<compile_context>
chip_gen: v7x
topology: tpu7x:2x2x1
jax: 0.10.0
libtpu: 0.0.40
codegen_flags: <defaults>
</compile_context>

<pallas_src>
import functools

import jax
import jax.numpy as jnp
import numpy as np
from jax.experimental import pallas as pl
from jax.experimental.pallas import tpu as pltpu


# ----------------------------- Pallas kernels -----------------------------

def _linear_kernel(x_ref, w_ref, b_ref, o_ref, *, relu):
    y = jnp.dot(x_ref[...], w_ref[...], preferred_element_type=jnp.float32) + b_ref[...]
    if relu:
        y = jnp.maximum(y, 0.0)
    o_ref[...] = y.astype(o_ref.dtype)


def _linear_residual_kernel(x_ref, w_ref, b_ref, r_ref, o_ref, *, relu_pre, relu_post):
    y = jnp.dot(x_ref[...], w_ref[...], preferred_element_type=jnp.float32) + b_ref[...]
    if relu_pre:
        y = jnp.maximum(y, 0.0)
    y = y + r_ref[...]
    if relu_post:
        y = jnp.maximum(y, 0.0)
    o_ref[...] = y.astype(o_ref.dtype)


def _attn_block_kernel(h_ref, hg_ref, pos_ref, mask_ref, id_ref,
                       qw_ref, qb_ref, kvw_ref, kvb_ref,
                       pbw1_ref, pbb1_ref, pbw2_ref, pbb2_ref,
                       wew1_ref, web1_ref, wew2e_ref, web2e_ref,
                       n2s_ref, n2t_ref, fc3w_ref, fc3b_ref,
                       o_ref, *, groups):
    S, tn, C = hg_ref.shape
    G = groups

    # ---- query projection (Linear + folded BN + ReLU) ----
    h = h_ref[...]                                                    # (tn, C)
    q = jnp.maximum(
        jnp.dot(h, qw_ref[...], preferred_element_type=jnp.float32) + qb_ref[...], 0.0)

    # ---- packed key|value projection on the gathered features, one MXU pass ----
    hg2 = hg_ref[...].reshape(S * tn, C)
    kv = jnp.dot(hg2, kvw_ref[...], preferred_element_type=jnp.float32) + kvb_ref[...]
    key = jnp.maximum(kv[:, :C], 0.0)                                 # linear_k (+BN+ReLU)
    val = kv[:, C:]                                                   # linear_v

    # ---- pe_bias MLP: Linear(3,C)+BN+ReLU on the VPU (K=3), then Linear(C,C) on MXU ----
    pos2 = pos_ref[...].reshape(S * tn, 3)
    w1 = pbw1_ref[...]                                                # (3, C)
    hmid = (pos2[:, 0:1] * w1[0:1, :] + pos2[:, 1:2] * w1[1:2, :]
            + pos2[:, 2:3] * w1[2:3, :] + pbb1_ref[...])
    hmid = jnp.maximum(hmid, 0.0)
    peb = jnp.dot(hmid, pbw2_ref[...], preferred_element_type=jnp.float32) + pbb2_ref[...]

    # relation_qk = key - q + peb ; value = value + peb   (neighbour-major 3D)
    rel = (key + peb).reshape(S, tn, C) - q[None, :, :]
    val3 = (val + peb).reshape(S, tn, C)

    # ---- weight encoding: Linear(C,G)+BN+ReLU on MXU, then the tiny GxG layer as
    #      VPU FMAs with the group-expansion matrix folded in (lane-dense C-wide) ----
    hw = jnp.maximum(
        jnp.dot(rel.reshape(S * tn, C), wew1_ref[...],
                preferred_element_type=jnp.float32) + web1_ref[...], 0.0)   # (S*tn, G)
    w2e = wew2e_ref[...]                                              # (G, C) expanded
    w = hw[:, 0:1] * w2e[0:1, :]
    for g in range(1, G):
        w = w + hw[:, g:g + 1] * w2e[g:g + 1, :]
    w = (w + web2e_ref[...]).reshape(S, tn, C)

    # ---- softmax over the neighbour axis (leading), then mask (post-softmax, as in PTv2) ----
    w = w - jnp.max(w, axis=0, keepdims=True)
    w = jnp.exp(w)
    w = w / jnp.sum(w, axis=0, keepdims=True)
    w = w * mask_ref[...]                                             # (S, tn, 1) broadcast

    # ---- grouped weighted sum, single lane-dense (tn, C) result ----
    out = jnp.sum(val3 * w, axis=0)                                   # (tn, C)

    # ---- norm2 affine + ReLU, then fused fc3 (norm3 folded) + residual + ReLU ----
    out = jnp.maximum(out * n2s_ref[...] + n2t_ref[...], 0.0)
    y = jnp.dot(out, fc3w_ref[...], preferred_element_type=jnp.float32) + fc3b_ref[...]
    y = jnp.maximum(y + id_ref[...], 0.0)
    o_ref[...] = y.astype(o_ref.dtype)


# ----------------------------- Pallas wrappers -----------------------------

_CPARAMS_1D = pltpu.CompilerParams(dimension_semantics=("parallel",))


def _tile_n(n, pref=256):
    if n % 8 != 0:
        return n
    t = min(pref, n)
    while n % t != 0:
        t -= 8
    return t


def pallas_linear(x, w, b, relu):
    N, Cin = x.shape
    Cout = w.shape[1]
    tn = _tile_n(N, pref=512)
    return pl.pallas_call(
        functools.partial(_linear_kernel, relu=relu),
        out_shape=jax.ShapeDtypeStruct((N, Cout), x.dtype),
        grid=(N // tn,),
        in_specs=[
            pl.BlockSpec((tn, Cin), lambda i: (i, 0)),
            pl.BlockSpec((Cin, Cout), lambda i: (0, 0)),
            pl.BlockSpec((1, Cout), lambda i: (0, 0)),
        ],
        out_specs=pl.BlockSpec((tn, Cout), lambda i: (i, 0)),
        compiler_params=_CPARAMS_1D,
    )(x, w, b)


def pallas_linear_residual(x, w, b, res, *, relu_pre, relu_post):
    N, Cin = x.shape
    Cout = w.shape[1]
    tn = _tile_n(N, pref=512)
    return pl.pallas_call(
        functools.partial(_linear_residual_kernel, relu_pre=relu_pre, relu_post=relu_post),
        out_shape=jax.ShapeDtypeStruct((N, Cout), x.dtype),
        grid=(N // tn,),
        in_specs=[
            pl.BlockSpec((tn, Cin), lambda i: (i, 0)),
            pl.BlockSpec((Cin, Cout), lambda i: (0, 0)),
            pl.BlockSpec((1, Cout), lambda i: (0, 0)),
            pl.BlockSpec((tn, Cout), lambda i: (i, 0)),
        ],
        out_specs=pl.BlockSpec((tn, Cout), lambda i: (i, 0)),
        compiler_params=_CPARAMS_1D,
    )(x, w, b, res)


def pallas_attention_block(h, h_g, pos, mask, identity, bp, groups):
    """q/k/v + GVA + norm2 + relu + fc3/norm3 + residual + relu in one kernel."""
    ap = bp['attn']
    S, N, C = h_g.shape
    G = groups

    # pad the point axis to a multiple of 8 so in-kernel reshapes stay layout-trivial
    Np = ((N + 7) // 8) * 8
    if Np != N:
        pad = Np - N
        h = jnp.pad(h, ((0, pad), (0, 0)))
        identity = jnp.pad(identity, ((0, pad), (0, 0)))
        h_g = jnp.pad(h_g, ((0, 0), (0, pad), (0, 0)))
        pos = jnp.pad(pos, ((0, 0), (0, pad), (0, 0)))
        mask = jnp.pad(mask, ((0, 0), (0, pad), (0, 0)))

    tn = _tile_n(Np, pref=128)
    rep = lambda i: (0, 0)
    out = pl.pallas_call(
        functools.partial(_attn_block_kernel, groups=groups),
        out_shape=jax.ShapeDtypeStruct((Np, C), h.dtype),
        grid=(Np // tn,),
        in_specs=[
            pl.BlockSpec((tn, C), lambda i: (i, 0)),          # h (fc1 output)
            pl.BlockSpec((S, tn, C), lambda i: (0, i, 0)),    # gathered h (neighbour-major)
            pl.BlockSpec((S, tn, 3), lambda i: (0, i, 0)),    # grouped relative xyz
            pl.BlockSpec((S, tn, 1), lambda i: (0, i, 0)),    # neighbour mask
            pl.BlockSpec((tn, C), lambda i: (i, 0)),          # block residual (identity)
            pl.BlockSpec((C, C), rep), pl.BlockSpec((1, C), rep),          # q
            pl.BlockSpec((C, 2 * C), rep), pl.BlockSpec((1, 2 * C), rep),  # packed k|v
            pl.BlockSpec((3, C), rep), pl.BlockSpec((1, C), rep),          # pe_bias layer 1
            pl.BlockSpec((C, C), rep), pl.BlockSpec((1, C), rep),          # pe_bias layer 2
            pl.BlockSpec((C, G), rep), pl.BlockSpec((1, G), rep),          # weight enc layer 1
            pl.BlockSpec((G, C), rep), pl.BlockSpec((1, C), rep),          # weight enc layer 2 (expanded)
            pl.BlockSpec((1, C), rep), pl.BlockSpec((1, C), rep),          # norm2 affine
            pl.BlockSpec((C, C), rep), pl.BlockSpec((1, C), rep),          # fc3 (+ norm3 folded)
        ],
        out_specs=pl.BlockSpec((tn, C), lambda i: (i, 0)),
        compiler_params=_CPARAMS_1D,
    )(h, h_g, pos, mask, identity,
      ap['q_w'], ap['q_b'], ap['kv_w'], ap['kv_b'],
      ap['pb_w1'], ap['pb_b1'], ap['pb_w2'], ap['pb_b2'],
      ap['we_w1'], ap['we_b1'], ap['we_w2e'], ap['we_b2e'],
      ap['n2_scale'], ap['n2_shift'],
      bp['fc3_w'], bp['fc3_b'])
    return out[:N]


# -------------------------- pure-JAX reference ops --------------------------

def ref_linear(x, w, b, relu):
    y = x @ w + b
    return jnp.maximum(y, 0.0) if relu else y


def ref_linear_residual(x, w, b, res, *, relu_pre, relu_post):
    y = x @ w + b
    if relu_pre:
        y = jnp.maximum(y, 0.0)
    y = y + res
    if relu_post:
        y = jnp.maximum(y, 0.0)
    return y


def ref_attention_block(h, h_g, pos, mask, identity, bp, groups):
    # h: (N, C); h_g/pos/mask: neighbour-major (S, N, ...)
    ap = bp['attn']
    S, N, C = h_g.shape
    q = jnp.maximum(h @ ap['q_w'] + ap['q_b'], 0.0)
    kv = h_g @ ap['kv_w'] + ap['kv_b']
    key, val = jnp.maximum(kv[..., :C], 0.0), kv[..., C:]
    hmid = jnp.maximum(pos @ ap['pb_w1'] + ap['pb_b1'], 0.0)
    peb = hmid @ ap['pb_w2'] + ap['pb_b2']
    rel = key - q[None, :, :] + peb
    val = val + peb
    hw = jnp.maximum(rel @ ap['we_w1'] + ap['we_b1'], 0.0)
    w = hw @ ap['we_w2'] + ap['we_b2']
    w = jax.nn.softmax(w, axis=0) * mask
    val = val.reshape(S, N, groups, C // groups)
    out = jnp.einsum('sngi,sng->ngi', val, w).reshape(N, C)
    a = jnp.maximum(out * ap['n2_scale'] + ap['n2_shift'], 0.0)
    y = a @ bp['fc3_w'] + bp['fc3_b']
    return jnp.maximum(y + identity, 0.0)


# ----------------------------- Decoder forward -----------------------------

def decoder_forward(params, points, skip_points, cluster, cfg, ops):
    coord, feat, offset = points
    s_coord, s_feat, s_offset = skip_points
    lin, lin_res, attn_block = ops

    # --- UnpoolWithSkip (backend='map'): proj + cluster map + proj_skip + add ---
    up = lin(feat, params['proj_w'], params['proj_b'], True)[cluster]
    feat = lin_res(s_feat, params['proj_skip_w'], params['proj_skip_b'], up,
                   relu_pre=True, relu_post=False)
    coord, offset = s_coord, s_offset

    # --- knn_query over the fine coordinates (plain-JAX glue) ---
    # TODO(synk): data-dependent knn / grouping done with argsort + fancy indexing.
    N = coord.shape[0]
    batch_idx = jnp.searchsorted(offset, jnp.arange(N), side='right')
    d2 = jnp.sum((coord[:, None, :] - coord[None, :, :]) ** 2, axis=-1)
    d2 = jnp.where(batch_idx[:, None] == batch_idx[None, :], d2, jnp.inf)
    ref_idx = jnp.argsort(d2, axis=-1)[:, :cfg['neighbours']].astype(jnp.int32)
    ref_idx_t = ref_idx.T                                        # (S, N) neighbour-major
    mask = (ref_idx_t >= 0).astype(feat.dtype)[:, :, None]       # torch.sign(ref_idx + 1)
    pos = coord[ref_idx_t] - coord[None, :, :]                   # (S, N, 3) grouped rel xyz

    # --- BlockSequence ---
    for bp in params['blocks']:
        identity = feat
        h = lin(feat, bp['fc1_w'], bp['fc1_b'], True)            # fc1 + norm1 + relu
        h_g = h[ref_idx_t]                                       # pointops.grouping (S, N, C)
        feat = attn_block(h, h_g, pos, mask, identity, bp, cfg['groups'])
    return coord, feat, offset


# ------------------------------ parameter init ------------------------------

def init_params(key, cfg):
    Cin, Cskip, C, G, depth = (cfg['in_channels'], cfg['skip_channels'],
                               cfg['embed_channels'], cfg['groups'], cfg['depth'])
    I = C // G
    keys = iter(jax.random.split(key, 512))

    def nrm(shape, s=0.1):
        return s * jax.random.normal(next(keys), shape, jnp.float32)

    def bn(c):
        return dict(gamma=1.0 + 0.1 * jax.random.normal(next(keys), (c,), jnp.float32),
                    beta=nrm((c,)),
                    mean=nrm((c,)),
                    var=1.0 + 0.1 * jax.random.uniform(next(keys), (c,), jnp.float32))

    def fold(w, b, s):   # fold eval-mode BN affine into the preceding Linear
        sc = s['gamma'] / jnp.sqrt(s['var'] + 1e-5)
        return w * sc[None, :], (b * sc + s['beta'] - s['mean'] * sc).reshape(1, -1)

    # group-expansion matrix: E[g, c] = 1 if c // I == g  (folded into we layer 2)
    E = jnp.repeat(jnp.eye(G, dtype=jnp.float32), I, axis=1)      # (G, C)

    p = {}
    p['proj_w'], p['proj_b'] = fold(nrm((Cin, C)), nrm((C,)), bn(C))
    p['proj_skip_w'], p['proj_skip_b'] = fold(nrm((Cskip, C)), nrm((C,)), bn(C))
    blocks = []
    for _ in range(depth):
        bp = {}
        bp['fc1_w'], bp['fc1_b'] = fold(nrm((C, C)), jnp.zeros((C,), jnp.float32), bn(C))
        ap = {}
        ap['q_w'], ap['q_b'] = fold(nrm((C, C)), nrm((C,)), bn(C))
        k_w, k_b = fold(nrm((C, C)), nrm((C,)), bn(C))
        v_w, v_b = nrm((C, C)), nrm((C,)).reshape(1, C)
        ap['kv_w'] = jnp.concatenate([k_w, v_w], axis=1)          # packed (C, 2C)
        ap['kv_b'] = jnp.concatenate([k_b, v_b], axis=1)          # packed (1, 2C)
        ap['pb_w1'], ap['pb_b1'] = fold(nrm((3, C)), nrm((C,)), bn(C))
        ap['pb_w2'], ap['pb_b2'] = nrm((C, C)), nrm((C,)).reshape(1, C)
        ap['we_w1'], ap['we_b1'] = fold(nrm((C, G)), nrm((G,)), bn(G))
        ap['we_w2'], ap['we_b2'] = nrm((G, G)), nrm((G,)).reshape(1, G)
        ap['we_w2e'] = ap['we_w2'] @ E                            # (G, C) lane-dense form
        ap['we_b2e'] = ap['we_b2'] @ E                            # (1, C)
        n2 = bn(C)
        sc2 = n2['gamma'] / jnp.sqrt(n2['var'] + 1e-5)
        ap['n2_scale'] = sc2.reshape(1, C)
        ap['n2_shift'] = (n2['beta'] - n2['mean'] * sc2).reshape(1, C)
        bp['attn'] = ap
        bp['fc3_w'], bp['fc3_b'] = fold(nrm((C, C)), jnp.zeros((C,), jnp.float32), bn(C))
        blocks.append(bp)
    p['blocks'] = blocks
    return p


# ----------------------------------- main -----------------------------------

if __name__ == "__main__":
    cfg = dict(in_channels=64, skip_channels=32, embed_channels=32,
               groups=4, depth=2, neighbours=8)

    Nc, Nf = 16, 64
    key = jax.random.PRNGKey(0)
    k = iter(jax.random.split(key, 16))

    params = init_params(next(k), cfg)

    coarse_coord = jax.random.uniform(next(k), (Nc, 3), jnp.float32)
    coarse_feat = jax.random.normal(next(k), (Nc, cfg['in_channels']), jnp.float32)
    coarse_offset = jnp.array([8, 16], jnp.int32)

    fine_coord = jax.random.uniform(next(k), (Nf, 3), jnp.float32)
    fine_feat = jax.random.normal(next(k), (Nf, cfg['skip_channels']), jnp.float32)
    fine_offset = jnp.array([32, 64], jnp.int32)

    # each fine point maps to a coarse cluster within its own batch
    cluster = jnp.concatenate([
        jax.random.randint(next(k), (32,), 0, 8),
        jax.random.randint(next(k), (32,), 8, 16)]).astype(jnp.int32)

    points = (coarse_coord, coarse_feat, coarse_offset)
    skip_points = (fine_coord, fine_feat, fine_offset)

    pallas_ops = (pallas_linear, pallas_linear_residual, pallas_attention_block)
    ref_ops = (ref_linear, ref_linear_residual, ref_attention_block)

    pallas_fwd = jax.jit(functools.partial(decoder_forward, cfg=cfg, ops=pallas_ops))
    ref_fwd = jax.jit(functools.partial(decoder_forward, cfg=cfg, ops=ref_ops))

    _, out_feat, _ = pallas_fwd(params, points, skip_points, cluster)
    out_feat = jax.block_until_ready(out_feat)

    _, ref_feat, _ = ref_fwd(params, points, skip_points, cluster)
    ref_feat = jax.block_until_ready(ref_feat)

    np.testing.assert_allclose(np.asarray(out_feat), np.asarray(ref_feat),
                               rtol=1e-4, atol=1e-4)
    assert out_feat.shape == (Nf, cfg['embed_channels'])
    print("KERNEL_OK")
</pallas_src>

<mosaic_0001>
module attributes {stable_mosaic.version = 11 : i64} {
  func.func @_linear_kernel(%arg0: i32, %arg1: memref<16x64xf32, #tpu.memory_space<vmem>>, %arg2: memref<64x32xf32, #tpu.memory_space<vmem>>, %arg3: memref<1x32xf32, #tpu.memory_space<vmem>>, %arg4: memref<16x32xf32, #tpu.memory_space<vmem>>) attributes {dimension_semantics = [#tpu.dimension_semantics<parallel>], iteration_bounds = array<i64: 1>, scalar_prefetch = 0 : i64, scratch_operands = 0 : i64, tpu.core_type = #tpu.core_type<tc>, window_params = [{transform_indices = @transform_0, window_bounds = array<i64: 16, 64>}, {pipeline_mode = #tpu.pipeline_mode<synchronous>, transform_indices = @transform_1, window_bounds = array<i64: 64, 32>}, {pipeline_mode = #tpu.pipeline_mode<synchronous>, transform_indices = @transform_2, window_bounds = array<i64: 1, 32>}, {transform_indices = @transform_3, window_bounds = array<i64: 16, 32>}]} {
    %c0 = arith.constant 0 : index
    %c0_0 = arith.constant 0 : index
    %0 = vector.load %arg1[%c0, %c0_0] : memref<16x64xf32, #tpu.memory_space<vmem>>, vector<16x64xf32>
    %c0_1 = arith.constant 0 : index
    %c0_2 = arith.constant 0 : index
    %1 = vector.load %arg2[%c0_1, %c0_2] : memref<64x32xf32, #tpu.memory_space<vmem>>, vector<64x32xf32>
    %cst = arith.constant dense<0.000000e+00> : vector<16x32xf32>
    %2 = tpu.matmul %0, %1, %cst {dimension_numbers = #tpu.dot_dimension_numbers<[1], [0], [0], [1], [0, 0, 1, 1], [], []>} : vector<16x64xf32>, vector<64x32xf32>, vector<16x32xf32> -> vector<16x32xf32>
    %c0_3 = arith.constant 0 : index
    %c0_4 = arith.constant 0 : index
    %3 = vector.load %arg3[%c0_3, %c0_4] : memref<1x32xf32, #tpu.memory_space<vmem>>, vector<1x32xf32>
    %4 = vector.broadcast %3 : vector<1x32xf32> to vector<16x32xf32>
    %5 = arith.addf %2, %4 : vector<16x32xf32>
    %cst_5 = arith.constant 0.000000e+00 : f32
    %6 = vector.broadcast %cst_5 : f32 to vector<16x32xf32>
    %7 = arith.maximumf %5, %6 : vector<16x32xf32>
    %c0_6 = arith.constant 0 : index
    %c0_7 = arith.constant 0 : index
    %8 = vector.load %arg4[%c0_6, %c0_7] : memref<16x32xf32, #tpu.memory_space<vmem>>, vector<16x32xf32>
    tpu.vector_store %arg4[%c0_6, %c0_7], %7 {strides = array<i32>} : memref<16x32xf32, #tpu.memory_space<vmem>>, vector<16x32xf32>,
    return
  }
  func.func @transform_0(%arg0: i32) -> (i32, i32) {
    %c0_i32 = arith.constant 0 : i32
    %c0_i32_0 = arith.constant 0 : i32
    return %arg0, %c0_i32 : i32, i32
  }
  func.func @transform_1(%arg0: i32) -> (i32, i32) {
    %c0_i32 = arith.constant 0 : i32
    %c0_i32_0 = arith.constant 0 : i32
    %c0_i32_1 = arith.constant 0 : i32
    return %c0_i32, %c0_i32_0 : i32, i32
  }
  func.func @transform_2(%arg0: i32) -> (i32, i32) {
    %c0_i32 = arith.constant 0 : i32
    %c0_i32_0 = arith.constant 0 : i32
    %c0_i32_1 = arith.constant 0 : i32
    return %c0_i32, %c0_i32_0 : i32, i32
  }
  func.func @transform_3(%arg0: i32) -> (i32, i32) {
    %c0_i32 = arith.constant 0 : i32
    %c0_i32_0 = arith.constant 0 : i32
    return %arg0, %c0_i32 : i32, i32
  }
}

module attributes {stable_mosaic.version = 11 : i64} {
  func.func @_linear_kernel(%arg0: i32, %arg1: memref<64x32xf32, #tpu.memory_space<vmem>>, %arg2: memref<32x32xf32, #tpu.memory_space<vmem>>, %arg3: memref<1x32xf32, #tpu.memory_space<vmem>>, %arg4: memref<64x32xf32, #tpu.memory_space<vmem>>) attributes {dimension_semantics = [#tpu.dimension_semantics<parallel>], iteration_bounds = array<i64: 1>, scalar_prefetch = 0 : i64, scratch_operands = 0 : i64, tpu.core_type = #tpu.core_type<tc>, window_params = [{transform_indices = @transform_0, window_bounds = array<i64: 64, 32>}, {pipeline_mode = #tpu.pipeline_mode<synchronous>, transform_indices = @transform_1, window_bounds = array<i64: 32, 32>}, {pipeline_mode = #tpu.pipeline_mode<synchronous>, transform_indices = @transform_2, window_bounds = array<i64: 1, 32>}, {transform_indices = @transform_3, window_bounds = array<i64: 64, 32>}]} {
    %c0 = arith.constant 0 : index
    %c0_0 = arith.constant 0 : index
    %0 = vector.load %arg1[%c0, %c0_0] : memref<64x32xf32, #tpu.memory_space<vmem>>, vector<64x32xf32>
    %c0_1 = arith.constant 0 : index
    %c0_2 = arith.constant 0 : index
    %1 = vector.load %arg2[%c0_1, %c0_2] : memref<32x32xf32, #tpu.memory_space<vmem>>, vector<32x32xf32>
    %cst = arith.constant dense<0.000000e+00> : vector<64x32xf32>
    %2 = tpu.matmul %0, %1, %cst {dimension_numbers = #tpu.dot_dimension_numbers<[1], [0], [0], [1], [0, 0, 1, 1], [], []>} : vector<64x32xf32>, vector<32x32xf32>, vector<64x32xf32> -> vector<64x32xf32>
    %c0_3 = arith.constant 0 : index
    %c0_4 = arith.constant 0 : index
    %3 = vector.load %arg3[%c0_3, %c0_4] : memref<1x32xf32, #tpu.memory_space<vmem>>, vector<1x32xf32>
    %4 = vector.broadcast %3 : vector<1x32xf32> to vector<64x32xf32>
    %5 = arith.addf %2, %4 : vector<64x32xf32>
    %cst_5 = arith.constant 0.000000e+00 : f32
    %6 = vector.broadcast %cst_5 : f32 to vector<64x32xf32>
    %7 = arith.maximumf %5, %6 : vector<64x32xf32>
    %c0_6 = arith.constant 0 : index
    %c0_7 = arith.constant 0 : index
    %8 = vector.load %arg4[%c0_6, %c0_7] : memref<64x32xf32, #tpu.memory_space<vmem>>, vector<64x32xf32>
    tpu.vector_store %arg4[%c0_6, %c0_7], %7 {strides = array<i32>} : memref<64x32xf32, #tpu.memory_space<vmem>>, vector<64x32xf32>,
    return
  }
  func.func @transform_0(%arg0: i32) -> (i32, i32) {
    %c0_i32 = arith.constant 0 : i32
    %c0_i32_0 = arith.constant 0 : i32
    return %arg0, %c0_i32 : i32, i32
  }
  func.func @transform_1(%arg0: i32) -> (i32, i32) {
    %c0_i32 = arith.constant 0 : i32
    %c0_i32_0 = arith.constant 0 : i32
    %c0_i32_1 = arith.constant 0 : i32
    return %c0_i32, %c0_i32_0 : i32, i32
  }
  func.func @transform_2(%arg0: i32) -> (i32, i32) {
    %c0_i32 = arith.constant 0 : i32
    %c0_i32_0 = arith.constant 0 : i32
    %c0_i32_1 = arith.constant 0 : i32
    return %c0_i32, %c0_i32_0 : i32, i32
  }
  func.func @transform_3(%arg0: i32) -> (i32, i32) {
    %c0_i32 = arith.constant 0 : i32
    %c0_i32_0 = arith.constant 0 : i32
    return %arg0, %c0_i32 : i32, i32
  }
}

module attributes {stable_mosaic.version = 11 : i64} {
  func.func @_linear_residual_kernel(%arg0: i32, %arg1: memref<64x32xf32, #tpu.memory_space<vmem>>, %arg2: memref<32x32xf32, #tpu.memory_space<vmem>>, %arg3: memref<1x32xf32, #tpu.memory_space<vmem>>, %arg4: memref<64x32xf32, #tpu.memory_space<vmem>>, %arg5: memref<64x32xf32, #tpu.memory_space<vmem>>) attributes {dimension_semantics = [#tpu.dimension_semantics<parallel>], iteration_bounds = array<i64: 1>, scalar_prefetch = 0 : i64, scratch_operands = 0 : i64, tpu.core_type = #tpu.core_type<tc>, window_params = [{transform_indices = @transform_0, window_bounds = array<i64: 64, 32>}, {pipeline_mode = #tpu.pipeline_mode<synchronous>, transform_indices = @transform_1, window_bounds = array<i64: 32, 32>}, {pipeline_mode = #tpu.pipeline_mode<synchronous>, transform_indices = @transform_2, window_bounds = array<i64: 1, 32>}, {transform_indices = @transform_3, window_bounds = array<i64: 64, 32>}, {transform_indices = @transform_4, window_bounds = array<i64: 64, 32>}]} {
    %c0 = arith.constant 0 : index
    %c0_0 = arith.constant 0 : index
    %0 = vector.load %arg1[%c0, %c0_0] : memref<64x32xf32, #tpu.memory_space<vmem>>, vector<64x32xf32>
    %c0_1 = arith.constant 0 : index
    %c0_2 = arith.constant 0 : index
    %1 = vector.load %arg2[%c0_1, %c0_2] : memref<32x32xf32, #tpu.memory_space<vmem>>, vector<32x32xf32>
    %cst = arith.constant dense<0.000000e+00> : vector<64x32xf32>
    %2 = tpu.matmul %0, %1, %cst {dimension_numbers = #tpu.dot_dimension_numbers<[1], [0], [0], [1], [0, 0, 1, 1], [], []>} : vector<64x32xf32>, vector<32x32xf32>, vector<64x32xf32> -> vector<64x32xf32>
    %c0_3 = arith.constant 0 : index
    %c0_4 = arith.constant 0 : index
    %3 = vector.load %arg3[%c0_3, %c0_4] : memref<1x32xf32, #tpu.memory_space<vmem>>, vector<1x32xf32>
    %4 = vector.broadcast %3 : vector<1x32xf32> to vector<64x32xf32>
    %5 = arith.addf %2, %4 : vector<64x32xf32>
    %cst_5 = arith.constant 0.000000e+00 : f32
    %6 = vector.broadcast %cst_5 : f32 to vector<64x32xf32>
    %7 = arith.maximumf %5, %6 : vector<64x32xf32>
    %c0_6 = arith.constant 0 : index
    %c0_7 = arith.constant 0 : index
    %8 = vector.load %arg4[%c0_6, %c0_7] : memref<64x32xf32, #tpu.memory_space<vmem>>, vector<64x32xf32>
    %9 = arith.addf %7, %8 : vector<64x32xf32>
    %c0_8 = arith.constant 0 : index
    %c0_9 = arith.constant 0 : index
    %10 = vector.load %arg5[%c0_8, %c0_9] : memref<64x32xf32, #tpu.memory_space<vmem>>, vector<64x32xf32>
    tpu.vector_store %arg5[%c0_8, %c0_9], %9 {strides = array<i32>} : memref<64x32xf32, #tpu.memory_space<vmem>>, vector<64x32xf32>,
    return
  }
  func.func @transform_0(%arg0: i32) -> (i32, i32) {
    %c0_i32 = arith.constant 0 : i32
    %c0_i32_0 = arith.constant 0 : i32
    return %arg0, %c0_i32 : i32, i32
  }
  func.func @transform_1(%arg0: i32) -> (i32, i32) {
    %c0_i32 = arith.constant 0 : i32
    %c0_i32_0 = arith.constant 0 : i32
    %c0_i32_1 = arith.constant 0 : i32
    return %c0_i32, %c0_i32_0 : i32, i32
  }
  func.func @transform_2(%arg0: i32) -> (i32, i32) {
    %c0_i32 = arith.constant 0 : i32
    %c0_i32_0 = arith.constant 0 : i32
    %c0_i32_1 = arith.constant 0 : i32
    return %c0_i32, %c0_i32_0 : i32, i32
  }
  func.func @transform_3(%arg0: i32) -> (i32, i32) {
    %c0_i32 = arith.constant 0 : i32
    %c0_i32_0 = arith.constant 0 : i32
    return %arg0, %c0_i32 : i32, i32
  }
  func.func @transform_4(%arg0: i32) -> (i32, i32) {
    %c0_i32 = arith.constant 0 : i32
    %c0_i32_0 = arith.constant 0 : i32
    return %arg0, %c0_i32 : i32, i32
  }
}

module attributes {stable_mosaic.version = 11 : i64} {
  func.func @_attn_block_kernel(%arg0: i32, %arg1: memref<64x32xf32, #tpu.memory_space<vmem>>, %arg2: memref<8x64x32xf32, #tpu.memory_space<vmem>>, %arg3: memref<8x64x3xf32, #tpu.memory_space<vmem>>, %arg4: memref<8x64x1xf32, #tpu.memory_space<vmem>>, %arg5: memref<64x32xf32, #tpu.memory_space<vmem>>, %arg6: memref<32x32xf32, #tpu.memory_space<vmem>>, %arg7: memref<1x32xf32, #tpu.memory_space<vmem>>, %arg8: memref<32x64xf32, #tpu.memory_space<vmem>>, %arg9: memref<1x64xf32, #tpu.memory_space<vmem>>, %arg10: memref<3x32xf32, #tpu.memory_space<vmem>>, %arg11: memref<1x32xf32, #tpu.memory_space<vmem>>, %arg12: memref<32x32xf32, #tpu.memory_space<vmem>>, %arg13: memref<1x32xf32, #tpu.memory_space<vmem>>, %arg14: memref<32x4xf32, #tpu.memory_space<vmem>>, %arg15: memref<1x4xf32, #tpu.memory_space<vmem>>, %arg16: memref<4x32xf32, #tpu.memory_space<vmem>>, %arg17: memref<1x32xf32, #tpu.memory_space<vmem>>, %arg18: memref<1x32xf32, #tpu.memory_space<vmem>>, %arg19: memref<1x32xf32, #tpu.memory_space<vmem>>, %arg20: memref<32x32xf32, #tpu.memory_space<vmem>>, %arg21: memref<1x32xf32, #tpu.memory_space<vmem>>, %arg22: memref<64x32xf32, #tpu.memory_space<vmem>>) attributes {dimension_semantics = [#tpu.dimension_semantics<parallel>], iteration_bounds = array<i64: 1>, scalar_prefetch = 0 : i64, scratch_operands = 0 : i64, tpu.core_type = #tpu.core_type<tc>, window_params = [{transform_indices = @transform_0, window_bounds = array<i64: 64, 32>}, {transform_indices = @transform_1, window_bounds = array<i64: 8, 64, 32>}, {transform_indices = @transform_2, window_bounds = array<i64: 8, 64, 3>}, {transform_indices = @transform_3, window_bounds = array<i64: 8, 64, 1>}, {transform_indices = @transform_4, window_bounds = array<i64: 64, 32>}, {pipeline_mode = #tpu.pipeline_mode<synchronous>, transform_indices = @transform_5, window_bounds = array<i64: 32, 32>}, {pipeline_mode = #tpu.pipeline_mode<synchronous>, transform_indices = @transform_6, window_bounds = array<i64: 1, 32>}, {pipeline_mode = #tpu.pipeline_mode<synchronous>, transform_indices = @transform_7, window_bounds = array<i64: 32, 64>}, {pipeline_mode = #tpu.pipeline_mode<synchronous>, transform_indices = @transform_8, window_bounds = array<i64: 1, 64>}, {pipeline_mode = #tpu.pipeline_mode<synchronous>, transform_indices = @transform_9, window_bounds = array<i64: 3, 32>}, {pipeline_mode = #tpu.pipeline_mode<synchronous>, transform_indices = @transform_10, window_bounds = array<i64: 1, 32>}, {pipeline_mode = #tpu.pipeline_mode<synchronous>, transform_indices = @transform_11, window_bounds = array<i64: 32, 32>}, {pipeline_mode = #tpu.pipeline_mode<synchronous>, transform_indices = @transform_12, window_bounds = array<i64: 1, 32>}, {pipeline_mode = #tpu.pipeline_mode<synchronous>, transform_indices = @transform_13, window_bounds = array<i64: 32, 4>}, {pipeline_mode = #tpu.pipeline_mode<synchronous>, transform_indices = @transform_14, window_bounds = array<i64: 1, 4>}, {pipeline_mode = #tpu.pipeline_mode<synchronous>, transform_indices = @transform_15, window_bounds = array<i64: 4, 32>}, {pipeline_mode = #tpu.pipeline_mode<synchronous>, transform_indices = @transform_16, window_bounds = array<i64: 1, 32>}, {pipeline_mode = #tpu.pipeline_mode<synchronous>, transform_indices = @transform_17, window_bounds = array<i64: 1, 32>}, {pipeline_mode = #tpu.pipeline_mode<synchronous>, transform_indices = @transform_18, window_bounds = array<i64: 1, 32>}, {pipeline_mode = #tpu.pipeline_mode<synchronous>, transform_indices = @transform_19, window_bounds = array<i64: 32, 32>}, {pipeline_mode = #tpu.pipeline_mode<synchronous>, transform_indices = @transform_20, window_bounds = array<i64: 1, 32>}, {transform_indices = @transform_21, window_bounds = array<i64: 64, 32>}]} {
    %c0 = arith.constant 0 : index
    %c0_0 = arith.constant 0 : index
    %0 = vector.load %arg1[%c0, %c0_0] : memref<64x32xf32, #tpu.memory_space<vmem>>, vector<64x32xf32>
    %c0_1 = arith.constant 0 : index
    %c0_2 = arith.constant 0 : index
    %1 = vector.load %arg6[%c0_1, %c0_2] : memref<32x32xf32, #tpu.memory_space<vmem>>, vector<32x32xf32>
    %cst = arith.constant dense<0.000000e+00> : vector<64x32xf32>
    %2 = tpu.matmul %0, %1, %cst {dimension_numbers = #tpu.dot_dimension_numbers<[1], [0], [0], [1], [0, 0, 1, 1], [], []>} : vector<64x32xf32>, vector<32x32xf32>, vector<64x32xf32> -> vector<64x32xf32>
    %c0_3 = arith.constant 0 : index
    %c0_4 = arith.constant 0 : index
    %3 = vector.load %arg7[%c0_3, %c0_4] : memref<1x32xf32, #tpu.memory_space<vmem>>, vector<1x32xf32>
    %4 = vector.broadcast %3 : vector<1x32xf32> to vector<64x32xf32>
    %5 = arith.addf %2, %4 : vector<64x32xf32>
    %cst_5 = arith.constant 0.000000e+00 : f32
    %6 = vector.broadcast %cst_5 : f32 to vector<64x32xf32>
    %7 = arith.maximumf %5, %6 : vector<64x32xf32>
    %c0_6 = arith.constant 0 : index
    %c0_7 = arith.constant 0 : index
    %c0_8 = arith.constant 0 : index
    %8 = vector.load %arg2[%c0_6, %c0_7, %c0_8] : memref<8x64x32xf32, #tpu.memory_space<vmem>>, vector<8x64x32xf32>
    %9 = vector.shape_cast %8 : vector<8x64x32xf32> to vector<512x32xf32>
    %c0_9 = arith.constant 0 : index
    %c0_10 = arith.constant 0 : index
    %10 = vector.load %arg8[%c0_9, %c0_10] : memref<32x64xf32, #tpu.memory_space<vmem>>, vector<32x64xf32>
    %cst_11 = arith.constant dense<0.000000e+00> : vector<512x64xf32>
    %11 = tpu.matmul %9, %10, %cst_11 {dimension_numbers = #tpu.dot_dimension_numbers<[1], [0], [0], [1], [0, 0, 1, 1], [], []>} : vector<512x32xf32>, vector<32x64xf32>, vector<512x64xf32> -> vector<512x64xf32>
    %c0_12 = arith.constant 0 : index
    %c0_13 = arith.constant 0 : index
    %12 = vector.load %arg9[%c0_12, %c0_13] : memref<1x64xf32, #tpu.memory_space<vmem>>, vector<1x64xf32>
    %13 = vector.broadcast %12 : vector<1x64xf32> to vector<512x64xf32>
    %14 = arith.addf %11, %13 : vector<512x64xf32>
    %15 = vector.extract_strided_slice %14 {offsets = [0, 0], sizes = [512, 32], strides = [1, 1]} : vector<512x64xf32> to vector<512x32xf32>
    %cst_14 = arith.constant 0.000000e+00 : f32
    %16 = vector.broadcast %cst_14 : f32 to vector<512x32xf32>
    %17 = arith.maximumf %15, %16 : vector<512x32xf32>
    %18 = vector.extract_strided_slice %14 {offsets = [0, 32], sizes = [512, 32], strides = [1, 1]} : vector<512x64xf32> to vector<512x32xf32>
    %c0_15 = arith.constant 0 : index
    %c0_16 = arith.constant 0 : index
    %c0_17 = arith.constant 0 : index
    %19 = vector.load %arg3[%c0_15, %c0_16, %c0_17] : memref<8x64x3xf32, #tpu.memory_space<vmem>>, vector<8x64x3xf32>
    %20 = vector.shape_cast %19 : vector<8x64x3xf32> to vector<512x3xf32>
    %c0_18 = arith.constant 0 : index
    %c0_19 = arith.constant 0 : index
    %21 = vector.load %arg10[%c0_18, %c0_19] : memref<3x32xf32, #tpu.memory_space<vmem>>, vector<3x32xf32>
    %22 = vector.extract_strided_slice %20 {offsets = [0, 0], sizes = [512, 1], strides = [1, 1]} : vector<512x3xf32> to vector<512x1xf32>
    %23 = vector.extract_strided_slice %21 {offsets = [0, 0], sizes = [1, 32], strides = [1, 1]} : vector<3x32xf32> to vector<1x32xf32>
    %24 = vector.broadcast %22 : vector<512x1xf32> to vector<512x32xf32>
    %25 = vector.broadcast %23 : vector<1x32xf32> to vector<512x32xf32>
    %26 = arith.mulf %24, %25 : vector<512x32xf32>
    %27 = vector.extract_strided_slice %20 {offsets = [0, 1], sizes = [512, 1], strides = [1, 1]} : vector<512x3xf32> to vector<512x1xf32>
    %28 = vector.extract_strided_slice %21 {offsets = [1, 0], sizes = [1, 32], strides = [1, 1]} : vector<3x32xf32> to vector<1x32xf32>
    %29 = vector.broadcast %27 : vector<512x1xf32> to vector<512x32xf32>
    %30 = vector.broadcast %28 : vector<1x32xf32> to vector<512x32xf32>
    %31 = arith.mulf %29, %30 : vector<512x32xf32>
    %32 = arith.addf %26, %31 : vector<512x32xf32>
    %33 = vector.extract_strided_slice %20 {offsets = [0, 2], sizes = [512, 1], strides = [1, 1]} : vector<512x3xf32> to vector<512x1xf32>
    %34 = vector.extract_strided_slice %21 {offsets = [2, 0], sizes = [1, 32], strides = [1, 1]} : vector<3x32xf32> to vector<1x32xf32>
    %35 = vector.broadcast %33 : vector<512x1xf32> to vector<512x32xf32>
    %36 = vector.broadcast %34 : vector<1x32xf32> to vector<512x32xf32>
    %37 = arith.mulf %35, %36 : vector<512x32xf32>
    %38 = arith.addf %32, %37 : vector<512x32xf32>
    %c0_20 = arith.constant 0 : index
    %c0_21 = arith.constant 0 : index
    %39 = vector.load %arg11[%c0_20, %c0_21] : memref<1x32xf32, #tpu.memory_space<vmem>>, vector<1x32xf32>
    %40 = vector.broadcast %39 : vector<1x32xf32> to vector<512x32xf32>
    %41 = arith.addf %38, %40 : vector<512x32xf32>
    %cst_22 = arith.constant 0.000000e+00 : f32
    %42 = vector.broadcast %cst_22 : f32 to vector<512x32xf32>
    %43 = arith.maximumf %41, %42 : vector<512x32xf32>
    %c0_23 = arith.constant 0 : index
    %c0_24 = arith.constant 0 : index
    %44 = vector.load %arg12[%c0_23, %c0_24] : memref<32x32xf32, #tpu.memory_space<vmem>>, vector<32x32xf32>
    %cst_25 = arith.constant dense<0.000000e+00> : vector<512x32xf32>
    %45 = tpu.matmul %43, %44, %cst_25 {dimension_numbers = #tpu.dot_dimension_numbers<[1], [0], [0], [1], [0, 0, 1, 1], [], []>} : vector<512x32xf32>, vector<32x32xf32>, vector<512x32xf32> -> vector<512x32xf32>
    %c0_26 = arith.constant 0 : index
    %c0_27 = arith.constant 0 : index
    %46 = vector.load %arg13[%c0_26, %c0_27] : memref<1x32xf32, #tpu.memory_space<vmem>>, vector<1x32xf32>
    %47 = vector.broadcast %46 : vector<1x32xf32> to vector<512x32xf32>
    %48 = arith.addf %45, %47 : vector<512x32xf32>
    %49 = arith.addf %17, %48 : vector<512x32xf32>
    %50 = vector.shape_cast %49 : vector<512x32xf32> to vector<8x64x32xf32>
    %51 = vector.shape_cast %7 : vector<64x32xf32> to vector<1x64x32xf32>
    %52 = vector.broadcast %51 : vector<1x64x32xf32> to vector<8x64x32xf32>
    %53 = arith.subf %50, %52 : vector<8x64x32xf32>
    %54 = arith.addf %18, %48 : vector<512x32xf32>
    %55 = vector.shape_cast %54 : vector<512x32xf32> to vector<8x64x32xf32>
    %56 = vector.shape_cast %53 : vector<8x64x32xf32> to vector<512x32xf32>
    %c0_28 = arith.constant 0 : index
    %c0_29 = arith.constant 0 : index
    %57 = vector.load %arg14[%c0_28, %c0_29] : memref<32x4xf32, #tpu.memory_space<vmem>>, vector<32x4xf32>
    %cst_30 = arith.constant dense<0.000000e+00> : vector<512x4xf32>
    %58 = tpu.matmul %56, %57, %cst_30 {dimension_numbers = #tpu.dot_dimension_numbers<[1], [0], [0], [1], [0, 0, 1, 1], [], []>} : vector<512x32xf32>, vector<32x4xf32>, vector<512x4xf32> -> vector<512x4xf32>
    %c0_31 = arith.constant 0 : index
    %c0_32 = arith.constant 0 : index
    %59 = vector.load %arg15[%c0_31, %c0_32] : memref<1x4xf32, #tpu.memory_space<vmem>>, vector<1x4xf32>
    %60 = vector.broadcast %59 : vector<1x4xf32> to vector<512x4xf32>
    %61 = arith.addf %58, %60 : vector<512x4xf32>
    %cst_33 = arith.constant 0.000000e+00 : f32
    %62 = vector.broadcast %cst_33 : f32 to vector<512x4xf32>
    %63 = arith.maximumf %61, %62 : vector<512x4xf32>
    %c0_34 = arith.constant 0 : index
    %c0_35 = arith.constant 0 : index
    %64 = vector.load %arg16[%c0_34, %c0_35] : memref<4x32xf32, #tpu.memory_space<vmem>>, vector<4x32xf32>
    %65 = vector.extract_strided_slice %63 {offsets = [0, 0], sizes = [512, 1], strides = [1, 1]} : vector<512x4xf32> to vector<512x1xf32>
    %66 = vector.extract_strided_slice %64 {offsets = [0, 0], sizes = [1, 32], strides = [1, 1]} : vector<4x32xf32> to vector<1x32xf32>
    %67 = vector.broadcast %65 : vector<512x1xf32> to vector<512x32xf32>
    %68 = vector.broadcast %66 : vector<1x32xf32> to vector<512x32xf32>
    %69 = arith.mulf %67, %68 : vector<512x32xf32>
    %70 = vector.extract_strided_slice %63 {offsets = [0, 1], sizes = [512, 1], strides = [1, 1]} : vector<512x4xf32> to vector<512x1xf32>
    %71 = vector.extract_strided_slice %64 {offsets = [1, 0], sizes = [1, 32], strides = [1, 1]} : vector<4x32xf32> to vector<1x32xf32>
    %72 = vector.broadcast %70 : vector<512x1xf32> to vector<512x32xf32>
    %73 = vector.broadcast %71 : vector<1x32xf32> to vector<512x32xf32>
    %74 = arith.mulf %72, %73 : vector<512x32xf32>
    %75 = arith.addf %69, %74 : vector<512x32xf32>
    %76 = vector.extract_strided_slice %63 {offsets = [0, 2], sizes = [512, 1], strides = [1, 1]} : vector<512x4xf32> to vector<512x1xf32>
    %77 = vector.extract_strided_slice %64 {offsets = [2, 0], sizes = [1, 32], strides = [1, 1]} : vector<4x32xf32> to vector<1x32xf32>
    %78 = vector.broadcast %76 : vector<512x1xf32> to vector<512x32xf32>
    %79 = vector.broadcast %77 : vector<1x32xf32> to vector<512x32xf32>
    %80 = arith.mulf %78, %79 : vector<512x32xf32>
    %81 = arith.addf %75, %80 : vector<512x32xf32>
    %82 = vector.extract_strided_slice %63 {offsets = [0, 3], sizes = [512, 1], strides = [1, 1]} : vector<512x4xf32> to vector<512x1xf32>
    %83 = vector.extract_strided_slice %64 {offsets = [3, 0], sizes = [1, 32], strides = [1, 1]} : vector<4x32xf32> to vector<1x32xf32>
    %84 = vector.broadcast %82 : vector<512x1xf32> to vector<512x32xf32>
    %85 = vector.broadcast %83 : vector<1x32xf32> to vector<512x32xf32>
    %86 = arith.mulf %84, %85 : vector<512x32xf32>
    %87 = arith.addf %81, %86 : vector<512x32xf32>
    %c0_36 = arith.constant 0 : index
    %c0_37 = arith.constant 0 : index
    %88 = vector.load %arg17[%c0_36, %c0_37] : memref<1x32xf32, #tpu.memory_space<vmem>>, vector<1x32xf32>
    %89 = vector.broadcast %88 : vector<1x32xf32> to vector<512x32xf32>
    %90 = arith.addf %87, %89 : vector<512x32xf32>
    %91 = vector.shape_cast %90 : vector<512x32xf32> to vector<8x64x32xf32>
    %cst_38 = arith.constant dense<0xFF800000> : vector<64x32xf32>
    %92 = vector.multi_reduction <maximumf>, %91, %cst_38 [0] : vector<8x64x32xf32> to vector<64x32xf32>
    %93 = vector.shape_cast %92 : vector<64x32xf32> to vector<1x64x32xf32>
    %94 = vector.broadcast %93 : vector<1x64x32xf32> to vector<8x64x32xf32>
    %95 = arith.subf %91, %94 : vector<8x64x32xf32>
    %96 = math.exp %95 : vector<8x64x32xf32>
    %cst_39 = arith.constant dense<0.000000e+00> : vector<64x32xf32>
    %97 = vector.multi_reduction <add>, %96, %cst_39 [0] : vector<8x64x32xf32> to vector<64x32xf32>
    %98 = vector.shape_cast %97 : vector<64x32xf32> to vector<1x64x32xf32>
    %99 = vector.broadcast %98 : vector<1x64x32xf32> to vector<8x64x32xf32>
    %100 = arith.divf %96, %99 : vector<8x64x32xf32>
    %c0_40 = arith.constant 0 : index
    %c0_41 = arith.constant 0 : index
    %c0_42 = arith.constant 0 : index
    %101 = vector.load %arg4[%c0_40, %c0_41, %c0_42] : memref<8x64x1xf32, #tpu.memory_space<vmem>>, vector<8x64x1xf32>
    %102 = vector.broadcast %101 : vector<8x64x1xf32> to vector<8x64x32xf32>
    %103 = arith.mulf %100, %102 : vector<8x64x32xf32>
    %104 = arith.mulf %55, %103 : vector<8x64x32xf32>
    %cst_43 = arith.constant dense<0.000000e+00> : vector<64x32xf32>
    %105 = vector.multi_reduction <add>, %104, %cst_43 [0] : vector<8x64x32xf32> to vector<64x32xf32>
    %c0_44 = arith.constant 0 : index
    %c0_45 = arith.constant 0 : index
    %106 = vector.load %arg18[%c0_44, %c0_45] : memref<1x32xf32, #tpu.memory_space<vmem>>, vector<1x32xf32>
    %107 = vector.broadcast %106 : vector<1x32xf32> to vector<64x32xf32>
    %108 = arith.mulf %105, %107 : vector<64x32xf32>
    %c0_46 = arith.constant 0 : index
    %c0_47 = arith.constant 0 : index
    %109 = vector.load %arg19[%c0_46, %c0_47] : memref<1x32xf32, #tpu.memory_space<vmem>>, vector<1x32xf32>
    %110 = vector.broadcast %109 : vector<1x32xf32> to vector<64x32xf32>
    %111 = arith.addf %108, %110 : vector<64x32xf32>
    %cst_48 = arith.constant 0.000000e+00 : f32
    %112 = vector.broadcast %cst_48 : f32 to vector<64x32xf32>
    %113 = arith.maximumf %111, %112 : vector<64x32xf32>
    %c0_49 = arith.constant 0 : index
    %c0_50 = arith.constant 0 : index
    %114 = vector.load %arg20[%c0_49, %c0_50] : memref<32x32xf32, #tpu.memory_space<vmem>>, vector<32x32xf32>
    %cst_51 = arith.constant dense<0.000000e+00> : vector<64x32xf32>
    %115 = tpu.matmul %113, %114, %cst_51 {dimension_numbers = #tpu.dot_dimension_numbers<[1], [0], [0], [1], [0, 0, 1, 1], [], []>} : vector<64x32xf32>, vector<32x32xf32>, vector<64x32xf32> -> vector<64x32xf32>
    %c0_52 = arith.constant 0 : index
    %c0_53 = arith.constant 0 : index
    %116 = vector.load %arg21[%c0_52, %c0_53] : memref<1x32xf32, #tpu.memory_space<vmem>>, vector<1x32xf32>
    %117 = vector.broadcast %116 : vector<1x32xf32> to vector<64x32xf32>
    %118 = arith.addf %115, %117 : vector<64x32xf32>
    %c0_54 = arith.constant 0 : index
    %c0_55 = arith.constant 0 : index
    %119 = vector.load %arg5[%c0_54, %c0_55] : memref<64x32xf32, #tpu.memory_space<vmem>>, vector<64x32xf32>
    %120 = arith.addf %118, %119 : vector<64x32xf32>
    %cst_56 = arith.constant 0.000000e+00 : f32
    %121 = vector.broadcast %cst_56 : f32 to vector<64x32xf32>
    %122 = arith.maximumf %120, %121 : vector<64x32xf32>
    %c0_57 = arith.constant 0 : index
    %c0_58 = arith.constant 0 : index
    %123 = vector.load %arg22[%c0_57, %c0_58] : memref<64x32xf32, #tpu.memory_space<vmem>>, vector<64x32xf32>
    tpu.vector_store %arg22[%c0_57, %c0_58], %122 {strides = array<i32>} : memref<64x32xf32, #tpu.memory_space<vmem>>, vector<64x32xf32>,
    return
  }
  func.func @transform_0(%arg0: i32) -> (i32, i32) {
    %c0_i32 = arith.constant 0 : i32
    %c0_i32_0 = arith.constant 0 : i32
    return %arg0, %c0_i32 : i32, i32
  }
  func.func @transform_1(%arg0: i32) -> (i32, i32, i32) {
    %c0_i32 = arith.constant 0 : i32
    %c0_i32_0 = arith.constant 0 : i32
    %c0_i32_1 = arith.constant 0 : i32
    return %c0_i32, %arg0, %c0_i32_0 : i32, i32, i32
  }
  func.func @transform_2(%arg0: i32) -> (i32, i32, i32) {
    %c0_i32 = arith.constant 0 : i32
    %c0_i32_0 = arith.constant 0 : i32
    %c0_i32_1 = arith.constant 0 : i32
    return %c0_i32, %arg0, %c0_i32_0 : i32, i32, i32
  }
  func.func @transform_3(%arg0: i32) -> (i32, i32, i32) {
    %c0_i32 = arith.constant 0 : i32
    %c0_i32_0 = arith.constant 0 : i32
    %c0_i32_1 = arith.constant 0 : i32
    return %c0_i32, %arg0, %c0_i32_0 : i32, i32, i32
  }
  func.func @transform_4(%arg0: i32) -> (i32, i32) {
    %c0_i32 = arith.constant 0 : i32
    %c0_i32_0 = arith.constant 0 : i32
    return %arg0, %c0_i32 : i32, i32
  }
  func.func @transform_5(%arg0: i32) -> (i32, i32) {
    %c0_i32 = arith.constant 0 : i32
    %c0_i32_0 = arith.constant 0 : i32
    %c0_i32_1 = arith.constant 0 : i32
    return %c0_i32, %c0_i32_0 : i32, i32
  }
  func.func @transform_6(%arg0: i32) -> (i32, i32) {
    %c0_i32 = arith.constant 0 : i32
    %c0_i32_0 = arith.constant 0 : i32
    %c0_i32_1 = arith.constant 0 : i32
    return %c0_i32, %c0_i32_0 : i32, i32
  }
  func.func @transform_7(%arg0: i32) -> (i32, i32) {
    %c0_i32 = arith.constant 0 : i32
    %c0_i32_0 = arith.constant 0 : i32
    %c0_i32_1 = arith.constant 0 : i32
    return %c0_i32, %c0_i32_0 : i32, i32
  }
  func.func @transform_8(%arg0: i32) -> (i32, i32) {
    %c0_i32 = arith.constant 0 : i32
    %c0_i32_0 = arith.constant 0 : i32
    %c0_i32_1 = arith.constant 0 : i32
    return %c0_i32, %c0_i32_0 : i32, i32
  }
  func.func @transform_9(%arg0: i32) -> (i32, i32) {
    %c0_i32 = arith.constant 0 : i32
    %c0_i32_0 = arith.constant 0 : i32
    %c0_i32_1 = arith.constant 0 : i32
    return %c0_i32, %c0_i32_0 : i32, i32
  }
  func.func @transform_10(%arg0: i32) -> (i32, i32) {
    %c0_i32 = arith.constant 0 : i32
    %c0_i32_0 = arith.constant 0 : i32
    %c0_i32_1 = arith.constant 0 : i32
    return %c0_i32, %c0_i32_0 : i32, i32
  }
  func.func @transform_11(%arg0: i32) -> (i32, i32) {
    %c0_i32 = arith.constant 0 : i32
    %c0_i32_0 = arith.constant 0 : i32
    %c0_i32_1 = arith.constant 0 : i32
    return %c0_i32, %c0_i32_0 : i32, i32
  }
  func.func @transform_12(%arg0: i32) -> (i32, i32) {
    %c0_i32 = arith.constant 0 : i32
    %c0_i32_0 = arith.constant 0 : i32
    %c0_i32_1 = arith.constant 0 : i32
    return %c0_i32, %c0_i32_0 : i32, i32
  }
  func.func @transform_13(%arg0: i32) -> (i32, i32) {
    %c0_i32 = arith.constant 0 : i32
    %c0_i32_0 = arith.constant 0 : i32
    %c0_i32_1 = arith.constant 0 : i32
    return %c0_i32, %c0_i32_0 : i32, i32
  }
  func.func @transform_14(%arg0: i32) -> (i32, i32) {
    %c0_i32 = arith.constant 0 : i32
    %c0_i32_0 = arith.constant 0 : i32
    %c0_i32_1 = arith.constant 0 : i32
    return %c0_i32, %c0_i32_0 : i32, i32
  }
  func.func @transform_15(%arg0: i32) -> (i32, i32) {
    %c0_i32 = arith.constant 0 : i32
    %c0_i32_0 = arith.constant 0 : i32
    %c0_i32_1 = arith.constant 0 : i32
    return %c0_i32, %c0_i32_0 : i32, i32
  }
  func.func @transform_16(%arg0: i32) -> (i32, i32) {
    %c0_i32 = arith.constant 0 : i32
    %c0_i32_0 = arith.constant 0 : i32
    %c0_i32_1 = arith.constant 0 : i32
    return %c0_i32, %c0_i32_0 : i32, i32
  }
  func.func @transform_17(%arg0: i32) -> (i32, i32) {
    %c0_i32 = arith.constant 0 : i32
    %c0_i32_0 = arith.constant 0 : i32
    %c0_i32_1 = arith.constant 0 : i32
    return %c0_i32, %c0_i32_0 : i32, i32
  }
  func.func @transform_18(%arg0: i32) -> (i32, i32) {
    %c0_i32 = arith.constant 0 : i32
    %c0_i32_0 = arith.constant 0 : i32
    %c0_i32_1 = arith.constant 0 : i32
    return %c0_i32, %c0_i32_0 : i32, i32
  }
  func.func @transform_19(%arg0: i32) -> (i32, i32) {
    %c0_i32 = arith.constant 0 : i32
    %c0_i32_0 = arith.constant 0 : i32
    %c0_i32_1 = arith.constant 0 : i32
    return %c0_i32, %c0_i32_0 : i32, i32
  }
  func.func @transform_20(%arg0: i32) -> (i32, i32) {
    %c0_i32 = arith.constant 0 : i32
    %c0_i32_0 = arith.constant 0 : i32
    %c0_i32_1 = arith.constant 0 : i32
    return %c0_i32, %c0_i32_0 : i32, i32
  }
  func.func @transform_21(%arg0: i32) -> (i32, i32) {
    %c0_i32 = arith.constant 0 : i32
    %c0_i32_0 = arith.constant 0 : i32
    return %arg0, %c0_i32 : i32, i32
  }
}

</mosaic_0001>

<bundles_post_ra>
// kernel: custom-call
= control target key start
LH: loop header
LB: loop body
LE: loop exit
PB: predicated region body
PF: predicated region fallthrough
CT: control target
= control target key end

     0   :  { %s6_s0 = inlined_call_operand.vmem [shape: u32[64], index: 0, kind: output, shape index: {}]  }

// kernel: decoder_forward.6
= control target key start
LH: loop header
LB: loop body
LE: loop exit
PB: predicated region body
PF: predicated region fallthrough
CT: control target
= control target key end

     0   :  { %vm31_vm0 = vcmask 523264   ;;  %vm115_vm1 = vcmask 261120   ;;  %s231_s1 = inlined_call_operand.vmem [shape: f32[64,32], index: 1, kind: input, shape index: {}]   ;;  %s232_s0 = inlined_call_operand.vmem [shape: f32[16,64], index: 0, kind: input, shape index: {}]   ;;  %s233_s2 = inlined_call_operand.vmem [shape: f32[1,32], index: 2, kind: input, shape index: {}]   ;;  %s234_s3 = inlined_call_operand.vmem [shape: f32[16,32], index: 3, kind: output, shape index: {}]  }
   0x1   :  { %v16_v0 = vld [vmem:[%s231_s1] sm:$0xff]  ;;  %v17_v1 = vld [vmem:[%s231_s1 + $0x8] sm:$0xff]  ;;  %v18_v2 = vld [vmem:[%s231_s1 + $0x10] sm:$0xff] }
   0x2   :  { %v154_v3 = vpack.c.bf16 %v17_v1, %v16_v0  ;;  %v19_v4 = vld [vmem:[%s231_s1 + $0x18] sm:$0xff]  ;;  %v20_v6 = vld [vmem:[%s231_s1 + $0x20] sm:$0xff]  ;;  %v21_v7 = vld [vmem:[%s231_s1 + $0x28] sm:$0xff] }
   0x3   :  { %v158_v5 = vpack.c.bf16 %v19_v4, %v18_v2  ;;  %v14_v8 = vld [vmem:[%s232_s0] sm:$0xff]  ;;  %v162_v9 = vpack.c.bf16 %v21_v7, %v20_v6  ;;  %v22_v10 = vld [vmem:[%s231_s1 + $0x30] sm:$0xff]  ;;  %v23_v11 = vld [vmem:[%s231_s1 + $0x38] sm:$0xff] }
   0x4   :  { %155 = vmatprep.subr.bf16.mxu0 %v154_v3  ;;  %151 = vmatprep.mubr.msk.f32.mxu0 %vm31_vm0, %v14_v8  ;;  %v166_v12 = vpack.c.bf16 %v23_v11, %v22_v10  ;;  %v15_v13 = vld [vmem:[%s232_s0 + $0x8] sm:$0xff]  ;;  %v122_v14 = vld [vmem:[%s233_s2] ss:$0 sm:$0xff] }
   0x5   :  { %157 = vmatpush3.bf16.msra.mxu0 %v154_v3 }
   0x6   :  { %159 = vmatprep.subr.bf16.mxu0 %v158_v5 }
   0x9   :  { %161 = vmatpush3.bf16.msra.mxu0 %v158_v5 }
   0xa   :  { %163 = vmatprep.subr.bf16.mxu0 %v162_v9 }
   0xd   :  { %165 = vmatpush3.bf16.msra.mxu0 %v162_v9 }
   0xe   :  { %167 = vmatprep.subr.bf16.mxu0 %v166_v12 }
  0x11   :  { %169 = vmatpush3.bf16.msra.mxu0 %v166_v12 }
  0x14   :  { %152 = vmatmul.mubr.msk.f32.vlgmr.msra.gmra.mrb[0].mxu0 %vm31_vm0, %v15_v13 }
  0xe7   :  { %v153_v15 = vpop.f32.mrb[0].mxu0 }
  0xe8   :  { %v110_v16 = vadd.f32 %v153_v15, %v122_v14  ;;  %v104_v17 = vpop.f32.mrb[1].mxu0 }
  0xe9   :  { %v105_v18 = vadd.f32 %v122_v14, %v104_v17 }
  0xea   :  { %v114_v19 = vmax.f32 %v110_v16, 0.0 }
  0xeb   :  { %v113_v20 = vmax.f32 %v105_v18, 0.0 }
  0xec   :  { %117 = vst.msk [vmem:[%s234_s3 + $0x8] sm:$0xff] %vm115_vm1, %v114_v19 }
  0xed   :  { %116 = vst.msk [vmem:[%s234_s3] sm:$0xff] %vm115_vm1, %v113_v20 }

// kernel: decoder_forward.8
= control target key start
LH: loop header
LB: loop body
LE: loop exit
PB: predicated region body
PF: predicated region fallthrough
CT: control target
= control target key end

     0   :  { %vm33_vm0 = vcmask 261120   ;;  %s335_s1 = inlined_call_operand.vmem [shape: f32[32,32], index: 1, kind: input, shape index: {}]   ;;  %s336_s0 = inlined_call_operand.vmem [shape: f32[64,32], index: 0, kind: input, shape index: {}]   ;;  %s337_s2 = inlined_call_operand.vmem [shape: f32[1,32], index: 2, kind: input, shape index: {}]   ;;  %s338_s3 = inlined_call_operand.vmem [shape: f32[64,32], index: 3, kind: output, shape index: {}]  }
   0x1   :  { %v22_v0 = vld [vmem:[%s335_s1] sm:$0xff]  ;;  %v23_v1 = vld [vmem:[%s335_s1 + $0x8] sm:$0xff]  ;;  %v24_v2 = vld [vmem:[%s335_s1 + $0x10] sm:$0xff] }
   0x2   :  { %v224_v3 = vpack.c.bf16 %v23_v1, %v22_v0  ;;  %v25_v4 = vld [vmem:[%s335_s1 + $0x18] sm:$0xff]  ;;  %v14_v5 = vld [vmem:[%s336_s0] sm:$0xff]  ;;  %v15_v8 = vld [vmem:[%s336_s0 + $0x8] sm:$0xff] }
   0x3   :  { %v18_v6 = vld [vmem:[%s336_s0 + $0x20] sm:$0xff]  ;;  %v228_v7 = vpack.c.bf16 %v25_v4, %v24_v2  ;;  %212 = vmatprep.mubr.msk.f32.mxu0 %vm33_vm0, %v14_v5  ;;  %v19_v9 = vld [vmem:[%s336_s0 + $0x28] sm:$0xff]  ;;  %v16_v10 = vld [vmem:[%s336_s0 + $0x10] sm:$0xff] }
   0x4   :  { %218 = vmatprep.mubr.msk.f32.mxu1 %vm33_vm0, %v18_v6  ;;  %225 = vmatprep.subr.bf16.mxu0 %v224_v3  ;;  %v20_v11 = vld [vmem:[%s336_s0 + $0x30] sm:$0xff]  ;;  %v17_v12 = vld [vmem:[%s336_s0 + $0x18] sm:$0xff]  ;;  %v183_v14 = vld [vmem:[%s337_s2] ss:$0 sm:$0xff] }
   0x5   :  { %232 = vmatprep.subr.bf16.mxu1 %v224_v3  ;;  %227 = vmatpush3.bf16.msra.mxu0 %v224_v3  ;;  %v21_v13 = vld [vmem:[%s336_s0 + $0x38] sm:$0xff] }
   0x6   :  { %234 = vmatpush3.bf16.msra.mxu1 %v224_v3  ;;  %229 = vmatprep.subr.bf16.mxu0 %v228_v7 }
   0x7   :  { %233 = vmatprep.subr.bf16.mxu1 %v228_v7 }
   0x9   :  { %231 = vmatpush3.bf16.msra.mxu0 %v228_v7 }
   0xa   :  { %235 = vmatpush3.bf16.msra.mxu1 %v228_v7 }
   0xc   :  { %213 = vmatmul.mubr.msk.f32.vlgmr.msra.gmra.mrb[0].mxu0 %vm33_vm0, %v15_v8 }
   0xd   :  { %219 = vmatmul.mubr.msk.f32.vlgmr.msra.gmra.mrb[0].mxu1 %vm33_vm0, %v19_v9  ;;  %215 = vmatprep.mubr.msk.f32.mxu0 %vm33_vm0, %v16_v10 }
   0xe   :  { %221 = vmatprep.mubr.msk.f32.mxu1 %vm33_vm0, %v20_v11 }
  0x10   :  { %216 = vmatmul.mubr.msk.f32.gmra.mrb[2].mxu0 %vm33_vm0, %v17_v12 }
  0x11   :  { %222 = vmatmul.mubr.msk.f32.gmra.mrb[2].mxu1 %vm33_vm0, %v21_v13 }
  0xdf   :  { %v214_v15 = vpop.f32.mrb[0].mxu0 }
  0xe0   :  { %v220_v16 = vpop.f32.mrb[0].mxu1  ;;  %v130_v17 = vadd.f32 %v214_v15, %v183_v14  ;;  %v124_v19 = vpop.f32.mrb[1].mxu0 }
  0xe1   :  { %v150_v18 = vadd.f32 %v220_v16, %v183_v14  ;;  %v144_v20 = vpop.f32.mrb[1].mxu1  ;;  %v125_v21 = vadd.f32 %v183_v14, %v124_v19 }
  0xe2   :  { %v145_v22 = vadd.f32 %v183_v14, %v144_v20  ;;  %v164_v23 = vmax.f32 %v130_v17, 0.0 }
  0xe3   :  { %v168_v24 = vmax.f32 %v150_v18, 0.0  ;;  %v163_v25 = vmax.f32 %v125_v21, 0.0  ;;  %v217_v27 = vpop.f32.mrb[2].mxu0 }
  0xe4   :  { %v167_v26 = vmax.f32 %v145_v22, 0.0  ;;  %v223_v28 = vpop.f32.mrb[2].mxu1  ;;  %172 = vst.msk [vmem:[%s338_s3 + $0x8] sm:$0xff] %vm33_vm0, %v164_v23  ;;  %v140_v29 = vadd.f32 %v217_v27, %v183_v14  ;;  %v134_v31 = vpop.f32.mrb[3].mxu0 }
  0xe5   :  { %176 = vst.msk [vmem:[%s338_s3 + $0x28] sm:$0xff] %vm33_vm0, %v168_v24  ;;  %v160_v30 = vadd.f32 %v223_v28, %v183_v14  ;;  %v154_v32 = vpop.f32.mrb[3].mxu1  ;;  %171 = vst.msk [vmem:[%s338_s3] sm:$0xff] %vm33_vm0, %v163_v25  ;;  %v135_v33 = vadd.f32 %v183_v14, %v134_v31 }
  0xe6   :  { %175 = vst.msk [vmem:[%s338_s3 + $0x20] sm:$0xff] %vm33_vm0, %v167_v26  ;;  %v155_v34 = vadd.f32 %v183_v14, %v154_v32  ;;  %v166_v35 = vmax.f32 %v140_v29, 0.0 }
  0xe7   :  { %v170_v36 = vmax.f32 %v160_v30, 0.0  ;;  %v165_v37 = vmax.f32 %v135_v33, 0.0 }
  0xe8   :  { %v169_v38 = vmax.f32 %v155_v34, 0.0  ;;  %174 = vst.msk [vmem:[%s338_s3 + $0x18] sm:$0xff] %vm33_vm0, %v166_v35 }
  0xe9   :  { %178 = vst.msk [vmem:[%s338_s3 + $0x38] sm:$0xff] %vm33_vm0, %v170_v36  ;;  %173 = vst.msk [vmem:[%s338_s3 + $0x10] sm:$0xff] %vm33_vm0, %v165_v37 }
  0xea   :  { %177 = vst.msk [vmem:[%s338_s3 + $0x30] sm:$0xff] %vm33_vm0, %v169_v38 }

// kernel: decoder_forward.7
= control target key start
LH: loop header
LB: loop body
LE: loop exit
PB: predicated region body
PF: predicated region fallthrough
CT: control target
= control target key end

     0   :  { %vm36_vm0 = vcmask 261120   ;;  %s383_s1 = inlined_call_operand.vmem [shape: f32[32,32], index: 1, kind: input, shape index: {}]   ;;  %s384_s0 = inlined_call_operand.vmem [shape: f32[64,32], index: 0, kind: input, shape index: {}]   ;;  %s385_s2 = inlined_call_operand.vmem [shape: f32[1,32], index: 2, kind: input, shape index: {}]   ;;  %s386_s3 = inlined_call_operand.vmem [shape: f32[64,32], index: 3, kind: input, shape index: {}]   ;;  %s387_s4 = inlined_call_operand.vmem [shape: f32[64,32], index: 4, kind: output, shape index: {}]  }
   0x1   :  { %v25_v0 = vld [vmem:[%s383_s1] sm:$0xff]  ;;  %v26_v1 = vld [vmem:[%s383_s1 + $0x8] sm:$0xff]  ;;  %v27_v2 = vld [vmem:[%s383_s1 + $0x10] sm:$0xff] }
   0x2   :  { %v243_v3 = vpack.c.bf16 %v26_v1, %v25_v0  ;;  %v28_v4 = vld [vmem:[%s383_s1 + $0x18] sm:$0xff]  ;;  %v17_v5 = vld [vmem:[%s384_s0] sm:$0xff]  ;;  %v18_v8 = vld [vmem:[%s384_s0 + $0x8] sm:$0xff] }
   0x3   :  { %v21_v6 = vld [vmem:[%s384_s0 + $0x20] sm:$0xff]  ;;  %v247_v7 = vpack.c.bf16 %v28_v4, %v27_v2  ;;  %231 = vmatprep.mubr.msk.f32.mxu0 %vm36_vm0, %v17_v5  ;;  %v22_v9 = vld [vmem:[%s384_s0 + $0x28] sm:$0xff]  ;;  %v19_v10 = vld [vmem:[%s384_s0 + $0x10] sm:$0xff] }
   0x4   :  { %237 = vmatprep.mubr.msk.f32.mxu1 %vm36_vm0, %v21_v6  ;;  %244 = vmatprep.subr.bf16.mxu0 %v243_v3  ;;  %v23_v11 = vld [vmem:[%s384_s0 + $0x30] sm:$0xff]  ;;  %v20_v12 = vld [vmem:[%s384_s0 + $0x18] sm:$0xff]  ;;  %v202_v14 = vld [vmem:[%s385_s2] ss:$0 sm:$0xff] }
   0x5   :  { %251 = vmatprep.subr.bf16.mxu1 %v243_v3  ;;  %246 = vmatpush3.bf16.msra.mxu0 %v243_v3  ;;  %v24_v13 = vld [vmem:[%s384_s0 + $0x38] sm:$0xff]  ;;  %v175_v21 = vld [vmem:[%s386_s3 + $0x8] sm:$0xff]  ;;  %v174_v27 = vld [vmem:[%s386_s3] sm:$0xff] }
   0x6   :  { %253 = vmatpush3.bf16.msra.mxu1 %v243_v3  ;;  %248 = vmatprep.subr.bf16.mxu0 %v247_v7  ;;  %v179_v22 = vld [vmem:[%s386_s3 + $0x28] sm:$0xff]  ;;  %v178_v28 = vld [vmem:[%s386_s3 + $0x20] sm:$0xff]  ;;  %v177_v41 = vld [vmem:[%s386_s3 + $0x18] sm:$0xff] }
   0x7   :  { %252 = vmatprep.subr.bf16.mxu1 %v247_v7  ;;  %v181_v42 = vld [vmem:[%s386_s3 + $0x38] sm:$0xff]  ;;  %v176_v47 = vld [vmem:[%s386_s3 + $0x10] sm:$0xff] }
   0x8   :  { %v180_v48 = vld [vmem:[%s386_s3 + $0x30] sm:$0xff] }
   0x9   :  { %250 = vmatpush3.bf16.msra.mxu0 %v247_v7 }
   0xa   :  { %254 = vmatpush3.bf16.msra.mxu1 %v247_v7 }
   0xc   :  { %232 = vmatmul.mubr.msk.f32.vlgmr.msra.gmra.mrb[0].mxu0 %vm36_vm0, %v18_v8 }
   0xd   :  { %238 = vmatmul.mubr.msk.f32.vlgmr.msra.gmra.mrb[0].mxu1 %vm36_vm0, %v22_v9  ;;  %234 = vmatprep.mubr.msk.f32.mxu0 %vm36_vm0, %v19_v10 }
   0xe   :  { %240 = vmatprep.mubr.msk.f32.mxu1 %vm36_vm0, %v23_v11 }
  0x10   :  { %235 = vmatmul.mubr.msk.f32.gmra.mrb[2].mxu0 %vm36_vm0, %v20_v12 }
  0x11   :  { %241 = vmatmul.mubr.msk.f32.gmra.mrb[2].mxu1 %vm36_vm0, %v24_v13 }
  0xdf   :  { %v233_v15 = vpop.f32.mrb[0].mxu0 }
  0xe0   :  { %v239_v16 = vpop.f32.mrb[0].mxu1  ;;  %v133_v17 = vadd.f32 %v233_v15, %v202_v14  ;;  %v127_v19 = vpop.f32.mrb[1].mxu0 }
  0xe1   :  { %v153_v18 = vadd.f32 %v239_v16, %v202_v14  ;;  %v147_v20 = vpop.f32.mrb[1].mxu1  ;;  %v128_v23 = vadd.f32 %v202_v14, %v127_v19 }
  0xe2   :  { %v148_v24 = vadd.f32 %v202_v14, %v147_v20  ;;  %v167_v25 = vmax.f32 %v133_v17, 0.0 }
  0xe3   :  { %v171_v26 = vmax.f32 %v153_v18, 0.0  ;;  %v166_v29 = vmax.f32 %v128_v23, 0.0  ;;  %v236_v31 = vpop.f32.mrb[2].mxu0 }
  0xe4   :  { %v170_v30 = vmax.f32 %v148_v24, 0.0  ;;  %v242_v32 = vpop.f32.mrb[2].mxu1  ;;  %v183_v33 = vadd.f32 %v175_v21, %v167_v25  ;;  %v143_v35 = vadd.f32 %v236_v31, %v202_v14  ;;  %v137_v37 = vpop.f32.mrb[3].mxu0 }
  0xe5   :  { %v187_v34 = vadd.f32 %v179_v22, %v171_v26  ;;  %v163_v36 = vadd.f32 %v242_v32, %v202_v14  ;;  %v157_v38 = vpop.f32.mrb[3].mxu1  ;;  %v182_v39 = vadd.f32 %v174_v27, %v166_v29  ;;  %v138_v43 = vadd.f32 %v202_v14, %v137_v37 }
  0xe6   :  { %v186_v40 = vadd.f32 %v178_v28, %v170_v30  ;;  %v158_v44 = vadd.f32 %v202_v14, %v157_v38  ;;  %191 = vst.msk [vmem:[%s387_s4 + $0x8] sm:$0xff] %vm36_vm0, %v183_v33  ;;  %v169_v45 = vmax.f32 %v143_v35, 0.0 }
  0xe7   :  { %195 = vst.msk [vmem:[%s387_s4 + $0x28] sm:$0xff] %vm36_vm0, %v187_v34  ;;  %v173_v46 = vmax.f32 %v163_v36, 0.0  ;;  %190 = vst.msk [vmem:[%s387_s4] sm:$0xff] %vm36_vm0, %v182_v39  ;;  %v168_v49 = vmax.f32 %v138_v43, 0.0 }
  0xe8   :  { %194 = vst.msk [vmem:[%s387_s4 + $0x20] sm:$0xff] %vm36_vm0, %v186_v40  ;;  %v172_v50 = vmax.f32 %v158_v44, 0.0  ;;  %v185_v51 = vadd.f32 %v177_v41, %v169_v45 }
  0xe9   :  { %v189_v52 = vadd.f32 %v181_v42, %v173_v46  ;;  %v184_v53 = vadd.f32 %v176_v47, %v168_v49 }
  0xea   :  { %v188_v54 = vadd.f32 %v180_v48, %v172_v50  ;;  %193 = vst.msk [vmem:[%s387_s4 + $0x18] sm:$0xff] %vm36_vm0, %v185_v51 }
  0xeb   :  { %197 = vst.msk [vmem:[%s387_s4 + $0x38] sm:$0xff] %vm36_vm0, %v189_v52  ;;  %192 = vst.msk [vmem:[%s387_s4 + $0x10] sm:$0xff] %vm36_vm0, %v184_v53 }
  0xec   :  { %196 = vst.msk [vmem:[%s387_s4 + $0x30] sm:$0xff] %vm36_vm0, %v188_v54 }

// kernel: decoder_forward.9
= control target key start
LH: loop header
LB: loop body
LE: loop exit
PB: predicated region body
PF: predicated region fallthrough
CT: control target
= control target key end

     0   :  { %v14852_v0 = vmov 0   ;;  %vm87_vm0 = vcmask 261120   ;;  %vm6889_vm1 = vcmask 523520   ;;  %s14824_s2 = inlined_call_operand.vmem [shape: f32[8,64,3], index: 2, kind: input, shape index: {}]   ;;  %s14825_s5 = inlined_call_operand.vmem [shape: f32[32,32], index: 5, kind: input, shape index: {}]   ;;  %s14826_s0 = inlined_call_operand.vmem [shape: f32[64,32], index: 0, kind: input, shape index: {}]   ;;  %s14827_s7 = inlined_call_operand.vmem [shape: f32[32,64], index: 7, kind: input, shape index: {}]   ;;  %s14828_s1 = inlined_call_operand.vmem [shape: f32[8,64,32], index: 1, kind: input, shape index: {}]   ;;  %s14829_s11 = inlined_call_operand.vmem [shape: f32[32,32], index: 11, kind: input, shape index: {}]   ;;  %s14830_s9 = inlined_call_operand.vmem [shape: f32[3,32], index: 9, kind: input, shape index: {}]   ;;  %s14831_s10 = inlined_call_operand.vmem [shape: f32[1,32], index: 10, kind: input, shape index: {}]   ;;  %s14832_s13 = inlined_call_operand.vmem [shape: f32[32,4], index: 13, kind: input, shape index: {}]   ;;  %s14833_s8 = inlined_call_operand.vmem [shape: f32[1,64], index: 8, kind: input, shape index: {}]   ;;  %s14834_s6 = inlined_call_operand.vmem [shape: f32[1,32], index: 6, kind: input, shape index: {}]   ;;  %s14835_s12 = inlined_call_operand.vmem [shape: f32[1,32], index: 12, kind: input, shape index: {}]   ;;  %s14836_s14 = inlined_call_operand.vmem [shape: f32[1,4], index: 14, kind: input, shape index: {}]   ;;  %s14837_s15 = inlined_call_operand.vmem [shape: f32[4,32], index: 15, kind: input, shape index: {}]   ;;  %s14838_s3 = inlined_call_operand.vmem [shape: f32[8,64,1], index: 3, kind: input, shape index: {}]   ;;  %s14839_s16 = inlined_call_operand.vmem [shape: f32[1,32], index: 16, kind: input, shape index: {}]   ;;  %s14840_s17 = inlined_call_operand.vmem [shape: f32[1,32], index: 17, kind: input, shape index: {}]   ;;  %s14841_s19 = inlined_call_operand.vmem [shape: f32[32,32], index: 19, kind: input, shape index: {}]   ;;  %s14842_s18 = inlined_call_operand.vmem [shape: f32[1,32], index: 18, kind: input, shape index: {}]   ;;  %s14843_s20 = inlined_call_operand.vmem [shape: f32[1,32], index: 20, kind: input, shape index: {}]   ;;  %s14844_s4 = inlined_call_operand.vmem [shape: f32[64,32], index: 4, kind: input, shape index: {}]   ;;  %s14845_s21 = inlined_call_operand.vmem [shape: f32[64,32], index: 21, kind: output, shape index: {}]  }
   0x1   :  { %15019 = sst [smem:[#allocation279_spill]] %s14824_s2  ;;  %8092 = vset.pattern.permute.xlu1 %v14852_v0  ;;  %8091 = vset.pattern.permute.xlu0 %v14852_v0 }
   0x2   :  { %15020 = sst [smem:[#allocation280_spill]] %s14825_s5  ;;  %s15025_s26 = sld [smem:[#allocation279_spill]] }
   0x3   :  { %15021 = sst [smem:[#allocation281_spill]] %s14826_s0 }
   0x4   :  { %15022 = sst [smem:[#allocation282_spill]] %s14827_s7  ;;  %s15070_s7 = sld [smem:[#allocation280_spill]] }
   0x5   :  { %15023 = sst [smem:[#allocation283_spill]] %s14828_s1  ;;  %s15075_s5 = sld [smem:[#allocation281_spill]] }
   0x6   :  { %15024 = sst [smem:[#allocation284_spill]] %s14829_s11  ;;  %s15078_s27 = sld [smem:[#allocation282_spill]] }
   0x7   :  { %s15085_s11 = sld [smem:[#allocation283_spill]]  ;;  %s15088_s0 = sld [smem:[#allocation284_spill]] }
   0x8   :  { %v8400_v1 = vld [vmem:[%s15025_s26 + $0x10] sm:$0xff]  ;;  %v8405_v2 = vld [vmem:[%s15025_s26] sm:$0xff]  ;;  %v8412_v3 = vld [vmem:[%s15025_s26 + $0x18] sm:$0xff] }
   0x9   :  { %1018 = vperm.xlu1 %8092, %v8400_v1   ;;  %1008 = vperm.xlu0 %8091, %v8405_v2   ;;  %v8417_v4 = vld [vmem:[%s15025_s26 + $0x8] sm:$0xff]  ;;  %v8429_v6 = vld [vmem:[%s15025_s26 + $0x20] sm:$0xff]  ;;  %v8436_v7 = vld [vmem:[%s15025_s26 + $0x38] sm:$0xff] }
   0xa   :  { %15026 = vst [vmem:[#allocation2_spill] sm:$0xff] %v8417_v4  ;;  %v8424_v5 = vld [vmem:[%s15025_s26 + $0x28] sm:$0xff]  ;;  %v8441_v8 = vld [vmem:[%s15025_s26 + $0x30] sm:$0xff]  ;;  %v8453_v10 = vld [vmem:[%s15025_s26 + $0x40] sm:$0xff] }
   0xb   :  { %v8448_v9 = vld [vmem:[%s15025_s26 + $0x48] sm:$0xff]  ;;  %v8460_v11 = vld [vmem:[%s15025_s26 + $0x58] sm:$0xff]  ;;  %v8465_v12 = vld [vmem:[%s15025_s26 + $0x50] sm:$0xff] }
   0xc   :  { %v8472_v13 = vld [vmem:[%s15025_s26 + $0x68] sm:$0xff]  ;;  %v8477_v14 = vld [vmem:[%s15025_s26 + $0x60] sm:$0xff]  ;;  %v8484_v15 = vld [vmem:[%s15025_s26 + $0x78] sm:$0xff] }
   0xd   :  { %1023 = vperm.xlu1 %8092, %v8412_v3   ;;  %1013 = vperm.xlu0 %8091, %v8417_v4   ;;  %v8489_v16 = vld [vmem:[%s15025_s26 + $0x70] sm:$0xff]  ;;  %v8496_v17 = vld [vmem:[%s15025_s26 + $0x88] sm:$0xff]  ;;  %v8501_v18 = vld [vmem:[%s15025_s26 + $0x80] sm:$0xff] }
   0xe   :  { %v8508_v19 = vld [vmem:[%s15025_s26 + $0x98] sm:$0xff]  ;;  %v8513_v20 = vld [vmem:[%s15025_s26 + $0x90] sm:$0xff]  ;;  %v8520_v21 = vld [vmem:[%s15025_s26 + $0xa8] sm:$0xff] }
   0xf   :  { %v8525_v22 = vld [vmem:[%s15025_s26 + $0xa0] sm:$0xff]  ;;  %v8532_v23 = vld [vmem:[%s15025_s26 + $0xb8] sm:$0xff]  ;;  %v8537_v24 = vld [vmem:[%s15025_s26 + $0xb0] sm:$0xff] }
  0x10   :  { %v8544_v25 = vld [vmem:[%s15025_s26 + $0xc8] sm:$0xff]  ;;  %v8549_v26 = vld [vmem:[%s15025_s26 + $0xc0] sm:$0xff]  ;;  %v8556_v27 = vld [vmem:[%s15025_s26 + $0xd8] sm:$0xff] }
  0x11   :  { %1033 = vperm.xlu1 %8092, %v8424_v5   ;;  %1028 = vperm.xlu0 %8091, %v8429_v6   ;;  %v8561_v28 = vld [vmem:[%s15025_s26 + $0xd0] sm:$0xff]  ;;  %v8568_v29 = vld [vmem:[%s15025_s26 + $0xe8] sm:$0xff]  ;;  %v8573_v30 = vld [vmem:[%s15025_s26 + $0xe0] sm:$0xff] }
  0x12   :  { %15027 = vst [vmem:[#allocation3_spill] sm:$0xff] %v8568_v29  ;;  %v8580_v31 = vld [vmem:[%s15025_s26 + $0xf8] sm:$0xff]  ;;  %v8585_v32 = vld [vmem:[%s15025_s26 + $0xf0] sm:$0xff]  ;;  %v8592_v33 = vld [vmem:[%s15025_s26 + $0x108] sm:$0xff] }
  0x13   :  { %15028 = vst [vmem:[#allocation4_spill] sm:$0xff] %v8580_v31  ;;  %v8597_v34 = vld [vmem:[%s15025_s26 + $0x100] sm:$0xff]  ;;  %v8604_v35 = vld [vmem:[%s15025_s26 + $0x118] sm:$0xff]  ;;  %v8609_v36 = vld [vmem:[%s15025_s26 + $0x110] sm:$0xff] }
  0x14   :  { %v8616_v37 = vld [vmem:[%s15025_s26 + $0x128] sm:$0xff]  ;;  %v8621_v38 = vld [vmem:[%s15025_s26 + $0x120] sm:$0xff]  ;;  %v8628_v39 = vld [vmem:[%s15025_s26 + $0x138] sm:$0xff] }
  0x15   :  { %1043 = vperm.xlu1 %8092, %v8436_v7   ;;  %1038 = vperm.xlu0 %8091, %v8441_v8   ;;  %v8633_v40 = vld [vmem:[%s15025_s26 + $0x130] sm:$0xff]  ;;  %v8640_v41 = vld [vmem:[%s15025_s26 + $0x148] sm:$0xff]  ;;  %v8645_v42 = vld [vmem:[%s15025_s26 + $0x140] sm:$0xff] }
  0x16   :  { %v8652_v43 = vld [vmem:[%s15025_s26 + $0x158] sm:$0xff]  ;;  %v8657_v44 = vld [vmem:[%s15025_s26 + $0x150] sm:$0xff]  ;;  %v8664_v45 = vld [vmem:[%s15025_s26 + $0x168] sm:$0xff] }
  0x17   :  { %v8669_v46 = vld [vmem:[%s15025_s26 + $0x160] sm:$0xff]  ;;  %v8676_v47 = vld [vmem:[%s15025_s26 + $0x178] sm:$0xff]  ;;  %v8681_v48 = vld [vmem:[%s15025_s26 + $0x170] sm:$0xff] }
  0x18   :  { %v8688_v49 = vld [vmem:[%s15025_s26 + $0x188] sm:$0xff]  ;;  %v8693_v50 = vld [vmem:[%s15025_s26 + $0x180] sm:$0xff]  ;;  %v8700_v51 = vld [vmem:[%s15025_s26 + $0x198] sm:$0xff] }
  0x19   :  { %1053 = vperm.xlu1 %8092, %v8448_v9   ;;  %1048 = vperm.xlu0 %8091, %v8453_v10   ;;  %v8705_v52 = vld [vmem:[%s15025_s26 + $0x190] sm:$0xff]  ;;  %v8712_v53 = vld [vmem:[%s15025_s26 + $0x1a8] sm:$0xff]  ;;  %v8717_v54 = vld [vmem:[%s15025_s26 + $0x1a0] sm:$0xff] }
  0x1a   :  { %v8724_v55 = vld [vmem:[%s15025_s26 + $0x1b8] sm:$0xff]  ;;  %v8729_v56 = vld [vmem:[%s15025_s26 + $0x1b0] sm:$0xff]  ;;  %v8736_v57 = vld [vmem:[%s15025_s26 + $0x1c8] sm:$0xff] }
  0x1b   :  { %15029 = vst [vmem:[#allocation5_spill] sm:$0xff] %v8724_v55  ;;  %15030 = vst [vmem:[#allocation6_spill] sm:$0xff] %v8736_v57  ;;  %v8741_v58 = vld [vmem:[%s15025_s26 + $0x1c0] sm:$0xff]  ;;  %v8748_v59 = vld [vmem:[%s15025_s26 + $0x1d8] sm:$0xff] }
  0x1c   :  { %15031 = vst [vmem:[#allocation7_spill] sm:$0xff] %v8748_v59  ;;  %v8753_v60 = vld [vmem:[%s15025_s26 + $0x1d0] sm:$0xff]  ;;  %v8760_v61 = vld [vmem:[%s15025_s26 + $0x1e8] sm:$0xff]  ;;  %v8765_v62 = vld [vmem:[%s15025_s26 + $0x1e0] sm:$0xff] }
  0x1d   :  { %1063 = vperm.xlu1 %8092, %v8460_v11   ;;  %1058 = vperm.xlu0 %8091, %v8465_v12   ;;  %15032 = vst [vmem:[#allocation8_spill] sm:$0xff] %v8753_v60  ;;  %15033 = vst [vmem:[#allocation9_spill] sm:$0xff] %v8760_v61  ;;  %v8772_v63 = vld [vmem:[%s15025_s26 + $0x1f8] sm:$0xff]  ;;  %v8777_v0 = vld [vmem:[%s15025_s26 + $0x1f0] sm:$0xff] }
  0x1e   :  { %15034 = vst [vmem:[#allocation10_spill] sm:$0xff] %v8765_v62  ;;  %15035 = vst [vmem:[#allocation11_spill] sm:$0xff] %v8772_v63 }
  0x21   :  { %1073 = vperm.xlu1 %8092, %v8472_v13   ;;  %1068 = vperm.xlu0 %8091, %v8477_v14  }
  0x25   :  { %1083 = vperm.xlu1 %8092, %v8484_v15   ;;  %1078 = vperm.xlu0 %8091, %v8489_v16  }
  0x29   :  { %1093 = vperm.xlu1 %8092, %v8496_v17   ;;  %1088 = vperm.xlu0 %8091, %v8501_v18  }
  0x2d   :  { %1103 = vperm.xlu1 %8092, %v8508_v19   ;;  %1098 = vperm.xlu0 %8091, %v8513_v20  }
  0x31   :  { %1113 = vperm.xlu1 %8092, %v8520_v21   ;;  %1108 = vperm.xlu0 %8091, %v8525_v22  }
  0x35   :  { %1123 = vperm.xlu1 %8092, %v8532_v23   ;;  %1118 = vperm.xlu0 %8091, %v8537_v24  }
  0x39   :  { %1133 = vperm.xlu1 %8092, %v8544_v25   ;;  %1128 = vperm.xlu0 %8091, %v8549_v26  }
  0x3d   :  { %1143 = vperm.xlu1 %8092, %v8556_v27   ;;  %1138 = vperm.xlu0 %8091, %v8561_v28  }
  0x41   :  { %1153 = vperm.xlu1 %8092, %v8568_v29   ;;  %1148 = vperm.xlu0 %8091, %v8573_v30  }
  0x45   :  { %1163 = vperm.xlu1 %8092, %v8580_v31   ;;  %1158 = vperm.xlu0 %8091, %v8585_v32  }
  0x49   :  { %1173 = vperm.xlu1 %8092, %v8592_v33   ;;  %1168 = vperm.xlu0 %8091, %v8597_v34  }
  0x4d   :  { %1183 = vperm.xlu1 %8092, %v8604_v35   ;;  %1178 = vperm.xlu0 %8091, %v8609_v36  }
  0x51   :  { %1193 = vperm.xlu1 %8092, %v8616_v37   ;;  %1188 = vperm.xlu0 %8091, %v8621_v38  }
  0x55   :  { %1203 = vperm.xlu1 %8092, %v8628_v39   ;;  %1198 = vperm.xlu0 %8091, %v8633_v40  }
  0x59   :  { %1213 = vperm.xlu1 %8092, %v8640_v41   ;;  %1208 = vperm.xlu0 %8091, %v8645_v42  }
  0x5d   :  { %1223 = vperm.xlu1 %8092, %v8652_v43   ;;  %1218 = vperm.xlu0 %8091, %v8657_v44  }
  0x61   :  { %1233 = vperm.xlu1 %8092, %v8664_v45   ;;  %1228 = vperm.xlu0 %8091, %v8669_v46  }
  0x65   :  { %1243 = vperm.xlu1 %8092, %v8676_v47   ;;  %1238 = vperm.xlu0 %8091, %v8681_v48  }
  0x69   :  { %1253 = vperm.xlu1 %8092, %v8688_v49   ;;  %1248 = vperm.xlu0 %8091, %v8693_v50  }
  0x6d   :  { %1263 = vperm.xlu1 %8092, %v8700_v51   ;;  %1258 = vperm.xlu0 %8091, %v8705_v52  }
  0x71   :  { %1273 = vperm.xlu1 %8092, %v8712_v53   ;;  %1268 = vperm.xlu0 %8091, %v8717_v54  }
  0x75   :  { %1283 = vperm.xlu1 %8092, %v8724_v55   ;;  %1278 = vperm.xlu0 %8091, %v8729_v56  }
  0x79   :  { %1293 = vperm.xlu1 %8092, %v8736_v57   ;;  %1288 = vperm.xlu0 %8091, %v8741_v58  }
  0x7d   :  { %1303 = vperm.xlu1 %8092, %v8748_v59   ;;  %1298 = vperm.xlu0 %8091, %v8753_v60  }
  0x81   :  { %1313 = vperm.xlu1 %8092, %v8760_v61   ;;  %1308 = vperm.xlu0 %8091, %v8765_v62   ;;  %v14864_v61 = vmov 1  }
  0x85   :  { %1323 = vperm.xlu1 %8092, %v8772_v63   ;;  %1318 = vperm.xlu0 %8091, %v8777_v0  }
  0x88   :  { %v8781_v59 = vpop.permute.xlu1 %1018  ;;  %v8783_v60 = vpop.permute.xlu0 %1008 }
  0x89   :  { %15036 = vst [vmem:[#allocation12_spill] sm:$0xff] %v8781_v59  ;;  %15037 = vst [vmem:[#allocation13_spill] sm:$0xff] %v8783_v60  ;;  %8094 = vset.pattern.permute.xlu1 %v14864_v61  ;;  %8093 = vset.pattern.permute.xlu0 %v14864_v61 }
  0x8a   :  { %1399 = vperm.xlu1 %8094, %v8417_v4   ;;  %1395 = vperm.xlu0 %8093, %v8405_v2  }
  0x8c   :  { %v8789_v62 = vpop.permute.xlu1 %1023  ;;  %v8791_v57 = vpop.permute.xlu0 %1013 }
  0x8d   :  { %15038 = vst [vmem:[#allocation14_spill] sm:$0xff] %v8789_v62  ;;  %15039 = vst [vmem:[#allocation15_spill] sm:$0xff] %v8791_v57 }
  0x8e   :  { %1403 = vperm.xlu1 %8094, %v8400_v1   ;;  %1407 = vperm.xlu0 %8093, %v8412_v3  }
  0x90   :  { %v8795_v59 = vpop.permute.xlu1 %1033  ;;  %v8797_v60 = vpop.permute.xlu0 %1028 }
  0x91   :  { %15040 = vst [vmem:[#allocation16_spill] sm:$0xff] %v8795_v59  ;;  %15041 = vst [vmem:[#allocation17_spill] sm:$0xff] %v8797_v60 }
  0x92   :  { %1411 = vperm.xlu1 %8094, %v8429_v6   ;;  %1415 = vperm.xlu0 %8093, %v8424_v5  }
  0x94   :  { %v8801_v61 = vpop.permute.xlu1 %1043  ;;  %v8803_v4 = vpop.permute.xlu0 %1038 }
  0x95   :  { %15042 = vst [vmem:[#allocation18_spill] sm:$0xff] %v8801_v61  ;;  %15043 = vst [vmem:[#allocation19_spill] sm:$0xff] %v8803_v4 }
  0x96   :  { %1419 = vperm.xlu1 %8094, %v8441_v8   ;;  %1423 = vperm.xlu0 %8093, %v8436_v7  }
  0x98   :  { %v8807_v62 = vpop.permute.xlu1 %1053  ;;  %v8809_v57 = vpop.permute.xlu0 %1048 }
  0x99   :  { %15044 = vst [vmem:[#allocation20_spill] sm:$0xff] %v8807_v62  ;;  %15045 = vst [vmem:[#allocation21_spill] sm:$0xff] %v8809_v57 }
  0x9a   :  { %1427 = vperm.xlu1 %8094, %v8453_v10   ;;  %1431 = vperm.xlu0 %8093, %v8448_v9  }
  0x9c   :  { %v8813_v59 = vpop.permute.xlu1 %1063  ;;  %v8815_v60 = vpop.permute.xlu0 %1058 }
  0x9d   :  { %15046 = vst [vmem:[#allocation22_spill] sm:$0xff] %v8813_v59  ;;  %15047 = vst [vmem:[#allocation23_spill] sm:$0xff] %v8815_v60 }
  0x9e   :  { %1435 = vperm.xlu1 %8094, %v8465_v12   ;;  %1439 = vperm.xlu0 %8093, %v8460_v11  }
  0xa0   :  { %v8819_v61 = vpop.permute.xlu1 %1073  ;;  %v8821_v4 = vpop.permute.xlu0 %1068 }
  0xa1   :  { %15048 = vst [vmem:[#allocation24_spill] sm:$0xff] %v8819_v61  ;;  %15049 = vst [vmem:[#allocation25_spill] sm:$0xff] %v8821_v4 }
  0xa2   :  { %1443 = vperm.xlu1 %8094, %v8477_v14   ;;  %1447 = vperm.xlu0 %8093, %v8472_v13  }
  0xa4   :  { %v8825_v62 = vpop.permute.xlu1 %1083  ;;  %v8827_v57 = vpop.permute.xlu0 %1078 }
  0xa5   :  { %15050 = vst [vmem:[#allocation26_spill] sm:$0xff] %v8825_v62  ;;  %15051 = vst [vmem:[#allocation27_spill] sm:$0xff] %v8827_v57 }
  0xa6   :  { %1451 = vperm.xlu1 %8094, %v8489_v16   ;;  %1455 = vperm.xlu0 %8093, %v8484_v15  }
  0xa8   :  { %v8831_v59 = vpop.permute.xlu1 %1093  ;;  %v8833_v60 = vpop.permute.xlu0 %1088 }
  0xa9   :  { %15052 = vst [vmem:[#allocation28_spill] sm:$0xff] %v8831_v59  ;;  %15053 = vst [vmem:[#allocation29_spill] sm:$0xff] %v8833_v60 }
  0xaa   :  { %1459 = vperm.xlu1 %8094, %v8501_v18   ;;  %1463 = vperm.xlu0 %8093, %v8496_v17  }
  0xac   :  { %v8837_v61 = vpop.permute.xlu1 %1103  ;;  %v8839_v4 = vpop.permute.xlu0 %1098 }
  0xad   :  { %15054 = vst [vmem:[#allocation30_spill] sm:$0xff] %v8837_v61  ;;  %15055 = vst [vmem:[#allocation31_spill] sm:$0xff] %v8839_v4 }
  0xae   :  { %1467 = vperm.xlu1 %8094, %v8513_v20   ;;  %1471 = vperm.xlu0 %8093, %v8508_v19  }
  0xb0   :  { %v8843_v62 = vpop.permute.xlu1 %1113  ;;  %v8845_v57 = vpop.permute.xlu0 %1108 }
  0xb1   :  { %15056 = vst [vmem:[#allocation32_spill] sm:$0xff] %v8843_v62  ;;  %15057 = vst [vmem:[#allocation33_spill] sm:$0xff] %v8845_v57 }
  0xb2   :  { %1475 = vperm.xlu1 %8094, %v8525_v22   ;;  %1479 = vperm.xlu0 %8093, %v8520_v21  }
  0xb4   :  { %v8849_v59 = vpop.permute.xlu1 %1123  ;;  %v8851_v60 = vpop.permute.xlu0 %1118 }
  0xb5   :  { %15058 = vst [vmem:[#allocation34_spill] sm:$0xff] %v8849_v59  ;;  %15059 = vst [vmem:[#allocation35_spill] sm:$0xff] %v8851_v60 }
  0xb6   :  { %1483 = vperm.xlu1 %8094, %v8537_v24   ;;  %1487 = vperm.xlu0 %8093, %v8532_v23  }
  0xb8   :  { %v8855_v61 = vpop.permute.xlu1 %1133  ;;  %v8857_v4 = vpop.permute.xlu0 %1128 }
  0xb9   :  { %15060 = vst [vmem:[#allocation36_spill] sm:$0xff] %v8855_v61  ;;  %15061 = vst [vmem:[#allocation37_spill] sm:$0xff] %v8857_v4 }
  0xba   :  { %1491 = vperm.xlu1 %8094, %v8549_v26   ;;  %1495 = vperm.xlu0 %8093, %v8544_v25  }
  0xbc   :  { %v8861_v62 = vpop.permute.xlu1 %1143  ;;  %v8863_v57 = vpop.permute.xlu0 %1138 }
  0xbd   :  { %15062 = vst [vmem:[#allocation38_spill] sm:$0xff] %v8861_v62  ;;  %15063 = vst [vmem:[#allocation39_spill] sm:$0xff] %v8863_v57 }
  0xbe   :  { %1499 = vperm.xlu1 %8094, %v8561_v28   ;;  %1503 = vperm.xlu0 %8093, %v8556_v27  }
  0xc0   :  { %v8867_v59 = vpop.permute.xlu1 %1153  ;;  %v8869_v60 = vpop.permute.xlu0 %1148 }
  0xc1   :  { %15064 = vst [vmem:[#allocation40_spill] sm:$0xff] %v8867_v59  ;;  %15065 = vst [vmem:[#allocation41_spill] sm:$0xff] %v8869_v60  ;;  %v76_v59 = vld [vmem:[%s15070_s7] sm:$0xff]  ;;  %v77_v60 = vld [vmem:[%s15070_s7 + $0x8] sm:$0xff] }
  0xc2   :  { %1507 = vperm.xlu1 %8094, %v8573_v30   ;;  %1511 = vperm.xlu0 %8093, %v8568_v29   ;;  %v8041_v29 = vpack.c.bf16 %v77_v60, %v76_v59 }
  0xc4   :  { %v8873_v61 = vpop.permute.xlu1 %1163  ;;  %v8875_v4 = vpop.permute.xlu0 %1158  ;;  %8042 = vmatprep.subr.bf16.mxu0 %v8041_v29 }
  0xc5   :  { %15066 = vst [vmem:[#allocation42_spill] sm:$0xff] %v8873_v61  ;;  %15067 = vst [vmem:[#allocation43_spill] sm:$0xff] %v8875_v4  ;;  %8044 = vmatpush3.bf16.msra.mxu0 %v8041_v29  ;;  %v68_v29 = vld [vmem:[%s15075_s5] sm:$0xff] }
  0xc6   :  { %1515 = vperm.xlu1 %8094, %v8585_v32   ;;  %1519 = vperm.xlu0 %8093, %v8580_v31  }
  0xc7   :  { %7697 = vmatprep.mubr.msk.f32.mxu0 %vm87_vm0, %v68_v29 }
  0xc8   :  { %v8879_v62 = vpop.permute.xlu1 %1173  ;;  %v8881_v57 = vpop.permute.xlu0 %1168 }
  0xc9   :  { %15068 = vst [vmem:[#allocation44_spill] sm:$0xff] %v8879_v62  ;;  %15069 = vst [vmem:[#allocation45_spill] sm:$0xff] %v8881_v57  ;;  %v78_v62 = vld [vmem:[%s15070_s7 + $0x10] sm:$0xff]  ;;  %v79_v57 = vld [vmem:[%s15070_s7 + $0x18] sm:$0xff] }
  0xca   :  { %1523 = vperm.xlu1 %8094, %v8597_v34   ;;  %1527 = vperm.xlu0 %8093, %v8592_v33   ;;  %v8045_v31 = vpack.c.bf16 %v79_v57, %v78_v62  ;;  %v69_v57 = vld [vmem:[%s15075_s5 + $0x8] sm:$0xff] }
  0xcc   :  { %v8891_v61 = vpop.permute.xlu1 %1183  ;;  %v8893_v4 = vpop.permute.xlu0 %1178  ;;  %8046 = vmatprep.subr.bf16.mxu0 %v8045_v31 }
  0xcd   :  { %15071 = vst [vmem:[#allocation46_spill] sm:$0xff] %v8891_v61  ;;  %15072 = vst [vmem:[#allocation47_spill] sm:$0xff] %v8893_v4  ;;  %8048 = vmatpush3.bf16.msra.mxu0 %v8045_v31  ;;  %v289_v31 = vld [vmem:[%s15078_s27] sm:$0xff]  ;;  %v290_v61 = vld [vmem:[%s15078_s27 + $0x8] sm:$0xff] }
  0xce   :  { %1531 = vperm.xlu1 %8094, %v8609_v36   ;;  %1535 = vperm.xlu0 %8093, %v8604_v35   ;;  %v8049_v29 = vpack.c.bf16 %v290_v61, %v289_v31  ;;  %v72_v4 = vld [vmem:[%s15075_s5 + $0x20] sm:$0xff]  ;;  %v73_v61 = vld [vmem:[%s15075_s5 + $0x28] sm:$0xff] }
  0xd0   :  { %v8903_v59 = vpop.permute.xlu1 %1193  ;;  %v8905_v60 = vpop.permute.xlu0 %1188  ;;  %7698 = vmatmul.mubr.msk.f32.vlgmr.msra.gmra.mrb[0].mxu0 %vm87_vm0, %v69_v57  ;;  %v71_v57 = vld [vmem:[%s15075_s5 + $0x18] sm:$0xff]  ;;  %8050 = vmatprep.subr.bf16.mxu0 %v8049_v29 }
  0xd1   :  { %15073 = vst [vmem:[#allocation48_spill] sm:$0xff] %v8903_v59  ;;  %15074 = vst [vmem:[#allocation49_spill] sm:$0xff] %v8905_v60  ;;  %v70_v60 = vld [vmem:[%s15075_s5 + $0x10] sm:$0xff]  ;;  %8052 = vmatpush3.bf16.msra.mxu0 %v8049_v29  ;;  %8081 = vmatprep.subr.bf16.mxu1 %v8049_v29 }
  0xd2   :  { %1539 = vperm.xlu1 %8094, %v8621_v38   ;;  %1543 = vperm.xlu0 %8093, %v8616_v37  }
  0xd3   :  { %7700 = vmatprep.mubr.msk.f32.mxu0 %vm87_vm0, %v70_v60  ;;  %8083 = vmatpush3.bf16.msra.mxu1 %v8049_v29  ;;  %v75_v29 = vld [vmem:[%s15075_s5 + $0x38] sm:$0xff] }
  0xd4   :  { %v8916_v62 = vpop.permute.xlu1 %1203  ;;  %v8918_v59 = vpop.permute.xlu0 %1198  ;;  %7701 = vmatmul.mubr.msk.f32.gmra.mrb[2].mxu0 %vm87_vm0, %v71_v57  ;;  %v291_v57 = vld [vmem:[%s15078_s27 + $0x10] sm:$0xff] }
  0xd5   :  { %15076 = vst [vmem:[#allocation50_spill] sm:$0xff] %v8916_v62  ;;  %15077 = vst [vmem:[#allocation51_spill] sm:$0xff] %v8918_v59  ;;  %7703 = vmatprep.mubr.msk.f32.mxu0 %vm87_vm0, %v72_v4  ;;  %v74_v4 = vld [vmem:[%s15075_s5 + $0x30] sm:$0xff] }
  0xd6   :  { %1547 = vperm.xlu1 %8094, %v8633_v40   ;;  %1551 = vperm.xlu0 %8093, %v8628_v39  }
  0xd8   :  { %v8936_v62 = vpop.permute.xlu1 %1213  ;;  %v8938_v59 = vpop.permute.xlu0 %1208  ;;  %7704 = vmatmul.mubr.msk.f32.gmra.mrb[4].mxu0 %vm87_vm0, %v73_v61 }
  0xd9   :  { %15079 = vst [vmem:[#allocation52_spill] sm:$0xff] %v8936_v62  ;;  %15080 = vst [vmem:[#allocation53_spill] sm:$0xff] %v8938_v59  ;;  %v292_v62 = vld [vmem:[%s15078_s27 + $0x18] sm:$0xff]  ;;  %7706 = vmatprep.mubr.msk.f32.mxu0 %vm87_vm0, %v74_v4 }
  0xda   :  { %1555 = vperm.xlu1 %8094, %v8645_v42   ;;  %1559 = vperm.xlu0 %8093, %v8640_v41   ;;  %v8053_v59 = vpack.c.bf16 %v292_v62, %v291_v57  ;;  %v225_v62 = vld [vmem:[%s15085_s11] sm:$0xff]  ;;  %v226_v57 = vld [vmem:[%s15085_s11 + $0x8] sm:$0xff] }
  0xdc   :  { %v8950_v60 = vpop.permute.xlu1 %1223  ;;  %v8952_v31 = vpop.permute.xlu0 %1218  ;;  %8054 = vmatprep.subr.bf16.mxu0 %v8053_v59  ;;  %8082 = vmatprep.subr.bf16.mxu1 %v8053_v59 }
  0xdd   :  { %15081 = vst [vmem:[#allocation54_spill] sm:$0xff] %v8950_v60  ;;  %15082 = vst [vmem:[#allocation55_spill] sm:$0xff] %v8952_v31  ;;  %8056 = vmatpush3.bf16.msra.mxu0 %v8053_v59  ;;  %8084 = vmatpush3.bf16.msra.mxu1 %v8053_v59  ;;  %v2305_v59 = vld [vmem:[%s15088_s0] sm:$0xff] }
  0xde   :  { %1563 = vperm.xlu1 %8094, %v8657_v44   ;;  %1567 = vperm.xlu0 %8093, %v8652_v43   ;;  %v229_v31 = vld [vmem:[%s15085_s11 + $0x20] sm:$0xff] }
  0xdf   :  { %7707 = vmatmul.mubr.msk.f32.gmra.mrb[6].mxu0 %vm87_vm0, %v75_v29  ;;  %v2306_v29 = vld [vmem:[%s15088_s0 + $0x8] sm:$0xff] }
  0xe0   :  { %v8970_v61 = vpop.permute.xlu1 %1233  ;;  %v8972_v60 = vpop.permute.xlu0 %1228  ;;  %7717 = vmatprep.mubr.msk.f32.mxu0 %vm87_vm0, %v225_v62  ;;  %v8057_v62 = vpack.c.bf16 %v2306_v29, %v2305_v59  ;;  %v230_v29 = vld [vmem:[%s15085_s11 + $0x28] sm:$0xff] }
  0xe1   :  { %15083 = vst [vmem:[#allocation56_spill] sm:$0xff] %v8970_v61  ;;  %15084 = vst [vmem:[#allocation57_spill] sm:$0xff] %v8972_v60  ;;  %v227_v60 = vld [vmem:[%s15085_s11 + $0x10] sm:$0xff] }
  0xe2   :  { %1571 = vperm.xlu1 %8094, %v8669_v46   ;;  %1575 = vperm.xlu0 %8093, %v8664_v45  }
  0xe3   :  { %7718 = vmatmul.mubr.msk.f32.vlgmr.msra.gmra.mrb[8].mxu0 %vm87_vm0, %v226_v57  ;;  %8058 = vmatprep.subr.bf16.mxu0 %v8057_v62 }
  0xe4   :  { %v8984_v4 = vpop.permute.xlu1 %1243  ;;  %v8986_v61 = vpop.permute.xlu0 %1238  ;;  %7720 = vmatprep.mubr.msk.f32.mxu0 %vm87_vm0, %v227_v60  ;;  %8060 = vmatpush3.bf16.msra.mxu0 %v8057_v62  ;;  %v231_v62 = vld [vmem:[%s15085_s11 + $0x30] sm:$0xff] }
  0xe5   :  { %15086 = vst [vmem:[#allocation58_spill] sm:$0xff] %v8984_v4  ;;  %15087 = vst [vmem:[#allocation59_spill] sm:$0xff] %v8986_v61  ;;  %v228_v61 = vld [vmem:[%s15085_s11 + $0x18] sm:$0xff] }
  0xe6   :  { %1579 = vperm.xlu1 %8094, %v8681_v48   ;;  %1583 = vperm.xlu0 %8093, %v8676_v47  }
  0xe7   :  { %7721 = vmatmul.mubr.msk.f32.gmra.mrb[10].mxu0 %vm87_vm0, %v228_v61 }
  0xe8   :  { %v9001_v57 = vpop.permute.xlu1 %1253  ;;  %v9003_v4 = vpop.permute.xlu0 %1248  ;;  %7723 = vmatprep.mubr.msk.f32.mxu0 %vm87_vm0, %v229_v31  ;;  %v232_v31 = vld [vmem:[%s15085_s11 + $0x38] sm:$0xff] }
  0xe9   :  { %15089 = vst [vmem:[#allocation60_spill] sm:$0xff] %v9001_v57  ;;  %15090 = vst [vmem:[#allocation61_spill] sm:$0xff] %v9003_v4  ;;  %v233_v57 = vld [vmem:[%s15085_s11 + $0x40] sm:$0xff]  ;;  %v2308_v4 = vld [vmem:[%s15088_s0 + $0x18] sm:$0xff] }
  0xea   :  { %1587 = vperm.xlu1 %8094, %v8693_v50   ;;  %1591 = vperm.xlu0 %8093, %v8688_v49  }
  0xeb   :  { %7724 = vmatmul.mubr.msk.f32.gmra.mrb[12].mxu0 %vm87_vm0, %v230_v29 }
  0xec   :  { %v9014_v60 = vpop.permute.xlu1 %1263  ;;  %v9016_v59 = vpop.permute.xlu0 %1258  ;;  %7726 = vmatprep.mubr.msk.f32.mxu0 %vm87_vm0, %v231_v62  ;;  %v234_v62 = vld [vmem:[%s15085_s11 + $0x48] sm:$0xff] }
  0xed   :  { %15091 = vst [vmem:[#allocation62_spill] sm:$0xff] %v9014_v60  ;;  %15092 = vst [vmem:[#allocation63_spill] sm:$0xff] %v9016_v59  ;;  %v15099_v59 = vld [vmem:[#allocation6_spill] sm:$0xff] }
  0xee   :  { %1595 = vperm.xlu1 %8094, %v8705_v52   ;;  %1599 = vperm.xlu0 %8093, %v8700_v51  }
  0xef   :  { %7727 = vmatmul.mubr.msk.f32.gmra.mrb[14].mxu0 %vm87_vm0, %v232_v31 }
  0xf0   :  { %v9028_v61 = vpop.permute.xlu1 %1273  ;;  %v9030_v60 = vpop.permute.xlu0 %1268  ;;  %7729 = vmatprep.mubr.msk.f32.mxu0 %vm87_vm0, %v233_v57  ;;  %v236_v57 = vld [vmem:[%s15085_s11 + $0x58] sm:$0xff] }
  0xf1   :  { %15093 = vst [vmem:[#allocation64_spill] sm:$0xff] %v9028_v61  ;;  %15094 = vst [vmem:[#allocation65_spill] sm:$0xff] %v9030_v60  ;;  %v235_v60 = vld [vmem:[%s15085_s11 + $0x50] sm:$0xff] }
  0xf2   :  { %1603 = vperm.xlu1 %8094, %v8717_v54   ;;  %1607 = vperm.xlu0 %8093, %v8712_v53  }
  0xf3   :  { %7730 = vmatmul.mubr.msk.f32.gmra.mrb[16].mxu0 %vm87_vm0, %v234_v62 }
  0xf4   :  { %v9042_v29 = vpop.permute.xlu1 %1283  ;;  %v9044_v61 = vpop.permute.xlu0 %1278  ;;  %7732 = vmatprep.mubr.msk.f32.mxu0 %vm87_vm0, %v235_v60  ;;  %v238_v60 = vld [vmem:[%s15085_s11 + $0x68] sm:$0xff] }
  0xf5   :  { %15095 = vst [vmem:[#allocation66_spill] sm:$0xff] %v9042_v29  ;;  %15096 = vst [vmem:[#allocation67_spill] sm:$0xff] %v9044_v61  ;;  %v237_v61 = vld [vmem:[%s15085_s11 + $0x60] sm:$0xff] }
  0xf6   :  { %1611 = vperm.xlu1 %8094, %v8729_v56   ;;  %1615 = vperm.xlu0 %8093, %v8724_v55  }
  0xf7   :  { %7733 = vmatmul.mubr.msk.f32.gmra.mrb[18].mxu0 %vm87_vm0, %v236_v57  ;;  %v239_v57 = vld [vmem:[%s15085_s11 + $0x70] sm:$0xff] }
  0xf8   :  { %v9056_v31 = vpop.permute.xlu1 %1293  ;;  %v9058_v29 = vpop.permute.xlu0 %1288  ;;  %7735 = vmatprep.mubr.msk.f32.mxu0 %vm87_vm0, %v237_v61  ;;  %v15103_v61 = vld [vmem:[#allocation7_spill] sm:$0xff] }
  0xf9   :  { %15097 = vst [vmem:[#allocation68_spill] sm:$0xff] %v9056_v31  ;;  %15098 = vst [vmem:[#allocation69_spill] sm:$0xff] %v9058_v29  ;;  %v2307_v29 = vld [vmem:[%s15088_s0 + $0x10] sm:$0xff] }
  0xfa   :  { %1619 = vperm.xlu1 %8094, %v8741_v58   ;;  %1623 = vperm.xlu0 %8093, %v15099_v59   ;;  %v8061_v59 = vpack.c.bf16 %v2308_v4, %v2307_v29  ;;  %v240_v4 = vld [vmem:[%s15085_s11 + $0x78] sm:$0xff]  ;;  %v241_v29 = vld [vmem:[%s15085_s11 + $0x80] sm:$0xff] }
  0xfb   :  { %7736 = vmatmul.mubr.msk.f32.gmra.mrb[20].mxu0 %vm87_vm0, %v238_v60 }
  0xfc   :  { %v9070_v62 = vpop.permute.xlu1 %1303  ;;  %v9072_v31 = vpop.permute.xlu0 %1298  ;;  %8062 = vmatprep.subr.bf16.mxu0 %v8061_v59  ;;  %7738 = vmatprep.mubr.msk.f32.mxu0 %vm87_vm0, %v239_v57  ;;  %v243_v57 = vld [vmem:[%s15085_s11 + $0x90] sm:$0xff] }
  0xfd   :  { %15100 = vst [vmem:[#allocation70_spill] sm:$0xff] %v9070_v62  ;;  %15101 = vst [vmem:[#allocation71_spill] sm:$0xff] %v9072_v31  ;;  %v15102_v62 = vld [vmem:[#allocation8_spill] sm:$0xff]  ;;  %8064 = vmatpush3.bf16.msra.mxu0 %v8061_v59  ;;  %v242_v59 = vld [vmem:[%s15085_s11 + $0x88] sm:$0xff] }
  0xfe   :  { %1627 = vperm.xlu1 %8094, %v15102_v62   ;;  %1631 = vperm.xlu0 %8093, %v15103_v61   ;;  %v15106_v62 = vld [vmem:[#allocation10_spill] sm:$0xff]  ;;  %v15107_v61 = vld [vmem:[#allocation9_spill] sm:$0xff] }
  0xff   :  { %7739 = vmatmul.mubr.msk.f32.gmra.mrb[22].mxu0 %vm87_vm0, %v240_v4 }
 0x100   :  { %v9090_v31 = vpop.permute.xlu1 %1313  ;;  %v9092_v55 = vpop.permute.xlu0 %1308  ;;  %7741 = vmatprep.mubr.msk.f32.mxu0 %vm87_vm0, %v241_v29  ;;  %v244_v29 = vld [vmem:[%s15085_s11 + $0x98] sm:$0xff] }
 0x101   :  { %15104 = vst [vmem:[#allocation72_spill] sm:$0xff] %v9090_v31  ;;  %15105 = vst [vmem:[#allocation73_spill] sm:$0xff] %v9092_v55  ;;  %v245_v55 = vld [vmem:[%s15085_s11 + $0xa0] sm:$0xff] }
 0x102   :  { %1635 = vperm.xlu1 %8094, %v15106_v62   ;;  %1639 = vperm.xlu0 %8093, %v15107_v61   ;;  %v247_v61 = vld [vmem:[%s15085_s11 + $0xb0] sm:$0xff] }
 0x103   :  { %7742 = vmatmul.mubr.msk.f32.gmra.mrb[24].mxu0 %vm87_vm0, %v242_v59  ;;  %v15110_v59 = vld [vmem:[#allocation2_spill] sm:$0xff] }
 0x104   :  { %v9104_v60 = vpop.permute.xlu1 %1323  ;;  %v9106_v31 = vpop.permute.xlu0 %1318  ;;  %7744 = vmatprep.mubr.msk.f32.mxu0 %vm87_vm0, %v243_v57 }
 0x105   :  { %15108 = vst [vmem:[#allocation10_spill] sm:$0xff] %v9104_v60  ;;  %15109 = vst [vmem:[#allocation74_spill] sm:$0xff] %v9106_v31  ;;  %v14871_v31 = vmov 2  }
 0x106   :  { %1643 = vperm.xlu1 %8094, %v8777_v0   ;;  %1647 = vperm.xlu0 %8093, %v8772_v63  }
 0x107   :  { %7745 = vmatmul.mubr.msk.f32.gmra.mrb[26].mxu0 %vm87_vm0, %v244_v29 }
 0x108   :  { %7747 = vmatprep.mubr.msk.f32.mxu0 %vm87_vm0, %v245_v55  ;;  %v248_v55 = vld [vmem:[%s15085_s11 + $0xb8] sm:$0xff] }
 0x109   :  { %v9119_v4 = vpop.permute.xlu1 %1399  ;;  %v9121_v60 = vpop.permute.xlu0 %1395 }
 0x10a   :  { %8095 = vset.pattern.permute.xlu1 %v14871_v31  ;;  %8096 = vset.pattern.permute.xlu0 %v14871_v31  ;;  %v246_v31 = vld [vmem:[%s15085_s11 + $0xa8] sm:$0xff] }
 0x10b   :  { %1783 = vperm.xlu1 %8095, %v8405_v2   ;;  %1787 = vperm.xlu0 %8096, %v15110_v59  }
 0x10c   :  { %7748 = vmatmul.mubr.msk.f32.gmra.mrb[28].mxu0 %vm87_vm0, %v246_v31 }
 0x10d   :  { %v9134_v57 = vpop.permute.xlu1 %1403  ;;  %v9136_v63 = vpop.permute.xlu0 %1407  ;;  %7750 = vmatprep.mubr.msk.f32.mxu0 %vm87_vm0, %v247_v61 }
 0x10f   :  { %1791 = vperm.xlu1 %8095, %v8400_v1   ;;  %1799 = vperm.xlu0 %8096, %v8429_v6  }
 0x110   :  { %7751 = vmatmul.mubr.msk.f32.gmra.mrb[30].mxu0 %vm87_vm0, %v248_v55 }
 0x111   :  { %v9148_v2 = vpop.permute.xlu1 %1411  ;;  %v9150_v29 = vpop.permute.xlu0 %1415 }
 0x113   :  { %1795 = vperm.xlu1 %8095, %v8412_v3   ;;  %1807 = vperm.xlu0 %8096, %v8441_v8  }
 0x115   :  { %v9159_v1 = vpop.permute.xlu1 %1419  ;;  %v9161_v6 = vpop.permute.xlu0 %1423 }
 0x117   :  { %1803 = vperm.xlu1 %8095, %v8424_v5   ;;  %1815 = vperm.xlu0 %8096, %v8453_v10  }
 0x119   :  { %v9165_v31 = vpop.permute.xlu1 %1427  ;;  %v9167_v61 = vpop.permute.xlu0 %1431 }
 0x11b   :  { %1811 = vperm.xlu1 %8095, %v8436_v7   ;;  %1823 = vperm.xlu0 %8096, %v8465_v12  }
 0x11d   :  { %v9171_v3 = vpop.permute.xlu1 %1435  ;;  %v9173_v8 = vpop.permute.xlu0 %1439 }
 0x11f   :  { %1819 = vperm.xlu1 %8095, %v8448_v9   ;;  %1831 = vperm.xlu0 %8096, %v8477_v14  }
 0x121   :  { %v9177_v59 = vpop.permute.xlu1 %1443  ;;  %v9179_v5 = vpop.permute.xlu0 %1447 }
 0x123   :  { %1827 = vperm.xlu1 %8095, %v8460_v11   ;;  %1839 = vperm.xlu0 %8096, %v8489_v16  }
 0x125   :  { %v9183_v10 = vpop.permute.xlu1 %1451  ;;  %v9185_v7 = vpop.permute.xlu0 %1455 }
 0x127   :  { %1835 = vperm.xlu1 %8095, %v8472_v13   ;;  %1847 = vperm.xlu0 %8096, %v8501_v18  }
 0x129   :  { %v9189_v12 = vpop.permute.xlu1 %1459  ;;  %v9191_v9 = vpop.permute.xlu0 %1463 }
 0x12b   :  { %1843 = vperm.xlu1 %8095, %v8484_v15   ;;  %1855 = vperm.xlu0 %8096, %v8513_v20  }
 0x12d   :  { %v9195_v14 = vpop.permute.xlu1 %1467  ;;  %v9197_v11 = vpop.permute.xlu0 %1471 }
 0x12f   :  { %1851 = vperm.xlu1 %8095, %v8496_v17   ;;  %1863 = vperm.xlu0 %8096, %v8525_v22  }
 0x131   :  { %v9201_v16 = vpop.permute.xlu1 %1475  ;;  %v9203_v13 = vpop.permute.xlu0 %1479 }
 0x133   :  { %1859 = vperm.xlu1 %8095, %v8508_v19   ;;  %1871 = vperm.xlu0 %8096, %v8537_v24  }
 0x135   :  { %v9207_v18 = vpop.permute.xlu1 %1483  ;;  %v9209_v15 = vpop.permute.xlu0 %1487 }
 0x137   :  { %1867 = vperm.xlu1 %8095, %v8520_v21   ;;  %1879 = vperm.xlu0 %8096, %v8549_v26  }
 0x139   :  { %v9213_v20 = vpop.permute.xlu1 %1491  ;;  %v9215_v17 = vpop.permute.xlu0 %1495 }
 0x13b   :  { %1875 = vperm.xlu1 %8095, %v8532_v23   ;;  %1887 = vperm.xlu0 %8096, %v8561_v28   ;;  %v249_v23 = vld [vmem:[%s15085_s11 + $0xc0] sm:$0xff] }
 0x13c   :  { %7753 = vmatprep.mubr.msk.f32.mxu1 %vm87_vm0, %v249_v23 }
 0x13d   :  { %v9219_v22 = vpop.permute.xlu1 %1499  ;;  %v9221_v19 = vpop.permute.xlu0 %1503 }
 0x13f   :  { %1883 = vperm.xlu1 %8095, %v8544_v25   ;;  %1895 = vperm.xlu0 %8096, %v8573_v30   ;;  %v250_v25 = vld [vmem:[%s15085_s11 + $0xc8] sm:$0xff] }
 0x140   :  { %7754 = vmatmul.mubr.msk.f32.vlgmr.msra.gmra.mrb[0].mxu1 %vm87_vm0, %v250_v25  ;;  %v15112_v30 = vld [vmem:[#allocation3_spill] sm:$0xff]  ;;  %v15113_v25 = vld [vmem:[#allocation4_spill] sm:$0xff] }
 0x141   :  { %v9225_v24 = vpop.permute.xlu1 %1507  ;;  %v9227_v21 = vpop.permute.xlu0 %1511 }
 0x143   :  { %1891 = vperm.xlu1 %8095, %v8556_v27   ;;  %1903 = vperm.xlu0 %8096, %v8585_v32   ;;  %v251_v27 = vld [vmem:[%s15085_s11 + $0xd0] sm:$0xff]  ;;  %v252_v32 = vld [vmem:[%s15085_s11 + $0xd8] sm:$0xff] }
 0x144   :  { %7756 = vmatprep.mubr.msk.f32.mxu1 %vm87_vm0, %v251_v27 }
 0x145   :  { %v9238_v26 = vpop.permute.xlu1 %1515  ;;  %v9240_v28 = vpop.permute.xlu0 %1519  ;;  %7757 = vmatmul.mubr.msk.f32.gmra.mrb[2].mxu1 %vm87_vm0, %v252_v32  ;;  %v256_v32 = vld [vmem:[%s15085_s11 + $0xf8] sm:$0xff] }
 0x146   :  { %15111 = vst [vmem:[#allocation2_spill] sm:$0xff] %v9240_v28 }
 0x147   :  { %1899 = vperm.xlu1 %8095, %v15112_v30   ;;  %1911 = vperm.xlu0 %8096, %v8597_v34   ;;  %v253_v34 = vld [vmem:[%s15085_s11 + $0xe0] sm:$0xff]  ;;  %v254_v30 = vld [vmem:[%s15085_s11 + $0xe8] sm:$0xff] }
 0x148   :  { %7759 = vmatprep.mubr.msk.f32.mxu1 %vm87_vm0, %v253_v34 }
 0x149   :  { %v9252_v55 = vpop.permute.xlu1 %1523  ;;  %v9254_v23 = vpop.permute.xlu0 %1527  ;;  %7760 = vmatmul.mubr.msk.f32.gmra.mrb[4].mxu1 %vm87_vm0, %v254_v30 }
 0x14b   :  { %1907 = vperm.xlu1 %8095, %v15113_v25   ;;  %1919 = vperm.xlu0 %8096, %v8609_v36   ;;  %v255_v36 = vld [vmem:[%s15085_s11 + $0xf0] sm:$0xff] }
 0x14c   :  { %7762 = vmatprep.mubr.msk.f32.mxu1 %vm87_vm0, %v255_v36 }
 0x14d   :  { %v9266_v27 = vpop.permute.xlu1 %1531  ;;  %v9268_v28 = vpop.permute.xlu0 %1535  ;;  %7763 = vmatmul.mubr.msk.f32.gmra.mrb[6].mxu1 %vm87_vm0, %v256_v32 }
 0x14f   :  { %1915 = vperm.xlu1 %8095, %v8592_v33   ;;  %1927 = vperm.xlu0 %8096, %v8621_v38   ;;  %v257_v33 = vld [vmem:[%s15085_s11 + $0x100] sm:$0xff]  ;;  %v258_v38 = vld [vmem:[%s15085_s11 + $0x108] sm:$0xff] }
 0x150   :  { %7765 = vmatprep.mubr.msk.f32.mxu1 %vm87_vm0, %v257_v33 }
 0x151   :  { %v9280_v25 = vpop.permute.xlu1 %1539  ;;  %v9282_v34 = vpop.permute.xlu0 %1543  ;;  %7766 = vmatmul.mubr.msk.f32.gmra.mrb[8].mxu1 %vm87_vm0, %v258_v38 }
 0x153   :  { %1923 = vperm.xlu1 %8095, %v8604_v35   ;;  %1935 = vperm.xlu0 %8096, %v8633_v40   ;;  %v259_v35 = vld [vmem:[%s15085_s11 + $0x110] sm:$0xff]  ;;  %v260_v40 = vld [vmem:[%s15085_s11 + $0x118] sm:$0xff] }
 0x154   :  { %7768 = vmatprep.mubr.msk.f32.mxu1 %vm87_vm0, %v259_v35 }
 0x155   :  { %v9294_v30 = vpop.permute.xlu1 %1547  ;;  %v9296_v36 = vpop.permute.xlu0 %1551  ;;  %7769 = vmatmul.mubr.msk.f32.gmra.mrb[10].mxu1 %vm87_vm0, %v260_v40 }
 0x157   :  { %1931 = vperm.xlu1 %8095, %v8616_v37   ;;  %1943 = vperm.xlu0 %8096, %v8645_v42   ;;  %v261_v37 = vld [vmem:[%s15085_s11 + $0x120] sm:$0xff]  ;;  %v262_v42 = vld [vmem:[%s15085_s11 + $0x128] sm:$0xff] }
 0x158   :  { %7771 = vmatprep.mubr.msk.f32.mxu1 %vm87_vm0, %v261_v37 }
 0x159   :  { %v9308_v32 = vpop.permute.xlu1 %1555  ;;  %v9310_v33 = vpop.permute.xlu0 %1559  ;;  %7772 = vmatmul.mubr.msk.f32.gmra.mrb[12].mxu1 %vm87_vm0, %v262_v42 }
 0x15b   :  { %1939 = vperm.xlu1 %8095, %v8628_v39   ;;  %1951 = vperm.xlu0 %8096, %v8657_v44   ;;  %v263_v39 = vld [vmem:[%s15085_s11 + $0x130] sm:$0xff]  ;;  %v264_v44 = vld [vmem:[%s15085_s11 + $0x138] sm:$0xff] }
 0x15c   :  { %7774 = vmatprep.mubr.msk.f32.mxu1 %vm87_vm0, %v263_v39 }
 0x15d   :  { %v9322_v38 = vpop.permute.xlu1 %1563  ;;  %v9324_v35 = vpop.permute.xlu0 %1567  ;;  %7775 = vmatmul.mubr.msk.f32.gmra.mrb[14].mxu1 %vm87_vm0, %v264_v44 }
 0x15e   :  { %15114 = vst [vmem:[#allocation3_spill] sm:$0xff] %v9324_v35 }
 0x15f   :  { %1947 = vperm.xlu1 %8095, %v8640_v41   ;;  %1959 = vperm.xlu0 %8096, %v8669_v46   ;;  %v265_v41 = vld [vmem:[%s15085_s11 + $0x140] sm:$0xff]  ;;  %v266_v46 = vld [vmem:[%s15085_s11 + $0x148] sm:$0xff] }
 0x160   :  { %7777 = vmatprep.mubr.msk.f32.mxu1 %vm87_vm0, %v265_v41 }
 0x161   :  { %v9336_v40 = vpop.permute.xlu1 %1571  ;;  %v9338_v37 = vpop.permute.xlu0 %1575  ;;  %7778 = vmatmul.mubr.msk.f32.gmra.mrb[16].mxu1 %vm87_vm0, %v266_v46 }
 0x162   :  { %15115 = vst [vmem:[#allocation4_spill] sm:$0xff] %v9336_v40  ;;  %15116 = vst [vmem:[#allocation75_spill] sm:$0xff] %v9338_v37 }
 0x163   :  { %1955 = vperm.xlu1 %8095, %v8652_v43   ;;  %1967 = vperm.xlu0 %8096, %v8681_v48   ;;  %v267_v43 = vld [vmem:[%s15085_s11 + $0x150] sm:$0xff]  ;;  %v268_v48 = vld [vmem:[%s15085_s11 + $0x158] sm:$0xff] }
 0x164   :  { %7780 = vmatprep.mubr.msk.f32.mxu1 %vm87_vm0, %v267_v43 }
 0x165   :  { %v9350_v42 = vpop.permute.xlu1 %1579  ;;  %v9352_v39 = vpop.permute.xlu0 %1583  ;;  %7781 = vmatmul.mubr.msk.f32.gmra.mrb[18].mxu1 %vm87_vm0, %v268_v48 }
 0x166   :  { %15117 = vst [vmem:[#allocation76_spill] sm:$0xff] %v9350_v42  ;;  %15118 = vst [vmem:[#allocation77_spill] sm:$0xff] %v9352_v39 }
 0x167   :  { %1963 = vperm.xlu1 %8095, %v8664_v45   ;;  %1975 = vperm.xlu0 %8096, %v8693_v50   ;;  %v269_v45 = vld [vmem:[%s15085_s11 + $0x160] sm:$0xff]  ;;  %v270_v50 = vld [vmem:[%s15085_s11 + $0x168] sm:$0xff] }
 0x168   :  { %7783 = vmatprep.mubr.msk.f32.mxu1 %vm87_vm0, %v269_v45 }
 0x169   :  { %v9364_v44 = vpop.permute.xlu1 %1587  ;;  %v9366_v41 = vpop.permute.xlu0 %1591  ;;  %7784 = vmatmul.mubr.msk.f32.gmra.mrb[20].mxu1 %vm87_vm0, %v270_v50 }
 0x16a   :  { %15119 = vst [vmem:[#allocation78_spill] sm:$0xff] %v9364_v44  ;;  %15120 = vst [vmem:[#allocation79_spill] sm:$0xff] %v9366_v41 }
 0x16b   :  { %1971 = vperm.xlu1 %8095, %v8676_v47   ;;  %1983 = vperm.xlu0 %8096, %v8705_v52   ;;  %v271_v47 = vld [vmem:[%s15085_s11 + $0x170] sm:$0xff]  ;;  %v272_v52 = vld [vmem:[%s15085_s11 + $0x178] sm:$0xff] }
 0x16c   :  { %7786 = vmatprep.mubr.msk.f32.mxu1 %vm87_vm0, %v271_v47 }
 0x16d   :  { %v9378_v46 = vpop.permute.xlu1 %1595  ;;  %v9380_v43 = vpop.permute.xlu0 %1599  ;;  %7787 = vmatmul.mubr.msk.f32.gmra.mrb[22].mxu1 %vm87_vm0, %v272_v52  ;;  %v1326_v52 = vlaneseq }
 0x16e   :  { %15121 = vst [vmem:[#allocation80_spill] sm:$0xff] %v9378_v46  ;;  %15122 = vst [vmem:[#allocation81_spill] sm:$0xff] %v9380_v43  ;;  %v15145_v46 = vld [vmem:[#allocation11_spill] sm:$0xff] }
 0x16f   :  { %1979 = vperm.xlu1 %8095, %v8688_v49   ;;  %1991 = vperm.xlu0 %8096, %v8717_v54   ;;  %v273_v49 = vld [vmem:[%s15085_s11 + $0x180] sm:$0xff]  ;;  %v274_v54 = vld [vmem:[%s15085_s11 + $0x188] sm:$0xff] }
 0x170   :  { %7789 = vmatprep.mubr.msk.f32.mxu1 %vm87_vm0, %v273_v49 }
 0x171   :  { %v9392_v48 = vpop.permute.xlu1 %1603  ;;  %v9394_v45 = vpop.permute.xlu0 %1607  ;;  %7790 = vmatmul.mubr.msk.f32.gmra.mrb[24].mxu1 %vm87_vm0, %v274_v54  ;;  %v277_v54 = vld [vmem:[%s15085_s11 + $0x1a0] sm:$0xff] }
 0x172   :  { %15123 = vst [vmem:[#allocation82_spill] sm:$0xff] %v9392_v48  ;;  %15124 = vst [vmem:[#allocation83_spill] sm:$0xff] %v9394_v45  ;;  %v9434_v45 = vshrl.u32 %v1326_v52, 7  ;;  %v280_v52 = vld [vmem:[%s15085_s11 + $0x1b8] sm:$0xff] }
 0x173   :  { %1987 = vperm.xlu1 %8095, %v8700_v51   ;;  %1999 = vperm.xlu0 %8096, %v8729_v56   ;;  %v275_v51 = vld [vmem:[%s15085_s11 + $0x190] sm:$0xff]  ;;  %v276_v56 = vld [vmem:[%s15085_s11 + $0x198] sm:$0xff] }
 0x174   :  { %7792 = vmatprep.mubr.msk.f32.mxu1 %vm87_vm0, %v275_v51  ;;  %v278_v51 = vld [vmem:[%s15085_s11 + $0x1a8] sm:$0xff] }
 0x175   :  { %v9406_v50 = vpop.permute.xlu1 %1611  ;;  %v9408_v47 = vpop.permute.xlu0 %1615  ;;  %7793 = vmatmul.mubr.msk.f32.gmra.mrb[26].mxu1 %vm87_vm0, %v276_v56  ;;  %v14873_v56 = vsub.s32 1, %v9434_v45 }
 0x176   :  { %15125 = vst [vmem:[#allocation84_spill] sm:$0xff] %v9406_v50  ;;  %15126 = vst [vmem:[#allocation85_spill] sm:$0xff] %v9408_v47  ;;  %7795 = vmatprep.mubr.msk.f32.mxu1 %vm87_vm0, %v277_v54  ;;  %v15141_v54 = vld [vmem:[#allocation9_spill] sm:$0xff]  ;;  %v15142_v50 = vsub.s32 2, %v9434_v45 }
 0x177   :  { %1995 = vperm.xlu1 %8095, %v8712_v53   ;;  %2007 = vperm.xlu0 %8096, %v8741_v58   ;;  %v15129_v53 = vld [vmem:[#allocation5_spill] sm:$0xff]  ;;  %v15130_v58 = vld [vmem:[#allocation8_spill] sm:$0xff] }
 0x178   :  { %15131 = vst [vmem:[#allocation5_spill] sm:$0xff] %v9434_v45 }
 0x179   :  { %v9420_v49 = vpop.permute.xlu1 %1619  ;;  %v9422_v47 = vpop.permute.xlu0 %1623  ;;  %7796 = vmatmul.mubr.msk.f32.gmra.mrb[28].mxu1 %vm87_vm0, %v278_v51 }
 0x17a   :  { %15127 = vst [vmem:[#allocation86_spill] sm:$0xff] %v9420_v49  ;;  %15128 = vst [vmem:[#allocation87_spill] sm:$0xff] %v9422_v47 }
 0x17b   :  { %2003 = vperm.xlu1 %8095, %v15129_v53   ;;  %2015 = vperm.xlu0 %8096, %v15130_v58   ;;  %v15134_v53 = vld [vmem:[#allocation6_spill] sm:$0xff]  ;;  %v279_v58 = vld [vmem:[%s15085_s11 + $0x1b0] sm:$0xff] }
 0x17c   :  { %7798 = vmatprep.mubr.msk.f32.mxu1 %vm87_vm0, %v279_v58  ;;  %v15137_v58 = vld [vmem:[#allocation7_spill] sm:$0xff] }
 0x17d   :  { %v9436_v49 = vpop.permute.xlu1 %1627  ;;  %v9438_v47 = vpop.permute.xlu0 %1631  ;;  %7799 = vmatmul.mubr.msk.f32.gmra.mrb[30].mxu1 %vm87_vm0, %v280_v52  ;;  %v282_v52 = vld [vmem:[%s15085_s11 + $0x1c8] sm:$0xff] }
 0x17e   :  { %15132 = vst [vmem:[#allocation8_spill] sm:$0xff] %v9436_v49  ;;  %15133 = vst [vmem:[#allocation88_spill] sm:$0xff] %v9438_v47 }
 0x17f   :  { %2011 = vperm.xlu1 %8095, %v15134_v53   ;;  %2023 = vperm.xlu0 %8096, %v15106_v62   ;;  %v1005_v62 = vld [vmem:[%s14830_s9] sm:$0x7] }
 0x180   :  { %v9462_v53 = vrot.slane %v1005_v62, %v14873_v56  ;;  %v9490_v43 = vrot.slane %v1005_v62, %v15142_v50 }
 0x181   :  { %v9452_v47 = vpop.permute.xlu1 %1635  ;;  %v9454_v51 = vpop.permute.xlu0 %1639 }
 0x182   :  { %15135 = vst [vmem:[#allocation6_spill] sm:$0xff] %v9452_v47  ;;  %15136 = vst [vmem:[#allocation89_spill] sm:$0xff] %v9454_v51  ;;  %v281_v51 = vld [vmem:[%s15085_s11 + $0x1c0] sm:$0xff]  ;;  %v15138_v47 = vsub.s32 0, %v9434_v45  ;;  %v1656_v50 = vmul.f32 %v9462_v53, %v9134_v57  ;;  %v1658_v57 = vmul.f32 %v9462_v53, %v9148_v2  ;;  %v1657_v2 = vmul.f32 %v9462_v53, %v9136_v63 }
 0x183   :  { %2019 = vperm.xlu1 %8095, %v15137_v58   ;;  %2031 = vperm.xlu0 %8096, %v8777_v0   ;;  %v1655_v0 = vmul.f32 %v9462_v53, %v9119_v4  ;;  %v15143_v4 = vld [vmem:[#allocation13_spill] sm:$0xff] }
 0x184   :  { %7801 = vmatprep.mubr.msk.f32.mxu1 %vm87_vm0, %v281_v51  ;;  %v9476_v56 = vrot.slane %v1005_v62, %v15138_v47  ;;  %v1654_v51 = vmul.f32 %v9462_v53, %v9121_v60  ;;  %v283_v47 = vld [vmem:[%s15085_s11 + $0x1d0] sm:$0xff]  ;;  %v15144_v60 = vld [vmem:[#allocation15_spill] sm:$0xff] }
 0x185   :  { %v9478_v49 = vpop.permute.xlu1 %1643  ;;  %v9480_v58 = vpop.permute.xlu0 %1647  ;;  %7802 = vmatmul.mubr.msk.f32.gmra.mrb[32].mxu1 %vm87_vm0, %v282_v52  ;;  %v284_v52 = vld [vmem:[%s15085_s11 + $0x1d8] sm:$0xff] }
 0x186   :  { %15139 = vst [vmem:[#allocation7_spill] sm:$0xff] %v9478_v49  ;;  %15140 = vst [vmem:[#allocation90_spill] sm:$0xff] %v9480_v58  ;;  %7804 = vmatprep.mubr.msk.f32.mxu1 %vm87_vm0, %v283_v47  ;;  %v1330_v58 = vmul.f32 %v9476_v56, %v15143_v4  ;;  %v285_v4 = vld [vmem:[%s15085_s11 + $0x1e0] sm:$0xff] }
 0x187   :  { %2027 = vperm.xlu1 %8095, %v15141_v54   ;;  %v1331_v54 = vmul.f32 %v9476_v56, %v15144_v60  ;;  %v15146_v60 = vld [vmem:[#allocation12_spill] sm:$0xff] }
 0x188   :  { %v1718_v48 = vadd.f32 %v1654_v51, %v1330_v58  ;;  %v9519_v58 = vld [vmem:[%s14831_s10] ss:$0 sm:$0xff]  ;;  %v15147_v51 = vld [vmem:[#allocation17_spill] sm:$0xff] }
 0x189   :  { %7805 = vmatmul.mubr.msk.f32.gmra.mrb[34].mxu1 %vm87_vm0, %v284_v52  ;;  %v1719_v49 = vadd.f32 %v1655_v0, %v1331_v54  ;;  %v1332_v52 = vmul.f32 %v9476_v56, %v15146_v60  ;;  %v1334_v54 = vmul.f32 %v9476_v56, %v15147_v51  ;;  %v15150_v51 = vld [vmem:[#allocation19_spill] sm:$0xff] }
 0x18a   :  { %v1784_v62 = vpop.permute.xlu1 %1783  ;;  %v1788_v45 = vpop.permute.xlu0 %1787  ;;  %7807 = vmatprep.mubr.msk.f32.mxu1 %vm87_vm0, %v285_v4 }
 0x18b   :  { %v2042_v47 = vmul.f32 %v9490_v43, %v1784_v62  ;;  %v2043_v41 = vmul.f32 %v9490_v43, %v1788_v45  ;;  %2035 = vperm.xlu1 %8095, %v15145_v46   ;;  %v286_v46 = vld [vmem:[%s15085_s11 + $0x1e8] sm:$0xff]  ;;  %v1720_v62 = vadd.f32 %v1656_v50, %v1332_v52  ;;  %v15149_v50 = vld [vmem:[#allocation14_spill] sm:$0xff]  ;;  %v1722_v63 = vadd.f32 %v1658_v57, %v1334_v54 }
 0x18c   :  { %v1660_v52 = vmul.f32 %v9462_v53, %v9159_v1  ;;  %v1659_v1 = vmul.f32 %v9462_v53, %v9150_v29  ;;  %v3341_v29 = vld [vmem:[%s14832_s13] sm:$0xff] }
 0x18d   :  { %v2106_v45 = vadd.f32 %v2042_v47, %v1718_v48  ;;  %v2107_v0 = vadd.f32 %v2043_v41, %v1719_v49  ;;  %7808 = vmatmul.mubr.msk.f32.gmra.mrb[36].mxu1 %vm87_vm0, %v286_v46  ;;  %v287_v41 = vld [vmem:[%s15085_s11 + $0x1f0] sm:$0xff]  ;;  %v15148_v49 = vmov 0   ;;  %v1333_v47 = vmul.f32 %v9476_v56, %v15149_v50  ;;  %v288_v46 = vld [vmem:[%s15085_s11 + $0x1f8] sm:$0xff] }
 0x18e   :  { %v1792_v60 = vpop.permute.xlu1 %1791  ;;  %v1800_v39 = vpop.permute.xlu0 %1799  ;;  %7810 = vmatprep.mubr.msk.f32.mxu1 %vm87_vm0, %v287_v41 }
 0x18f   :  { %v2177_v44 = vadd.f32 %v9519_v58, %v2106_v45  ;;  %v2178_v4 = vadd.f32 %v9519_v58, %v2107_v0  ;;  %v2044_v37 = vmul.f32 %v9490_v43, %v1792_v60  ;;  %v2046_v48 = vmul.f32 %v9490_v43, %v1800_v39  ;;  %8097 = vset.pattern.permute.xlu1 %v15148_v49 }
 0x190   :  { %v1336_v60 = vmul.f32 %v9476_v56, %v15150_v51  ;;  %v1721_v49 = vadd.f32 %v1657_v2, %v1333_v47  ;;  %v1662_v2 = vmul.f32 %v9462_v53, %v9165_v31  ;;  %v15152_v47 = vld [vmem:[#allocation21_spill] sm:$0xff]  ;;  %v3343_v31 = vld [vmem:[%s14832_s13 + $0x10] sm:$0xff] }
 0x191   :  { %v2241_v39 = vmax.f32 %v2177_v44, 0.0  ;;  %v2242_v45 = vmax.f32 %v2178_v4, 0.0  ;;  %v2108_v0 = vadd.f32 %v2044_v37, %v1720_v62  ;;  %7811 = vmatmul.mubr.msk.f32.gmra.mrb[38].mxu1 %vm87_vm0, %v288_v46  ;;  %v2110_v50 = vadd.f32 %v2046_v48, %v1722_v63  ;;  %v15151_v37 = vld [vmem:[#allocation16_spill] sm:$0xff]  ;;  %v3342_v48 = vld [vmem:[%s14832_s13 + $0x8] sm:$0xff] }
 0x192   :  { %v1796_v57 = vpop.permute.xlu1 %1795  ;;  %v1808_v54 = vpop.permute.xlu0 %1807  ;;  %v1335_v62 = vmul.f32 %v9476_v56, %v15151_v37  ;;  %v1724_v4 = vadd.f32 %v1660_v52, %v1336_v60  ;;  %v1338_v63 = vmul.f32 %v9476_v56, %v15152_v47  ;;  %v1661_v46 = vmul.f32 %v9462_v53, %v9161_v6 }
 0x193   :  { %v2179_v41 = vadd.f32 %v9519_v58, %v2108_v0  ;;  %v2045_v42 = vmul.f32 %v9490_v43, %v1796_v57  ;;  %v2048_v44 = vmul.f32 %v9490_v43, %v1808_v54  ;;  %7821 = vmatprep.mubr.msk.f32.mxu0 %vm87_vm0, %v2241_v39  ;;  %v2181_v0 = vadd.f32 %v9519_v58, %v2110_v50 }
 0x194   :  { %7822 = vmatmul.mubr.msk.f32.vlgmr.msra.gmra.mrb[32].mxu0 %vm87_vm0, %v2242_v45  ;;  %v3344_v45 = vld [vmem:[%s14832_s13 + $0x18] sm:$0xff]  ;;  %v8065_v54 = vpack.c.bf16 %v3342_v48, %v3341_v29  ;;  %v1723_v47 = vadd.f32 %v1659_v1, %v1335_v62  ;;  %v1726_v40 = vadd.f32 %v1662_v2, %v1338_v63  ;;  %v1664_v50 = vmul.f32 %v9462_v53, %v9171_v3 }
 0x195   :  { %v2243_v52 = vmax.f32 %v2179_v41, 0.0  ;;  %v2109_v39 = vadd.f32 %v2045_v42, %v1721_v49  ;;  %v2112_v51 = vadd.f32 %v2048_v44, %v1724_v4  ;;  %v8069_v37 = vpack.c.bf16 %v3344_v45, %v3343_v31  ;;  %v15153_v41 = vld [vmem:[#allocation18_spill] sm:$0xff]  ;;  %v15154_v44 = vld [vmem:[#allocation23_spill] sm:$0xff] }
 0x196   :  { %v1804_v60 = vpop.permute.xlu1 %1803  ;;  %v1816_v57 = vpop.permute.xlu0 %1815  ;;  %v1337_v35 = vmul.f32 %v9476_v56, %v15153_v41  ;;  %8066 = vmatprep.subr.bf16.mxu1 %v8065_v54  ;;  %v1340_v4 = vmul.f32 %v9476_v56, %v15154_v44  ;;  %v2245_v48 = vmax.f32 %v2181_v0, 0.0  ;;  %v1663_v2 = vmul.f32 %v9462_v53, %v9167_v61  ;;  %v15156_v0 = vld [vmem:[#allocation25_spill] sm:$0xff] }
 0x197   :  { %v2180_v6 = vadd.f32 %v9519_v58, %v2109_v39  ;;  %v2047_v42 = vmul.f32 %v9490_v43, %v1804_v60  ;;  %v2050_v49 = vmul.f32 %v9490_v43, %v1816_v57  ;;  %7824 = vmatprep.mubr.msk.f32.mxu0 %vm87_vm0, %v2243_v52  ;;  %8068 = vmatpush3.bf16.msra.mxu1 %v8065_v54 }
 0x198   :  { %v1725_v29 = vadd.f32 %v1661_v46, %v1337_v35  ;;  %v2183_v39 = vadd.f32 %v9519_v58, %v2112_v51  ;;  %8070 = vmatprep.subr.bf16.mxu1 %v8069_v37  ;;  %v1728_v57 = vadd.f32 %v1664_v50, %v1340_v4  ;;  %v1666_v35 = vmul.f32 %v9462_v53, %v9177_v59 }
 0x199   :  { %v2244_v1 = vmax.f32 %v2180_v6, 0.0  ;;  %v2111_v62 = vadd.f32 %v2047_v42, %v1723_v47  ;;  %v2114_v31 = vadd.f32 %v2050_v49, %v1726_v40  ;;  %v15155_v40 = vld [vmem:[#allocation20_spill] sm:$0xff]  ;;  %v1342_v61 = vmul.f32 %v9476_v56, %v15156_v0 }
 0x19a   :  { %v1812_v52 = vpop.permute.xlu1 %1811  ;;  %v1824_v45 = vpop.permute.xlu0 %1823  ;;  %v1339_v46 = vmul.f32 %v9476_v56, %v15155_v40  ;;  %v1665_v47 = vmul.f32 %v9462_v53, %v9173_v8  ;;  %v2247_v6 = vmax.f32 %v2183_v39, 0.0  ;;  %v1668_v8 = vmul.f32 %v9462_v53, %v9183_v10 }
 0x19b   :  { %v2182_v3 = vadd.f32 %v9519_v58, %v2111_v62  ;;  %v2049_v63 = vmul.f32 %v9490_v43, %v1812_v52  ;;  %v2052_v60 = vmul.f32 %v9490_v43, %v1824_v45  ;;  %7825 = vmatmul.mubr.msk.f32.gmra.mrb[34].mxu0 %vm87_vm0, %v2244_v1  ;;  %8072 = vmatpush3.bf16.msra.mxu1 %v8069_v37  ;;  %v15157_v62 = vld [vmem:[#allocation22_spill] sm:$0xff] }
 0x19c   :  { %7827 = vmatprep.mubr.msk.f32.mxu0 %vm87_vm0, %v2245_v48  ;;  %v2185_v42 = vadd.f32 %v9519_v58, %v2114_v31  ;;  %v1727_v50 = vadd.f32 %v1663_v2, %v1339_v46  ;;  %v1341_v37 = vmul.f32 %v9476_v56, %v15157_v62  ;;  %v15158_v48 = vld [vmem:[#allocation27_spill] sm:$0xff] }
 0x19d   :  { %v2246_v51 = vmax.f32 %v2182_v3, 0.0  ;;  %v2113_v54 = vadd.f32 %v2049_v63, %v1725_v29  ;;  %v2116_v49 = vadd.f32 %v2052_v60, %v1728_v57  ;;  %v1730_v29 = vadd.f32 %v1666_v35, %v1342_v61 }
 0x19e   :  { %v1820_v41 = vpop.permute.xlu1 %1819  ;;  %v1832_v59 = vpop.permute.xlu0 %1831  ;;  %v1344_v39 = vmul.f32 %v9476_v56, %v15158_v48  ;;  %v1729_v45 = vadd.f32 %v1665_v47, %v1341_v37  ;;  %v2249_v2 = vmax.f32 %v2185_v42, 0.0  ;;  %v1667_v35 = vmul.f32 %v9462_v53, %v9179_v5  ;;  %v15160_v47 = vld [vmem:[#allocation29_spill] sm:$0xff] }
 0x19f   :  { %v2184_v44 = vadd.f32 %v9519_v58, %v2113_v54  ;;  %v2051_v4 = vmul.f32 %v9490_v43, %v1820_v41  ;;  %v2054_v1 = vmul.f32 %v9490_v43, %v1832_v59  ;;  %7828 = vmatmul.mubr.msk.f32.gmra.mrb[36].mxu0 %vm87_vm0, %v2246_v51  ;;  %v2187_v3 = vadd.f32 %v9519_v58, %v2116_v49  ;;  %v15159_v51 = vld [vmem:[#allocation24_spill] sm:$0xff] }
 0x1a0   :  { %7830 = vmatprep.mubr.msk.f32.mxu0 %vm87_vm0, %v2247_v6  ;;  %v1732_v0 = vadd.f32 %v1668_v8, %v1344_v39  ;;  %v1670_v61 = vmul.f32 %v9462_v53, %v9189_v12  ;;  %v1343_v54 = vmul.f32 %v9476_v56, %v15159_v51  ;;  %v1346_v5 = vmul.f32 %v9476_v56, %v15160_v47  ;;  %v15161_v8 = vld [vmem:[#allocation26_spill] sm:$0xff] }
 0x1a1   :  { %v2248_v31 = vmax.f32 %v2184_v44, 0.0  ;;  %v2115_v52 = vadd.f32 %v2051_v4, %v1727_v50  ;;  %v2118_v63 = vadd.f32 %v2054_v1, %v1730_v29  ;;  %v1669_v49 = vmul.f32 %v9462_v53, %v9185_v7 }
 0x1a2   :  { %v1828_v60 = vpop.permute.xlu1 %1827  ;;  %v1840_v57 = vpop.permute.xlu0 %1839  ;;  %v2251_v41 = vmax.f32 %v2187_v3, 0.0  ;;  %v1731_v12 = vadd.f32 %v1667_v35, %v1343_v54  ;;  %v1345_v7 = vmul.f32 %v9476_v56, %v15161_v8  ;;  %v1734_v48 = vadd.f32 %v1670_v61, %v1346_v5 }
 0x1a3   :  { %v2186_v40 = vadd.f32 %v9519_v58, %v2115_v52  ;;  %v2053_v10 = vmul.f32 %v9490_v43, %v1828_v60  ;;  %v2056_v46 = vmul.f32 %v9490_v43, %v1840_v57  ;;  %7831 = vmatmul.mubr.msk.f32.gmra.mrb[38].mxu0 %vm87_vm0, %v2248_v31  ;;  %v2189_v59 = vadd.f32 %v9519_v58, %v2118_v63  ;;  %v9636_v29 = vpop.f32.mrb[0].mxu0  ;;  %v15162_v52 = vld [vmem:[#allocation31_spill] sm:$0xff] }
 0x1a4   :  { %7833 = vmatprep.mubr.msk.f32.mxu0 %vm87_vm0, %v2249_v2  ;;  %v1672_v39 = vmul.f32 %v9462_v53, %v9195_v14  ;;  %v9643_v31 = vpop.f32.mrb[1].mxu0  ;;  %v1733_v63 = vadd.f32 %v1669_v49, %v1345_v7  ;;  %v1674_v47 = vmul.f32 %v9462_v53, %v9201_v16 }
 0x1a5   :  { %v2250_v6 = vmax.f32 %v2186_v40, 0.0  ;;  %v2117_v42 = vadd.f32 %v2053_v10, %v1729_v45  ;;  %v2120_v50 = vadd.f32 %v2056_v46, %v1732_v0  ;;  %v1348_v45 = vmul.f32 %v9476_v56, %v15162_v52 }
 0x1a6   :  { %v1836_v44 = vpop.permute.xlu1 %1835  ;;  %v1848_v4 = vpop.permute.xlu0 %1847  ;;  %v2253_v60 = vmax.f32 %v2189_v59, 0.0  ;;  %v1671_v46 = vmul.f32 %v9462_v53, %v9191_v9 }
 0x1a7   :  { %v2188_v1 = vadd.f32 %v9519_v58, %v2117_v42  ;;  %v2055_v62 = vmul.f32 %v9490_v43, %v1836_v44  ;;  %v2058_v37 = vmul.f32 %v9490_v43, %v1848_v4  ;;  %7834 = vmatmul.mubr.msk.f32.gmra.mrb[40].mxu0 %vm87_vm0, %v2250_v6  ;;  %v2191_v57 = vadd.f32 %v9519_v58, %v2120_v50  ;;  %v9654_v51 = vpop.f32.mrb[2].mxu0  ;;  %v15163_v6 = vld [vmem:[#allocation28_spill] sm:$0xff]  ;;  %v15164_v42 = vld [vmem:[#allocation33_spill] sm:$0xff] }
 0x1a8   :  { %7836 = vmatprep.mubr.msk.f32.mxu0 %vm87_vm0, %v2251_v41  ;;  %v1736_v54 = vadd.f32 %v1672_v39, %v1348_v45  ;;  %v9659_v5 = vpop.f32.mrb[3].mxu0  ;;  %v1347_v9 = vmul.f32 %v9476_v56, %v15163_v6  ;;  %v1350_v49 = vmul.f32 %v9476_v56, %v15164_v42  ;;  %v1673_v50 = vmul.f32 %v9462_v53, %v9197_v11  ;;  %v15165_v39 = vld [vmem:[#allocation30_spill] sm:$0xff] }
 0x1a9   :  { %v2252_v2 = vmax.f32 %v2188_v1, 0.0  ;;  %v2119_v3 = vadd.f32 %v2055_v62, %v1731_v12  ;;  %v2122_v35 = vadd.f32 %v2058_v37, %v1734_v48  ;;  %v2255_v44 = vmax.f32 %v2191_v57, 0.0 }
 0x1aa   :  { %v1844_v40 = vpop.permute.xlu1 %1843  ;;  %v1856_v10 = vpop.permute.xlu0 %1855  ;;  %v1735_v62 = vadd.f32 %v1671_v46, %v1347_v9  ;;  %v1349_v11 = vmul.f32 %v9476_v56, %v15165_v39  ;;  %v1738_v52 = vadd.f32 %v1674_v47, %v1350_v49  ;;  %v1676_v45 = vmul.f32 %v9462_v53, %v9207_v18  ;;  %v15167_v49 = vld [vmem:[#allocation32_spill] sm:$0xff] }
 0x1ab   :  { %v2190_v14 = vadd.f32 %v9519_v58, %v2119_v3  ;;  %v2057_v0 = vmul.f32 %v9490_v43, %v1844_v40  ;;  %v2060_v61 = vmul.f32 %v9490_v43, %v1856_v10  ;;  %7837 = vmatmul.mubr.msk.f32.gmra.mrb[42].mxu0 %vm87_vm0, %v2252_v2  ;;  %v2193_v4 = vadd.f32 %v9519_v58, %v2122_v35  ;;  %v9672_v48 = vpop.f32.mrb[4].mxu0  ;;  %v15166_v3 = vld [vmem:[#allocation35_spill] sm:$0xff] }
 0x1ac   :  { %7839 = vmatprep.mubr.msk.f32.mxu0 %vm87_vm0, %v2253_v60  ;;  %v9679_v2 = vpop.f32.mrb[5].mxu0  ;;  %v1737_v35 = vadd.f32 %v1673_v50, %v1349_v11  ;;  %v1678_v9 = vmul.f32 %v9462_v53, %v9213_v20 }
 0x1ad   :  { %v2254_v41 = vmax.f32 %v2190_v14, 0.0  ;;  %v2121_v59 = vadd.f32 %v2057_v0, %v1733_v63  ;;  %v2124_v12 = vadd.f32 %v2060_v61, %v1736_v54  ;;  %v1352_v63 = vmul.f32 %v9476_v56, %v15166_v3 }
 0x1ae   :  { %v1852_v16 = vpop.permute.xlu1 %1851  ;;  %v1864_v1 = vpop.permute.xlu0 %1863  ;;  %v2257_v40 = vmax.f32 %v2193_v4, 0.0  ;;  %v1675_v61 = vmul.f32 %v9462_v53, %v9203_v13  ;;  %v15168_v13 = vld [vmem:[#allocation37_spill] sm:$0xff] }
 0x1af   :  { %v2192_v37 = vadd.f32 %v9519_v58, %v2121_v59  ;;  %v2059_v8 = vmul.f32 %v9490_v43, %v1852_v16  ;;  %v2062_v7 = vmul.f32 %v9490_v43, %v1864_v1  ;;  %7840 = vmatmul.mubr.msk.f32.gmra.mrb[44].mxu0 %vm87_vm0, %v2254_v41  ;;  %v2195_v10 = vadd.f32 %v9519_v58, %v2124_v12 }
 0x1b0   :  { %7842 = vmatprep.mubr.msk.f32.mxu0 %vm87_vm0, %v2255_v44  ;;  %v1740_v6 = vadd.f32 %v1676_v45, %v1352_v63  ;;  %v1351_v41 = vmul.f32 %v9476_v56, %v15167_v49  ;;  %v1354_v59 = vmul.f32 %v9476_v56, %v15168_v13  ;;  %v1677_v12 = vmul.f32 %v9462_v53, %v9209_v15  ;;  %v15171_v13 = vld [vmem:[#allocation36_spill] sm:$0xff] }
 0x1b1   :  { %v2256_v60 = vmax.f32 %v2192_v37, 0.0  ;;  %v2123_v57 = vadd.f32 %v2059_v8, %v1735_v62  ;;  %v2126_v46 = vadd.f32 %v2062_v7, %v1738_v52  ;;  %v2259_v16 = vmax.f32 %v2195_v10, 0.0  ;;  %v15169_v52 = vld [vmem:[#allocation34_spill] sm:$0xff] }
 0x1b2   :  { %v1860_v14 = vpop.permute.xlu1 %1859  ;;  %v1872_v0 = vpop.permute.xlu0 %1871  ;;  %v1739_v8 = vadd.f32 %v1675_v61, %v1351_v41  ;;  %v1353_v45 = vmul.f32 %v9476_v56, %v15169_v52  ;;  %v1742_v3 = vadd.f32 %v1678_v9, %v1354_v59  ;;  %v1680_v15 = vmul.f32 %v9462_v53, %v9219_v22 }
 0x1b3   :  { %v2194_v18 = vadd.f32 %v9519_v58, %v2123_v57  ;;  %v2061_v54 = vmul.f32 %v9490_v43, %v1860_v14  ;;  %v2064_v47 = vmul.f32 %v9490_v43, %v1872_v0  ;;  %7843 = vmatmul.mubr.msk.f32.gmra.mrb[46].mxu0 %vm87_vm0, %v2256_v60  ;;  %v9693_v42 = vpop.f32.mrb[6].mxu0  ;;  %v2197_v20 = vadd.f32 %v9519_v58, %v2126_v46  ;;  %v15170_v60 = vld [vmem:[#allocation39_spill] sm:$0xff] }
 0x1b4   :  { %7845 = vmatprep.mubr.msk.f32.mxu0 %vm87_vm0, %v2257_v40  ;;  %v9699_v4 = vpop.f32.mrb[7].mxu0  ;;  %v1356_v57 = vmul.f32 %v9476_v56, %v15170_v60  ;;  %v1741_v46 = vadd.f32 %v1677_v12, %v1353_v45  ;;  %v1679_v22 = vmul.f32 %v9462_v53, %v9215_v17  ;;  %v1682_v41 = vmul.f32 %v9462_v53, %v9225_v24  ;;  %v15173_v45 = vld [vmem:[#allocation38_spill] sm:$0xff] }
 0x1b5   :  { %v2258_v50 = vmax.f32 %v2194_v18, 0.0  ;;  %v2125_v44 = vadd.f32 %v2061_v54, %v1737_v35  ;;  %v2128_v1 = vadd.f32 %v2064_v47, %v1740_v6  ;;  %v2261_v14 = vmax.f32 %v2197_v20, 0.0 }
 0x1b6   :  { %v1868_v62 = vpop.permute.xlu1 %1867  ;;  %v1880_v37 = vpop.permute.xlu0 %1879  ;;  %v1744_v49 = vadd.f32 %v1680_v15, %v1356_v57  ;;  %v1355_v59 = vmul.f32 %v9476_v56, %v15171_v13  ;;  %v1684_v15 = vmul.f32 %v9462_v53, %v9238_v26  ;;  %v15174_v57 = vld [vmem:[#allocation43_spill] sm:$0xff]  ;;  %v1686_v13 = vmul.f32 %v9462_v53, %v9252_v55 }
 0x1b7   :  { %v2196_v7 = vadd.f32 %v9519_v58, %v2125_v44  ;;  %v2063_v39 = vmul.f32 %v9490_v43, %v1868_v62  ;;  %v2066_v11 = vmul.f32 %v9490_v43, %v1880_v37  ;;  %7846 = vmatmul.mubr.msk.f32.gmra.mrb[48].mxu0 %vm87_vm0, %v2258_v50  ;;  %v9713_v63 = vpop.f32.mrb[8].mxu0  ;;  %v2199_v0 = vadd.f32 %v9519_v58, %v2128_v1  ;;  %v15172_v50 = vld [vmem:[#allocation41_spill] sm:$0xff] }
 0x1b8   :  { %7848 = vmatprep.mubr.msk.f32.mxu0 %vm87_vm0, %v2259_v16  ;;  %v9717_v10 = vpop.f32.mrb[9].mxu0  ;;  %v1358_v17 = vmul.f32 %v9476_v56, %v15172_v50  ;;  %v1681_v16 = vmul.f32 %v9462_v53, %v9221_v19  ;;  %v1743_v24 = vadd.f32 %v1679_v22, %v1355_v59  ;;  %v1357_v19 = vmul.f32 %v9476_v56, %v15173_v45  ;;  %v15175_v50 = vld [vmem:[#allocation40_spill] sm:$0xff] }
 0x1b9   :  { %v2260_v35 = vmax.f32 %v2196_v7, 0.0  ;;  %v2127_v40 = vadd.f32 %v2063_v39, %v1739_v8  ;;  %v2130_v61 = vadd.f32 %v2066_v11, %v1742_v3  ;;  %v2263_v20 = vmax.f32 %v2199_v0, 0.0 }
 0x1ba   :  { %v1876_v18 = vpop.permute.xlu1 %1875  ;;  %v1888_v54 = vpop.permute.xlu0 %1887  ;;  %v1746_v3 = vadd.f32 %v1682_v41, %v1358_v17  ;;  %v15176_v17 = vld [vmem:[#allocation45_spill] sm:$0xff] }
 0x1bb   :  { %v2198_v47 = vadd.f32 %v9519_v58, %v2127_v40  ;;  %v2065_v6 = vmul.f32 %v9490_v43, %v1876_v18  ;;  %v2068_v9 = vmul.f32 %v9490_v43, %v1888_v54  ;;  %7849 = vmatmul.mubr.msk.f32.gmra.mrb[50].mxu0 %vm87_vm0, %v2260_v35  ;;  %v2201_v1 = vadd.f32 %v9519_v58, %v2130_v61  ;;  %v9740_v52 = vpop.f32.mrb[10].mxu0 }
 0x1bc   :  { %7851 = vmatprep.mubr.msk.f32.mxu0 %vm87_vm0, %v2261_v14  ;;  %v9747_v60 = vpop.f32.mrb[11].mxu0  ;;  %v1360_v35 = vmul.f32 %v9476_v56, %v15174_v57  ;;  %v1745_v14 = vadd.f32 %v1681_v16, %v1357_v19 }
 0x1bd   :  { %v2262_v44 = vmax.f32 %v2198_v47, 0.0  ;;  %v2129_v12 = vadd.f32 %v2065_v6, %v1741_v46  ;;  %v2132_v62 = vadd.f32 %v2068_v9, %v1744_v49  ;;  %v2265_v0 = vmax.f32 %v2201_v1, 0.0 }
 0x1be   :  { %v1884_v37 = vpop.permute.xlu1 %1883  ;;  %v1896_v8 = vpop.permute.xlu0 %1895  ;;  %v1683_v47 = vmul.f32 %v9462_v53, %v9227_v21  ;;  %v1748_v41 = vadd.f32 %v1684_v15, %v1360_v35  ;;  %v1359_v21 = vmul.f32 %v9476_v56, %v15175_v50  ;;  %v1688_v35 = vmul.f32 %v9462_v53, %v9266_v27 }
 0x1bf   :  { %v2200_v7 = vadd.f32 %v9519_v58, %v2129_v12  ;;  %v2067_v39 = vmul.f32 %v9490_v43, %v1884_v37  ;;  %v2070_v11 = vmul.f32 %v9490_v43, %v1896_v8  ;;  %7852 = vmatmul.mubr.msk.f32.gmra.mrb[52].mxu0 %vm87_vm0, %v2262_v44  ;;  %v2203_v61 = vadd.f32 %v9519_v58, %v2132_v62  ;;  %v9758_v49 = vpop.f32.mrb[12].mxu0 }
 0x1c0   :  { %7854 = vmatprep.mubr.msk.f32.mxu0 %vm87_vm0, %v2263_v20  ;;  %v9763_v59 = vpop.f32.mrb[13].mxu0  ;;  %v1362_v44 = vmul.f32 %v9476_v56, %v15176_v17  ;;  %v15177_v20 = vld [vmem:[#allocation2_spill] sm:$0xff]  ;;  %v1690_v17 = vmul.f32 %v9462_v53, %v9280_v25 }
 0x1c1   :  { %v2264_v40 = vmax.f32 %v2200_v7, 0.0  ;;  %v2131_v46 = vadd.f32 %v2067_v39, %v1743_v24  ;;  %v2134_v18 = vadd.f32 %v2070_v11, %v1746_v3  ;;  %v1685_v1 = vmul.f32 %v9462_v53, %v15177_v20  ;;  %v15178_v3 = vld [vmem:[#allocation42_spill] sm:$0xff] }
 0x1c2   :  { %v1892_v54 = vpop.permute.xlu1 %1891  ;;  %v1904_v22 = vpop.permute.xlu0 %1903  ;;  %v2267_v62 = vmax.f32 %v2203_v61, 0.0  ;;  %v1747_v7 = vadd.f32 %v1683_v47, %v1359_v21  ;;  %v1361_v15 = vmul.f32 %v9476_v56, %v15178_v3  ;;  %v1750_v57 = vadd.f32 %v1686_v13, %v1362_v44 }
 0x1c3   :  { %v2202_v26 = vadd.f32 %v9519_v58, %v2131_v46  ;;  %v2069_v6 = vmul.f32 %v9490_v43, %v1892_v54  ;;  %v2072_v9 = vmul.f32 %v9490_v43, %v1904_v22  ;;  %7855 = vmatmul.mubr.msk.f32.gmra.mrb[54].mxu0 %vm87_vm0, %v2264_v40  ;;  %v2205_v37 = vadd.f32 %v9519_v58, %v2134_v18  ;;  %v9776_v19 = vpop.f32.mrb[14].mxu0  ;;  %v15179_v46 = vld [vmem:[#allocation47_spill] sm:$0xff] }
 0x1c4   :  { %7857 = vmatprep.mubr.msk.f32.mxu0 %vm87_vm0, %v2265_v0  ;;  %v9783_v40 = vpop.f32.mrb[15].mxu0  ;;  %v1749_v18 = vadd.f32 %v1685_v1, %v1361_v15 }
 0x1c5   :  { %v2266_v12 = vmax.f32 %v2202_v26, 0.0  ;;  %v2133_v16 = vadd.f32 %v2069_v6, %v1745_v14  ;;  %v2136_v8 = vadd.f32 %v2072_v9, %v1748_v41  ;;  %v1364_v14 = vmul.f32 %v9476_v56, %v15179_v46 }
 0x1c6   :  { %v1900_v55 = vpop.permute.xlu1 %1899  ;;  %v1912_v24 = vpop.permute.xlu0 %1911  ;;  %v2269_v54 = vmax.f32 %v2205_v37, 0.0  ;;  %v1687_v9 = vmul.f32 %v9462_v53, %v9254_v23  ;;  %v1689_v37 = vmul.f32 %v9462_v53, %v9268_v28  ;;  %v1692_v46 = vmul.f32 %v9462_v53, %v9294_v30 }
 0x1c7   :  { %v2204_v39 = vadd.f32 %v9519_v58, %v2133_v16  ;;  %v2071_v11 = vmul.f32 %v9490_v43, %v1900_v55  ;;  %v2074_v45 = vmul.f32 %v9490_v43, %v1912_v24  ;;  %7858 = vmatmul.mubr.msk.f32.gmra.mrb[56].mxu0 %vm87_vm0, %v2266_v12  ;;  %v2207_v22 = vadd.f32 %v9519_v58, %v2136_v8  ;;  %v9794_v50 = vpop.f32.mrb[16].mxu0  ;;  %v15180_v12 = vld [vmem:[#allocation44_spill] sm:$0xff]  ;;  %v15181_v16 = vld [vmem:[#allocation49_spill] sm:$0xff] }
 0x1c8   :  { %7860 = vmatprep.mubr.msk.f32.mxu0 %vm87_vm0, %v2267_v62  ;;  %v1752_v21 = vadd.f32 %v1688_v35, %v1364_v14  ;;  %v9799_v44 = vpop.f32.mrb[17].mxu0  ;;  %v1363_v23 = vmul.f32 %v9476_v56, %v15180_v12  ;;  %v1366_v20 = vmul.f32 %v9476_v56, %v15181_v16 }
 0x1c9   :  { %v2268_v0 = vmax.f32 %v2204_v39, 0.0  ;;  %v2135_v61 = vadd.f32 %v2071_v11, %v1747_v7  ;;  %v2138_v47 = vadd.f32 %v2074_v45, %v1750_v57  ;;  %v2271_v8 = vmax.f32 %v2207_v22, 0.0  ;;  %v15182_v57 = vld [vmem:[#allocation46_spill] sm:$0xff] }
 0x1ca   :  { %v1908_v26 = vpop.permute.xlu1 %1907  ;;  %v1920_v6 = vpop.permute.xlu0 %1919  ;;  %v1751_v39 = vadd.f32 %v1687_v9, %v1363_v23  ;;  %v1365_v28 = vmul.f32 %v9476_v56, %v15182_v57  ;;  %v1754_v35 = vadd.f32 %v1690_v17, %v1366_v20  ;;  %v1694_v23 = vmul.f32 %v9462_v53, %v9308_v32  ;;  %v15184_v20 = vld [vmem:[#allocation48_spill] sm:$0xff] }
 0x1cb   :  { %v2206_v27 = vadd.f32 %v9519_v58, %v2135_v61  ;;  %v2073_v41 = vmul.f32 %v9490_v43, %v1908_v26  ;;  %v2076_v13 = vmul.f32 %v9490_v43, %v1920_v6  ;;  %7861 = vmatmul.mubr.msk.f32.gmra.mrb[58].mxu0 %vm87_vm0, %v2268_v0  ;;  %v2209_v55 = vadd.f32 %v9519_v58, %v2138_v47  ;;  %v9812_v15 = vpop.f32.mrb[18].mxu0  ;;  %v15183_v0 = vld [vmem:[#allocation51_spill] sm:$0xff] }
 0x1cc   :  { %7863 = vmatprep.mubr.msk.f32.mxu0 %vm87_vm0, %v2269_v54  ;;  %v9819_v14 = vpop.f32.mrb[19].mxu0  ;;  %v1368_v61 = vmul.f32 %v9476_v56, %v15183_v0  ;;  %v1753_v22 = vadd.f32 %v1689_v37, %v1365_v28  ;;  %v1696_v0 = vmul.f32 %v9462_v53, %v9322_v38 }
 0x1cd   :  { %v2270_v1 = vmax.f32 %v2206_v27, 0.0  ;;  %v2137_v62 = vadd.f32 %v2073_v41, %v1749_v18  ;;  %v2140_v24 = vadd.f32 %v2076_v13, %v1752_v21  ;;  %v2273_v47 = vmax.f32 %v2209_v55, 0.0 }
 0x1ce   :  { %v1916_v25 = vpop.permute.xlu1 %1915  ;;  %v1928_v7 = vpop.permute.xlu0 %1927  ;;  %v1691_v41 = vmul.f32 %v9462_v53, %v9282_v34  ;;  %v1756_v12 = vadd.f32 %v1692_v46, %v1368_v61  ;;  %v1367_v34 = vmul.f32 %v9476_v56, %v15184_v20  ;;  %v1693_v55 = vmul.f32 %v9462_v53, %v9296_v36 }
 0x1cf   :  { %v2208_v11 = vadd.f32 %v9519_v58, %v2137_v62  ;;  %v2075_v45 = vmul.f32 %v9490_v43, %v1916_v25  ;;  %v2078_v3 = vmul.f32 %v9490_v43, %v1928_v7  ;;  %7864 = vmatmul.mubr.msk.f32.gmra.mrb[60].mxu0 %vm87_vm0, %v2270_v1  ;;  %v2211_v26 = vadd.f32 %v9519_v58, %v2140_v24  ;;  %v9830_v17 = vpop.f32.mrb[20].mxu0  ;;  %v15185_v1 = vld [vmem:[#allocation53_spill] sm:$0xff] }
 0x1d0   :  { %7866 = vmatprep.mubr.msk.f32.mxu0 %vm87_vm0, %v2271_v8  ;;  %v9835_v16 = vpop.f32.mrb[21].mxu0  ;;  %v1370_v62 = vmul.f32 %v9476_v56, %v15185_v1 }
 0x1d1   :  { %v2272_v18 = vmax.f32 %v2208_v11, 0.0  ;;  %v2139_v54 = vadd.f32 %v2075_v45, %v1751_v39  ;;  %v2142_v6 = vadd.f32 %v2078_v3, %v1754_v35  ;;  %v2275_v24 = vmax.f32 %v2211_v26, 0.0  ;;  %v15186_v35 = vld [vmem:[#allocation50_spill] sm:$0xff] }
 0x1d2   :  { %v1924_v9 = vpop.permute.xlu1 %1923  ;;  %v1936_v27 = vpop.permute.xlu0 %1935  ;;  %v1755_v11 = vadd.f32 %v1691_v41, %v1367_v34  ;;  %v1369_v36 = vmul.f32 %v9476_v56, %v15186_v35  ;;  %v1758_v46 = vadd.f32 %v1694_v23, %v1370_v62  ;;  %v15188_v34 = vld [vmem:[#allocation4_spill] sm:$0xff] }
 0x1d3   :  { %v2210_v30 = vadd.f32 %v9519_v58, %v2139_v54  ;;  %v2077_v13 = vmul.f32 %v9490_v43, %v1924_v9  ;;  %v2080_v21 = vmul.f32 %v9490_v43, %v1936_v27  ;;  %7867 = vmatmul.mubr.msk.f32.gmra.mrb[62].mxu0 %vm87_vm0, %v2272_v18  ;;  %v2213_v25 = vadd.f32 %v9519_v58, %v2142_v6  ;;  %v9848_v28 = vpop.f32.mrb[22].mxu0  ;;  %v15187_v18 = vld [vmem:[#allocation55_spill] sm:$0xff] }
 0x1d4   :  { %7869 = vmatprep.mubr.msk.f32.mxu0 %vm87_vm0, %v2273_v47  ;;  %v9855_v61 = vpop.f32.mrb[23].mxu0  ;;  %v1372_v54 = vmul.f32 %v9476_v56, %v15187_v18  ;;  %v1757_v26 = vadd.f32 %v1693_v55, %v1369_v36  ;;  %v1698_v1 = vmul.f32 %v9462_v53, %v15188_v34 }
 0x1d5   :  { %v2274_v37 = vmax.f32 %v2210_v30, 0.0  ;;  %v2141_v8 = vadd.f32 %v2077_v13, %v1753_v22  ;;  %v2144_v7 = vadd.f32 %v2080_v21, %v1756_v12  ;;  %v2277_v6 = vmax.f32 %v2213_v25, 0.0 }
 0x1d6   :  { %v1932_v32 = vpop.permute.xlu1 %1931  ;;  %v1944_v39 = vpop.permute.xlu0 %1943  ;;  %v1695_v13 = vmul.f32 %v9462_v53, %v9310_v33  ;;  %v1760_v20 = vadd.f32 %v1696_v0, %v1372_v54  ;;  %v15192_v54 = vld [vmem:[#allocation54_spill] sm:$0xff] }
 0x1d7   :  { %v2212_v45 = vadd.f32 %v9519_v58, %v2141_v8  ;;  %v2079_v3 = vmul.f32 %v9490_v43, %v1932_v32  ;;  %v2082_v57 = vmul.f32 %v9490_v43, %v1944_v39  ;;  %7870 = vmatmul.mubr.msk.f32.gmra.mrb[64].mxu0 %vm87_vm0, %v2274_v37  ;;  %v2215_v9 = vadd.f32 %v9519_v58, %v2144_v7  ;;  %v9866_v23 = vpop.f32.mrb[24].mxu0  ;;  %v15189_v37 = vld [vmem:[#allocation52_spill] sm:$0xff]  ;;  %v15190_v8 = vld [vmem:[#allocation57_spill] sm:$0xff]  ;;  %v15191_v7 = vld [vmem:[#allocation3_spill] sm:$0xff] }
 0x1d8   :  { %7872 = vmatprep.mubr.msk.f32.mxu0 %vm87_vm0, %v2275_v24  ;;  %v9871_v62 = vpop.f32.mrb[25].mxu0  ;;  %v1371_v33 = vmul.f32 %v9476_v56, %v15189_v37  ;;  %v1374_v55 = vmul.f32 %v9476_v56, %v15190_v8  ;;  %v1697_v32 = vmul.f32 %v9462_v53, %v15191_v7 }
 0x1d9   :  { %v2276_v22 = vmax.f32 %v2212_v45, 0.0  ;;  %v2143_v47 = vadd.f32 %v2079_v3, %v1755_v11  ;;  %v2146_v27 = vadd.f32 %v2082_v57, %v1758_v46  ;;  %v2279_v39 = vmax.f32 %v2215_v9, 0.0 }
 0x1da   :  { %v1940_v41 = vpop.permute.xlu1 %1939  ;;  %v1952_v30 = vpop.permute.xlu0 %1951  ;;  %v1759_v35 = vadd.f32 %v1695_v13, %v1371_v33 }
 0x1db   :  { %v2214_v38 = vadd.f32 %v9519_v58, %v2143_v47  ;;  %v2081_v21 = vmul.f32 %v9490_v43, %v1940_v41  ;;  %v2084_v12 = vmul.f32 %v9490_v43, %v1952_v30  ;;  %7873 = vmatmul.mubr.msk.f32.gmra.mrb[66].mxu0 %vm87_vm0, %v2276_v22  ;;  %v2217_v11 = vadd.f32 %v9519_v58, %v2146_v27  ;;  %v9884_v18 = vpop.f32.mrb[26].mxu0  ;;  %v15194_v27 = vld [vmem:[#allocation59_spill] sm:$0xff] }
 0x1dc   :  { %7875 = vmatprep.mubr.msk.f32.mxu0 %vm87_vm0, %v2277_v6  ;;  %v1373_v22 = vmul.f32 %v9476_v56, %v15192_v54  ;;  %v1762_v47 = vadd.f32 %v1698_v1, %v1374_v55  ;;  %v9891_v9 = vpop.f32.mrb[27].mxu0  ;;  %v1376_v41 = vmul.f32 %v9476_v56, %v15194_v27  ;;  %v15195_v1 = vld [vmem:[#allocation75_spill] sm:$0xff] }
 0x1dd   :  { %v2278_v24 = vmax.f32 %v2214_v38, 0.0  ;;  %v2145_v25 = vadd.f32 %v2081_v21, %v1757_v26  ;;  %v2148_v45 = vadd.f32 %v2084_v12, %v1760_v20  ;;  %v15193_v26 = vld [vmem:[#allocation76_spill] sm:$0xff]  ;;  %v2281_v21 = vmax.f32 %v2217_v11, 0.0 }
 0x1de   :  { %v1948_v3 = vpop.permute.xlu1 %1947  ;;  %v1960_v57 = vpop.permute.xlu0 %1959  ;;  %v1700_v6 = vmul.f32 %v9462_v53, %v15193_v26  ;;  %v1761_v38 = vadd.f32 %v1697_v32, %v1373_v22  ;;  %v1699_v33 = vmul.f32 %v9462_v53, %v15195_v1  ;;  %v15196_v32 = vld [vmem:[#allocation78_spill] sm:$0xff]  ;;  %v15201_v1 = vld [vmem:[#allocation80_spill] sm:$0xff] }
 0x1df   :  { %v2216_v36 = vadd.f32 %v9519_v58, %v2145_v25  ;;  %v2083_v46 = vmul.f32 %v9490_v43, %v1948_v3  ;;  %v2086_v0 = vmul.f32 %v9490_v43, %v1960_v57  ;;  %7876 = vmatmul.mubr.msk.f32.gmra.mrb[68].mxu0 %vm87_vm0, %v2278_v24  ;;  %v2219_v12 = vadd.f32 %v9519_v58, %v2148_v45  ;;  %v9902_v25 = vpop.f32.mrb[28].mxu0  ;;  %v15197_v45 = vld [vmem:[#allocation56_spill] sm:$0xff]  ;;  %v15198_v57 = vld [vmem:[#allocation61_spill] sm:$0xff] }
 0x1e0   :  { %7878 = vmatprep.mubr.msk.f32.mxu0 %vm87_vm0, %v2279_v39  ;;  %v1764_v7 = vadd.f32 %v1700_v6, %v1376_v41  ;;  %v1702_v39 = vmul.f32 %v9462_v53, %v15196_v32  ;;  %v9907_v11 = vpop.f32.mrb[29].mxu0  ;;  %v1375_v3 = vmul.f32 %v9476_v56, %v15197_v45 }
 0x1e1   :  { %v2280_v30 = vmax.f32 %v2216_v36, 0.0  ;;  %v2147_v13 = vadd.f32 %v2083_v46, %v1759_v35  ;;  %v2150_v20 = vadd.f32 %v2086_v0, %v1762_v47  ;;  %v1378_v35 = vmul.f32 %v9476_v56, %v15198_v57  ;;  %v15199_v0 = vld [vmem:[#allocation77_spill] sm:$0xff] }
 0x1e2   :  { %v1956_v34 = vpop.permute.xlu1 %1955  ;;  %v1968_v37 = vpop.permute.xlu0 %1967  ;;  %v1701_v54 = vmul.f32 %v9462_v53, %v15199_v0  ;;  %v2283_v22 = vmax.f32 %v2219_v12, 0.0  ;;  %v1763_v41 = vadd.f32 %v1699_v33, %v1375_v3 }
 0x1e3   :  { %v2218_v8 = vadd.f32 %v9519_v58, %v2147_v13  ;;  %v2085_v55 = vmul.f32 %v9490_v43, %v1956_v34  ;;  %v2088_v24 = vmul.f32 %v9490_v43, %v1968_v37  ;;  %7879 = vmatmul.mubr.msk.f32.gmra.mrb[70].mxu0 %vm87_vm0, %v2280_v30  ;;  %v2221_v47 = vadd.f32 %v9519_v58, %v2150_v20  ;;  %v9920_v34 = vpop.f32.mrb[30].mxu0 }
 0x1e4   :  { %7881 = vmatprep.mubr.msk.f32.mxu0 %vm87_vm0, %v2281_v21  ;;  %v1766_v12 = vadd.f32 %v1702_v39, %v1378_v35  ;;  %v1704_v20 = vmul.f32 %v9462_v53, %v15201_v1  ;;  %v9927_v33 = vpop.f32.mrb[31].mxu0  ;;  %v15203_v39 = vld [vmem:[#allocation79_spill] sm:$0xff] }
 0x1e5   :  { %v2282_v36 = vmax.f32 %v2218_v8, 0.0  ;;  %v2149_v46 = vadd.f32 %v2085_v55, %v1761_v38  ;;  %v2152_v26 = vadd.f32 %v2088_v24, %v1764_v7  ;;  %v15200_v38 = vld [vmem:[#allocation58_spill] sm:$0xff]  ;;  %v15202_v8 = vld [vmem:[#allocation63_spill] sm:$0xff]  ;;  %v2285_v45 = vmax.f32 %v2221_v47, 0.0  ;;  %v15205_v47 = vld [vmem:[#allocation60_spill] sm:$0xff] }
 0x1e6   :  { %v1964_v6 = vpop.permute.xlu1 %1963  ;;  %v1976_v27 = vpop.permute.xlu0 %1975  ;;  %v1377_v37 = vmul.f32 %v9476_v56, %v15200_v38  ;;  %v1380_v55 = vmul.f32 %v9476_v56, %v15202_v8  ;;  %v1703_v35 = vmul.f32 %v9462_v53, %v15203_v39  ;;  %v15208_v39 = vld [vmem:[#allocation62_spill] sm:$0xff] }
 0x1e7   :  { %v2220_v30 = vadd.f32 %v9519_v58, %v2149_v46  ;;  %v2087_v13 = vmul.f32 %v9490_v43, %v1964_v6  ;;  %v2090_v21 = vmul.f32 %v9490_v43, %v1976_v27  ;;  %7882 = vmatmul.mubr.msk.f32.gmra.mrb[72].mxu0 %vm87_vm0, %v2282_v36  ;;  %v2223_v3 = vadd.f32 %v9519_v58, %v2152_v26 }
 0x1e8   :  { %7884 = vmatprep.mubr.msk.f32.mxu0 %vm87_vm0, %v2283_v22  ;;  %v1765_v32 = vadd.f32 %v1701_v54, %v1377_v37  ;;  %v1768_v27 = vadd.f32 %v1704_v20, %v1380_v55  ;;  %v1379_v26 = vmul.f32 %v9476_v56, %v15205_v47  ;;  %v15207_v37 = vld [vmem:[#allocation81_spill] sm:$0xff] }
 0x1e9   :  { %v2284_v24 = vmax.f32 %v2220_v30, 0.0  ;;  %v2151_v7 = vadd.f32 %v2087_v13, %v1763_v41  ;;  %v2154_v57 = vadd.f32 %v2090_v21, %v1766_v12  ;;  %v15204_v41 = vld [vmem:[#allocation82_spill] sm:$0xff]  ;;  %v15206_v30 = vld [vmem:[#allocation65_spill] sm:$0xff]  ;;  %v1705_v12 = vmul.f32 %v9462_v53, %v15207_v37  ;;  %v15211_v37 = vld [vmem:[#allocation83_spill] sm:$0xff] }
 0x1ea   :  { %v1972_v36 = vpop.permute.xlu1 %1971  ;;  %v1984_v46 = vpop.permute.xlu0 %1983  ;;  %v1706_v54 = vmul.f32 %v9462_v53, %v15204_v41  ;;  %v1382_v13 = vmul.f32 %v9476_v56, %v15206_v30  ;;  %v2287_v1 = vmax.f32 %v2223_v3, 0.0 }
 0x1eb   :  { %v2222_v0 = vadd.f32 %v9519_v58, %v2151_v7  ;;  %v2089_v22 = vmul.f32 %v9490_v43, %v1972_v36  ;;  %v2092_v6 = vmul.f32 %v9490_v43, %v1984_v46  ;;  %7885 = vmatmul.mubr.msk.f32.gmra.mrb[74].mxu0 %vm87_vm0, %v2284_v24  ;;  %v2225_v8 = vadd.f32 %v9519_v58, %v2154_v57  ;;  %v15210_v57 = vld [vmem:[#allocation67_spill] sm:$0xff] }
 0x1ec   :  { %7887 = vmatprep.mubr.msk.f32.mxu0 %vm87_vm0, %v2285_v45  ;;  %v1767_v7 = vadd.f32 %v1703_v35, %v1379_v26  ;;  %v1384_v35 = vmul.f32 %v9476_v56, %v15210_v57 }
 0x1ed   :  { %v2286_v21 = vmax.f32 %v2222_v0, 0.0  ;;  %v2153_v38 = vadd.f32 %v2089_v22, %v1765_v32  ;;  %v2156_v20 = vadd.f32 %v2092_v6, %v1768_v27  ;;  %v1381_v32 = vmul.f32 %v9476_v56, %v15208_v39  ;;  %v15209_v22 = vld [vmem:[#allocation84_spill] sm:$0xff]  ;;  %v15215_v39 = vld [vmem:[#allocation85_spill] sm:$0xff] }
 0x1ee   :  { %v1980_v55 = vpop.permute.xlu1 %1979  ;;  %v1992_v24 = vpop.permute.xlu0 %1991  ;;  %v1770_v0 = vadd.f32 %v1706_v54, %v1382_v13  ;;  %v1708_v3 = vmul.f32 %v9462_v53, %v15209_v22  ;;  %v2289_v47 = vmax.f32 %v2225_v8, 0.0  ;;  %v1707_v54 = vmul.f32 %v9462_v53, %v15211_v37  ;;  %v15213_v8 = vld [vmem:[#allocation64_spill] sm:$0xff]  ;;  %v9978_v22 = vld [vmem:[%s14831_s10] ss:$0 sm:$0xff] }
 0x1ef   :  { %v2224_v45 = vadd.f32 %v9519_v58, %v2153_v38  ;;  %v2091_v36 = vmul.f32 %v9490_v43, %v1980_v55  ;;  %v2094_v46 = vmul.f32 %v9490_v43, %v1992_v24  ;;  %7888 = vmatmul.mubr.msk.f32.gmra.mrb[76].mxu0 %vm87_vm0, %v2286_v21  ;;  %v1769_v41 = vadd.f32 %v1705_v12, %v1381_v32 }
 0x1f0   :  { %7890 = vmatprep.mubr.msk.f32.mxu0 %vm87_vm0, %v2287_v1  ;;  %v2227_v26 = vadd.f32 %v9519_v58, %v2156_v20  ;;  %v1772_v24 = vadd.f32 %v1708_v3, %v1384_v35  ;;  %v1383_v20 = vmul.f32 %v9476_v56, %v15213_v8  ;;  %v1709_v32 = vmul.f32 %v9462_v53, %v15215_v39  ;;  %v15219_v39 = vld [vmem:[#allocation87_spill] sm:$0xff] }
 0x1f1   :  { %v2288_v6 = vmax.f32 %v2224_v45, 0.0  ;;  %v2155_v27 = vadd.f32 %v2091_v36, %v1767_v7  ;;  %v2158_v30 = vadd.f32 %v2094_v46, %v1770_v0  ;;  %v15212_v7 = vld [vmem:[#allocation86_spill] sm:$0xff]  ;;  %v15214_v45 = vld [vmem:[#allocation69_spill] sm:$0xff] }
 0x1f2   :  { %v1988_v21 = vpop.permute.xlu1 %1987  ;;  %v2000_v38 = vpop.permute.xlu0 %1999  ;;  %v1710_v12 = vmul.f32 %v9462_v53, %v15212_v7  ;;  %v1386_v36 = vmul.f32 %v9476_v56, %v15214_v45  ;;  %v2291_v0 = vmax.f32 %v2227_v26, 0.0  ;;  %v15216_v26 = vld [vmem:[#allocation66_spill] sm:$0xff] }
 0x1f3   :  { %v2226_v13 = vadd.f32 %v9519_v58, %v2155_v27  ;;  %v2093_v55 = vmul.f32 %v9490_v43, %v1988_v21  ;;  %v2096_v1 = vmul.f32 %v9490_v43, %v2000_v38  ;;  %7891 = vmatmul.mubr.msk.f32.gmra.mrb[78].mxu0 %vm87_vm0, %v2288_v6  ;;  %v2229_v3 = vadd.f32 %v9978_v22, %v2158_v30  ;;  %v15218_v30 = vld [vmem:[#allocation71_spill] sm:$0xff] }
 0x1f4   :  { %7893 = vmatprep.mubr.msk.f32.mxu0 %vm87_vm0, %v2289_v47  ;;  %v1771_v27 = vadd.f32 %v1707_v54, %v1383_v20  ;;  %v1385_v38 = vmul.f32 %v9476_v56, %v15216_v26  ;;  %v1774_v37 = vadd.f32 %v1710_v12, %v1386_v36  ;;  %v1388_v54 = vmul.f32 %v9476_v56, %v15218_v30 }
 0x1f5   :  { %v2290_v46 = vmax.f32 %v2226_v13, 0.0  ;;  %v2157_v58 = vadd.f32 %v2093_v55, %v1769_v41  ;;  %v2160_v57 = vadd.f32 %v2096_v1, %v1772_v24  ;;  %v15217_v13 = vld [vmem:[#allocation8_spill] sm:$0xff]  ;;  %v2293_v8 = vmax.f32 %v2229_v3, 0.0 }
 0x1f6   :  { %v1996_v35 = vpop.permute.xlu1 %1995  ;;  %v2008_v6 = vpop.permute.xlu0 %2007  ;;  %v1712_v55 = vmul.f32 %v9462_v53, %v15217_v13  ;;  %v1773_v7 = vadd.f32 %v1709_v32, %v1385_v38  ;;  %v1711_v12 = vmul.f32 %v9462_v53, %v15219_v39  ;;  %v15221_v3 = vld [vmem:[#allocation68_spill] sm:$0xff]  ;;  %v15224_v39 = vld [vmem:[#allocation70_spill] sm:$0xff] }
 0x1f7   :  { %v2228_v47 = vadd.f32 %v9978_v22, %v2157_v58  ;;  %v2095_v21 = vmul.f32 %v9490_v43, %v1996_v35  ;;  %v2098_v41 = vmul.f32 %v9490_v43, %v2008_v6  ;;  %7894 = vmatmul.mubr.msk.f32.gmra.mrb[80].mxu0 %vm87_vm0, %v2290_v46  ;;  %v2231_v20 = vadd.f32 %v9978_v22, %v2160_v57  ;;  %v15223_v38 = vld [vmem:[#allocation88_spill] sm:$0xff] }
 0x1f8   :  { %7896 = vmatprep.mubr.msk.f32.mxu0 %vm87_vm0, %v2291_v0  ;;  %v1776_v6 = vadd.f32 %v1712_v55, %v1388_v54  ;;  %v1387_v57 = vmul.f32 %v9476_v56, %v15221_v3 }
 0x1f9   :  { %v2292_v1 = vmax.f32 %v2228_v47, 0.0  ;;  %v2159_v24 = vadd.f32 %v2095_v21, %v1771_v27  ;;  %v2162_v45 = vadd.f32 %v2098_v41, %v1774_v37  ;;  %v15220_v27 = vld [vmem:[#allocation6_spill] sm:$0xff]  ;;  %v15222_v47 = vld [vmem:[#allocation73_spill] sm:$0xff]  ;;  %v1713_v37 = vmul.f32 %v9462_v53, %v15223_v38 }
 0x1fa   :  { %v2004_v46 = vpop.permute.xlu1 %2003  ;;  %v2016_v58 = vpop.permute.xlu0 %2015  ;;  %v1714_v32 = vmul.f32 %v9462_v53, %v15220_v27  ;;  %v1390_v21 = vmul.f32 %v9476_v56, %v15222_v47  ;;  %v2295_v13 = vmax.f32 %v2231_v20, 0.0  ;;  %v15227_v38 = vld [vmem:[#allocation89_spill] sm:$0xff] }
 0x1fb   :  { %v2230_v36 = vadd.f32 %v9978_v22, %v2159_v24  ;;  %v2097_v35 = vmul.f32 %v9490_v43, %v2004_v46  ;;  %v2100_v0 = vmul.f32 %v9490_v43, %v2016_v58  ;;  %7897 = vmatmul.mubr.msk.f32.gmra.mrb[82].mxu0 %vm87_vm0, %v2292_v1  ;;  %v2233_v30 = vadd.f32 %v9978_v22, %v2162_v45  ;;  %v15226_v45 = vld [vmem:[#allocation74_spill] sm:$0xff] }
 0x1fc   :  { %7899 = vmatprep.mubr.msk.f32.mxu0 %vm87_vm0, %v2293_v8  ;;  %v1775_v24 = vadd.f32 %v1711_v12, %v1387_v57  ;;  %v1392_v12 = vmul.f32 %v9476_v56, %v15226_v45 }
 0x1fd   :  { %v2294_v41 = vmax.f32 %v2230_v36, 0.0  ;;  %v2161_v26 = vadd.f32 %v2097_v35, %v1773_v7  ;;  %v2164_v55 = vadd.f32 %v2100_v0, %v1776_v6  ;;  %v1389_v7 = vmul.f32 %v9476_v56, %v15224_v39  ;;  %v15225_v35 = vld [vmem:[#allocation7_spill] sm:$0xff] }
 0x1fe   :  { %v2012_v54 = vpop.permute.xlu1 %2011  ;;  %v2024_v1 = vpop.permute.xlu0 %2023  ;;  %v1778_v36 = vadd.f32 %v1714_v32, %v1390_v21  ;;  %v1716_v20 = vmul.f32 %v9462_v53, %v15225_v35  ;;  %v2297_v3 = vmax.f32 %v2233_v30, 0.0  ;;  %v1715_v32 = vmul.f32 %v9462_v53, %v15227_v38 }
 0x1ff   :  { %v2232_v8 = vadd.f32 %v9978_v22, %v2161_v26  ;;  %v2099_v46 = vmul.f32 %v9490_v43, %v2012_v54  ;;  %v2102_v58 = vmul.f32 %v9490_v43, %v2024_v1  ;;  %7900 = vmatmul.mubr.msk.f32.gmra.mrb[84].mxu0 %vm87_vm0, %v2294_v41  ;;  %v1777_v27 = vadd.f32 %v1713_v37, %v1389_v7  ;;  %v15228_v37 = vld [vmem:[#allocation72_spill] sm:$0xff] }
 0x200   :  { %7902 = vmatprep.mubr.msk.f32.mxu0 %vm87_vm0, %v2295_v13  ;;  %v2235_v57 = vadd.f32 %v9978_v22, %v2164_v55  ;;  %v1780_v1 = vadd.f32 %v1716_v20, %v1392_v12  ;;  %v1391_v30 = vmul.f32 %v9476_v56, %v15228_v37  ;;  %v15230_v12 = vld [vmem:[#allocation10_spill] sm:$0xff] }
 0x201   :  { %v2296_v0 = vmax.f32 %v2232_v8, 0.0  ;;  %v2163_v6 = vadd.f32 %v2099_v46, %v1775_v24  ;;  %v2166_v47 = vadd.f32 %v2102_v58, %v1778_v36  ;;  %v15229_v36 = vld [vmem:[#allocation90_spill] sm:$0xff] }
 0x202   :  { %v2020_v41 = vpop.permute.xlu1 %2019  ;;  %v2032_v26 = vpop.permute.xlu0 %2031  ;;  %v2299_v8 = vmax.f32 %v2235_v57, 0.0  ;;  %v1779_v7 = vadd.f32 %v1715_v32, %v1391_v30  ;;  %v1717_v35 = vmul.f32 %v9462_v53, %v15229_v36 }
 0x203   :  { %v2234_v21 = vadd.f32 %v9978_v22, %v2163_v6  ;;  %v2101_v54 = vmul.f32 %v9490_v43, %v2020_v41  ;;  %v2104_v13 = vmul.f32 %v9490_v43, %v2032_v26  ;;  %7903 = vmatmul.mubr.msk.f32.gmra.mrb[86].mxu0 %vm87_vm0, %v2296_v0  ;;  %v2237_v46 = vadd.f32 %v9978_v22, %v2166_v47 }
 0x204   :  { %7905 = vmatprep.mubr.msk.f32.mxu0 %vm87_vm0, %v2297_v3  ;;  %v1393_v0 = vmul.f32 %v9476_v56, %v15230_v12 }
 0x205   :  { %v2298_v55 = vmax.f32 %v2234_v21, 0.0  ;;  %v2165_v24 = vadd.f32 %v2101_v54, %v1777_v27  ;;  %v2168_v58 = vadd.f32 %v2104_v13, %v1780_v1  ;;  %v2301_v3 = vmax.f32 %v2237_v46, 0.0 }
 0x206   :  { %v2028_v39 = vpop.permute.xlu1 %2027  ;;  %v1781_v41 = vadd.f32 %v1717_v35, %v1393_v0 }
 0x207   :  { %v2236_v45 = vadd.f32 %v9978_v22, %v2165_v24  ;;  %v2103_v20 = vmul.f32 %v9490_v43, %v2028_v39  ;;  %7906 = vmatmul.mubr.msk.f32.gmra.mrb[88].mxu0 %vm87_vm0, %v2298_v55  ;;  %v2239_v57 = vadd.f32 %v9978_v22, %v2168_v58 }
 0x208   :  { %7908 = vmatprep.mubr.msk.f32.mxu0 %vm87_vm0, %v2299_v8 }
 0x209   :  { %v2300_v6 = vmax.f32 %v2236_v45, 0.0  ;;  %v2167_v27 = vadd.f32 %v2103_v20, %v1779_v7  ;;  %v2303_v21 = vmax.f32 %v2239_v57, 0.0 }
 0x20a   :  { %v2036_v47 = vpop.permute.xlu1 %2035 }
 0x20b   :  { %v2238_v53 = vadd.f32 %v9978_v22, %v2167_v27  ;;  %v2105_v26 = vmul.f32 %v9490_v43, %v2036_v47  ;;  %7909 = vmatmul.mubr.msk.f32.gmra.mrb[90].mxu0 %vm87_vm0, %v2300_v6 }
 0x20c   :  { %7911 = vmatprep.mubr.msk.f32.mxu0 %vm87_vm0, %v2301_v3 }
 0x20d   :  { %v2302_v38 = vmax.f32 %v2238_v53, 0.0  ;;  %v2169_v32 = vadd.f32 %v2105_v26, %v1781_v41 }
 0x20f   :  { %v2240_v56 = vadd.f32 %v9978_v22, %v2169_v32  ;;  %7912 = vmatmul.mubr.msk.f32.gmra.mrb[92].mxu0 %vm87_vm0, %v2302_v38 }
 0x210   :  { %7914 = vmatprep.mubr.msk.f32.mxu0 %vm87_vm0, %v2303_v21 }
 0x211   :  { %v2304_v54 = vmax.f32 %v2240_v56, 0.0 }
 0x213   :  { %7915 = vmatmul.mubr.msk.f32.gmra.mrb[94].mxu0 %vm87_vm0, %v2304_v54  ;;  %v10048_v13 = vpop.f32.mrb[0].mxu1 }
 0x214   :  { %v10050_v1 = vpop.f32.mrb[1].mxu1 }
 0x218   :  { %v10052_v43 = vpop.f32.mrb[2].mxu1 }
 0x219   :  { %v10054_v37 = vpop.f32.mrb[3].mxu1 }
 0x21c   :  { %v10056_v30 = vpop.f32.mrb[4].mxu1 }
 0x21d   :  { %v10058_v55 = vpop.f32.mrb[5].mxu1 }
 0x220   :  { %v10060_v22 = vpop.f32.mrb[6].mxu1 }
 0x221   :  { %v10062_v24 = vpop.f32.mrb[7].mxu1 }
 0x224   :  { %v10064_v8 = vpop.f32.mrb[8].mxu1 }
 0x225   :  { %v10066_v46 = vpop.f32.mrb[9].mxu1 }
 0x228   :  { %v10068_v58 = vpop.f32.mrb[10].mxu1 }
 0x229   :  { %v10070_v39 = vpop.f32.mrb[11].mxu1 }
 0x22c   :  { %v10072_v7 = vpop.f32.mrb[12].mxu1 }
 0x22d   :  { %v10074_v36 = vpop.f32.mrb[13].mxu1 }
 0x230   :  { %v10076_v35 = vpop.f32.mrb[14].mxu1 }
 0x231   :  { %v10078_v45 = vpop.f32.mrb[15].mxu1 }
 0x234   :  { %v10080_v20 = vpop.f32.mrb[16].mxu1 }
 0x235   :  { %v10082_v12 = vpop.f32.mrb[17].mxu1 }
 0x238   :  { %v10084_v0 = vpop.f32.mrb[18].mxu1 }
 0x239   :  { %v10086_v6 = vpop.f32.mrb[19].mxu1 }
 0x23a   :  { %15231 = vst [vmem:[#allocation9_spill] sm:$0xff] %v10086_v6 }
 0x23c   :  { %v10088_v27 = vpop.f32.mrb[20].mxu1 }
 0x23d   :  { %15232 = vst [vmem:[#allocation13_spill] sm:$0xff] %v10088_v27  ;;  %v10090_v3 = vpop.f32.mrb[21].mxu1 }
 0x23e   :  { %15233 = vst [vmem:[#allocation15_spill] sm:$0xff] %v10090_v3 }
 0x240   :  { %v10092_v57 = vpop.f32.mrb[22].mxu1 }
 0x241   :  { %15234 = vst [vmem:[#allocation11_spill] sm:$0xff] %v10092_v57  ;;  %v10094_v47 = vpop.f32.mrb[23].mxu1 }
 0x242   :  { %15235 = vst [vmem:[#allocation12_spill] sm:$0xff] %v10094_v47 }
 0x244   :  { %v10096_v41 = vpop.f32.mrb[24].mxu1 }
 0x245   :  { %15236 = vst [vmem:[#allocation17_spill] sm:$0xff] %v10096_v41  ;;  %v10098_v53 = vpop.f32.mrb[25].mxu1 }
 0x246   :  { %15237 = vst [vmem:[#allocation14_spill] sm:$0xff] %v10098_v53 }
 0x248   :  { %v10100_v26 = vpop.f32.mrb[26].mxu1 }
 0x249   :  { %15238 = vst [vmem:[#allocation19_spill] sm:$0xff] %v10100_v26  ;;  %v10102_v38 = vpop.f32.mrb[27].mxu1 }
 0x24a   :  { %15239 = vst [vmem:[#allocation16_spill] sm:$0xff] %v10102_v38 }
 0x24c   :  { %v10104_v32 = vpop.f32.mrb[28].mxu1 }
 0x24d   :  { %15240 = vst [vmem:[#allocation21_spill] sm:$0xff] %v10104_v32  ;;  %v10106_v21 = vpop.f32.mrb[29].mxu1  ;;  %v10125_v32 = vld [vmem:[%s14833_s8] ss:$0 sm:$0xff] }
 0x24e   :  { %15241 = vst [vmem:[#allocation18_spill] sm:$0xff] %v10106_v21 }
 0x250   :  { %v10108_v56 = vpop.f32.mrb[30].mxu1 }
 0x251   :  { %15242 = vst [vmem:[#allocation23_spill] sm:$0xff] %v10108_v56  ;;  %v10110_v54 = vpop.f32.mrb[31].mxu1 }
 0x252   :  { %15243 = vst [vmem:[#allocation20_spill] sm:$0xff] %v10110_v54  ;;  %v10132_v54 = vld [vmem:[%s14834_s6] ss:$0 sm:$0xff]  ;;  %s8282_s6 = smov 32  }
 0x258   :  { %v10112_v3 = vpop.f32.mrb[32].mxu1 }
 0x259   :  { %15244 = vst [vmem:[#allocation25_spill] sm:$0xff] %v10112_v3  ;;  %v10114_v57 = vpop.f32.mrb[33].mxu1  ;;  %v179_v3 = vadd.f32 %v10132_v54, %v9643_v31  ;;  %v10164_v31 = vadd.f32 %v9740_v52, %v10125_v32  ;;  %v194_v52 = vadd.f32 %v9654_v51, %v10132_v54 }
 0x25a   :  { %15245 = vst [vmem:[#allocation22_spill] sm:$0xff] %v10114_v57  ;;  %v10136_v57 = vadd.f32 %v9713_v63, %v10125_v32  ;;  %v184_v63 = vadd.f32 %v9636_v29, %v10132_v54 }
 0x25b   :  { %15254 = vst [vmem:[#allocation35_spill] sm:$0xff] %v10164_v31 }
 0x25c   :  { %v10116_v47 = vpop.f32.mrb[34].mxu1  ;;  %15250 = vst [vmem:[#allocation31_spill] sm:$0xff] %v10136_v57 }
 0x25d   :  { %15246 = vst [vmem:[#allocation27_spill] sm:$0xff] %v10116_v47  ;;  %v10118_v41 = vpop.f32.mrb[35].mxu1 }
 0x25e   :  { %15247 = vst [vmem:[#allocation24_spill] sm:$0xff] %v10118_v41  ;;  %v10147_v41 = vld [vmem:[%s14835_s12] ss:$0 sm:$0xff] }
 0x260   :  { %v10120_v53 = vpop.f32.mrb[36].mxu1 }
 0x261   :  { %15248 = vst [vmem:[#allocation29_spill] sm:$0xff] %v10120_v53  ;;  %v10127_v21 = vpop.f32.mrb[37].mxu1  ;;  %v10142_v53 = vadd.f32 %v10125_v32, %v9717_v10 }
 0x262   :  { %15249 = vst [vmem:[#allocation26_spill] sm:$0xff] %v10127_v21 }
 0x263   :  { %15252 = vst [vmem:[#allocation33_spill] sm:$0xff] %v10142_v53  ;;  %v877_v26 = vmax.f32 %v10142_v53, 0.0 }
 0x264   :  { %v10138_v47 = vpop.f32.mrb[38].mxu1 }
 0x265   :  { %15251 = vst [vmem:[#allocation28_spill] sm:$0xff] %v10138_v47  ;;  %v10149_v21 = vpop.f32.mrb[39].mxu1  ;;  %v878_v47 = vmax.f32 %v10136_v57, 0.0  ;;  %v10167_v57 = vmax.f32 %v184_v63, 0.0 }
 0x266   :  { %15253 = vst [vmem:[#allocation30_spill] sm:$0xff] %v10149_v21  ;;  %v10160_v21 = vmax.f32 %v179_v3, 0.0 }
 0x267   :  { %v7823_v56 = vpop.f32.mrb[32].mxu0 }
 0x268   :  { %v2580_v38 = vadd.f32 %v7823_v56, %v10147_v41  ;;  %v2574_v10 = vpop.f32.mrb[33].mxu0  ;;  %v10171_v56 = vadd.f32 %v10125_v32, %v9747_v60 }
 0x269   :  { %v2575_v27 = vadd.f32 %v10147_v41, %v2574_v10 }
 0x26a   :  { %v2894_v6 = vadd.f32 %v2580_v38, %v878_v47  ;;  %3087 = vrot.lane.b32.xlu1 %v2580_v38, %s8282_s6  ;;  %15255 = vst [vmem:[#allocation32_spill] sm:$0xff] %v10171_v56  ;;  %v189_v38 = vadd.f32 %v10132_v54, %v9659_v5  ;;  %v10189_v5 = vadd.f32 %v10125_v32, %v9763_v59  ;;  %v10201_v59 = vmax.f32 %v194_v52, 0.0 }
 0x26b   :  { %v2893_v29 = vadd.f32 %v2575_v27, %v877_v26  ;;  %3085 = vrot.lane.b32.xlu0 %v2575_v27, %s8282_s6  ;;  %v880_v26 = vmax.f32 %v10164_v31, 0.0  ;;  %v10182_v27 = vadd.f32 %v9758_v49, %v10125_v32 }
 0x26c   :  { %v2958_v3 = vsub.f32 %v2894_v6, %v10167_v57  ;;  %15257 = vst [vmem:[#allocation34_spill] sm:$0xff] %v10189_v5  ;;  %v10194_v49 = vmax.f32 %v189_v38, 0.0 }
 0x26d   :  { %v2957_v47 = vsub.f32 %v2893_v29, %v10160_v21  ;;  %15256 = vst [vmem:[#allocation37_spill] sm:$0xff] %v10182_v27  ;;  %v879_v29 = vmax.f32 %v10171_v56, 0.0 }
 0x26e   :  { %v7826_v10 = vpop.f32.mrb[34].mxu0 }
 0x26f   :  { %v2590_v60 = vadd.f32 %v7826_v10, %v10147_v41  ;;  %v2584_v63 = vpop.f32.mrb[35].mxu0  ;;  %7925 = vmatprep.mubr.msk.f32.mxu1 %vm87_vm0, %v2957_v47  ;;  %v204_v10 = vadd.f32 %v9672_v48, %v10132_v54  ;;  %v199_v47 = vadd.f32 %v10132_v54, %v9679_v2  ;;  %v881_v48 = vmax.f32 %v10189_v5, 0.0 }
 0x270   :  { %v2585_v6 = vadd.f32 %v10147_v41, %v2584_v63  ;;  %7926 = vmatmul.mubr.msk.f32.vlgmr.msra.gmra.mrb[40].mxu1 %vm87_vm0, %v2958_v3  ;;  %v882_v63 = vmax.f32 %v10182_v27, 0.0  ;;  %v10206_v3 = vadd.f32 %v9776_v19, %v10125_v32  ;;  %v10212_v2 = vadd.f32 %v10125_v32, %v9783_v40 }
 0x271   :  { %v2896_v51 = vadd.f32 %v2590_v60, %v880_v26  ;;  %3091 = vrot.lane.b32.xlu1 %v2590_v60, %s8282_s6  ;;  %v10218_v19 = vmax.f32 %v204_v10, 0.0  ;;  %v10220_v27 = vmax.f32 %v199_v47, 0.0  ;;  %v214_v40 = vadd.f32 %v9693_v42, %v10132_v54 }
 0x272   :  { %v2895_v31 = vadd.f32 %v2585_v6, %v879_v29  ;;  %v7829_v56 = vpop.f32.mrb[36].mxu0  ;;  %3089 = vrot.lane.b32.xlu0 %v2585_v6, %s8282_s6  ;;  %15258 = vst [vmem:[#allocation39_spill] sm:$0xff] %v10206_v3  ;;  %15259 = vst [vmem:[#allocation36_spill] sm:$0xff] %v10212_v2 }
 0x273   :  { %v2600_v38 = vadd.f32 %v7829_v56, %v10147_v41  ;;  %v2594_v26 = vpop.f32.mrb[37].mxu0  ;;  %v2960_v29 = vsub.f32 %v2896_v51, %v10201_v59  ;;  %v209_v56 = vadd.f32 %v10132_v54, %v9699_v4  ;;  %v10231_v51 = vadd.f32 %v9794_v50, %v10125_v32 }
 0x274   :  { %v2959_v60 = vsub.f32 %v2895_v31, %v10194_v49  ;;  %v2595_v52 = vadd.f32 %v10147_v41, %v2594_v26  ;;  %v884_v31 = vmax.f32 %v10206_v3, 0.0  ;;  %v883_v4 = vmax.f32 %v10212_v2, 0.0 }
 0x275   :  { %v2898_v6 = vadd.f32 %v2600_v38, %v882_v63  ;;  %3095 = vrot.lane.b32.xlu1 %v2600_v38, %s8282_s6  ;;  %15260 = vst [vmem:[#allocation41_spill] sm:$0xff] %v10231_v51  ;;  %v10238_v63 = vadd.f32 %v10125_v32, %v9799_v44  ;;  %v10244_v50 = vmax.f32 %v209_v56, 0.0  ;;  %v886_v44 = vmax.f32 %v10231_v51, 0.0 }
 0x276   :  { %v2897_v5 = vadd.f32 %v2595_v52, %v881_v48  ;;  %v7832_v53 = vpop.f32.mrb[38].mxu0  ;;  %3093 = vrot.lane.b32.xlu0 %v2595_v52, %s8282_s6  ;;  %7928 = vmatprep.mubr.msk.f32.mxu1 %vm87_vm0, %v2959_v60  ;;  %v10248_v60 = vmax.f32 %v214_v40, 0.0  ;;  %v10260_v56 = vadd.f32 %v10125_v32, %v9819_v14  ;;  %v10271_v14 = vadd.f32 %v9830_v17, %v10125_v32 }
 0x277   :  { %v2610_v10 = vadd.f32 %v7832_v53, %v10147_v41  ;;  %v2604_v47 = vpop.f32.mrb[39].mxu0  ;;  %7929 = vmatmul.mubr.msk.f32.gmra.mrb[42].mxu1 %vm87_vm0, %v2960_v29  ;;  %15261 = vst [vmem:[#allocation38_spill] sm:$0xff] %v10238_v63  ;;  %v2962_v54 = vsub.f32 %v2898_v6, %v10218_v19  ;;  %v885_v6 = vmax.f32 %v10238_v63, 0.0 }
 0x278   :  { %v2961_v38 = vsub.f32 %v2897_v5, %v10220_v27  ;;  %v2605_v42 = vadd.f32 %v10147_v41, %v2604_v47  ;;  %v10253_v5 = vadd.f32 %v9812_v15, %v10125_v32  ;;  %15263 = vst [vmem:[#allocation40_spill] sm:$0xff] %v10260_v56  ;;  %15264 = vst [vmem:[#allocation45_spill] sm:$0xff] %v10271_v14 }
 0x279   :  { %v2900_v26 = vadd.f32 %v2610_v10, %v884_v31  ;;  %3099 = vrot.lane.b32.xlu1 %v2610_v10, %s8282_s6 }
 0x27a   :  { %v2899_v53 = vadd.f32 %v2605_v42, %v883_v4  ;;  %v7835_v48 = vpop.f32.mrb[40].mxu0  ;;  %3097 = vrot.lane.b32.xlu0 %v2605_v42, %s8282_s6  ;;  %7931 = vmatprep.mubr.msk.f32.mxu1 %vm87_vm0, %v2961_v38  ;;  %15262 = vst [vmem:[#allocation43_spill] sm:$0xff] %v10253_v5  ;;  %v888_v38 = vmax.f32 %v10253_v5, 0.0 }
 0x27b   :  { %v2620_v52 = vadd.f32 %v7835_v48, %v10147_v41  ;;  %v2614_v29 = vpop.f32.mrb[41].mxu0  ;;  %7932 = vmatmul.mubr.msk.f32.gmra.mrb[44].mxu1 %vm87_vm0, %v2962_v54  ;;  %v2964_v10 = vsub.f32 %v2900_v26, %v10248_v60  ;;  %v887_v26 = vmax.f32 %v10260_v56, 0.0 }
 0x27c   :  { %v2963_v40 = vsub.f32 %v2899_v53, %v10244_v50  ;;  %v2615_v31 = vadd.f32 %v10147_v41, %v2614_v29  ;;  %v10278_v53 = vadd.f32 %v10125_v32, %v9835_v16  ;;  %v10289_v16 = vadd.f32 %v9848_v28, %v10125_v32 }
 0x27d   :  { %v2902_v47 = vadd.f32 %v2620_v52, %v886_v44  ;;  %3103 = vrot.lane.b32.xlu1 %v2620_v52, %s8282_s6 }
 0x27e   :  { %v2901_v15 = vadd.f32 %v2615_v31, %v885_v6  ;;  %v7838_v4 = vpop.f32.mrb[42].mxu0  ;;  %3101 = vrot.lane.b32.xlu0 %v2615_v31, %s8282_s6  ;;  %7934 = vmatprep.mubr.msk.f32.mxu1 %vm87_vm0, %v2963_v40  ;;  %15265 = vst [vmem:[#allocation2_spill] sm:$0xff] %v10278_v53  ;;  %v890_v40 = vmax.f32 %v10271_v14, 0.0  ;;  %15266 = vst [vmem:[#allocation42_spill] sm:$0xff] %v10289_v16 }
 0x27f   :  { %v2630_v42 = vadd.f32 %v7838_v4, %v10147_v41  ;;  %v2624_v54 = vpop.f32.mrb[43].mxu0  ;;  %7935 = vmatmul.mubr.msk.f32.gmra.mrb[46].mxu1 %vm87_vm0, %v2964_v10  ;;  %v2966_v52 = vsub.f32 %v2902_v47, %v10167_v57  ;;  %v889_v47 = vmax.f32 %v10278_v53, 0.0 }
 0x280   :  { %v2965_v48 = vsub.f32 %v2901_v15, %v10160_v21  ;;  %v2625_v44 = vadd.f32 %v10147_v41, %v2624_v54  ;;  %v10296_v15 = vadd.f32 %v10125_v32, %v9855_v61  ;;  %v10307_v61 = vadd.f32 %v9866_v23, %v10125_v32 }
 0x281   :  { %v2904_v29 = vadd.f32 %v2630_v42, %v888_v38  ;;  %3107 = vrot.lane.b32.xlu1 %v2630_v42, %s8282_s6 }
 0x282   :  { %v2903_v17 = vadd.f32 %v2625_v44, %v887_v26  ;;  %v7841_v6 = vpop.f32.mrb[44].mxu0  ;;  %3105 = vrot.lane.b32.xlu0 %v2625_v44, %s8282_s6  ;;  %7937 = vmatprep.mubr.msk.f32.mxu1 %vm87_vm0, %v2965_v48  ;;  %15267 = vst [vmem:[#allocation47_spill] sm:$0xff] %v10296_v15  ;;  %v892_v48 = vmax.f32 %v10289_v16, 0.0  ;;  %15268 = vst [vmem:[#allocation44_spill] sm:$0xff] %v10307_v61 }
 0x283   :  { %v2640_v31 = vadd.f32 %v7841_v6, %v10147_v41  ;;  %v2634_v10 = vpop.f32.mrb[45].mxu0  ;;  %7938 = vmatmul.mubr.msk.f32.gmra.mrb[48].mxu1 %vm87_vm0, %v2966_v52  ;;  %v2968_v42 = vsub.f32 %v2904_v29, %v10201_v59  ;;  %v891_v29 = vmax.f32 %v10296_v15, 0.0 }
 0x284   :  { %v2967_v4 = vsub.f32 %v2903_v17, %v10194_v49  ;;  %v2635_v38 = vadd.f32 %v10147_v41, %v2634_v10  ;;  %v10314_v17 = vadd.f32 %v10125_v32, %v9871_v62  ;;  %v10325_v62 = vadd.f32 %v9884_v18, %v10125_v32 }
 0x285   :  { %v2906_v54 = vadd.f32 %v2640_v31, %v890_v40  ;;  %3111 = vrot.lane.b32.xlu1 %v2640_v31, %s8282_s6 }
 0x286   :  { %v2905_v28 = vadd.f32 %v2635_v38, %v889_v47  ;;  %v7844_v26 = vpop.f32.mrb[46].mxu0  ;;  %3109 = vrot.lane.b32.xlu0 %v2635_v38, %s8282_s6  ;;  %7940 = vmatprep.mubr.msk.f32.mxu1 %vm87_vm0, %v2967_v4  ;;  %15269 = vst [vmem:[#allocation49_spill] sm:$0xff] %v10314_v17  ;;  %v894_v4 = vmax.f32 %v10307_v61, 0.0  ;;  %15270 = vst [vmem:[#allocation46_spill] sm:$0xff] %v10325_v62 }
 0x287   :  { %v2650_v44 = vadd.f32 %v7844_v26, %v10147_v41  ;;  %v2644_v52 = vpop.f32.mrb[47].mxu0  ;;  %7941 = vmatmul.mubr.msk.f32.gmra.mrb[50].mxu1 %vm87_vm0, %v2968_v42  ;;  %v2970_v31 = vsub.f32 %v2906_v54, %v10218_v19  ;;  %v893_v54 = vmax.f32 %v10314_v17, 0.0 }
 0x288   :  { %v2969_v6 = vsub.f32 %v2905_v28, %v10220_v27  ;;  %v2645_v40 = vadd.f32 %v10147_v41, %v2644_v52  ;;  %v10332_v28 = vadd.f32 %v10125_v32, %v9891_v9  ;;  %v10343_v9 = vadd.f32 %v9902_v25, %v10125_v32 }
 0x289   :  { %v2908_v10 = vadd.f32 %v2650_v44, %v892_v48  ;;  %3115 = vrot.lane.b32.xlu1 %v2650_v44, %s8282_s6 }
 0x28a   :  { %v2907_v23 = vadd.f32 %v2645_v40, %v891_v29  ;;  %v7847_v47 = vpop.f32.mrb[48].mxu0  ;;  %3113 = vrot.lane.b32.xlu0 %v2645_v40, %s8282_s6  ;;  %7943 = vmatprep.mubr.msk.f32.mxu1 %vm87_vm0, %v2969_v6  ;;  %15271 = vst [vmem:[#allocation51_spill] sm:$0xff] %v10332_v28  ;;  %v896_v6 = vmax.f32 %v10325_v62, 0.0  ;;  %15272 = vst [vmem:[#allocation48_spill] sm:$0xff] %v10343_v9 }
 0x28b   :  { %v2660_v38 = vadd.f32 %v7847_v47, %v10147_v41  ;;  %v2654_v42 = vpop.f32.mrb[49].mxu0  ;;  %7944 = vmatmul.mubr.msk.f32.gmra.mrb[52].mxu1 %vm87_vm0, %v2970_v31  ;;  %v2972_v44 = vsub.f32 %v2908_v10, %v10248_v60  ;;  %v895_v10 = vmax.f32 %v10332_v28, 0.0 }
 0x28c   :  { %v2971_v26 = vsub.f32 %v2907_v23, %v10244_v50  ;;  %v2655_v48 = vadd.f32 %v10147_v41, %v2654_v42  ;;  %v10350_v23 = vadd.f32 %v10125_v32, %v9907_v11  ;;  %v10361_v11 = vadd.f32 %v9920_v34, %v10125_v32 }
 0x28d   :  { %v2910_v52 = vadd.f32 %v2660_v38, %v894_v4  ;;  %3119 = vrot.lane.b32.xlu1 %v2660_v38, %s8282_s6  ;;  %v10376_v34 = vadd.f32 %v10048_v13, %v10125_v32 }
 0x28e   :  { %v2909_v18 = vadd.f32 %v2655_v48, %v893_v54  ;;  %v7850_v29 = vpop.f32.mrb[50].mxu0  ;;  %3117 = vrot.lane.b32.xlu0 %v2655_v48, %s8282_s6  ;;  %7946 = vmatprep.mubr.msk.f32.mxu1 %vm87_vm0, %v2971_v26  ;;  %15273 = vst [vmem:[#allocation53_spill] sm:$0xff] %v10350_v23  ;;  %v898_v26 = vmax.f32 %v10343_v9, 0.0  ;;  %15274 = vst [vmem:[#allocation50_spill] sm:$0xff] %v10361_v11 }
 0x28f   :  { %v2670_v40 = vadd.f32 %v7850_v29, %v10147_v41  ;;  %v2664_v31 = vpop.f32.mrb[51].mxu0  ;;  %7947 = vmatmul.mubr.msk.f32.gmra.mrb[54].mxu1 %vm87_vm0, %v2972_v44  ;;  %v2974_v38 = vsub.f32 %v2910_v52, %v10167_v57  ;;  %v897_v52 = vmax.f32 %v10350_v23, 0.0  ;;  %15276 = vst [vmem:[#allocation4_spill] sm:$0xff] %v10376_v34 }
 0x290   :  { %v2973_v47 = vsub.f32 %v2909_v18, %v10160_v21  ;;  %v2665_v4 = vadd.f32 %v10147_v41, %v2664_v31  ;;  %v10368_v18 = vadd.f32 %v10125_v32, %v9927_v33  ;;  %v10382_v33 = vadd.f32 %v10125_v32, %v10050_v1 }
 0x291   :  { %v2912_v42 = vadd.f32 %v2670_v40, %v896_v6  ;;  %3123 = vrot.lane.b32.xlu1 %v2670_v40, %s8282_s6  ;;  %v10395_v1 = vadd.f32 %v10052_v43, %v10125_v32 }
 0x292   :  { %v2911_v25 = vadd.f32 %v2665_v4, %v895_v10  ;;  %v7853_v54 = vpop.f32.mrb[52].mxu0  ;;  %3121 = vrot.lane.b32.xlu0 %v2665_v4, %s8282_s6  ;;  %7949 = vmatprep.mubr.msk.f32.mxu1 %vm87_vm0, %v2973_v47  ;;  %15275 = vst [vmem:[#allocation55_spill] sm:$0xff] %v10368_v18  ;;  %15277 = vst [vmem:[#allocation52_spill] sm:$0xff] %v10382_v33  ;;  %v900_v4 = vmax.f32 %v10361_v11, 0.0  ;;  %v899_v13 = vmax.f32 %v10368_v18, 0.0  ;;  %v15366_v18 = vmov 0  }
 0x293   :  { %v2680_v48 = vadd.f32 %v7853_v54, %v10147_v41  ;;  %v2674_v44 = vpop.f32.mrb[53].mxu0  ;;  %7950 = vmatmul.mubr.msk.f32.gmra.mrb[56].mxu1 %vm87_vm0, %v2974_v38  ;;  %v2976_v40 = vsub.f32 %v2912_v42, %v10201_v59  ;;  %15278 = vst [vmem:[#allocation57_spill] sm:$0xff] %v10395_v1 }
 0x294   :  { %v2975_v29 = vsub.f32 %v2911_v25, %v10194_v49  ;;  %v2675_v6 = vadd.f32 %v10147_v41, %v2674_v44  ;;  %v902_v44 = vmax.f32 %v10376_v34, 0.0 }
 0x295   :  { %v2914_v31 = vadd.f32 %v2680_v48, %v898_v26  ;;  %3127 = vrot.lane.b32.xlu1 %v2680_v48, %s8282_s6 }
 0x296   :  { %v2913_v10 = vadd.f32 %v2675_v6, %v897_v52  ;;  %v7856_v47 = vpop.f32.mrb[54].mxu0  ;;  %3125 = vrot.lane.b32.xlu0 %v2675_v6, %s8282_s6  ;;  %7952 = vmatprep.mubr.msk.f32.mxu1 %vm87_vm0, %v2975_v29  ;;  %v901_v29 = vmax.f32 %v10382_v33, 0.0 }
 0x297   :  { %v2690_v38 = vadd.f32 %v7856_v47, %v10147_v41  ;;  %v2684_v42 = vpop.f32.mrb[55].mxu0  ;;  %7953 = vmatmul.mubr.msk.f32.gmra.mrb[58].mxu1 %vm87_vm0, %v2976_v40  ;;  %v2978_v26 = vsub.f32 %v2914_v31, %v10218_v19  ;;  %v10402_v40 = vadd.f32 %v10125_v32, %v10054_v37  ;;  %v10413_v37 = vadd.f32 %v10056_v30, %v10125_v32 }
 0x298   :  { %v2977_v25 = vsub.f32 %v2913_v10, %v10220_v27  ;;  %v2685_v54 = vadd.f32 %v10147_v41, %v2684_v42  ;;  %v904_v42 = vmax.f32 %v10395_v1, 0.0 }
 0x299   :  { %v2916_v48 = vadd.f32 %v2690_v38, %v900_v4  ;;  %3131 = vrot.lane.b32.xlu1 %v2690_v38, %s8282_s6  ;;  %15279 = vst [vmem:[#allocation3_spill] sm:$0xff] %v10402_v40  ;;  %15280 = vst [vmem:[#allocation54_spill] sm:$0xff] %v10413_v37 }
 0x29a   :  { %v2915_v52 = vadd.f32 %v2685_v54, %v899_v13  ;;  %v7859_v6 = vpop.f32.mrb[56].mxu0  ;;  %3129 = vrot.lane.b32.xlu0 %v2685_v54, %s8282_s6  ;;  %7955 = vmatprep.mubr.msk.f32.mxu1 %vm87_vm0, %v2977_v25  ;;  %v903_v25 = vmax.f32 %v10402_v40, 0.0 }
 0x29b   :  { %v2700_v31 = vadd.f32 %v7859_v6, %v10147_v41  ;;  %v2694_v10 = vpop.f32.mrb[57].mxu0  ;;  %7956 = vmatmul.mubr.msk.f32.gmra.mrb[60].mxu1 %vm87_vm0, %v2978_v26  ;;  %v2980_v4 = vsub.f32 %v2916_v48, %v10248_v60  ;;  %v10420_v26 = vadd.f32 %v10125_v32, %v10058_v55  ;;  %v10431_v55 = vadd.f32 %v10060_v22, %v10125_v32 }
 0x29c   :  { %v2979_v43 = vsub.f32 %v2915_v52, %v10244_v50  ;;  %v2695_v47 = vadd.f32 %v10147_v41, %v2694_v10 }
 0x29d   :  { %v2918_v38 = vadd.f32 %v2700_v31, %v902_v44  ;;  %3135 = vrot.lane.b32.xlu1 %v2700_v31, %s8282_s6  ;;  %15281 = vst [vmem:[#allocation76_spill] sm:$0xff] %v10420_v26  ;;  %v906_v31 = vmax.f32 %v10413_v37, 0.0  ;;  %15282 = vst [vmem:[#allocation59_spill] sm:$0xff] %v10431_v55 }
 0x29e   :  { %v2917_v13 = vadd.f32 %v2695_v47, %v901_v29  ;;  %v7862_v54 = vpop.f32.mrb[58].mxu0  ;;  %3133 = vrot.lane.b32.xlu0 %v2695_v47, %s8282_s6  ;;  %7958 = vmatprep.mubr.msk.f32.mxu1 %vm87_vm0, %v2979_v43  ;;  %v905_v43 = vmax.f32 %v10420_v26, 0.0 }
 0x29f   :  { %v2710_v48 = vadd.f32 %v7862_v54, %v10147_v41  ;;  %v2704_v44 = vpop.f32.mrb[59].mxu0  ;;  %7959 = vmatmul.mubr.msk.f32.gmra.mrb[62].mxu1 %vm87_vm0, %v2980_v4  ;;  %v2982_v29 = vsub.f32 %v2918_v38, %v10167_v57  ;;  %v10438_v4 = vadd.f32 %v10125_v32, %v10062_v24  ;;  %v10449_v24 = vadd.f32 %v10064_v8, %v10125_v32 }
 0x2a0   :  { %v2981_v30 = vsub.f32 %v2917_v13, %v10160_v21  ;;  %v2705_v52 = vadd.f32 %v10147_v41, %v2704_v44 }
 0x2a1   :  { %v2920_v6 = vadd.f32 %v2710_v48, %v904_v42  ;;  %3139 = vrot.lane.b32.xlu1 %v2710_v48, %s8282_s6  ;;  %15283 = vst [vmem:[#allocation75_spill] sm:$0xff] %v10438_v4  ;;  %v908_v48 = vmax.f32 %v10431_v55, 0.0  ;;  %15284 = vst [vmem:[#allocation78_spill] sm:$0xff] %v10449_v24 }
 0x2a2   :  { %v2919_v10 = vadd.f32 %v2705_v52, %v903_v25  ;;  %v7865_v47 = vpop.f32.mrb[60].mxu0  ;;  %3137 = vrot.lane.b32.xlu0 %v2705_v52, %s8282_s6  ;;  %7961 = vmatprep.mubr.msk.f32.mxu1 %vm87_vm0, %v2981_v30  ;;  %v907_v30 = vmax.f32 %v10438_v4, 0.0 }
 0x2a3   :  { %v2720_v38 = vadd.f32 %v7865_v47, %v10147_v41  ;;  %v2714_v42 = vpop.f32.mrb[61].mxu0  ;;  %7962 = vmatmul.mubr.msk.f32.gmra.mrb[64].mxu1 %vm87_vm0, %v2982_v29  ;;  %v2984_v25 = vsub.f32 %v2920_v6, %v10201_v59  ;;  %v10456_v29 = vadd.f32 %v10125_v32, %v10066_v46  ;;  %v10467_v46 = vadd.f32 %v10068_v58, %v10125_v32 }
 0x2a4   :  { %v2983_v22 = vsub.f32 %v2919_v10, %v10194_v49  ;;  %v2715_v13 = vadd.f32 %v10147_v41, %v2714_v42 }
 0x2a5   :  { %v2922_v54 = vadd.f32 %v2720_v38, %v906_v31  ;;  %3143 = vrot.lane.b32.xlu1 %v2720_v38, %s8282_s6  ;;  %15285 = vst [vmem:[#allocation56_spill] sm:$0xff] %v10456_v29  ;;  %v910_v38 = vmax.f32 %v10449_v24, 0.0  ;;  %15286 = vst [vmem:[#allocation61_spill] sm:$0xff] %v10467_v46 }
 0x2a6   :  { %v2921_v44 = vadd.f32 %v2715_v13, %v905_v43  ;;  %v7868_v52 = vpop.f32.mrb[62].mxu0  ;;  %3141 = vrot.lane.b32.xlu0 %v2715_v13, %s8282_s6  ;;  %7964 = vmatprep.mubr.msk.f32.mxu1 %vm87_vm0, %v2983_v22  ;;  %v909_v22 = vmax.f32 %v10456_v29, 0.0 }
 0x2a7   :  { %v2730_v6 = vadd.f32 %v7868_v52, %v10147_v41  ;;  %v2724_v31 = vpop.f32.mrb[63].mxu0  ;;  %7965 = vmatmul.mubr.msk.f32.gmra.mrb[66].mxu1 %vm87_vm0, %v2984_v25  ;;  %v2986_v43 = vsub.f32 %v2922_v54, %v10218_v19  ;;  %v10474_v25 = vadd.f32 %v10125_v32, %v10070_v39  ;;  %v10485_v39 = vadd.f32 %v10072_v7, %v10125_v32 }
 0x2a8   :  { %v2985_v8 = vsub.f32 %v2921_v44, %v10220_v27  ;;  %v2725_v10 = vadd.f32 %v10147_v41, %v2724_v31 }
 0x2a9   :  { %v2924_v47 = vadd.f32 %v2730_v6, %v908_v48  ;;  %3147 = vrot.lane.b32.xlu1 %v2730_v6, %s8282_s6  ;;  %15287 = vst [vmem:[#allocation77_spill] sm:$0xff] %v10474_v25  ;;  %v912_v6 = vmax.f32 %v10467_v46, 0.0  ;;  %15288 = vst [vmem:[#allocation58_spill] sm:$0xff] %v10485_v39 }
 0x2aa   :  { %v2923_v42 = vadd.f32 %v2725_v10, %v907_v30  ;;  %v7871_v13 = vpop.f32.mrb[64].mxu0  ;;  %3145 = vrot.lane.b32.xlu0 %v2725_v10, %s8282_s6  ;;  %7967 = vmatprep.mubr.msk.f32.mxu1 %vm87_vm0, %v2985_v8  ;;  %v911_v8 = vmax.f32 %v10474_v25, 0.0  ;;  %v15360_v25 = vmov 1  }
 0x2ab   :  { %v2740_v54 = vadd.f32 %v7871_v13, %v10147_v41  ;;  %v2734_v48 = vpop.f32.mrb[65].mxu0  ;;  %7968 = vmatmul.mubr.msk.f32.gmra.mrb[68].mxu1 %vm87_vm0, %v2986_v43  ;;  %v2988_v30 = vsub.f32 %v2924_v47, %v10248_v60  ;;  %v10492_v43 = vadd.f32 %v10125_v32, %v10074_v36  ;;  %v10503_v36 = vadd.f32 %v10076_v35, %v10125_v32 }
 0x2ac   :  { %v2987_v58 = vsub.f32 %v2923_v42, %v10244_v50  ;;  %v2735_v44 = vadd.f32 %v10147_v41, %v2734_v48 }
 0x2ad   :  { %v2926_v52 = vadd.f32 %v2740_v54, %v910_v38  ;;  %3151 = vrot.lane.b32.xlu1 %v2740_v54, %s8282_s6  ;;  %15289 = vst [vmem:[#allocation80_spill] sm:$0xff] %v10492_v43  ;;  %v914_v54 = vmax.f32 %v10485_v39, 0.0  ;;  %15290 = vst [vmem:[#allocation63_spill] sm:$0xff] %v10503_v36 }
 0x2ae   :  { %v2925_v31 = vadd.f32 %v2735_v44, %v909_v22  ;;  %v7874_v10 = vpop.f32.mrb[66].mxu0  ;;  %3149 = vrot.lane.b32.xlu0 %v2735_v44, %s8282_s6  ;;  %7970 = vmatprep.mubr.msk.f32.mxu1 %vm87_vm0, %v2987_v58  ;;  %v913_v58 = vmax.f32 %v10492_v43, 0.0 }
 0x2af   :  { %v2750_v47 = vadd.f32 %v7874_v10, %v10147_v41  ;;  %v2744_v38 = vpop.f32.mrb[67].mxu0  ;;  %7971 = vmatmul.mubr.msk.f32.gmra.mrb[70].mxu1 %vm87_vm0, %v2988_v30  ;;  %v2990_v22 = vsub.f32 %v2926_v52, %v10167_v57  ;;  %v10510_v30 = vadd.f32 %v10125_v32, %v10078_v45  ;;  %v10521_v45 = vadd.f32 %v10080_v20, %v10125_v32 }
 0x2b0   :  { %v2989_v7 = vsub.f32 %v2925_v31, %v10160_v21  ;;  %v2745_v42 = vadd.f32 %v10147_v41, %v2744_v38 }
 0x2b1   :  { %v2928_v13 = vadd.f32 %v2750_v47, %v912_v6  ;;  %3155 = vrot.lane.b32.xlu1 %v2750_v47, %s8282_s6  ;;  %15291 = vst [vmem:[#allocation79_spill] sm:$0xff] %v10510_v30  ;;  %v916_v47 = vmax.f32 %v10503_v36, 0.0  ;;  %15292 = vst [vmem:[#allocation82_spill] sm:$0xff] %v10521_v45 }
 0x2b2   :  { %v2927_v48 = vadd.f32 %v2745_v42, %v911_v8  ;;  %v7877_v44 = vpop.f32.mrb[68].mxu0  ;;  %3153 = vrot.lane.b32.xlu0 %v2745_v42, %s8282_s6  ;;  %7973 = vmatprep.mubr.msk.f32.mxu1 %vm87_vm0, %v2989_v7  ;;  %v915_v7 = vmax.f32 %v10510_v30, 0.0 }
 0x2b3   :  { %v2760_v52 = vadd.f32 %v7877_v44, %v10147_v41  ;;  %v2754_v6 = vpop.f32.mrb[69].mxu0  ;;  %7974 = vmatmul.mubr.msk.f32.gmra.mrb[72].mxu1 %vm87_vm0, %v2990_v22  ;;  %v2992_v8 = vsub.f32 %v2928_v13, %v10201_v59  ;;  %v10528_v22 = vadd.f32 %v10125_v32, %v10082_v12  ;;  %v10539_v12 = vadd.f32 %v10084_v0, %v10125_v32 }
 0x2b4   :  { %v2991_v35 = vsub.f32 %v2927_v48, %v10194_v49  ;;  %v2755_v31 = vadd.f32 %v10147_v41, %v2754_v6 }
 0x2b5   :  { %v2930_v10 = vadd.f32 %v2760_v52, %v914_v54  ;;  %3159 = vrot.lane.b32.xlu1 %v2760_v52, %s8282_s6  ;;  %15293 = vst [vmem:[#allocation60_spill] sm:$0xff] %v10528_v22  ;;  %v918_v52 = vmax.f32 %v10521_v45, 0.0  ;;  %15294 = vst [vmem:[#allocation65_spill] sm:$0xff] %v10539_v12 }
 0x2b6   :  { %v2929_v38 = vadd.f32 %v2755_v31, %v913_v58  ;;  %v7880_v42 = vpop.f32.mrb[70].mxu0  ;;  %3157 = vrot.lane.b32.xlu0 %v2755_v31, %s8282_s6  ;;  %7976 = vmatprep.mubr.msk.f32.mxu1 %vm87_vm0, %v2991_v35  ;;  %v917_v35 = vmax.f32 %v10528_v22, 0.0 }
 0x2b7   :  { %v2770_v13 = vadd.f32 %v7880_v42, %v10147_v41  ;;  %v2764_v54 = vpop.f32.mrb[71].mxu0  ;;  %7977 = vmatmul.mubr.msk.f32.gmra.mrb[74].mxu1 %vm87_vm0, %v2992_v8  ;;  %v2994_v58 = vsub.f32 %v2930_v10, %v10218_v19  ;;  %v15295_v8 = vld [vmem:[#allocation9_spill] sm:$0xff] }
 0x2b8   :  { %v2993_v20 = vsub.f32 %v2929_v38, %v10220_v27  ;;  %v2765_v48 = vadd.f32 %v10147_v41, %v2764_v54  ;;  %v10546_v10 = vadd.f32 %v10125_v32, %v15295_v8  ;;  %v920_v54 = vmax.f32 %v10539_v12, 0.0 }
 0x2b9   :  { %v2932_v44 = vadd.f32 %v2770_v13, %v916_v47  ;;  %3163 = vrot.lane.b32.xlu1 %v2770_v13, %s8282_s6 }
 0x2ba   :  { %v2931_v6 = vadd.f32 %v2765_v48, %v915_v7  ;;  %v7883_v31 = vpop.f32.mrb[72].mxu0  ;;  %3161 = vrot.lane.b32.xlu0 %v2765_v48, %s8282_s6  ;;  %7979 = vmatprep.mubr.msk.f32.mxu1 %vm87_vm0, %v2993_v20  ;;  %15296 = vst [vmem:[#allocation81_spill] sm:$0xff] %v10546_v10  ;;  %v15297_v20 = vld [vmem:[#allocation13_spill] sm:$0xff] }
 0x2bb   :  { %v2780_v47 = vadd.f32 %v7883_v31, %v10147_v41  ;;  %v2774_v38 = vpop.f32.mrb[73].mxu0  ;;  %7980 = vmatmul.mubr.msk.f32.gmra.mrb[76].mxu1 %vm87_vm0, %v2994_v58  ;;  %v2996_v42 = vsub.f32 %v2932_v44, %v10248_v60  ;;  %v10557_v48 = vadd.f32 %v15297_v20, %v10125_v32  ;;  %v919_v31 = vmax.f32 %v10546_v10, 0.0  ;;  %v15299_v58 = vld [vmem:[#allocation15_spill] sm:$0xff] }
 0x2bc   :  { %v2995_v0 = vsub.f32 %v2931_v6, %v10244_v50  ;;  %v2775_v7 = vadd.f32 %v10147_v41, %v2774_v38  ;;  %v10564_v44 = vadd.f32 %v10125_v32, %v15299_v58 }
 0x2bd   :  { %v2934_v13 = vadd.f32 %v2780_v47, %v918_v52  ;;  %3167 = vrot.lane.b32.xlu1 %v2780_v47, %s8282_s6  ;;  %15298 = vst [vmem:[#allocation62_spill] sm:$0xff] %v10557_v48 }
 0x2be   :  { %v2933_v8 = vadd.f32 %v2775_v7, %v917_v35  ;;  %v7886_v30 = vpop.f32.mrb[74].mxu0  ;;  %3165 = vrot.lane.b32.xlu0 %v2775_v7, %s8282_s6  ;;  %7982 = vmatprep.mubr.msk.f32.mxu1 %vm87_vm0, %v2995_v0  ;;  %15300 = vst [vmem:[#allocation84_spill] sm:$0xff] %v10564_v44  ;;  %v922_v7 = vmax.f32 %v10557_v48, 0.0  ;;  %v15301_v0 = vld [vmem:[#allocation11_spill] sm:$0xff] }
 0x2bf   :  { %v2790_v52 = vadd.f32 %v7886_v30, %v10147_v41  ;;  %v2784_v6 = vpop.f32.mrb[75].mxu0  ;;  %7983 = vmatmul.mubr.msk.f32.gmra.mrb[78].mxu1 %vm87_vm0, %v2996_v42  ;;  %v2998_v38 = vsub.f32 %v2934_v13, %v10167_v57  ;;  %v10575_v58 = vadd.f32 %v15301_v0, %v10125_v32  ;;  %v921_v30 = vmax.f32 %v10564_v44, 0.0  ;;  %v15303_v42 = vld [vmem:[#allocation12_spill] sm:$0xff] }
 0x2c0   :  { %v2997_v47 = vsub.f32 %v2933_v8, %v10160_v21  ;;  %v2785_v35 = vadd.f32 %v10147_v41, %v2784_v6  ;;  %v10582_v13 = vadd.f32 %v10125_v32, %v15303_v42 }
 0x2c1   :  { %v2936_v20 = vadd.f32 %v2790_v52, %v920_v54  ;;  %3171 = vrot.lane.b32.xlu1 %v2790_v52, %s8282_s6  ;;  %15302 = vst [vmem:[#allocation67_spill] sm:$0xff] %v10575_v58 }
 0x2c2   :  { %v2935_v10 = vadd.f32 %v2785_v35, %v919_v31  ;;  %v7889_v12 = vpop.f32.mrb[76].mxu0  ;;  %3169 = vrot.lane.b32.xlu0 %v2785_v35, %s8282_s6  ;;  %7985 = vmatprep.mubr.msk.f32.mxu1 %vm87_vm0, %v2997_v47  ;;  %15304 = vst [vmem:[#allocation83_spill] sm:$0xff] %v10582_v13  ;;  %v924_v35 = vmax.f32 %v10575_v58, 0.0  ;;  %v15305_v47 = vld [vmem:[#allocation17_spill] sm:$0xff] }
 0x2c3   :  { %v2800_v54 = vadd.f32 %v7889_v12, %v10147_v41  ;;  %v2794_v8 = vpop.f32.mrb[77].mxu0  ;;  %7986 = vmatmul.mubr.msk.f32.gmra.mrb[80].mxu1 %vm87_vm0, %v2998_v38  ;;  %v3000_v6 = vsub.f32 %v2936_v20, %v10201_v59  ;;  %v10593_v42 = vadd.f32 %v15305_v47, %v10125_v32  ;;  %v923_v12 = vmax.f32 %v10582_v13, 0.0 }
 0x2c4   :  { %v2999_v52 = vsub.f32 %v2935_v10, %v10194_v49  ;;  %v2795_v31 = vadd.f32 %v10147_v41, %v2794_v8  ;;  %v15307_v10 = vld [vmem:[#allocation14_spill] sm:$0xff] }
 0x2c5   :  { %v2938_v0 = vadd.f32 %v2800_v54, %v922_v7  ;;  %3175 = vrot.lane.b32.xlu1 %v2800_v54, %s8282_s6  ;;  %15306 = vst [vmem:[#allocation86_spill] sm:$0xff] %v10593_v42  ;;  %v10600_v38 = vadd.f32 %v10125_v32, %v15307_v10 }
 0x2c6   :  { %v2937_v44 = vadd.f32 %v2795_v31, %v921_v30  ;;  %v7892_v48 = vpop.f32.mrb[78].mxu0  ;;  %3173 = vrot.lane.b32.xlu0 %v2795_v31, %s8282_s6  ;;  %7988 = vmatprep.mubr.msk.f32.mxu1 %vm87_vm0, %v2999_v52  ;;  %v926_v31 = vmax.f32 %v10593_v42, 0.0  ;;  %v15309_v52 = vld [vmem:[#allocation19_spill] sm:$0xff] }
 0x2c7   :  { %15308 = vst [vmem:[#allocation64_spill] sm:$0xff] %v10600_v38  ;;  %v2810_v20 = vadd.f32 %v7892_v48, %v10147_v41  ;;  %v2804_v7 = vpop.f32.mrb[79].mxu0  ;;  %7989 = vmatmul.mubr.msk.f32.gmra.mrb[82].mxu1 %vm87_vm0, %v3000_v6  ;;  %v3002_v8 = vsub.f32 %v2938_v0, %v10218_v19  ;;  %v10611_v10 = vadd.f32 %v15309_v52, %v10125_v32  ;;  %v925_v48 = vmax.f32 %v10600_v38, 0.0 }
 0x2c8   :  { %v3001_v54 = vsub.f32 %v2937_v44, %v10220_v27  ;;  %v2805_v30 = vadd.f32 %v10147_v41, %v2804_v7  ;;  %v15311_v44 = vld [vmem:[#allocation16_spill] sm:$0xff] }
 0x2c9   :  { %v2940_v47 = vadd.f32 %v2810_v20, %v924_v35  ;;  %3179 = vrot.lane.b32.xlu1 %v2810_v20, %s8282_s6  ;;  %15310 = vst [vmem:[#allocation69_spill] sm:$0xff] %v10611_v10  ;;  %v10618_v6 = vadd.f32 %v10125_v32, %v15311_v44 }
 0x2ca   :  { %v2939_v13 = vadd.f32 %v2805_v30, %v923_v12  ;;  %v7895_v58 = vpop.f32.mrb[80].mxu0  ;;  %3177 = vrot.lane.b32.xlu0 %v2805_v30, %s8282_s6  ;;  %7991 = vmatprep.mubr.msk.f32.mxu1 %vm87_vm0, %v3001_v54  ;;  %v928_v30 = vmax.f32 %v10611_v10, 0.0  ;;  %v15313_v54 = vld [vmem:[#allocation21_spill] sm:$0xff] }
 0x2cb   :  { %15312 = vst [vmem:[#allocation85_spill] sm:$0xff] %v10618_v6  ;;  %v2820_v0 = vadd.f32 %v7895_v58, %v10147_v41  ;;  %v2814_v35 = vpop.f32.mrb[81].mxu0  ;;  %7992 = vmatmul.mubr.msk.f32.gmra.mrb[84].mxu1 %vm87_vm0, %v3002_v8  ;;  %v3004_v7 = vsub.f32 %v2940_v47, %v10248_v60  ;;  %v10629_v44 = vadd.f32 %v15313_v54, %v10125_v32  ;;  %v927_v58 = vmax.f32 %v10618_v6, 0.0 }
 0x2cc   :  { %v3003_v20 = vsub.f32 %v2939_v13, %v10244_v50  ;;  %v2815_v12 = vadd.f32 %v10147_v41, %v2814_v35  ;;  %v15315_v13 = vld [vmem:[#allocation18_spill] sm:$0xff] }
 0x2cd   :  { %v2942_v52 = vadd.f32 %v2820_v0, %v926_v31  ;;  %3183 = vrot.lane.b32.xlu1 %v2820_v0, %s8282_s6  ;;  %15314 = vst [vmem:[#allocation66_spill] sm:$0xff] %v10629_v44  ;;  %v10636_v8 = vadd.f32 %v10125_v32, %v15315_v13 }
 0x2ce   :  { %v2941_v38 = vadd.f32 %v2815_v12, %v925_v48  ;;  %v7898_v42 = vpop.f32.mrb[82].mxu0  ;;  %3181 = vrot.lane.b32.xlu0 %v2815_v12, %s8282_s6  ;;  %7994 = vmatprep.mubr.msk.f32.mxu1 %vm87_vm0, %v3003_v20  ;;  %v930_v12 = vmax.f32 %v10629_v44, 0.0  ;;  %v15317_v20 = vld [vmem:[#allocation23_spill] sm:$0xff] }
 0x2cf   :  { %15316 = vst [vmem:[#allocation8_spill] sm:$0xff] %v10636_v8  ;;  %v2830_v47 = vadd.f32 %v7898_v42, %v10147_v41  ;;  %v2824_v31 = vpop.f32.mrb[83].mxu0  ;;  %7995 = vmatmul.mubr.msk.f32.gmra.mrb[86].mxu1 %vm87_vm0, %v3004_v7  ;;  %v3006_v35 = vsub.f32 %v2942_v52, %v10167_v57  ;;  %v10647_v13 = vadd.f32 %v15317_v20, %v10125_v32  ;;  %v929_v42 = vmax.f32 %v10636_v8, 0.0 }
 0x2d0   :  { %v3005_v0 = vsub.f32 %v2941_v38, %v10160_v21  ;;  %v2825_v48 = vadd.f32 %v10147_v41, %v2824_v31  ;;  %v15319_v38 = vld [vmem:[#allocation20_spill] sm:$0xff] }
 0x2d1   :  { %v2944_v54 = vadd.f32 %v2830_v47, %v928_v30  ;;  %3187 = vrot.lane.b32.xlu1 %v2830_v47, %s8282_s6  ;;  %15318 = vst [vmem:[#allocation71_spill] sm:$0xff] %v10647_v13  ;;  %v10654_v7 = vadd.f32 %v10125_v32, %v15319_v38 }
 0x2d2   :  { %v2943_v6 = vadd.f32 %v2825_v48, %v927_v58  ;;  %v7901_v10 = vpop.f32.mrb[84].mxu0  ;;  %3185 = vrot.lane.b32.xlu0 %v2825_v48, %s8282_s6  ;;  %7997 = vmatprep.mubr.msk.f32.mxu1 %vm87_vm0, %v3005_v0  ;;  %v932_v48 = vmax.f32 %v10647_v13, 0.0  ;;  %v15321_v0 = vld [vmem:[#allocation25_spill] sm:$0xff] }
 0x2d3   :  { %15320 = vst [vmem:[#allocation87_spill] sm:$0xff] %v10654_v7  ;;  %v2840_v52 = vadd.f32 %v7901_v10, %v10147_v41  ;;  %v2834_v30 = vpop.f32.mrb[85].mxu0  ;;  %7998 = vmatmul.mubr.msk.f32.gmra.mrb[88].mxu1 %vm87_vm0, %v3006_v35  ;;  %v3008_v31 = vsub.f32 %v2944_v54, %v10201_v59  ;;  %v10665_v38 = vadd.f32 %v15321_v0, %v10125_v32  ;;  %v931_v10 = vmax.f32 %v10654_v7, 0.0 }
 0x2d4   :  { %v3007_v47 = vsub.f32 %v2943_v6, %v10194_v49  ;;  %v2835_v58 = vadd.f32 %v10147_v41, %v2834_v30  ;;  %v15323_v6 = vld [vmem:[#allocation22_spill] sm:$0xff] }
 0x2d5   :  { %v2946_v20 = vadd.f32 %v2840_v52, %v930_v12  ;;  %3191 = vrot.lane.b32.xlu1 %v2840_v52, %s8282_s6  ;;  %15322 = vst [vmem:[#allocation6_spill] sm:$0xff] %v10665_v38  ;;  %v10672_v35 = vadd.f32 %v10125_v32, %v15323_v6 }
 0x2d6   :  { %v2945_v8 = vadd.f32 %v2835_v58, %v929_v42  ;;  %v7904_v44 = vpop.f32.mrb[86].mxu0  ;;  %3189 = vrot.lane.b32.xlu0 %v2835_v58, %s8282_s6  ;;  %8000 = vmatprep.mubr.msk.f32.mxu1 %vm87_vm0, %v3007_v47  ;;  %v934_v58 = vmax.f32 %v10665_v38, 0.0  ;;  %v15325_v47 = vld [vmem:[#allocation27_spill] sm:$0xff] }
 0x2d7   :  { %15324 = vst [vmem:[#allocation68_spill] sm:$0xff] %v10672_v35  ;;  %v2850_v54 = vadd.f32 %v7904_v44, %v10147_v41  ;;  %v2844_v12 = vpop.f32.mrb[87].mxu0  ;;  %8001 = vmatmul.mubr.msk.f32.gmra.mrb[90].mxu1 %vm87_vm0, %v3008_v31  ;;  %v3010_v30 = vsub.f32 %v2946_v20, %v10218_v19  ;;  %v10683_v6 = vadd.f32 %v15325_v47, %v10125_v32  ;;  %v933_v44 = vmax.f32 %v10672_v35, 0.0 }
 0x2d8   :  { %v3009_v52 = vsub.f32 %v2945_v8, %v10220_v27  ;;  %v2845_v42 = vadd.f32 %v10147_v41, %v2844_v12  ;;  %v15327_v8 = vld [vmem:[#allocation24_spill] sm:$0xff] }
 0x2d9   :  { %v2948_v0 = vadd.f32 %v2850_v54, %v932_v48  ;;  %3195 = vrot.lane.b32.xlu1 %v2850_v54, %s8282_s6  ;;  %15326 = vst [vmem:[#allocation73_spill] sm:$0xff] %v10683_v6  ;;  %v10690_v31 = vadd.f32 %v10125_v32, %v15327_v8 }
 0x2da   :  { %v2947_v7 = vadd.f32 %v2845_v42, %v931_v10  ;;  %v7907_v13 = vpop.f32.mrb[88].mxu0  ;;  %3193 = vrot.lane.b32.xlu0 %v2845_v42, %s8282_s6  ;;  %8003 = vmatprep.mubr.msk.f32.mxu1 %vm87_vm0, %v3009_v52  ;;  %v936_v42 = vmax.f32 %v10683_v6, 0.0  ;;  %v15329_v52 = vld [vmem:[#allocation29_spill] sm:$0xff] }
 0x2db   :  { %15328 = vst [vmem:[#allocation88_spill] sm:$0xff] %v10690_v31  ;;  %v2860_v20 = vadd.f32 %v7907_v13, %v10147_v41  ;;  %v2854_v48 = vpop.f32.mrb[89].mxu0  ;;  %8004 = vmatmul.mubr.msk.f32.gmra.mrb[92].mxu1 %vm87_vm0, %v3010_v30  ;;  %v3012_v12 = vsub.f32 %v2948_v0, %v10248_v60  ;;  %v10701_v8 = vadd.f32 %v15329_v52, %v10125_v32  ;;  %v935_v13 = vmax.f32 %v10690_v31, 0.0 }
 0x2dc   :  { %v3011_v54 = vsub.f32 %v2947_v7, %v10244_v50  ;;  %v2855_v10 = vadd.f32 %v10147_v41, %v2854_v48  ;;  %v15331_v7 = vld [vmem:[#allocation26_spill] sm:$0xff] }
 0x2dd   :  { %v2950_v47 = vadd.f32 %v2860_v20, %v934_v58  ;;  %3199 = vrot.lane.b32.xlu1 %v2860_v20, %s8282_s6  ;;  %15330 = vst [vmem:[#allocation70_spill] sm:$0xff] %v10701_v8  ;;  %v10708_v30 = vadd.f32 %v10125_v32, %v15331_v7 }
 0x2de   :  { %v2949_v35 = vadd.f32 %v2855_v10, %v933_v44  ;;  %v7910_v38 = vpop.f32.mrb[90].mxu0  ;;  %3197 = vrot.lane.b32.xlu0 %v2855_v10, %s8282_s6  ;;  %8006 = vmatprep.mubr.msk.f32.mxu1 %vm87_vm0, %v3011_v54  ;;  %v938_v10 = vmax.f32 %v10701_v8, 0.0  ;;  %v15333_v54 = vld [vmem:[#allocation28_spill] sm:$0xff] }
 0x2df   :  { %15332 = vst [vmem:[#allocation7_spill] sm:$0xff] %v10708_v30  ;;  %v2870_v0 = vadd.f32 %v7910_v38, %v10147_v41  ;;  %v2864_v58 = vpop.f32.mrb[91].mxu0  ;;  %8007 = vmatmul.mubr.msk.f32.gmra.mrb[94].mxu1 %vm87_vm0, %v3012_v12  ;;  %v3014_v48 = vsub.f32 %v2950_v47, %v10167_v57  ;;  %v10719_v7 = vadd.f32 %v15333_v54, %v10125_v32  ;;  %v937_v38 = vmax.f32 %v10708_v30, 0.0 }
 0x2e0   :  { %v3013_v20 = vsub.f32 %v2949_v35, %v10160_v21  ;;  %v2865_v44 = vadd.f32 %v10147_v41, %v2864_v58  ;;  %v15335_v21 = vld [vmem:[#allocation30_spill] sm:$0xff] }
 0x2e1   :  { %v2952_v52 = vadd.f32 %v2870_v0, %v936_v42  ;;  %3203 = vrot.lane.b32.xlu1 %v2870_v0, %s8282_s6  ;;  %15334 = vst [vmem:[#allocation74_spill] sm:$0xff] %v10719_v7  ;;  %v10726_v57 = vadd.f32 %v10125_v32, %v15335_v21  ;;  %v940_v58 = vmax.f32 %v10719_v7, 0.0 }
 0x2e2   :  { %v2951_v31 = vadd.f32 %v2865_v44, %v935_v13  ;;  %v7913_v6 = vpop.f32.mrb[92].mxu0  ;;  %3201 = vrot.lane.b32.xlu0 %v2865_v44, %s8282_s6  ;;  %8009 = vmatprep.mubr.msk.f32.mxu1 %vm87_vm0, %v3013_v20 }
 0x2e3   :  { %15336 = vst [vmem:[#allocation89_spill] sm:$0xff] %v10726_v57  ;;  %v2880_v35 = vadd.f32 %v7913_v6, %v10147_v41  ;;  %v2874_v12 = vpop.f32.mrb[93].mxu0  ;;  %8010 = vmatmul.mubr.msk.f32.gmra.mrb[96].mxu1 %vm87_vm0, %v3014_v48  ;;  %v3016_v13 = vsub.f32 %v2952_v52, %v10201_v59  ;;  %v939_v32 = vmax.f32 %v10726_v57, 0.0 }
 0x2e4   :  { %v3015_v47 = vsub.f32 %v2951_v31, %v10194_v49  ;;  %v2875_v42 = vadd.f32 %v10147_v41, %v2874_v12  ;;  %v8277_v49 = vld [vmem:[%s14835_s12] ss:$0 sm:$0xff] }
 0x2e5   :  { %v2954_v0 = vadd.f32 %v2880_v35, %v938_v10  ;;  %3207 = vrot.lane.b32.xlu1 %v2880_v35, %s8282_s6 }
 0x2e6   :  { %v2953_v20 = vadd.f32 %v2875_v42, %v937_v38  ;;  %v7916_v44 = vpop.f32.mrb[94].mxu0  ;;  %3205 = vrot.lane.b32.xlu0 %v2875_v42, %s8282_s6  ;;  %8012 = vmatprep.mubr.msk.f32.mxu1 %vm87_vm0, %v3015_v47 }
 0x2e7   :  { %v2890_v41 = vadd.f32 %v8277_v49, %v7916_v44  ;;  %v2884_v6 = vpop.f32.mrb[95].mxu0  ;;  %8013 = vmatmul.mubr.msk.f32.gmra.mrb[98].mxu1 %vm87_vm0, %v3016_v13  ;;  %v3018_v48 = vsub.f32 %v2954_v0, %v10218_v19  ;;  %v10754_v19 = vpop.permute.xlu0 %3085 }
 0x2e8   :  { %v3017_v59 = vsub.f32 %v2953_v20, %v10220_v27  ;;  %v2885_v31 = vadd.f32 %v8277_v49, %v2884_v6  ;;  %v10752_v27 = vpop.permute.xlu1 %3087  ;;  %15338 = vst [vmem:[#allocation90_spill] sm:$0xff] %v10754_v19 }
 0x2e9   :  { %v2956_v52 = vadd.f32 %v2890_v41, %v940_v58  ;;  %3211 = vrot.lane.b32.xlu1 %v2890_v41, %s8282_s6  ;;  %15337 = vst [vmem:[#allocation72_spill] sm:$0xff] %v10752_v27 }
 0x2ea   :  { %v2955_v10 = vadd.f32 %v2885_v31, %v939_v32  ;;  %3209 = vrot.lane.b32.xlu0 %v2885_v31, %s8282_s6  ;;  %8015 = vmatprep.mubr.msk.f32.mxu1 %vm87_vm0, %v3017_v59  ;;  %v10793_v31 = vld [vmem:[%s14836_s14] ss:$0 sm:$0xff] }
 0x2eb   :  { %8016 = vmatmul.mubr.msk.f32.gmra.mrb[100].mxu1 %vm87_vm0, %v3018_v48  ;;  %v3020_v38 = vsub.f32 %v2956_v52, %v10248_v60  ;;  %v10758_v35 = vpop.permute.xlu0 %3089 }
 0x2ec   :  { %v3019_v54 = vsub.f32 %v2955_v10, %v10244_v50  ;;  %v10756_v21 = vpop.permute.xlu1 %3091  ;;  %15340 = vst [vmem:[#allocation9_spill] sm:$0xff] %v10758_v35 }
 0x2ed   :  { %15339 = vst [vmem:[#allocation10_spill] sm:$0xff] %v10756_v21 }
 0x2ee   :  { %8018 = vmatprep.mubr.msk.f32.mxu1 %vm87_vm0, %v3019_v54 }
 0x2ef   :  { %8019 = vmatmul.mubr.msk.f32.gmra.mrb[102].mxu1 %vm87_vm0, %v3020_v38  ;;  %v10762_v47 = vpop.permute.xlu0 %3093 }
 0x2f0   :  { %v10760_v12 = vpop.permute.xlu1 %3095  ;;  %15342 = vst [vmem:[#allocation15_spill] sm:$0xff] %v10762_v47 }
 0x2f1   :  { %15341 = vst [vmem:[#allocation13_spill] sm:$0xff] %v10760_v12 }
 0x2f3   :  { %v10766_v50 = vpop.permute.xlu0 %3097 }
 0x2f4   :  { %v10764_v42 = vpop.permute.xlu1 %3099  ;;  %15344 = vst [vmem:[#allocation12_spill] sm:$0xff] %v10766_v50 }
 0x2f5   :  { %15343 = vst [vmem:[#allocation11_spill] sm:$0xff] %v10764_v42 }
 0x2f7   :  { %v10770_v13 = vpop.permute.xlu0 %3101 }
 0x2f8   :  { %v10768_v60 = vpop.permute.xlu1 %3103  ;;  %15346 = vst [vmem:[#allocation14_spill] sm:$0xff] %v10770_v13 }
 0x2f9   :  { %15345 = vst [vmem:[#allocation17_spill] sm:$0xff] %v10768_v60 }
 0x2fb   :  { %v10774_v58 = vpop.permute.xlu0 %3105 }
 0x2fc   :  { %v10772_v0 = vpop.permute.xlu1 %3107  ;;  %15348 = vst [vmem:[#allocation16_spill] sm:$0xff] %v10774_v58 }
 0x2fd   :  { %15347 = vst [vmem:[#allocation19_spill] sm:$0xff] %v10772_v0 }
 0x2ff   :  { %v10778_v32 = vpop.permute.xlu0 %3109 }
 0x300   :  { %v10776_v20 = vpop.permute.xlu1 %3111  ;;  %15350 = vst [vmem:[#allocation18_spill] sm:$0xff] %v10778_v32 }
 0x301   :  { %15349 = vst [vmem:[#allocation21_spill] sm:$0xff] %v10776_v20 }
 0x303   :  { %v10782_v49 = vpop.permute.xlu0 %3113 }
 0x304   :  { %v10780_v44 = vpop.permute.xlu1 %3115  ;;  %15352 = vst [vmem:[#allocation20_spill] sm:$0xff] %v10782_v49 }
 0x305   :  { %15351 = vst [vmem:[#allocation23_spill] sm:$0xff] %v10780_v44 }
 0x307   :  { %v10786_v6 = vpop.permute.xlu0 %3117 }
 0x308   :  { %v10784_v41 = vpop.permute.xlu1 %3119  ;;  %15354 = vst [vmem:[#allocation22_spill] sm:$0xff] %v10786_v6 }
 0x309   :  { %15353 = vst [vmem:[#allocation25_spill] sm:$0xff] %v10784_v41 }
 0x30b   :  { %v10795_v48 = vpop.permute.xlu0 %3121 }
 0x30c   :  { %v10788_v59 = vpop.permute.xlu1 %3123  ;;  %15356 = vst [vmem:[#allocation24_spill] sm:$0xff] %v10795_v48 }
 0x30d   :  { %15355 = vst [vmem:[#allocation27_spill] sm:$0xff] %v10788_v59 }
 0x30f   :  { %v10805_v8 = vpop.permute.xlu0 %3125 }
 0x310   :  { %v10798_v38 = vpop.permute.xlu1 %3127  ;;  %15358 = vst [vmem:[#allocation26_spill] sm:$0xff] %v10805_v8 }
 0x311   :  { %15357 = vst [vmem:[#allocation29_spill] sm:$0xff] %v10798_v38 }
 0x314   :  { %v10809_v43 = vpop.permute.xlu1 %3131 }
 0x315   :  { %15359 = vst [vmem:[#allocation28_spill] sm:$0xff] %v10809_v43 }
 0x318   :  { %v10821_v55 = vpop.permute.xlu1 %3135 }
 0x319   :  { %15362 = vst [vmem:[#allocation91_spill] sm:$0xff] %v10821_v55 }
 0x343   :  { %v7927_v52 = vpop.f32.mrb[40].mxu1 }
 0x344   :  { %v3616_v10 = vadd.f32 %v7927_v52, %v10793_v31  ;;  %v3610_v54 = vpop.f32.mrb[41].mxu1 }
 0x345   :  { %v3611_v57 = vadd.f32 %v10793_v31, %v3610_v54 }
 0x346   :  { %v10801_v7 = vmax.f32 %v3616_v10, 0.0 }
 0x347   :  { %v10803_v30 = vmax.f32 %v3611_v57, 0.0  ;;  %v10816_v57 = vpop.permute.xlu0 %3129 }
 0x348   :  { %4001 = vperm.xlu1 %8097, %v10801_v7   ;;  %15361 = vst [vmem:[#allocation30_spill] sm:$0xff] %v10816_v57 }
 0x349   :  { %4771 = vperm.xlu0 %8096, %v10803_v30  }
 0x34a   :  { %v7930_v36 = vpop.f32.mrb[42].mxu1 }
 0x34b   :  { %v3626_v52 = vadd.f32 %v7930_v36, %v10793_v31  ;;  %v3620_v39 = vpop.f32.mrb[43].mxu1  ;;  %v10828_v1 = vpop.permute.xlu0 %3133 }
 0x34c   :  { %8098 = vset.pattern.permute.xlu1 %v15360_v25  ;;  %v3621_v4 = vadd.f32 %v10793_v31, %v3620_v39  ;;  %15364 = vst [vmem:[#allocation93_spill] sm:$0xff] %v10828_v1 }
 0x34d   :  { %v10813_v45 = vmax.f32 %v3626_v52, 0.0  ;;  %4383 = vperm.xlu1 %8098, %v10803_v30  }
 0x34e   :  { %v7933_v10 = vpop.f32.mrb[44].mxu1 }
 0x34f   :  { %v3636_v54 = vadd.f32 %v7933_v10, %v10793_v31  ;;  %v3630_v46 = vpop.f32.mrb[45].mxu1  ;;  %4783 = vperm.xlu0 %8096, %v10813_v45   ;;  %v10830_v10 = vmax.f32 %v3621_v4, 0.0  ;;  %v10842_v8 = vpop.permute.xlu0 %3137 }
 0x350   :  { %15369 = vst [vmem:[#allocation97_spill] sm:$0xff] %v10842_v8 }
 0x351   :  { %v10823_v36 = vmax.f32 %v3636_v54, 0.0  ;;  %4395 = vperm.xlu1 %8098, %v10813_v45   ;;  %v10836_v54 = vpop.permute.xlu1 %3139 }
 0x352   :  { %v7936_v52 = vpop.f32.mrb[46].mxu1  ;;  %15367 = vst [vmem:[#allocation95_spill] sm:$0xff] %v10836_v54 }
 0x353   :  { %15363 = vst [vmem:[#allocation92_spill] sm:$0xff] %v10823_v36  ;;  %v3646_v26 = vadd.f32 %v7936_v52, %v10793_v31  ;;  %v3640_v37 = vpop.f32.mrb[47].mxu1  ;;  %4791 = vperm.xlu0 %8096, %v10823_v36  }
 0x355   :  { %v10832_v57 = vmax.f32 %v3646_v26, 0.0  ;;  %8099 = vset.pattern.permute.xlu1 %v15366_v18  ;;  %v10850_v54 = vpop.permute.xlu1 %3143 }
 0x356   :  { %v7939_v39 = vpop.f32.mrb[48].mxu1  ;;  %4006 = vperm.xlu1 %8099, %v10830_v10   ;;  %15370 = vst [vmem:[#allocation98_spill] sm:$0xff] %v10850_v54 }
 0x357   :  { %15365 = vst [vmem:[#allocation94_spill] sm:$0xff] %v10832_v57  ;;  %v3656_v43 = vadd.f32 %v7939_v39, %v10793_v31  ;;  %v3650_v11 = vpop.f32.mrb[49].mxu1  ;;  %4799 = vperm.xlu0 %8096, %v10832_v57  }
 0x359   :  { %v10840_v52 = vmax.f32 %v3656_v43, 0.0  ;;  %v3631_v43 = vadd.f32 %v10793_v31, %v3630_v46 }
 0x35a   :  { %v7942_v4 = vpop.f32.mrb[50].mxu1  ;;  %8100 = vset.pattern.permute.xlu1 %v15360_v25 }
 0x35b   :  { %15368 = vst [vmem:[#allocation96_spill] sm:$0xff] %v10840_v52  ;;  %v3666_v26 = vadd.f32 %v7942_v4, %v10793_v31  ;;  %v10846_v23 = vpop.f32.mrb[51].mxu1  ;;  %4807 = vperm.xlu0 %8096, %v10840_v52   ;;  %4391 = vperm.xlu1 %8100, %v10830_v10   ;;  %v10860_v4 = vpop.permute.xlu0 %3141  ;;  %v10864_v44 = vmax.f32 %v3631_v43, 0.0 }
 0x35c   :  { %15372 = vst [vmem:[#allocation100_spill] sm:$0xff] %v10860_v4 }
 0x35d   :  { %v10852_v39 = vmax.f32 %v3666_v26, 0.0  ;;  %v10866_v26 = vpop.permute.xlu1 %3147 }
 0x35e   :  { %v7945_v38 = vpop.f32.mrb[52].mxu1  ;;  %15374 = vst [vmem:[#allocation102_spill] sm:$0xff] %v10866_v26 }
 0x35f   :  { %15371 = vst [vmem:[#allocation99_spill] sm:$0xff] %v10852_v39  ;;  %v3676_v9 = vadd.f32 %v7945_v38, %v10793_v31  ;;  %v10856_v49 = vpop.f32.mrb[53].mxu1  ;;  %4815 = vperm.xlu0 %8096, %v10852_v39   ;;  %4403 = vperm.xlu1 %8100, %v10823_v36   ;;  %v10876_v4 = vpop.permute.xlu0 %3145 }
 0x360   :  { %15376 = vst [vmem:[#allocation104_spill] sm:$0xff] %v10876_v4 }
 0x361   :  { %v10862_v15 = vmax.f32 %v3676_v9, 0.0  ;;  %v10884_v26 = vpop.permute.xlu1 %3151 }
 0x362   :  { %v7948_v54 = vpop.f32.mrb[54].mxu1  ;;  %15377 = vst [vmem:[#allocation105_spill] sm:$0xff] %v10884_v26 }
 0x363   :  { %15373 = vst [vmem:[#allocation101_spill] sm:$0xff] %v10862_v15  ;;  %v3686_v46 = vadd.f32 %v7948_v54, %v10793_v31  ;;  %v10869_v16 = vpop.f32.mrb[55].mxu1  ;;  %4823 = vperm.xlu0 %8096, %v10862_v15   ;;  %8101 = vset.pattern.permute.xlu1 %v15366_v18  ;;  %v3641_v54 = vadd.f32 %v10793_v31, %v3640_v37 }
 0x364   :  { %4016 = vperm.xlu1 %8101, %v10864_v44  }
 0x365   :  { %v10874_v38 = vmax.f32 %v3686_v46, 0.0  ;;  %v10895_v3 = vmax.f32 %v3641_v54, 0.0 }
 0x366   :  { %v7951_v9 = vpop.f32.mrb[56].mxu1 }
 0x367   :  { %15375 = vst [vmem:[#allocation103_spill] sm:$0xff] %v10874_v38  ;;  %v3696_v43 = vadd.f32 %v7951_v9, %v10793_v31  ;;  %v10879_v50 = vpop.f32.mrb[57].mxu1  ;;  %4831 = vperm.xlu0 %8096, %v10874_v38   ;;  %v10893_v9 = vpop.permute.xlu0 %3149 }
 0x368   :  { %8102 = vset.pattern.permute.xlu1 %v15360_v25  ;;  %15379 = vst [vmem:[#allocation107_spill] sm:$0xff] %v10893_v9 }
 0x369   :  { %v10886_v2 = vmax.f32 %v3696_v43, 0.0  ;;  %4411 = vperm.xlu1 %8102, %v10832_v57   ;;  %v10901_v43 = vpop.permute.xlu1 %3155 }
 0x36a   :  { %v7954_v46 = vpop.f32.mrb[58].mxu1  ;;  %15381 = vst [vmem:[#allocation109_spill] sm:$0xff] %v10901_v43 }
 0x36b   :  { %15378 = vst [vmem:[#allocation106_spill] sm:$0xff] %v10886_v2  ;;  %v3706_v4 = vadd.f32 %v7954_v46, %v10793_v31  ;;  %v10890_v42 = vpop.f32.mrb[59].mxu1  ;;  %4839 = vperm.xlu0 %8096, %v10886_v2   ;;  %v10909_v8 = vpop.permute.xlu0 %3153 }
 0x36c   :  { %15383 = vst [vmem:[#allocation111_spill] sm:$0xff] %v10909_v8 }
 0x36d   :  { %v10897_v37 = vmax.f32 %v3706_v4, 0.0  ;;  %8103 = vset.pattern.permute.xlu1 %v15366_v18  ;;  %v3651_v4 = vadd.f32 %v10793_v31, %v3650_v11 }
 0x36e   :  { %v7957_v12 = vpop.f32.mrb[60].mxu1  ;;  %4026 = vperm.xlu1 %8103, %v10895_v3  }
 0x36f   :  { %15380 = vst [vmem:[#allocation108_spill] sm:$0xff] %v10897_v37  ;;  %v3716_v20 = vadd.f32 %v7957_v12, %v10793_v31  ;;  %v10904_v46 = vpop.f32.mrb[61].mxu1  ;;  %4847 = vperm.xlu0 %8096, %v10897_v37   ;;  %v10918_v12 = vpop.permute.xlu1 %3159 }
 0x370   :  { %15384 = vst [vmem:[#allocation112_spill] sm:$0xff] %v10918_v12 }
 0x371   :  { %v10907_v14 = vmax.f32 %v3716_v20, 0.0  ;;  %v10922_v20 = vmax.f32 %v3651_v4, 0.0 }
 0x372   :  { %v7960_v54 = vpop.f32.mrb[62].mxu1  ;;  %8104 = vset.pattern.permute.xlu1 %v15360_v25 }
 0x373   :  { %15382 = vst [vmem:[#allocation110_spill] sm:$0xff] %v10907_v14  ;;  %v3726_v40 = vadd.f32 %v7960_v54, %v10793_v31  ;;  %v10914_v22 = vpop.f32.mrb[63].mxu1  ;;  %4855 = vperm.xlu0 %8096, %v10907_v14   ;;  %4419 = vperm.xlu1 %8104, %v10840_v52   ;;  %v10929_v54 = vpop.permute.xlu0 %3157 }
 0x374   :  { %15386 = vst [vmem:[#allocation114_spill] sm:$0xff] %v10929_v54 }
 0x375   :  { %v10920_v43 = vmax.f32 %v3726_v40, 0.0  ;;  %v10934_v40 = vpop.permute.xlu1 %3163 }
 0x376   :  { %v7963_v8 = vpop.f32.mrb[64].mxu1  ;;  %15388 = vst [vmem:[#allocation116_spill] sm:$0xff] %v10934_v40 }
 0x377   :  { %15385 = vst [vmem:[#allocation113_spill] sm:$0xff] %v10920_v43  ;;  %v3736_v11 = vadd.f32 %v7963_v8, %v10793_v31  ;;  %v10925_v32 = vpop.f32.mrb[65].mxu1  ;;  %4863 = vperm.xlu0 %8096, %v10920_v43   ;;  %8105 = vset.pattern.permute.xlu1 %v15366_v18  ;;  %v3661_v8 = vadd.f32 %v10793_v31, %v10846_v23 }
 0x378   :  { %4036 = vperm.xlu1 %8105, %v10922_v20  }
 0x379   :  { %v10932_v53 = vmax.f32 %v3736_v11, 0.0  ;;  %v10946_v11 = vpop.permute.xlu0 %3161  ;;  %v10955_v24 = vpop.permute.xlu1 %3167 }
 0x37a   :  { %v7966_v12 = vpop.f32.mrb[66].mxu1  ;;  %15390 = vst [vmem:[#allocation118_spill] sm:$0xff] %v10946_v11  ;;  %15391 = vst [vmem:[#allocation119_spill] sm:$0xff] %v10955_v24 }
 0x37b   :  { %15387 = vst [vmem:[#allocation115_spill] sm:$0xff] %v10932_v53  ;;  %v3746_v4 = vadd.f32 %v7966_v12, %v10793_v31  ;;  %v10937_v47 = vpop.f32.mrb[67].mxu1  ;;  %4871 = vperm.xlu0 %8096, %v10932_v53   ;;  %v10953_v12 = vmax.f32 %v3661_v8, 0.0  ;;  %v3671_v8 = vadd.f32 %v10793_v31, %v10856_v49 }
 0x37c   :  { %8106 = vset.pattern.permute.xlu1 %v15360_v25 }
 0x37d   :  { %v10943_v26 = vmax.f32 %v3746_v4, 0.0  ;;  %4427 = vperm.xlu1 %8106, %v10852_v39   ;;  %v10964_v11 = vpop.permute.xlu0 %3165  ;;  %v10972_v24 = vpop.permute.xlu1 %3171 }
 0x37e   :  { %v10948_v54 = vpop.f32.mrb[68].mxu1  ;;  %15392 = vst [vmem:[#allocation120_spill] sm:$0xff] %v10964_v11  ;;  %15393 = vst [vmem:[#allocation121_spill] sm:$0xff] %v10972_v24  ;;  %v10980_v11 = vmax.f32 %v3671_v8, 0.0  ;;  %v3681_v8 = vadd.f32 %v10793_v31, %v10869_v16 }
 0x37f   :  { %15389 = vst [vmem:[#allocation117_spill] sm:$0xff] %v10943_v26  ;;  %v10950_v40 = vpop.f32.mrb[69].mxu1  ;;  %4879 = vperm.xlu0 %8096, %v10943_v26  }
 0x380   :  { %v11008_v0 = vmax.f32 %v3681_v8, 0.0  ;;  %v3691_v8 = vadd.f32 %v10793_v31, %v10879_v50 }
 0x381   :  { %8107 = vset.pattern.permute.xlu1 %v15366_v18  ;;  %v10978_v9 = vpop.permute.xlu0 %3169  ;;  %v10989_v49 = vpop.permute.xlu1 %3175 }
 0x382   :  { %v10958_v23 = vpop.f32.mrb[70].mxu1  ;;  %4046 = vperm.xlu1 %8107, %v10953_v12   ;;  %15394 = vst [vmem:[#allocation122_spill] sm:$0xff] %v10978_v9  ;;  %15395 = vst [vmem:[#allocation123_spill] sm:$0xff] %v10989_v49  ;;  %v11033_v33 = vmax.f32 %v3691_v8, 0.0  ;;  %v3711_v8 = vadd.f32 %v10793_v31, %v10904_v46 }
 0x383   :  { %v10961_v4 = vpop.f32.mrb[71].mxu1  ;;  %8126 = vset.pattern.permute.xlu0 %v15360_v25 }
 0x384   :  { %4387 = vperm.xlu0 %8126, %v10801_v7   ;;  %v11061_v61 = vmax.f32 %v3711_v8, 0.0 }
 0x385   :  { %v10995_v55 = vpop.permute.xlu0 %3173  ;;  %v11004_v34 = vpop.permute.xlu1 %3179 }
 0x386   :  { %v10969_v59 = vpop.f32.mrb[72].mxu1  ;;  %8108 = vset.pattern.permute.xlu1 %v15360_v25  ;;  %15396 = vst [vmem:[#allocation124_spill] sm:$0xff] %v10995_v55  ;;  %15397 = vst [vmem:[#allocation125_spill] sm:$0xff] %v11004_v34 }
 0x387   :  { %v10974_v62 = vpop.f32.mrb[73].mxu1  ;;  %4435 = vperm.xlu1 %8108, %v10862_v15  }
 0x388   :  { %4399 = vperm.xlu0 %8126, %v10864_v44  }
 0x389   :  { %v11012_v55 = vpop.permute.xlu0 %3177  ;;  %v11020_v21 = vpop.permute.xlu1 %3183 }
 0x38a   :  { %v10982_v29 = vpop.f32.mrb[74].mxu1  ;;  %15398 = vst [vmem:[#allocation126_spill] sm:$0xff] %v11012_v55  ;;  %15399 = vst [vmem:[#allocation127_spill] sm:$0xff] %v11020_v21  ;;  %v3701_v21 = vadd.f32 %v10793_v31, %v10890_v42 }
 0x38b   :  { %v10984_v48 = vpop.f32.mrb[75].mxu1  ;;  %8109 = vset.pattern.permute.xlu1 %v15366_v18 }
 0x38c   :  { %4407 = vperm.xlu0 %8126, %v10895_v3   ;;  %4056 = vperm.xlu1 %8109, %v10980_v11   ;;  %v11048_v35 = vmax.f32 %v3701_v21, 0.0  ;;  %v3721_v21 = vadd.f32 %v10793_v31, %v10914_v22 }
 0x38d   :  { %v11030_v55 = vpop.permute.xlu0 %3181  ;;  %v11039_v50 = vpop.permute.xlu1 %3187 }
 0x38e   :  { %v10991_v24 = vpop.f32.mrb[76].mxu1  ;;  %15400 = vst [vmem:[#allocation128_spill] sm:$0xff] %v11030_v55  ;;  %15401 = vst [vmem:[#allocation129_spill] sm:$0xff] %v11039_v50  ;;  %v11073_v17 = vmax.f32 %v3721_v21, 0.0  ;;  %v3741_v21 = vadd.f32 %v10793_v31, %v10937_v47 }
 0x38f   :  { %v10993_v28 = vpop.f32.mrb[77].mxu1 }
 0x390   :  { %4415 = vperm.xlu0 %8126, %v10922_v20   ;;  %8110 = vset.pattern.permute.xlu1 %v15360_v25  ;;  %v11100_v13 = vmax.f32 %v3741_v21, 0.0  ;;  %v3761_v21 = vadd.f32 %v10793_v31, %v10961_v4 }
 0x391   :  { %4443 = vperm.xlu1 %8110, %v10874_v38   ;;  %v11046_v55 = vpop.permute.xlu0 %3185  ;;  %v11058_v50 = vpop.permute.xlu1 %3191 }
 0x392   :  { %v11002_v9 = vpop.f32.mrb[78].mxu1  ;;  %15402 = vst [vmem:[#allocation130_spill] sm:$0xff] %v11046_v55  ;;  %15403 = vst [vmem:[#allocation131_spill] sm:$0xff] %v11058_v50  ;;  %v3731_v50 = vadd.f32 %v10793_v31, %v10925_v32 }
 0x393   :  { %v11006_v49 = vpop.f32.mrb[79].mxu1 }
 0x394   :  { %4423 = vperm.xlu0 %8126, %v10953_v12   ;;  %v11087_v51 = vmax.f32 %v3731_v50, 0.0  ;;  %v3751_v50 = vadd.f32 %v10793_v31, %v10950_v40 }
 0x395   :  { %8111 = vset.pattern.permute.xlu1 %v15366_v18  ;;  %v11069_v6 = vpop.permute.xlu0 %3189  ;;  %v11080_v22 = vpop.permute.xlu1 %3195 }
 0x396   :  { %v11014_v16 = vpop.f32.mrb[80].mxu1  ;;  %4066 = vperm.xlu1 %8111, %v11008_v0   ;;  %15404 = vst [vmem:[#allocation132_spill] sm:$0xff] %v11069_v6  ;;  %15405 = vst [vmem:[#allocation133_spill] sm:$0xff] %v11080_v22  ;;  %v11113_v19 = vmax.f32 %v3751_v50, 0.0  ;;  %v3771_v50 = vadd.f32 %v10793_v31, %v10974_v62 }
 0x397   :  { %v11017_v5 = vpop.f32.mrb[81].mxu1 }
 0x398   :  { %4431 = vperm.xlu0 %8126, %v10980_v11   ;;  %v11140_v38 = vmax.f32 %v3771_v50, 0.0 }
 0x399   :  { %v11085_v6 = vpop.permute.xlu0 %3193  ;;  %v11098_v22 = vpop.permute.xlu1 %3199 }
 0x39a   :  { %v11024_v34 = vpop.f32.mrb[82].mxu1  ;;  %8112 = vset.pattern.permute.xlu1 %v15360_v25  ;;  %15406 = vst [vmem:[#allocation134_spill] sm:$0xff] %v11085_v6  ;;  %15407 = vst [vmem:[#allocation135_spill] sm:$0xff] %v11098_v22 }
 0x39b   :  { %v11027_v1 = vpop.f32.mrb[83].mxu1  ;;  %4451 = vperm.xlu1 %8112, %v10886_v2  }
 0x39c   :  { %4439 = vperm.xlu0 %8126, %v11008_v0  }
 0x39d   :  { %v11109_v63 = vpop.permute.xlu0 %3197  ;;  %v11119_v40 = vpop.permute.xlu1 %3203 }
 0x39e   :  { %v11037_v58 = vpop.f32.mrb[84].mxu1  ;;  %15408 = vst [vmem:[#allocation136_spill] sm:$0xff] %v11109_v63  ;;  %15409 = vst [vmem:[#allocation137_spill] sm:$0xff] %v11119_v40 }
 0x39f   :  { %v11041_v56 = vpop.f32.mrb[85].mxu1  ;;  %8113 = vset.pattern.permute.xlu1 %v15366_v18 }
 0x3a0   :  { %4447 = vperm.xlu0 %8126, %v11033_v33   ;;  %4076 = vperm.xlu1 %8113, %v11033_v33  }
 0x3a1   :  { %v11126_v63 = vpop.permute.xlu0 %3201  ;;  %v11137_v40 = vpop.permute.xlu1 %3207 }
 0x3a2   :  { %v11052_v42 = vpop.f32.mrb[86].mxu1  ;;  %15410 = vst [vmem:[#allocation138_spill] sm:$0xff] %v11126_v63  ;;  %15411 = vst [vmem:[#allocation139_spill] sm:$0xff] %v11137_v40  ;;  %v3781_v63 = vadd.f32 %v10793_v31, %v10984_v48  ;;  %v3791_v40 = vadd.f32 %v10793_v31, %v10993_v28 }
 0x3a3   :  { %v11054_v41 = vpop.f32.mrb[87].mxu1 }
 0x3a4   :  { %4455 = vperm.xlu0 %8126, %v11048_v35   ;;  %8114 = vset.pattern.permute.xlu1 %v15360_v25  ;;  %v11152_v15 = vmax.f32 %v3781_v63, 0.0  ;;  %v11167_v52 = vmax.f32 %v3791_v40, 0.0  ;;  %v3801_v63 = vadd.f32 %v10793_v31, %v11006_v49 }
 0x3a5   :  { %4459 = vperm.xlu1 %8114, %v10897_v37   ;;  %v11128_v37 = vmax.f32 %v3761_v21, 0.0  ;;  %v11159_v48 = vpop.permute.xlu1 %3211 }
 0x3a6   :  { %v11065_v55 = vpop.f32.mrb[88].mxu1  ;;  %15413 = vst [vmem:[#allocation141_spill] sm:$0xff] %v11159_v48  ;;  %v11176_v48 = vmax.f32 %v3801_v63, 0.0 }
 0x3a7   :  { %v11067_v46 = vpop.f32.mrb[89].mxu1 }
 0x3a8   :  { %4463 = vperm.xlu0 %8126, %v11061_v61  }
 0x3a9   :  { %8115 = vset.pattern.permute.xlu1 %v15366_v18 }
 0x3aa   :  { %v11077_v8 = vpop.f32.mrb[90].mxu1  ;;  %4086 = vperm.xlu1 %8115, %v11048_v35  }
 0x3ab   :  { %v11082_v60 = vpop.f32.mrb[91].mxu1 }
 0x3ac   :  { %4471 = vperm.xlu0 %8126, %v11073_v17  }
 0x3ae   :  { %v11091_v27 = vpop.f32.mrb[92].mxu1  ;;  %8116 = vset.pattern.permute.xlu1 %v15360_v25 }
 0x3af   :  { %v11094_v32 = vpop.f32.mrb[93].mxu1  ;;  %4467 = vperm.xlu1 %8116, %v10907_v14  }
 0x3b0   :  { %4479 = vperm.xlu0 %8126, %v11087_v51  }
 0x3b2   :  { %v11104_v6 = vpop.f32.mrb[94].mxu1 }
 0x3b3   :  { %v11106_v47 = vpop.f32.mrb[95].mxu1  ;;  %8117 = vset.pattern.permute.xlu1 %v15366_v18 }
 0x3b4   :  { %4487 = vperm.xlu0 %8126, %v11100_v13   ;;  %4096 = vperm.xlu1 %8117, %v11061_v61  }
 0x3b6   :  { %v11117_v22 = vpop.f32.mrb[96].mxu1 }
 0x3b7   :  { %v11121_v14 = vpop.f32.mrb[97].mxu1 }
 0x3b8   :  { %4495 = vperm.xlu0 %8126, %v11113_v19   ;;  %8118 = vset.pattern.permute.xlu1 %v15360_v25 }
 0x3b9   :  { %4475 = vperm.xlu1 %8118, %v10920_v43   ;;  %v11149_v43 = vpop.permute.xlu0 %3205 }
 0x3ba   :  { %v11132_v4 = vpop.f32.mrb[98].mxu1  ;;  %15412 = vst [vmem:[#allocation140_spill] sm:$0xff] %v11149_v43 }
 0x3bb   :  { %v11134_v2 = vpop.f32.mrb[99].mxu1 }
 0x3bc   :  { %4503 = vperm.xlu0 %8126, %v11128_v37  }
 0x3bd   :  { %8119 = vset.pattern.permute.xlu1 %v15366_v18  ;;  %v11165_v43 = vpop.permute.xlu0 %3209 }
 0x3be   :  { %v11144_v21 = vpop.f32.mrb[100].mxu1  ;;  %4106 = vperm.xlu1 %8119, %v11073_v17   ;;  %15414 = vst [vmem:[#allocation142_spill] sm:$0xff] %v11165_v43  ;;  %v3821_v43 = vadd.f32 %v10793_v31, %v11027_v1 }
 0x3bf   :  { %v11147_v62 = vpop.f32.mrb[101].mxu1 }
 0x3c0   :  { %4511 = vperm.xlu0 %8126, %v11140_v38  }
 0x3c2   :  { %v11156_v50 = vpop.f32.mrb[102].mxu1  ;;  %8120 = vset.pattern.permute.xlu1 %v15360_v25 }
 0x3c3   :  { %v11161_v39 = vpop.f32.mrb[103].mxu1  ;;  %4483 = vperm.xlu1 %8120, %v10932_v53   ;;  %v3811_v53 = vadd.f32 %v10793_v31, %v11017_v5 }
 0x3c4   :  { %4519 = vperm.xlu0 %8126, %v11152_v15  }
 0x3c5   :  { %v11187_v40 = vmax.f32 %v3811_v53, 0.0 }
 0x3c7   :  { %v11171_v28 = vpop.permute.xlu1 %4001  ;;  %8121 = vset.pattern.permute.xlu1 %v15366_v18 }
 0x3c8   :  { %15415 = vst [vmem:[#allocation143_spill] sm:$0xff] %v11171_v28  ;;  %4527 = vperm.xlu0 %8126, %v11167_v52   ;;  %4116 = vperm.xlu1 %8121, %v11087_v51   ;;  %v11180_v57 = vpop.permute.xlu0 %4771 }
 0x3c9   :  { %15416 = vst [vmem:[#allocation144_spill] sm:$0xff] %v11180_v57  ;;  %v11197_v57 = vmax.f32 %v3821_v43, 0.0  ;;  %v3851_v43 = vadd.f32 %v10793_v31, %v11067_v46 }
 0x3cc   :  { %4535 = vperm.xlu0 %8126, %v11176_v48   ;;  %8122 = vset.pattern.permute.xlu1 %v15360_v25  ;;  %v11184_v49 = vpop.permute.xlu1 %4383 }
 0x3cd   :  { %15417 = vst [vmem:[#allocation145_spill] sm:$0xff] %v11184_v49  ;;  %4491 = vperm.xlu1 %8122, %v10943_v26   ;;  %v3831_v49 = vadd.f32 %v10793_v31, %v11041_v56 }
 0x3ce   :  { %v11191_v63 = vpop.permute.xlu0 %4783 }
 0x3cf   :  { %15418 = vst [vmem:[#allocation146_spill] sm:$0xff] %v11191_v63  ;;  %v11207_v1 = vmax.f32 %v3831_v49, 0.0 }
 0x3d0   :  { %4543 = vperm.xlu0 %8126, %v11187_v40   ;;  %v11194_v5 = vpop.permute.xlu1 %4395 }
 0x3d1   :  { %15419 = vst [vmem:[#allocation147_spill] sm:$0xff] %v11194_v5  ;;  %8123 = vset.pattern.permute.xlu1 %v15366_v18  ;;  %v3841_v5 = vadd.f32 %v10793_v31, %v11054_v41  ;;  %v11225_v41 = vmax.f32 %v3851_v43, 0.0 }
 0x3d2   :  { %v11201_v28 = vpop.permute.xlu0 %4791  ;;  %4126 = vperm.xlu1 %8123, %v11100_v13  }
 0x3d3   :  { %15420 = vst [vmem:[#allocation148_spill] sm:$0xff] %v11201_v28  ;;  %v11215_v56 = vmax.f32 %v3841_v5, 0.0 }
 0x3d4   :  { %4551 = vperm.xlu0 %8126, %v11197_v57  }
 0x3d5   :  { %v11205_v53 = vpop.permute.xlu1 %4006 }
 0x3d6   :  { %15421 = vst [vmem:[#allocation149_spill] sm:$0xff] %v11205_v53  ;;  %v11211_v63 = vpop.permute.xlu0 %4799  ;;  %4136 = vperm.xlu1 %8123, %v11113_v19  }
 0x3d7   :  { %15422 = vst [vmem:[#allocation150_spill] sm:$0xff] %v11211_v63  ;;  %v3861_v63 = vadd.f32 %v10793_v31, %v11082_v60 }
 0x3d8   :  { %4559 = vperm.xlu0 %8126, %v11207_v1  }
 0x3d9   :  { %v11235_v46 = vmax.f32 %v3861_v63, 0.0 }
 0x3da   :  { %v11219_v28 = vpop.permute.xlu0 %4807  ;;  %4146 = vperm.xlu1 %8123, %v11128_v37   ;;  %v11222_v49 = vpop.permute.xlu1 %4391 }
 0x3db   :  { %15423 = vst [vmem:[#allocation151_spill] sm:$0xff] %v11219_v28  ;;  %15424 = vst [vmem:[#allocation152_spill] sm:$0xff] %v11222_v49  ;;  %v3871_v28 = vadd.f32 %v10793_v31, %v11094_v32 }
 0x3dc   :  { %4567 = vperm.xlu0 %8126, %v11215_v56  }
 0x3dd   :  { %v11245_v60 = vmax.f32 %v3871_v28, 0.0 }
 0x3de   :  { %v11229_v53 = vpop.permute.xlu0 %4815  ;;  %4156 = vperm.xlu1 %8123, %v11140_v38   ;;  %v11232_v5 = vpop.permute.xlu1 %4403 }
 0x3df   :  { %15425 = vst [vmem:[#allocation153_spill] sm:$0xff] %v11229_v53  ;;  %15426 = vst [vmem:[#allocation154_spill] sm:$0xff] %v11232_v5  ;;  %v3881_v5 = vadd.f32 %v10793_v31, %v11106_v47 }
 0x3e0   :  { %4575 = vperm.xlu0 %8126, %v11225_v41  }
 0x3e1   :  { %v11255_v63 = vmax.f32 %v3881_v5, 0.0  ;;  %v3911_v5 = vadd.f32 %v10793_v31, %v11147_v62 }
 0x3e2   :  { %v11239_v49 = vpop.permute.xlu0 %4823  ;;  %4166 = vperm.xlu1 %8123, %v11152_v15  }
 0x3e3   :  { %15427 = vst [vmem:[#allocation155_spill] sm:$0xff] %v11239_v49  ;;  %v11242_v43 = vpop.permute.xlu1 %4016 }
 0x3e4   :  { %15428 = vst [vmem:[#allocation156_spill] sm:$0xff] %v11242_v43  ;;  %4583 = vperm.xlu0 %8126, %v11235_v46   ;;  %v3891_v43 = vadd.f32 %v10793_v31, %v11121_v14 }
 0x3e6   :  { %v11249_v53 = vpop.permute.xlu0 %4831  ;;  %4176 = vperm.xlu1 %8123, %v11167_v52   ;;  %v11265_v28 = vmax.f32 %v3891_v43, 0.0 }
 0x3e7   :  { %15429 = vst [vmem:[#allocation157_spill] sm:$0xff] %v11249_v53  ;;  %v3901_v53 = vadd.f32 %v10793_v31, %v11134_v2  ;;  %v11283_v2 = vmax.f32 %v3911_v5, 0.0  ;;  %v3756_v5 = vadd.f32 %v10948_v54, %v10793_v31 }
 0x3e8   :  { %4591 = vperm.xlu0 %8126, %v11245_v60   ;;  %v11253_v32 = vpop.permute.xlu1 %4411 }
 0x3e9   :  { %15430 = vst [vmem:[#allocation158_spill] sm:$0xff] %v11253_v32  ;;  %v11273_v14 = vmax.f32 %v3901_v53, 0.0  ;;  %15436 = vst [vmem:[#allocation164_spill] sm:$0xff] %v11283_v2 }
 0x3ea   :  { %v11259_v49 = vpop.permute.xlu0 %4839  ;;  %4186 = vperm.xlu1 %8123, %v11176_v48  }
 0x3eb   :  { %15431 = vst [vmem:[#allocation159_spill] sm:$0xff] %v11259_v49 }
 0x3ec   :  { %4599 = vperm.xlu0 %8126, %v11255_v63  }
 0x3ed   :  { %v11263_v47 = vpop.permute.xlu1 %4026 }
 0x3ee   :  { %15432 = vst [vmem:[#allocation160_spill] sm:$0xff] %v11263_v47  ;;  %v11269_v26 = vpop.permute.xlu0 %4847  ;;  %4196 = vperm.xlu1 %8123, %v11187_v40  }
 0x3ef   :  { %15433 = vst [vmem:[#allocation161_spill] sm:$0xff] %v11269_v26  ;;  %v3921_v26 = vadd.f32 %v10793_v31, %v11161_v39 }
 0x3f0   :  { %4607 = vperm.xlu0 %8126, %v11265_v28  }
 0x3f1   :  { %v11293_v62 = vmax.f32 %v3921_v26, 0.0  ;;  %v3766_v26 = vadd.f32 %v10958_v23, %v10793_v31 }
 0x3f2   :  { %v11277_v49 = vpop.permute.xlu0 %4855  ;;  %4206 = vperm.xlu1 %8123, %v11197_v57   ;;  %v11280_v43 = vpop.permute.xlu1 %4419 }
 0x3f3   :  { %15434 = vst [vmem:[#allocation162_spill] sm:$0xff] %v11277_v49  ;;  %15435 = vst [vmem:[#allocation163_spill] sm:$0xff] %v11280_v43  ;;  %v15442_v43 = vmov 2   ;;  %v11315_v54 = vmax.f32 %v3766_v26, 0.0  ;;  %v3796_v26 = vadd.f32 %v10991_v24, %v10793_v31 }
 0x3f4   :  { %4615 = vperm.xlu0 %8126, %v11273_v14  }
 0x3f6   :  { %v11287_v47 = vpop.permute.xlu0 %4863  ;;  %4216 = vperm.xlu1 %8123, %v11207_v1  }
 0x3f7   :  { %15437 = vst [vmem:[#allocation165_spill] sm:$0xff] %v11287_v47  ;;  %v11290_v53 = vpop.permute.xlu1 %4036 }
 0x3f8   :  { %15438 = vst [vmem:[#allocation166_spill] sm:$0xff] %v11290_v53  ;;  %4623 = vperm.xlu0 %8126, %v11283_v2   ;;  %v11306_v53 = vmax.f32 %v3756_v5, 0.0 }
 0x3fa   :  { %v11295_v49 = vpop.permute.xlu0 %4871  ;;  %4226 = vperm.xlu1 %8123, %v11215_v56  }
 0x3fb   :  { %15439 = vst [vmem:[#allocation167_spill] sm:$0xff] %v11295_v49 }
 0x3fc   :  { %4631 = vperm.xlu0 %8126, %v11293_v62   ;;  %v11301_v39 = vpop.permute.xlu1 %4427 }
 0x3fd   :  { %15440 = vst [vmem:[#allocation168_spill] sm:$0xff] %v11301_v39 }
 0x3fe   :  { %v11303_v47 = vpop.permute.xlu0 %4879  ;;  %4236 = vperm.xlu1 %8123, %v11225_v41  }
 0x3ff   :  { %15441 = vst [vmem:[#allocation169_spill] sm:$0xff] %v11303_v47  ;;  %v3776_v47 = vadd.f32 %v10969_v59, %v10793_v31 }
 0x400   :  { %8127 = vset.pattern.permute.xlu0 %v15442_v43 }
 0x401   :  { %4887 = vperm.xlu0 %8127, %v11306_v53   ;;  %v11312_v49 = vpop.permute.xlu1 %4046  ;;  %v11325_v5 = vmax.f32 %v3776_v47, 0.0  ;;  %v3806_v47 = vadd.f32 %v11002_v9, %v10793_v31 }
 0x402   :  { %15443 = vst [vmem:[#allocation170_spill] sm:$0xff] %v11312_v49  ;;  %4246 = vperm.xlu1 %8123, %v11235_v46   ;;  %v3786_v49 = vadd.f32 %v10982_v29, %v10793_v31  ;;  %v11343_v29 = vmax.f32 %v3796_v26, 0.0 }
 0x403   :  { %v11319_v39 = vpop.permute.xlu0 %4387  ;;  %v11353_v24 = vmax.f32 %v3806_v47, 0.0 }
 0x404   :  { %15444 = vst [vmem:[#allocation171_spill] sm:$0xff] %v11319_v39  ;;  %v11333_v59 = vmax.f32 %v3786_v49, 0.0 }
 0x405   :  { %4895 = vperm.xlu0 %8127, %v11315_v54  }
 0x406   :  { %4256 = vperm.xlu1 %8123, %v11245_v60   ;;  %v11323_v23 = vpop.permute.xlu1 %4435 }
 0x407   :  { %15445 = vst [vmem:[#allocation172_spill] sm:$0xff] %v11323_v23  ;;  %v11329_v32 = vpop.permute.xlu0 %4399 }
 0x409   :  { %4903 = vperm.xlu0 %8127, %v11325_v5  }
 0x40a   :  { %4266 = vperm.xlu1 %8123, %v11255_v63  }
 0x40b   :  { %v11337_v39 = vpop.permute.xlu0 %4407  ;;  %v11339_v36 = vpop.permute.xlu1 %4056 }
 0x40c   :  { %15446 = vst [vmem:[#allocation173_spill] sm:$0xff] %v11337_v39  ;;  %15447 = vst [vmem:[#allocation174_spill] sm:$0xff] %v11339_v36  ;;  %v3816_v36 = vadd.f32 %v11014_v16, %v10793_v31 }
 0x40d   :  { %4911 = vperm.xlu0 %8127, %v11333_v59  }
 0x40e   :  { %4276 = vperm.xlu1 %8123, %v11265_v28   ;;  %v11363_v9 = vmax.f32 %v3816_v36, 0.0  ;;  %v3846_v36 = vadd.f32 %v11052_v42, %v10793_v31 }
 0x40f   :  { %v11347_v23 = vpop.permute.xlu0 %4415 }
 0x410   :  { %15448 = vst [vmem:[#allocation175_spill] sm:$0xff] %v11347_v23  ;;  %v11349_v49 = vpop.permute.xlu1 %4443 }
 0x411   :  { %15449 = vst [vmem:[#allocation176_spill] sm:$0xff] %v11349_v49  ;;  %4919 = vperm.xlu0 %8127, %v11343_v29   ;;  %v3826_v49 = vadd.f32 %v11024_v34, %v10793_v31 }
 0x412   :  { %4286 = vperm.xlu1 %8123, %v11273_v14  }
 0x413   :  { %v11357_v39 = vpop.permute.xlu0 %4423  ;;  %v11373_v47 = vmax.f32 %v3826_v49, 0.0 }
 0x414   :  { %15450 = vst [vmem:[#allocation177_spill] sm:$0xff] %v11357_v39 }
 0x415   :  { %4927 = vperm.xlu0 %8127, %v11353_v24   ;;  %v11360_v26 = vpop.permute.xlu1 %4066 }
 0x416   :  { %15451 = vst [vmem:[#allocation178_spill] sm:$0xff] %v11360_v26  ;;  %4296 = vperm.xlu1 %8123, %v11283_v2   ;;  %v3836_v26 = vadd.f32 %v11037_v58, %v10793_v31  ;;  %v11391_v58 = vmax.f32 %v3846_v36, 0.0 }
 0x417   :  { %v11367_v23 = vpop.permute.xlu0 %4431 }
 0x418   :  { %15452 = vst [vmem:[#allocation179_spill] sm:$0xff] %v11367_v23  ;;  %v11381_v34 = vmax.f32 %v3836_v26, 0.0  ;;  %v3866_v26 = vadd.f32 %v11077_v8, %v10793_v31 }
 0x419   :  { %4935 = vperm.xlu0 %8127, %v11363_v9  }
 0x41a   :  { %4306 = vperm.xlu1 %8123, %v11293_v62   ;;  %v11371_v16 = vpop.permute.xlu1 %4451  ;;  %v11411_v36 = vmax.f32 %v3866_v26, 0.0  ;;  %v3896_v26 = vadd.f32 %v11117_v22, %v10793_v31 }
 0x41b   :  { %15453 = vst [vmem:[#allocation180_spill] sm:$0xff] %v11371_v16  ;;  %v11377_v39 = vpop.permute.xlu0 %4439  ;;  %v3856_v16 = vadd.f32 %v11065_v55, %v10793_v31 }
 0x41c   :  { %15454 = vst [vmem:[#allocation181_spill] sm:$0xff] %v11377_v39 }
 0x41d   :  { %4943 = vperm.xlu0 %8127, %v11373_v47   ;;  %v11401_v42 = vmax.f32 %v3856_v16, 0.0 }
 0x41e   :  { %8124 = vset.pattern.permute.xlu1 %v15360_v25 }
 0x41f   :  { %v11385_v23 = vpop.permute.xlu0 %4447  ;;  %4499 = vperm.xlu1 %8124, %v11306_v53   ;;  %v11388_v49 = vpop.permute.xlu1 %4076 }
 0x420   :  { %15455 = vst [vmem:[#allocation182_spill] sm:$0xff] %v11385_v23  ;;  %15456 = vst [vmem:[#allocation183_spill] sm:$0xff] %v11388_v49 }
 0x421   :  { %4951 = vperm.xlu0 %8127, %v11381_v34  }
 0x423   :  { %v11395_v39 = vpop.permute.xlu0 %4455  ;;  %4507 = vperm.xlu1 %8124, %v11315_v54  }
 0x424   :  { %15457 = vst [vmem:[#allocation184_spill] sm:$0xff] %v11395_v39  ;;  %v11398_v25 = vpop.permute.xlu1 %4459 }
 0x425   :  { %15458 = vst [vmem:[#allocation185_spill] sm:$0xff] %v11398_v25  ;;  %4959 = vperm.xlu0 %8127, %v11391_v58   ;;  %v3876_v25 = vadd.f32 %v11091_v27, %v10793_v31 }
 0x427   :  { %v11405_v49 = vpop.permute.xlu0 %4463  ;;  %4515 = vperm.xlu1 %8124, %v11325_v5   ;;  %v11421_v16 = vmax.f32 %v3876_v25, 0.0 }
 0x428   :  { %15459 = vst [vmem:[#allocation186_spill] sm:$0xff] %v11405_v49  ;;  %v3886_v49 = vadd.f32 %v11104_v6, %v10793_v31  ;;  %v11439_v6 = vmax.f32 %v3896_v26, 0.0 }
 0x429   :  { %4967 = vperm.xlu0 %8127, %v11401_v42   ;;  %v11409_v55 = vpop.permute.xlu1 %4086 }
 0x42a   :  { %v11429_v27 = vmax.f32 %v3886_v49, 0.0 }
 0x42b   :  { %v11415_v39 = vpop.permute.xlu0 %4471  ;;  %4523 = vperm.xlu1 %8124, %v11333_v59  }
 0x42c   :  { %15460 = vst [vmem:[#allocation187_spill] sm:$0xff] %v11415_v39  ;;  %15463 = vst [vmem:[#allocation190_spill] sm:$0xff] %v11429_v27 }
 0x42d   :  { %4975 = vperm.xlu0 %8127, %v11411_v36  }
 0x42e   :  { %v11419_v8 = vpop.permute.xlu1 %4467 }
 0x42f   :  { %15461 = vst [vmem:[#allocation188_spill] sm:$0xff] %v11419_v8  ;;  %v11425_v23 = vpop.permute.xlu0 %4479  ;;  %4531 = vperm.xlu1 %8124, %v11343_v29  }
 0x430   :  { %15462 = vst [vmem:[#allocation189_spill] sm:$0xff] %v11425_v23  ;;  %v3906_v23 = vadd.f32 %v11132_v4, %v10793_v31 }
 0x431   :  { %4983 = vperm.xlu0 %8127, %v11421_v16  }
 0x432   :  { %v11449_v22 = vmax.f32 %v3906_v23, 0.0 }
 0x433   :  { %v11433_v39 = vpop.permute.xlu0 %4487  ;;  %4539 = vperm.xlu1 %8124, %v11353_v24   ;;  %v11436_v25 = vpop.permute.xlu1 %4096 }
 0x434   :  { %15464 = vst [vmem:[#allocation191_spill] sm:$0xff] %v11433_v39  ;;  %15465 = vst [vmem:[#allocation192_spill] sm:$0xff] %v11436_v25  ;;  %v3916_v39 = vadd.f32 %v11144_v21, %v10793_v31 }
 0x435   :  { %4991 = vperm.xlu0 %8127, %v11429_v27  }
 0x436   :  { %v11459_v26 = vmax.f32 %v3916_v39, 0.0 }
 0x437   :  { %v11443_v8 = vpop.permute.xlu0 %4495  ;;  %4547 = vperm.xlu1 %8124, %v11363_v9  }
 0x438   :  { %15466 = vst [vmem:[#allocation193_spill] sm:$0xff] %v11443_v8  ;;  %v11446_v49 = vpop.permute.xlu1 %4475 }
 0x439   :  { %15467 = vst [vmem:[#allocation194_spill] sm:$0xff] %v11446_v49  ;;  %4999 = vperm.xlu0 %8127, %v11439_v6   ;;  %v3926_v49 = vadd.f32 %v11156_v50, %v10793_v31  ;;  %v14964_v50 = vmov 3  }
 0x43b   :  { %v11453_v25 = vpop.permute.xlu0 %4503  ;;  %4555 = vperm.xlu1 %8124, %v11373_v47   ;;  %v11469_v23 = vmax.f32 %v3926_v49, 0.0 }
 0x43c   :  { %15468 = vst [vmem:[#allocation195_spill] sm:$0xff] %v11453_v25 }
 0x43d   :  { %5007 = vperm.xlu0 %8127, %v11449_v22   ;;  %v11457_v4 = vpop.permute.xlu1 %4106 }
 0x43f   :  { %v11463_v8 = vpop.permute.xlu0 %4511  ;;  %4563 = vperm.xlu1 %8124, %v11381_v34  }
 0x440   :  { %15469 = vst [vmem:[#allocation196_spill] sm:$0xff] %v11463_v8 }
 0x441   :  { %5015 = vperm.xlu0 %8127, %v11459_v26  }
 0x442   :  { %v11467_v21 = vpop.permute.xlu1 %4483 }
 0x443   :  { %15470 = vst [vmem:[#allocation197_spill] sm:$0xff] %v11467_v21  ;;  %v11471_v25 = vpop.permute.xlu0 %4519  ;;  %4571 = vperm.xlu1 %8124, %v11391_v58  }
 0x444   :  { %15471 = vst [vmem:[#allocation198_spill] sm:$0xff] %v11471_v25 }
 0x445   :  { %5023 = vperm.xlu0 %8127, %v11469_v23  }
 0x447   :  { %v11475_v39 = vpop.permute.xlu0 %4527  ;;  %4579 = vperm.xlu1 %8124, %v11401_v42   ;;  %v11478_v31 = vpop.permute.xlu1 %4116 }
 0x448   :  { %15472 = vst [vmem:[#allocation199_spill] sm:$0xff] %v11475_v39 }
 0x449   :  { %8129 = vset.pattern.permute.xlu0 %v14964_v50 }
 0x44a   :  { %5163 = vperm.xlu0 %8129, %v10801_v7  }
 0x44b   :  { %v11482_v21 = vpop.permute.xlu0 %4535  ;;  %4587 = vperm.xlu1 %8124, %v11411_v36  }
 0x44c   :  { %15473 = vst [vmem:[#allocation200_spill] sm:$0xff] %v11482_v21  ;;  %v11485_v49 = vpop.permute.xlu1 %4491 }
 0x44d   :  { %15474 = vst [vmem:[#allocation201_spill] sm:$0xff] %v11485_v49 }
 0x44e   :  { %5175 = vperm.xlu0 %8129, %v10864_v44  }
 0x44f   :  { %v11488_v25 = vpop.permute.xlu0 %4543  ;;  %4595 = vperm.xlu1 %8124, %v11421_v16  }
 0x450   :  { %15475 = vst [vmem:[#allocation202_spill] sm:$0xff] %v11488_v25 }
 0x451   :  { %v11491_v39 = vpop.permute.xlu1 %4126 }
 0x452   :  { %15476 = vst [vmem:[#allocation203_spill] sm:$0xff] %v11491_v39  ;;  %5183 = vperm.xlu0 %8129, %v10895_v3  }
 0x453   :  { %v11494_v8 = vpop.permute.xlu0 %4551  ;;  %4603 = vperm.xlu1 %8124, %v11429_v27  }
 0x454   :  { %15477 = vst [vmem:[#allocation204_spill] sm:$0xff] %v11494_v8 }
 0x455   :  { %v11497_v50 = vpop.permute.xlu1 %4136 }
 0x456   :  { %15478 = vst [vmem:[#allocation205_spill] sm:$0xff] %v11497_v50  ;;  %5191 = vperm.xlu0 %8129, %v10922_v20  }
 0x457   :  { %v11500_v21 = vpop.permute.xlu0 %4559  ;;  %4611 = vperm.xlu1 %8124, %v11439_v6  }
 0x458   :  { %15479 = vst [vmem:[#allocation206_spill] sm:$0xff] %v11500_v21 }
 0x459   :  { %v11503_v49 = vpop.permute.xlu1 %4146 }
 0x45a   :  { %15480 = vst [vmem:[#allocation207_spill] sm:$0xff] %v11503_v49  ;;  %5199 = vperm.xlu0 %8129, %v10953_v12  }
 0x45b   :  { %v11506_v25 = vpop.permute.xlu0 %4567  ;;  %4619 = vperm.xlu1 %8124, %v11449_v22  }
 0x45c   :  { %15481 = vst [vmem:[#allocation208_spill] sm:$0xff] %v11506_v25 }
 0x45d   :  { %v11509_v39 = vpop.permute.xlu1 %4156 }
 0x45e   :  { %5207 = vperm.xlu0 %8129, %v10980_v11  }
 0x45f   :  { %v11512_v8 = vpop.permute.xlu0 %4575  ;;  %4627 = vperm.xlu1 %8124, %v11459_v26  }
 0x460   :  { %15482 = vst [vmem:[#allocation209_spill] sm:$0xff] %v11512_v8 }
 0x461   :  { %v11515_v50 = vpop.permute.xlu1 %4166 }
 0x462   :  { %15483 = vst [vmem:[#allocation210_spill] sm:$0xff] %v11515_v50  ;;  %5215 = vperm.xlu0 %8129, %v11008_v0  }
 0x463   :  { %v11518_v21 = vpop.permute.xlu0 %4583  ;;  %4635 = vperm.xlu1 %8124, %v11469_v23  }
 0x464   :  { %15484 = vst [vmem:[#allocation211_spill] sm:$0xff] %v11518_v21 }
 0x465   :  { %v11521_v49 = vpop.permute.xlu1 %4176 }
 0x466   :  { %15485 = vst [vmem:[#allocation212_spill] sm:$0xff] %v11521_v49  ;;  %5223 = vperm.xlu0 %8129, %v11033_v33  }
 0x467   :  { %v11524_v25 = vpop.permute.xlu0 %4591  ;;  %8125 = vset.pattern.permute.xlu1 %v15442_v43 }
 0x468   :  { %15486 = vst [vmem:[#allocation213_spill] sm:$0xff] %v11524_v25  ;;  %4775 = vperm.xlu1 %8125, %v10801_v7  }
 0x469   :  { %v11528_v8 = vpop.permute.xlu1 %4186 }
 0x46a   :  { %5231 = vperm.xlu0 %8129, %v11048_v35  }
 0x46b   :  { %v11531_v50 = vpop.permute.xlu0 %4599 }
 0x46c   :  { %15487 = vst [vmem:[#allocation214_spill] sm:$0xff] %v11531_v50  ;;  %4779 = vperm.xlu1 %8125, %v10830_v10  }
 0x46d   :  { %v11534_v21 = vpop.permute.xlu1 %4196 }
 0x46e   :  { %15488 = vst [vmem:[#allocation215_spill] sm:$0xff] %v11534_v21  ;;  %5239 = vperm.xlu0 %8129, %v11061_v61  }
 0x46f   :  { %v11537_v49 = vpop.permute.xlu0 %4607 }
 0x470   :  { %15489 = vst [vmem:[#allocation216_spill] sm:$0xff] %v11537_v49  ;;  %4787 = vperm.xlu1 %8125, %v10864_v44  }
 0x471   :  { %v11540_v25 = vpop.permute.xlu1 %4206 }
 0x472   :  { %5247 = vperm.xlu0 %8129, %v11073_v17  }
 0x473   :  { %v11543_v7 = vpop.permute.xlu0 %4615 }
 0x474   :  { %15490 = vst [vmem:[#allocation217_spill] sm:$0xff] %v11543_v7  ;;  %4795 = vperm.xlu1 %8125, %v10895_v3  }
 0x475   :  { %v11546_v43 = vpop.permute.xlu1 %4216 }
 0x476   :  { %5255 = vperm.xlu0 %8129, %v11087_v51  }
 0x477   :  { %v11549_v50 = vpop.permute.xlu0 %4623 }
 0x478   :  { %15491 = vst [vmem:[#allocation218_spill] sm:$0xff] %v11549_v50  ;;  %4803 = vperm.xlu1 %8125, %v10922_v20  }
 0x479   :  { %v11552_v21 = vpop.permute.xlu1 %4226 }
 0x47a   :  { %5263 = vperm.xlu0 %8129, %v11100_v13  }
 0x47b   :  { %v11555_v44 = vpop.permute.xlu0 %4631 }
 0x47c   :  { %15492 = vst [vmem:[#allocation219_spill] sm:$0xff] %v11555_v44  ;;  %4811 = vperm.xlu1 %8125, %v10953_v12  }
 0x47d   :  { %v11558_v49 = vpop.permute.xlu1 %4236 }
 0x47e   :  { %5271 = vperm.xlu0 %8129, %v11113_v19  }
 0x480   :  { %v11561_v3 = vpop.permute.xlu0 %4887  ;;  %4819 = vperm.xlu1 %8125, %v10980_v11  }
 0x481   :  { %15493 = vst [vmem:[#allocation220_spill] sm:$0xff] %v11561_v3  ;;  %v11564_v7 = vpop.permute.xlu1 %4246 }
 0x482   :  { %5279 = vperm.xlu0 %8129, %v11128_v37  }
 0x484   :  { %v11567_v20 = vpop.permute.xlu0 %4895  ;;  %4827 = vperm.xlu1 %8125, %v11008_v0  }
 0x485   :  { %15494 = vst [vmem:[#allocation221_spill] sm:$0xff] %v11567_v20  ;;  %v11570_v50 = vpop.permute.xlu1 %4256 }
 0x486   :  { %5287 = vperm.xlu0 %8129, %v11140_v38  }
 0x488   :  { %v11573_v12 = vpop.permute.xlu0 %4903  ;;  %4835 = vperm.xlu1 %8125, %v11033_v33  }
 0x489   :  { %15495 = vst [vmem:[#allocation222_spill] sm:$0xff] %v11573_v12  ;;  %v11576_v44 = vpop.permute.xlu1 %4266 }
 0x48a   :  { %5295 = vperm.xlu0 %8129, %v11152_v15  }
 0x48c   :  { %v11579_v11 = vpop.permute.xlu0 %4911  ;;  %4843 = vperm.xlu1 %8125, %v11048_v35  }
 0x48d   :  { %15496 = vst [vmem:[#allocation223_spill] sm:$0xff] %v11579_v11  ;;  %v11582_v3 = vpop.permute.xlu1 %4276 }
 0x48e   :  { %5303 = vperm.xlu0 %8129, %v11167_v52  }
 0x490   :  { %v11585_v0 = vpop.permute.xlu0 %4919  ;;  %4851 = vperm.xlu1 %8125, %v11061_v61  }
 0x491   :  { %v11588_v20 = vpop.permute.xlu1 %4286 }
 0x492   :  { %5311 = vperm.xlu0 %8129, %v11176_v48  }
 0x494   :  { %v11591_v33 = vpop.permute.xlu0 %4927  ;;  %4859 = vperm.xlu1 %8125, %v11073_v17  }
 0x495   :  { %15497 = vst [vmem:[#allocation224_spill] sm:$0xff] %v11591_v33  ;;  %v11594_v12 = vpop.permute.xlu1 %4296 }
 0x496   :  { %5319 = vperm.xlu0 %8129, %v11187_v40  }
 0x498   :  { %v11597_v35 = vpop.permute.xlu0 %4935  ;;  %4867 = vperm.xlu1 %8125, %v11087_v51  }
 0x499   :  { %15498 = vst [vmem:[#allocation225_spill] sm:$0xff] %v11597_v35  ;;  %v11600_v11 = vpop.permute.xlu1 %4306 }
 0x49a   :  { %5351 = vperm.xlu0 %8129, %v11225_v41  }
 0x49c   :  { %v11603_v61 = vpop.permute.xlu0 %4943  ;;  %4875 = vperm.xlu1 %8125, %v11100_v13  }
 0x49d   :  { %15499 = vst [vmem:[#allocation226_spill] sm:$0xff] %v11603_v61 }
 0x49e   :  { %5327 = vperm.xlu0 %8129, %v11197_v57   ;;  %v11607_v33 = vpop.permute.xlu1 %4499 }
 0x4a0   :  { %v11609_v17 = vpop.permute.xlu0 %4951  ;;  %4883 = vperm.xlu1 %8125, %v11113_v19  }
 0x4a1   :  { %15500 = vst [vmem:[#allocation227_spill] sm:$0xff] %v11609_v17 }
 0x4a2   :  { %5331 = vperm.xlu0 %8129, %v11373_v47   ;;  %v11613_v35 = vpop.permute.xlu1 %4507 }
 0x4a4   :  { %v11615_v51 = vpop.permute.xlu0 %4959  ;;  %4891 = vperm.xlu1 %8125, %v11128_v37  }
 0x4a5   :  { %15501 = vst [vmem:[#allocation228_spill] sm:$0xff] %v11615_v51 }
 0x4a6   :  { %5359 = vperm.xlu0 %8129, %v11235_v46   ;;  %v11619_v61 = vpop.permute.xlu1 %4515 }
 0x4a8   :  { %v11621_v13 = vpop.permute.xlu0 %4967  ;;  %4899 = vperm.xlu1 %8125, %v11140_v38  }
 0x4a9   :  { %15502 = vst [vmem:[#allocation229_spill] sm:$0xff] %v11621_v13 }
 0x4aa   :  { %5335 = vperm.xlu0 %8129, %v11207_v1   ;;  %v11625_v17 = vpop.permute.xlu1 %4523 }
 0x4ab   :  { %15503 = vst [vmem:[#allocation230_spill] sm:$0xff] %v11625_v17  ;;  %v15645_v17 = vld [vmem:[#allocation183_spill] sm:$0xff] }
 0x4ac   :  { %v11627_v19 = vpop.permute.xlu0 %4975  ;;  %4907 = vperm.xlu1 %8125, %v11152_v15  }
 0x4ad   :  { %15504 = vst [vmem:[#allocation231_spill] sm:$0xff] %v11627_v19 }
 0x4ae   :  { %5339 = vperm.xlu0 %8129, %v11381_v34   ;;  %v11631_v51 = vpop.permute.xlu1 %4531 }
 0x4af   :  { %15505 = vst [vmem:[#allocation232_spill] sm:$0xff] %v11631_v51 }
 0x4b0   :  { %v11633_v37 = vpop.permute.xlu0 %4983  ;;  %4915 = vperm.xlu1 %8125, %v11167_v52  }
 0x4b1   :  { %15506 = vst [vmem:[#allocation233_spill] sm:$0xff] %v11633_v37 }
 0x4b2   :  { %5367 = vperm.xlu0 %8129, %v11245_v60   ;;  %v11637_v13 = vpop.permute.xlu1 %4539 }
 0x4b3   :  { %15507 = vst [vmem:[#allocation234_spill] sm:$0xff] %v11637_v13 }
 0x4b4   :  { %v11639_v38 = vpop.permute.xlu0 %4991  ;;  %4923 = vperm.xlu1 %8125, %v11176_v48  }
 0x4b5   :  { %15508 = vst [vmem:[#allocation235_spill] sm:$0xff] %v11639_v38 }
 0x4b6   :  { %5343 = vperm.xlu0 %8129, %v11215_v56   ;;  %v11643_v19 = vpop.permute.xlu1 %4547 }
 0x4b7   :  { %15509 = vst [vmem:[#allocation236_spill] sm:$0xff] %v11643_v19  ;;  %v15541_v19 = vld [vmem:[#allocation108_spill] sm:$0xff] }
 0x4b8   :  { %v11645_v15 = vpop.permute.xlu0 %4999  ;;  %4931 = vperm.xlu1 %8125, %v11187_v40  }
 0x4b9   :  { %15510 = vst [vmem:[#allocation237_spill] sm:$0xff] %v11645_v15 }
 0x4ba   :  { %5347 = vperm.xlu0 %8129, %v11391_v58   ;;  %v11649_v37 = vpop.permute.xlu1 %4555 }
 0x4bb   :  { %15511 = vst [vmem:[#allocation238_spill] sm:$0xff] %v11649_v37 }
 0x4bc   :  { %v11651_v52 = vpop.permute.xlu0 %5007  ;;  %4939 = vperm.xlu1 %8125, %v11197_v57  }
 0x4bd   :  { %15512 = vst [vmem:[#allocation239_spill] sm:$0xff] %v11651_v52 }
 0x4be   :  { %5375 = vperm.xlu0 %8129, %v11255_v63   ;;  %v11655_v38 = vpop.permute.xlu1 %4563 }
 0x4bf   :  { %15513 = vst [vmem:[#allocation240_spill] sm:$0xff] %v11655_v38  ;;  %v15535_v38 = vld [vmem:[#allocation103_spill] sm:$0xff] }
 0x4c0   :  { %v11657_v48 = vpop.permute.xlu0 %5015  ;;  %4947 = vperm.xlu1 %8125, %v11207_v1  }
 0x4c1   :  { %15514 = vst [vmem:[#allocation241_spill] sm:$0xff] %v11657_v48 }
 0x4c2   :  { %5407 = vperm.xlu0 %8129, %v11293_v62   ;;  %v11661_v15 = vpop.permute.xlu1 %4571 }
 0x4c3   :  { %15515 = vst [vmem:[#allocation242_spill] sm:$0xff] %v11661_v15 }
 0x4c4   :  { %v11663_v40 = vpop.permute.xlu0 %5023  ;;  %4955 = vperm.xlu1 %8125, %v11215_v56   ;;  %v15522_v56 = vld [vmem:[#allocation92_spill] sm:$0xff] }
 0x4c5   :  { %15516 = vst [vmem:[#allocation243_spill] sm:$0xff] %v11663_v40 }
 0x4c6   :  { %8130 = vset.pattern.permute.xlu0 %v15366_v18  ;;  %v11667_v52 = vpop.permute.xlu1 %4579 }
 0x4c7   :  { %15517 = vst [vmem:[#allocation244_spill] sm:$0xff] %v11667_v52  ;;  %3996 = vperm.xlu0 %8130, %v10803_v30  }
 0x4c8   :  { %4963 = vperm.xlu1 %8125, %v11225_v41   ;;  %v15524_v41 = vld [vmem:[#allocation94_spill] sm:$0xff] }
 0x4c9   :  { %v11671_v57 = vpop.permute.xlu0 %5163 }
 0x4ca   :  { %15518 = vst [vmem:[#allocation245_spill] sm:$0xff] %v11671_v57  ;;  %v11673_v48 = vpop.permute.xlu1 %4587 }
 0x4cb   :  { %15519 = vst [vmem:[#allocation246_spill] sm:$0xff] %v11673_v48  ;;  %4011 = vperm.xlu0 %8130, %v10813_v45  }
 0x4cc   :  { %4971 = vperm.xlu1 %8125, %v11235_v46   ;;  %v15527_v46 = vld [vmem:[#allocation96_spill] sm:$0xff] }
 0x4cd   :  { %v11677_v1 = vpop.permute.xlu0 %5175 }
 0x4ce   :  { %15520 = vst [vmem:[#allocation247_spill] sm:$0xff] %v11677_v1  ;;  %v11679_v40 = vpop.permute.xlu1 %4595 }
 0x4cf   :  { %15521 = vst [vmem:[#allocation248_spill] sm:$0xff] %v11679_v40  ;;  %4021 = vperm.xlu0 %8130, %v15522_v56  }
 0x4d0   :  { %4979 = vperm.xlu1 %8125, %v11245_v60   ;;  %v15530_v60 = vld [vmem:[#allocation99_spill] sm:$0xff] }
 0x4d1   :  { %v11683_v18 = vpop.permute.xlu0 %5183 }
 0x4d2   :  { %v11685_v52 = vpop.permute.xlu1 %4603 }
 0x4d3   :  { %15523 = vst [vmem:[#allocation92_spill] sm:$0xff] %v11685_v52  ;;  %4031 = vperm.xlu0 %8130, %v15524_v41  }
 0x4d4   :  { %4987 = vperm.xlu1 %8125, %v11255_v63   ;;  %v15533_v63 = vld [vmem:[#allocation101_spill] sm:$0xff] }
 0x4d5   :  { %v11689_v48 = vpop.permute.xlu0 %5191 }
 0x4d6   :  { %15525 = vst [vmem:[#allocation94_spill] sm:$0xff] %v11689_v48  ;;  %v11691_v57 = vpop.permute.xlu1 %4611 }
 0x4d7   :  { %15526 = vst [vmem:[#allocation249_spill] sm:$0xff] %v11691_v57  ;;  %4041 = vperm.xlu0 %8130, %v15527_v46  }
 0x4d8   :  { %4995 = vperm.xlu1 %8125, %v11265_v28  }
 0x4d9   :  { %v11695_v40 = vpop.permute.xlu0 %5199 }
 0x4da   :  { %15528 = vst [vmem:[#allocation96_spill] sm:$0xff] %v11695_v40  ;;  %v11697_v1 = vpop.permute.xlu1 %4619  ;;  %v15537_v40 = vld [vmem:[#allocation106_spill] sm:$0xff] }
 0x4db   :  { %15529 = vst [vmem:[#allocation250_spill] sm:$0xff] %v11697_v1  ;;  %4051 = vperm.xlu0 %8130, %v15530_v60  }
 0x4dc   :  { %5003 = vperm.xlu1 %8125, %v11273_v14  }
 0x4dd   :  { %v11701_v52 = vpop.permute.xlu0 %5207 }
 0x4de   :  { %15531 = vst [vmem:[#allocation99_spill] sm:$0xff] %v11701_v52  ;;  %v11703_v15 = vpop.permute.xlu1 %4627  ;;  %v15539_v52 = vmov 3  }
 0x4df   :  { %15532 = vst [vmem:[#allocation251_spill] sm:$0xff] %v11703_v15  ;;  %4061 = vperm.xlu0 %8130, %v15533_v63  }
 0x4e0   :  { %5011 = vperm.xlu1 %8125, %v11283_v2  }
 0x4e1   :  { %v11707_v57 = vpop.permute.xlu0 %5215 }
 0x4e2   :  { %v11709_v48 = vpop.permute.xlu1 %4635 }
 0x4e3   :  { %15534 = vst [vmem:[#allocation101_spill] sm:$0xff] %v11709_v48  ;;  %4071 = vperm.xlu0 %8130, %v15535_v38  }
 0x4e4   :  { %5019 = vperm.xlu1 %8125, %v11293_v62   ;;  %v15544_v62 = vld [vmem:[#allocation110_spill] sm:$0xff] }
 0x4e5   :  { %v11713_v1 = vpop.permute.xlu0 %5223 }
 0x4e6   :  { %15536 = vst [vmem:[#allocation103_spill] sm:$0xff] %v11713_v1 }
 0x4e7   :  { %4081 = vperm.xlu0 %8130, %v15537_v40   ;;  %v11716_v37 = vpop.permute.xlu1 %4775 }
 0x4e8   :  { %15538 = vst [vmem:[#allocation106_spill] sm:$0xff] %v11716_v37  ;;  %8128 = vset.pattern.permute.xlu1 %v15539_v52  ;;  %v15546_v52 = vld [vmem:[#allocation113_spill] sm:$0xff] }
 0x4e9   :  { %v11719_v15 = vpop.permute.xlu0 %5231  ;;  %5159 = vperm.xlu1 %8128, %v10803_v30  }
 0x4ea   :  { %15540 = vst [vmem:[#allocation252_spill] sm:$0xff] %v11719_v15 }
 0x4eb   :  { %4091 = vperm.xlu0 %8130, %v15541_v19   ;;  %v11723_v13 = vpop.permute.xlu1 %4779 }
 0x4ec   :  { %15542 = vst [vmem:[#allocation108_spill] sm:$0xff] %v11723_v13  ;;  %v15548_v13 = vld [vmem:[#allocation115_spill] sm:$0xff] }
 0x4ed   :  { %v11725_v48 = vpop.permute.xlu0 %5239  ;;  %5167 = vperm.xlu1 %8128, %v10830_v10  }
 0x4ee   :  { %15543 = vst [vmem:[#allocation253_spill] sm:$0xff] %v11725_v48 }
 0x4ef   :  { %4101 = vperm.xlu0 %8130, %v15544_v62   ;;  %v11729_v1 = vpop.permute.xlu1 %4787 }
 0x4f0   :  { %15545 = vst [vmem:[#allocation110_spill] sm:$0xff] %v11729_v1  ;;  %v15551_v1 = vld [vmem:[#allocation117_spill] sm:$0xff] }
 0x4f1   :  { %v11731_v51 = vpop.permute.xlu0 %5247  ;;  %5171 = vperm.xlu1 %8128, %v10813_v45  }
 0x4f3   :  { %4111 = vperm.xlu0 %8130, %v15546_v52   ;;  %v11735_v15 = vpop.permute.xlu1 %4795 }
 0x4f5   :  { %v11737_v30 = vpop.permute.xlu0 %5255  ;;  %5179 = vperm.xlu1 %8128, %v15522_v56  }
 0x4f6   :  { %15547 = vst [vmem:[#allocation113_spill] sm:$0xff] %v11737_v30 }
 0x4f7   :  { %4121 = vperm.xlu0 %8130, %v15548_v13   ;;  %v11741_v48 = vpop.permute.xlu1 %4803 }
 0x4f8   :  { %15549 = vst [vmem:[#allocation115_spill] sm:$0xff] %v11741_v48  ;;  %v15589_v48 = vld [vmem:[#allocation146_spill] sm:$0xff] }
 0x4f9   :  { %v11743_v10 = vpop.permute.xlu0 %5263  ;;  %5187 = vperm.xlu1 %8128, %v15524_v41  }
 0x4fa   :  { %15550 = vst [vmem:[#allocation254_spill] sm:$0xff] %v11743_v10 }
 0x4fb   :  { %4131 = vperm.xlu0 %8130, %v15551_v1   ;;  %v11747_v37 = vpop.permute.xlu1 %4811 }
 0x4fc   :  { %15552 = vst [vmem:[#allocation117_spill] sm:$0xff] %v11747_v37 }
 0x4fd   :  { %v11749_v45 = vpop.permute.xlu0 %5271  ;;  %5195 = vperm.xlu1 %8128, %v15527_v46  }
 0x4fe   :  { %15553 = vst [vmem:[#allocation255_spill] sm:$0xff] %v11749_v45 }
 0x4ff   :  { %4141 = vperm.xlu0 %8130, %v11306_v53   ;;  %v11753_v30 = vpop.permute.xlu1 %4819 }
 0x500   :  { %15554 = vst [vmem:[#allocation256_spill] sm:$0xff] %v11753_v30  ;;  %v15591_v30 = vld [vmem:[#allocation147_spill] sm:$0xff] }
 0x501   :  { %v11755_v56 = vpop.permute.xlu0 %5279  ;;  %5203 = vperm.xlu1 %8128, %v15530_v60  }
 0x502   :  { %15555 = vst [vmem:[#allocation257_spill] sm:$0xff] %v11755_v56  ;;  %v15641_v56 = vld [vmem:[#allocation172_spill] sm:$0xff] }
 0x503   :  { %4151 = vperm.xlu0 %8130, %v11315_v54   ;;  %v11759_v10 = vpop.permute.xlu1 %4827 }
 0x505   :  { %v11761_v41 = vpop.permute.xlu0 %5287  ;;  %5211 = vperm.xlu1 %8128, %v15533_v63  }
 0x506   :  { %15556 = vst [vmem:[#allocation258_spill] sm:$0xff] %v11761_v41 }
 0x507   :  { %4161 = vperm.xlu0 %8130, %v11325_v5   ;;  %v11765_v45 = vpop.permute.xlu1 %4835 }
 0x508   :  { %15557 = vst [vmem:[#allocation259_spill] sm:$0xff] %v11765_v45  ;;  %v15587_v45 = vld [vmem:[#allocation145_spill] sm:$0xff] }
 0x509   :  { %v11767_v46 = vpop.permute.xlu0 %5295  ;;  %5219 = vperm.xlu1 %8128, %v15535_v38  }
 0x50a   :  { %15558 = vst [vmem:[#allocation260_spill] sm:$0xff] %v11767_v46 }
 0x50b   :  { %4171 = vperm.xlu0 %8130, %v11333_v59   ;;  %v11771_v37 = vpop.permute.xlu1 %4843 }
 0x50c   :  { %15559 = vst [vmem:[#allocation261_spill] sm:$0xff] %v11771_v37 }
 0x50d   :  { %v11773_v60 = vpop.permute.xlu0 %5303  ;;  %5227 = vperm.xlu1 %8128, %v15537_v40  }
 0x50e   :  { %15560 = vst [vmem:[#allocation262_spill] sm:$0xff] %v11773_v60 }
 0x50f   :  { %4181 = vperm.xlu0 %8130, %v11343_v29   ;;  %v11777_v41 = vpop.permute.xlu1 %4851 }
 0x510   :  { %15561 = vst [vmem:[#allocation263_spill] sm:$0xff] %v11777_v41 }
 0x511   :  { %v11779_v63 = vpop.permute.xlu0 %5311  ;;  %5235 = vperm.xlu1 %8128, %v15541_v19  }
 0x512   :  { %15562 = vst [vmem:[#allocation264_spill] sm:$0xff] %v11779_v63  ;;  %v15635_v63 = vld [vmem:[#allocation177_spill] sm:$0xff] }
 0x513   :  { %4191 = vperm.xlu0 %8130, %v11353_v24   ;;  %v11783_v46 = vpop.permute.xlu1 %4859 }
 0x515   :  { %v11785_v38 = vpop.permute.xlu0 %5319  ;;  %5243 = vperm.xlu1 %8128, %v15544_v62  }
 0x516   :  { %15563 = vst [vmem:[#allocation265_spill] sm:$0xff] %v11785_v38 }
 0x517   :  { %4201 = vperm.xlu0 %8130, %v11363_v9   ;;  %v11789_v60 = vpop.permute.xlu1 %4867 }
 0x518   :  { %15564 = vst [vmem:[#allocation266_spill] sm:$0xff] %v11789_v60 }
 0x519   :  { %v11791_v40 = vpop.permute.xlu0 %5351  ;;  %5251 = vperm.xlu1 %8128, %v15546_v52  }
 0x51a   :  { %15565 = vst [vmem:[#allocation267_spill] sm:$0xff] %v11791_v40 }
 0x51b   :  { %4211 = vperm.xlu0 %8130, %v11373_v47   ;;  %v11795_v37 = vpop.permute.xlu1 %4875 }
 0x51c   :  { %15566 = vst [vmem:[#allocation268_spill] sm:$0xff] %v11795_v37  ;;  %v15584_v37 = vld [vmem:[#allocation144_spill] sm:$0xff] }
 0x51d   :  { %v11797_v19 = vpop.permute.xlu0 %5327  ;;  %5259 = vperm.xlu1 %8128, %v15548_v13  }
 0x51e   :  { %15567 = vst [vmem:[#allocation269_spill] sm:$0xff] %v11797_v19 }
 0x51f   :  { %4221 = vperm.xlu0 %8130, %v11381_v34   ;;  %v11801_v38 = vpop.permute.xlu1 %4883 }
 0x520   :  { %15568 = vst [vmem:[#allocation270_spill] sm:$0xff] %v11801_v38 }
 0x521   :  { %v11803_v62 = vpop.permute.xlu0 %5331  ;;  %5267 = vperm.xlu1 %8128, %v15551_v1  }
 0x522   :  { %15569 = vst [vmem:[#allocation271_spill] sm:$0xff] %v11803_v62 }
 0x523   :  { %4231 = vperm.xlu0 %8130, %v11391_v58   ;;  %v11807_v40 = vpop.permute.xlu1 %4891 }
 0x525   :  { %v11809_v52 = vpop.permute.xlu0 %5359  ;;  %5275 = vperm.xlu1 %8128, %v11306_v53   ;;  %v11827_v53 = vld [vmem:[%s14837_s15] sm:$0xf] }
 0x526   :  { %15570 = vst [vmem:[#allocation272_spill] sm:$0xff] %v11809_v52 }
 0x527   :  { %4241 = vperm.xlu0 %8130, %v11401_v42   ;;  %v11813_v47 = vpop.permute.xlu1 %4899 }
 0x528   :  { %15571 = vst [vmem:[#allocation273_spill] sm:$0xff] %v11813_v47 }
 0x529   :  { %v11815_v13 = vpop.permute.xlu0 %5335  ;;  %5283 = vperm.xlu1 %8128, %v11315_v54   ;;  %v15577_v54 = vld [vmem:[#allocation5_spill] sm:$0xff] }
 0x52a   :  { %15572 = vst [vmem:[#allocation274_spill] sm:$0xff] %v11815_v13  ;;  %v15578_v52 = vsub.s32 0, %v15577_v54  ;;  %v15580_v19 = vsub.s32 1, %v15577_v54 }
 0x52b   :  { %4251 = vperm.xlu0 %8130, %v11411_v36   ;;  %v11819_v34 = vpop.permute.xlu1 %4907 }
 0x52c   :  { %15573 = vst [vmem:[#allocation275_spill] sm:$0xff] %v11819_v34  ;;  %v11838_v62 = vrot.slane %v11827_v53, %v15578_v52  ;;  %v11848_v34 = vrot.slane %v11827_v53, %v15580_v19  ;;  %v15583_v52 = vld [vmem:[#allocation143_spill] sm:$0xff]  ;;  %v15586_v19 = vld [vmem:[#allocation149_spill] sm:$0xff] }
 0x52d   :  { %v11821_v1 = vpop.permute.xlu0 %5339  ;;  %5291 = vperm.xlu1 %8128, %v11325_v5   ;;  %v15579_v5 = vsub.s32 2, %v15577_v54 }
 0x52e   :  { %15574 = vst [vmem:[#allocation276_spill] sm:$0xff] %v11821_v1  ;;  %v4320_v38 = vmul.f32 %v11838_v62, %v15586_v19  ;;  %v11868_v41 = vmul.f32 %v11848_v34, %v15587_v45  ;;  %v15596_v19 = vld [vmem:[#allocation150_spill] sm:$0xff] }
 0x52f   :  { %4261 = vperm.xlu0 %8130, %v11421_v16   ;;  %v11830_v58 = vpop.permute.xlu1 %4915  ;;  %v11843_v1 = vrot.slane %v11827_v53, %v15579_v5  ;;  %v4319_v5 = vmul.f32 %v11838_v62, %v15583_v52  ;;  %v15593_v52 = vld [vmem:[#allocation148_spill] sm:$0xff] }
 0x530   :  { %15575 = vst [vmem:[#allocation277_spill] sm:$0xff] %v11830_v58  ;;  %15588 = vst [vmem:[#allocation143_spill] sm:$0xff] %v11868_v41  ;;  %v15605_v41 = vld [vmem:[#allocation155_spill] sm:$0xff] }
 0x531   :  { %v11832_v13 = vpop.permute.xlu0 %5367  ;;  %5299 = vperm.xlu1 %8128, %v11333_v59   ;;  %v15581_v59 = vld [vmem:[#allocation152_spill] sm:$0xff]  ;;  %v11862_v60 = vmul.f32 %v11843_v1, %v15584_v37  ;;  %v11887_v45 = vmul.f32 %v11843_v1, %v15596_v19 }
 0x532   :  { %15576 = vst [vmem:[#allocation278_spill] sm:$0xff] %v11832_v13  ;;  %v4644_v58 = vmul.f32 %v11848_v34, %v15581_v59  ;;  %v11872_v59 = vmul.f32 %v11843_v1, %v15589_v48  ;;  %v15607_v19 = vld [vmem:[#allocation156_spill] sm:$0xff] }
 0x533   :  { %4271 = vperm.xlu0 %8130, %v11429_v27   ;;  %v11851_v13 = vpop.permute.xlu1 %4923  ;;  %15585 = vst [vmem:[#allocation152_spill] sm:$0xff] %v11862_v60  ;;  %v11880_v27 = vmul.f32 %v11843_v1, %v15593_v52  ;;  %15597 = vst [vmem:[#allocation147_spill] sm:$0xff] %v11887_v45  ;;  %v15598_v60 = vld [vmem:[#allocation151_spill] sm:$0xff]  ;;  %v15603_v52 = vld [vmem:[#allocation154_spill] sm:$0xff]  ;;  %v4322_v45 = vmul.f32 %v11838_v62, %v15607_v19 }
 0x534   :  { %15590 = vst [vmem:[#allocation144_spill] sm:$0xff] %v11872_v59  ;;  %v11891_v48 = vmul.f32 %v11843_v1, %v15598_v60  ;;  %v11893_v59 = vadd.f32 %v4644_v58, %v4320_v38  ;;  %v15611_v58 = vld [vmem:[#allocation158_spill] sm:$0xff]  ;;  %v15616_v19 = vld [vmem:[#allocation171_spill] sm:$0xff] }
 0x535   :  { %v11855_v47 = vpop.permute.xlu0 %5343  ;;  %5307 = vperm.xlu1 %8128, %v11343_v29   ;;  %v11876_v29 = vmul.f32 %v11848_v34, %v15591_v30  ;;  %15594 = vst [vmem:[#allocation145_spill] sm:$0xff] %v11880_v27  ;;  %v15601_v30 = vld [vmem:[#allocation153_spill] sm:$0xff]  ;;  %v11901_v27 = vmul.f32 %v11848_v34, %v15603_v52  ;;  %v15613_v52 = vld [vmem:[#allocation159_spill] sm:$0xff] }
 0x536   :  { %15582 = vst [vmem:[#allocation5_spill] sm:$0xff] %v11855_v47  ;;  %15599 = vst [vmem:[#allocation148_spill] sm:$0xff] %v11891_v48  ;;  %v15608_v47 = vld [vmem:[#allocation157_spill] sm:$0xff]  ;;  %v4643_v48 = vmul.f32 %v11848_v34, %v15616_v19 }
 0x537   :  { %15592 = vst [vmem:[#allocation149_spill] sm:$0xff] %v11876_v29  ;;  %4281 = vperm.xlu0 %8130, %v11439_v6   ;;  %v11883_v37 = vpop.permute.xlu1 %4931  ;;  %15600 = vst [vmem:[#allocation150_spill] sm:$0xff] %v11893_v59  ;;  %v11897_v29 = vmul.f32 %v11843_v1, %v15601_v30  ;;  %v11911_v60 = vmul.f32 %v11843_v1, %v15608_v47  ;;  %v11918_v30 = vmul.f32 %v11848_v34, %v15611_v58  ;;  %v15617_v47 = vld [vmem:[#allocation161_spill] sm:$0xff]  ;;  %v15621_v58 = vld [vmem:[#allocation163_spill] sm:$0xff] }
 0x538   :  { %15595 = vst [vmem:[#allocation146_spill] sm:$0xff] %v11883_v37  ;;  %15604 = vst [vmem:[#allocation153_spill] sm:$0xff] %v11901_v27  ;;  %v11905_v37 = vmul.f32 %v11843_v1, %v15605_v41  ;;  %v15615_v41 = vld [vmem:[#allocation160_spill] sm:$0xff]  ;;  %v15624_v19 = vld [vmem:[#allocation165_spill] sm:$0xff] }
 0x539   :  { %15602 = vst [vmem:[#allocation151_spill] sm:$0xff] %v11897_v29  ;;  %15609 = vst [vmem:[#allocation155_spill] sm:$0xff] %v11911_v60  ;;  %v11913_v38 = vpop.permute.xlu0 %5347  ;;  %5315 = vperm.xlu1 %8128, %v11353_v24   ;;  %v11922_v29 = vmul.f32 %v11843_v1, %v15613_v52  ;;  %v11930_v60 = vmul.f32 %v11843_v1, %v15617_v47  ;;  %v4646_v52 = vmul.f32 %v11848_v34, %v11329_v32  ;;  %v15626_v47 = vld [vmem:[#allocation166_spill] sm:$0xff]  ;;  %v15630_v27 = vld [vmem:[#allocation168_spill] sm:$0xff] }
 0x53a   :  { %15606 = vst [vmem:[#allocation154_spill] sm:$0xff] %v11905_v37  ;;  %15610 = vst [vmem:[#allocation156_spill] sm:$0xff] %v11913_v38  ;;  %v4324_v37 = vmul.f32 %v11838_v62, %v15615_v41  ;;  %v15619_v38 = vld [vmem:[#allocation162_spill] sm:$0xff]  ;;  %v11959_v32 = vmul.f32 %v11848_v34, %v15630_v27  ;;  %v15632_v59 = vld [vmem:[#allocation169_spill] sm:$0xff] }
 0x53b   :  { %15612 = vst [vmem:[#allocation157_spill] sm:$0xff] %v11918_v30  ;;  %15614 = vst [vmem:[#allocation158_spill] sm:$0xff] %v11922_v29  ;;  %v11934_v24 = vmul.f32 %v11843_v1, %v15619_v38  ;;  %v11938_v30 = vmul.f32 %v11848_v34, %v15621_v58  ;;  %4291 = vperm.xlu0 %8130, %v11449_v22   ;;  %v11943_v41 = vpop.permute.xlu1 %4939  ;;  %v11947_v29 = vmul.f32 %v11843_v1, %v15624_v19  ;;  %v15627_v38 = vld [vmem:[#allocation167_spill] sm:$0xff]  ;;  %v15629_v58 = vld [vmem:[#allocation173_spill] sm:$0xff] }
 0x53c   :  { %15618 = vst [vmem:[#allocation159_spill] sm:$0xff] %v11930_v60  ;;  %15623 = vst [vmem:[#allocation161_spill] sm:$0xff] %v11943_v41  ;;  %v4326_v60 = vmul.f32 %v11838_v62, %v15626_v47  ;;  %v11963_v41 = vmul.f32 %v11843_v1, %v15632_v59  ;;  %v15634_v19 = vld [vmem:[#allocation175_spill] sm:$0xff]  ;;  %v4652_v47 = vmul.f32 %v11848_v34, %v15635_v63  ;;  %v15640_v59 = vld [vmem:[#allocation181_spill] sm:$0xff] }
 0x53d   :  { %15620 = vst [vmem:[#allocation160_spill] sm:$0xff] %v11934_v24  ;;  %15622 = vst [vmem:[#allocation171_spill] sm:$0xff] %v11938_v30  ;;  %v11953_v24 = vmul.f32 %v11843_v1, %v15627_v38  ;;  %v4648_v30 = vmul.f32 %v11848_v34, %v15629_v58  ;;  %v11969_v2 = vpop.permute.xlu0 %5375  ;;  %5323 = vperm.xlu1 %8128, %v11363_v9   ;;  %v15637_v38 = vld [vmem:[#allocation170_spill] sm:$0xff]  ;;  %v15639_v27 = vld [vmem:[#allocation179_spill] sm:$0xff]  ;;  %v11984_v63 = vadd.f32 %v4646_v52, %v4322_v45 }
 0x53e   :  { %15625 = vst [vmem:[#allocation162_spill] sm:$0xff] %v11947_v29  ;;  %15631 = vst [vmem:[#allocation165_spill] sm:$0xff] %v11959_v32  ;;  %v4650_v29 = vmul.f32 %v11848_v34, %v15634_v19  ;;  %v4328_v58 = vmul.f32 %v11838_v62, %v15637_v38  ;;  %v4654_v32 = vmul.f32 %v11848_v34, %v15639_v27  ;;  %v15647_v27 = vld [vmem:[#allocation174_spill] sm:$0xff] }
 0x53f   :  { %15628 = vst [vmem:[#allocation163_spill] sm:$0xff] %v11953_v24  ;;  %15633 = vst [vmem:[#allocation166_spill] sm:$0xff] %v11963_v41  ;;  %v11974_v24 = vadd.f32 %v4643_v48, %v4319_v5  ;;  %v4656_v41 = vmul.f32 %v11848_v34, %v15640_v59  ;;  %v11982_v19 = vmul.f32 %v11848_v34, %v15641_v56  ;;  %4301 = vperm.xlu0 %8130, %v11459_v26   ;;  %v11991_v5 = vpop.permute.xlu1 %4947 }
 0x540   :  { %15636 = vst [vmem:[#allocation167_spill] sm:$0xff] %v11969_v2  ;;  %15643 = vst [vmem:[#allocation169_spill] sm:$0xff] %v11984_v63  ;;  %v15644_v2 = vld [vmem:[#allocation182_spill] sm:$0xff]  ;;  %v4334_v38 = vmul.f32 %v11838_v62, %v15645_v17  ;;  %v11993_v48 = vadd.f32 %v4648_v30, %v4324_v37  ;;  %v4330_v59 = vmul.f32 %v11838_v62, %v15647_v27 }
 0x541   :  { %15638 = vst [vmem:[#allocation173_spill] sm:$0xff] %v11974_v24  ;;  %15642 = vst [vmem:[#allocation168_spill] sm:$0xff] %v11982_v19  ;;  %v4658_v9 = vmul.f32 %v11848_v34, %v15644_v2  ;;  %v15648_v24 = vld [vmem:[#allocation178_spill] sm:$0xff]  ;;  %v4336_v45 = vmul.f32 %v11838_v62, %v11409_v55  ;;  %v12001_v52 = vadd.f32 %v4650_v29, %v4326_v60  ;;  %v15650_v2 = vld [vmem:[#allocation176_spill] sm:$0xff]  ;;  %v12011_v30 = vpop.permute.xlu0 %5407  ;;  %5355 = vperm.xlu1 %8128, %v11401_v42  }
 0x542   :  { %15646 = vst [vmem:[#allocation175_spill] sm:$0xff] %v11991_v5  ;;  %v4332_v56 = vmul.f32 %v11838_v62, %v15648_v24  ;;  %v12005_v17 = vmul.f32 %v11848_v34, %v15650_v2  ;;  %v12007_v19 = vadd.f32 %v4652_v47, %v4328_v58  ;;  %v15653_v5 = vld [vmem:[#allocation192_spill] sm:$0xff]  ;;  %v12014_v27 = vadd.f32 %v4654_v32, %v4330_v59  ;;  %v15659_v58 = vld [vmem:[#allocation185_spill] sm:$0xff] }
 0x543   :  { %15649 = vst [vmem:[#allocation177_spill] sm:$0xff] %v12001_v52  ;;  %v4338_v37 = vmul.f32 %v11838_v62, %v15653_v5  ;;  %v15655_v24 = vld [vmem:[#allocation180_spill] sm:$0xff]  ;;  %v12024_v47 = vadd.f32 %v4658_v9, %v4334_v38  ;;  %v12028_v5 = vmul.f32 %v11848_v34, %v15659_v58  ;;  %v4340_v32 = vmul.f32 %v11838_v62, %v11457_v4  ;;  %v12035_v59 = vpop.permute.xlu1 %4955  ;;  %v15666_v4 = vld [vmem:[#allocation189_spill] sm:$0xff]  ;;  %v15681_v52 = vld [vmem:[#allocation199_spill] sm:$0xff] }
 0x544   :  { %15651 = vst [vmem:[#allocation170_spill] sm:$0xff] %v12005_v17  ;;  %15652 = vst [vmem:[#allocation179_spill] sm:$0xff] %v12007_v19  ;;  %v12018_v55 = vmul.f32 %v11848_v34, %v15655_v24  ;;  %v12020_v29 = vadd.f32 %v4656_v41, %v4332_v56  ;;  %v15657_v60 = vld [vmem:[#allocation184_spill] sm:$0xff]  ;;  %v15661_v17 = vld [vmem:[#allocation186_spill] sm:$0xff]  ;;  %4311 = vperm.xlu0 %8130, %v11469_v23   ;;  %v4666_v58 = vmul.f32 %v11848_v34, %v15666_v4 }
 0x545   :  { %15654 = vst [vmem:[#allocation181_spill] sm:$0xff] %v12014_v27  ;;  %v4660_v2 = vmul.f32 %v11848_v34, %v15657_v60  ;;  %15658 = vst [vmem:[#allocation182_spill] sm:$0xff] %v12024_v47  ;;  %v4662_v42 = vmul.f32 %v11848_v34, %v15661_v17  ;;  %v15663_v56 = vld [vmem:[#allocation187_spill] sm:$0xff]  ;;  %v15664_v38 = vld [vmem:[#allocation188_spill] sm:$0xff]  ;;  %v5416_v60 = vsub.s32 3, %v15577_v54  ;;  %5383 = vperm.xlu1 %8128, %v11265_v28  }
 0x546   :  { %15656 = vst [vmem:[#allocation172_spill] sm:$0xff] %v12018_v55  ;;  %15660 = vst [vmem:[#allocation183_spill] sm:$0xff] %v12028_v5  ;;  %v4664_v9 = vmul.f32 %v11848_v34, %v15663_v56  ;;  %v12043_v24 = vmul.f32 %v11848_v34, %v15664_v38  ;;  %v6121_v17 = vld [vmem:[%s14838_s3] sm:$0xff]  ;;  %v15667_v5 = vld [vmem:[#allocation191_spill] sm:$0xff]  ;;  %v4342_v56 = vmul.f32 %v11838_v62, %v11478_v31 }
 0x547   :  { %v12037_v41 = vadd.f32 %v4660_v2, %v4336_v45  ;;  %v4668_v45 = vmul.f32 %v11848_v34, %v15667_v5  ;;  %v12053_v2 = vadd.f32 %v4662_v42, %v4338_v37  ;;  %v15669_v38 = vld [vmem:[#allocation193_spill] sm:$0xff]  ;;  %v15673_v47 = vld [vmem:[#allocation203_spill] sm:$0xff]  ;;  %v12068_v37 = vpop.permute.xlu0 %3996  ;;  %v15675_v31 = vld [vmem:[#allocation196_spill] sm:$0xff] }
 0x548   :  { %15665 = vst [vmem:[#allocation178_spill] sm:$0xff] %v12043_v24  ;;  %v4670_v54 = vmul.f32 %v11848_v34, %v15669_v38  ;;  %v15670_v24 = vld [vmem:[#allocation194_spill] sm:$0xff]  ;;  %v4344_v5 = vmul.f32 %v11838_v62, %v15673_v47  ;;  %15674 = vst [vmem:[#allocation180_spill] sm:$0xff] %v12068_v37  ;;  %v12070_v42 = vadd.f32 %v4664_v9, %v4340_v32  ;;  %v15678_v19 = vld [vmem:[#allocation205_spill] sm:$0xff]  ;;  %6187 = vperm.xlu0 %8130, %v6121_v17  }
 0x549   :  { %15662 = vst [vmem:[#allocation174_spill] sm:$0xff] %v12037_v41  ;;  %15668 = vst [vmem:[#allocation176_spill] sm:$0xff] %v12053_v2  ;;  %v12062_v55 = vmul.f32 %v11848_v34, %v15670_v24  ;;  %v15672_v41 = vld [vmem:[#allocation195_spill] sm:$0xff]  ;;  %v4674_v28 = vmul.f32 %v11848_v34, %v15675_v31  ;;  %v15676_v2 = vld [vmem:[#allocation197_spill] sm:$0xff]  ;;  %v4346_v24 = vmul.f32 %v11838_v62, %v15678_v19  ;;  %5387 = vperm.xlu1 %8128, %v11439_v6  }
 0x54a   :  { %v4672_v4 = vmul.f32 %v11848_v34, %v15672_v41  ;;  %v12076_v38 = vmul.f32 %v11848_v34, %v15676_v2  ;;  %v15680_v41 = vld [vmem:[#allocation198_spill] sm:$0xff]  ;;  %v4678_v32 = vmul.f32 %v11848_v34, %v15681_v52  ;;  %v15682_v9 = vld [vmem:[#allocation207_spill] sm:$0xff]  ;;  %v12089_v31 = vrot.slane %v11827_v53, %v5416_v60  ;;  %v15684_v17 = vld [vmem:[#allocation200_spill] sm:$0xff] }
 0x54b   :  { %15671 = vst [vmem:[#allocation192_spill] sm:$0xff] %v12062_v55  ;;  %v12080_v55 = vpop.permute.xlu1 %4963  ;;  %v4676_v47 = vmul.f32 %v11848_v34, %v15680_v41  ;;  %v4348_v37 = vmul.f32 %v11838_v62, %v15682_v9  ;;  %v6130_v2 = vld [vmem:[%s14838_s3 + $0x48] sm:$0xff]  ;;  %v12094_v19 = vadd.f32 %v4666_v58, %v4342_v56  ;;  %v4350_v41 = vmul.f32 %v11838_v62, %v11509_v39  ;;  %v15686_v9 = vld [vmem:[#allocation201_spill] sm:$0xff]  ;;  %v15688_v60 = vld [vmem:[#allocation202_spill] sm:$0xff] }
 0x54c   :  { %15677 = vst [vmem:[#allocation184_spill] sm:$0xff] %v12076_v38  ;;  %15679 = vst [vmem:[#allocation185_spill] sm:$0xff] %v12080_v55  ;;  %v4680_v38 = vmul.f32 %v11848_v34, %v15684_v17  ;;  %v15685_v55 = vld [vmem:[#allocation210_spill] sm:$0xff]  ;;  %v12105_v53 = vmul.f32 %v11848_v34, %v15686_v9  ;;  %v4682_v27 = vmul.f32 %v11848_v34, %v15688_v60  ;;  %v15690_v56 = vld [vmem:[#allocation212_spill] sm:$0xff]  ;;  %6232 = vperm.xlu0 %8130, %v6130_v2  }
 0x54d   :  { %15683 = vst [vmem:[#allocation186_spill] sm:$0xff] %v12094_v19  ;;  %v4352_v52 = vmul.f32 %v11838_v62, %v15685_v55  ;;  %v12109_v58 = vadd.f32 %v4668_v45, %v4344_v5  ;;  %v4354_v17 = vmul.f32 %v11838_v62, %v15690_v56  ;;  %v12113_v19 = vpop.permute.xlu0 %4011  ;;  %v15692_v39 = vld [vmem:[#allocation204_spill] sm:$0xff]  ;;  %v12117_v55 = vadd.f32 %v4670_v54, %v4346_v24  ;;  %v15693_v9 = vld [vmem:[#allocation215_spill] sm:$0xff]  ;;  %v15695_v45 = vld [vmem:[#allocation206_spill] sm:$0xff] }
 0x54e   :  { %15687 = vst [vmem:[#allocation187_spill] sm:$0xff] %v12105_v53  ;;  %15691 = vst [vmem:[#allocation189_spill] sm:$0xff] %v12113_v19  ;;  %v4684_v63 = vmul.f32 %v11848_v34, %v15692_v39  ;;  %v4356_v6 = vmul.f32 %v11838_v62, %v11528_v8  ;;  %v4358_v53 = vmul.f32 %v11838_v62, %v15693_v9  ;;  %v15696_v19 = vld [vmem:[#allocation208_spill] sm:$0xff]  ;;  %v6138_v8 = vld [vmem:[%s14838_s3 + $0x88] sm:$0xff]  ;;  %5363 = vperm.xlu1 %8128, %v11411_v36  }
 0x54f   :  { %15689 = vst [vmem:[#allocation188_spill] sm:$0xff] %v12109_v58  ;;  %v12123_v60 = vpop.permute.xlu1 %4971  ;;  %v4686_v5 = vmul.f32 %v11848_v34, %v15695_v45  ;;  %v12127_v56 = vadd.f32 %v4672_v4, %v4348_v37  ;;  %v4688_v58 = vmul.f32 %v11848_v34, %v15696_v19  ;;  %v4360_v54 = vmul.f32 %v11838_v62, %v11540_v25  ;;  %v15697_v2 = vld [vmem:[#allocation209_spill] sm:$0xff]  ;;  %v15698_v37 = vld [vmem:[#allocation211_spill] sm:$0xff] }
 0x550   :  { %15694 = vst [vmem:[#allocation191_spill] sm:$0xff] %v12123_v60  ;;  %v12136_v24 = vadd.f32 %v4674_v28, %v4350_v41  ;;  %v4690_v39 = vmul.f32 %v11848_v34, %v15697_v2  ;;  %v12140_v9 = vadd.f32 %v4676_v47, %v4352_v52  ;;  %v4362_v4 = vmul.f32 %v11838_v62, %v11546_v43  ;;  %v15699_v45 = vld [vmem:[#allocation213_spill] sm:$0xff]  ;;  %v15700_v52 = vld [vmem:[#allocation214_spill] sm:$0xff] }
 0x551   :  { %v4692_v19 = vmul.f32 %v11848_v34, %v15698_v37  ;;  %v12147_v25 = vadd.f32 %v4678_v32, %v4354_v17  ;;  %v4694_v60 = vmul.f32 %v11848_v34, %v15699_v45  ;;  %v4364_v28 = vmul.f32 %v11838_v62, %v11552_v21  ;;  %v12153_v41 = vpop.permute.xlu0 %4021  ;;  %6272 = vperm.xlu0 %8130, %v6138_v8   ;;  %v15701_v17 = vld [vmem:[#allocation216_spill] sm:$0xff]  ;;  %v15702_v21 = vld [vmem:[#allocation217_spill] sm:$0xff] }
 0x552   :  { %v12155_v47 = vadd.f32 %v4680_v38, %v4356_v6  ;;  %v4696_v43 = vmul.f32 %v11848_v34, %v15700_v52  ;;  %v12159_v2 = vadd.f32 %v4682_v27, %v4358_v53  ;;  %v4366_v36 = vmul.f32 %v11838_v62, %v11558_v49  ;;  %v6131_v27 = vld [vmem:[%s14838_s3 + $0x50] sm:$0xff]  ;;  %v15703_v49 = vld [vmem:[#allocation218_spill] sm:$0xff]  ;;  %5391 = vperm.xlu1 %8128, %v11273_v14  }
 0x553   :  { %v12163_v32 = vpop.permute.xlu1 %4979  ;;  %v4698_v37 = vmul.f32 %v11848_v34, %v15701_v17  ;;  %v12167_v45 = vadd.f32 %v4684_v63, %v4360_v54  ;;  %v4700_v38 = vmul.f32 %v11848_v34, %v15702_v21  ;;  %v4368_v6 = vmul.f32 %v11838_v62, %v11564_v7  ;;  %v15704_v7 = vld [vmem:[#allocation219_spill] sm:$0xff] }
 0x554   :  { %v12176_v53 = vadd.f32 %v4686_v5, %v4362_v4  ;;  %v4702_v8 = vmul.f32 %v11848_v34, %v15703_v49  ;;  %v4370_v52 = vmul.f32 %v11838_v62, %v11570_v50  ;;  %v4372_v63 = vmul.f32 %v11838_v62, %v11576_v44  ;;  %v15705_v50 = vld [vmem:[#allocation220_spill] sm:$0xff] }
 0x555   :  { %v12185_v54 = vadd.f32 %v4688_v58, %v4364_v28  ;;  %v4704_v17 = vmul.f32 %v11848_v34, %v15704_v7  ;;  %v4374_v5 = vmul.f32 %v11838_v62, %v11582_v3  ;;  %v4376_v4 = vmul.f32 %v11838_v62, %v11588_v20  ;;  %v12193_v21 = vpop.permute.xlu0 %4031  ;;  %6237 = vperm.xlu0 %8130, %v6131_v27   ;;  %v15707_v7 = vld [vmem:[#allocation221_spill] sm:$0xff] }
 0x556   :  { %v12195_v49 = vadd.f32 %v4690_v39, %v4366_v36  ;;  %v12199_v44 = vmul.f32 %v11843_v1, %v15705_v50  ;;  %v4378_v14 = vmul.f32 %v11838_v62, %v11594_v12  ;;  %v5044_v58 = vmul.f32 %v11843_v1, %v11759_v10  ;;  %v6124_v12 = vld [vmem:[%s14838_s3 + $0x18] sm:$0xff]  ;;  %v15709_v10 = vld [vmem:[#allocation222_spill] sm:$0xff]  ;;  %5395 = vperm.xlu1 %8128, %v11449_v22  }
 0x557   :  { %v4988_v28 = vpop.permute.xlu1 %4987  ;;  %v12205_v3 = vadd.f32 %v4692_v19, %v4368_v6  ;;  %v12209_v20 = vmul.f32 %v11843_v1, %v15707_v7  ;;  %v4380_v39 = vmul.f32 %v11838_v62, %v11600_v11  ;;  %v5036_v36 = vmul.f32 %v11843_v1, %v11735_v15  ;;  %v15711_v11 = vld [vmem:[#allocation223_spill] sm:$0xff] }
 0x558   :  { %15706 = vst [vmem:[#allocation193_spill] sm:$0xff] %v12199_v44  ;;  %v12218_v50 = vadd.f32 %v4694_v60, %v4370_v52  ;;  %v12222_v19 = vmul.f32 %v11843_v1, %v15709_v10  ;;  %v12224_v6 = vadd.f32 %v4696_v43, %v4372_v63  ;;  %v5052_v27 = vmul.f32 %v11843_v1, %v11783_v46  ;;  %v15716_v43 = vld [vmem:[#allocation224_spill] sm:$0xff] }
 0x559   :  { %15708 = vst [vmem:[#allocation194_spill] sm:$0xff] %v12209_v20  ;;  %v12231_v15 = vmul.f32 %v11843_v1, %v15711_v11  ;;  %v12233_v7 = vadd.f32 %v4698_v37, %v4374_v5  ;;  %v12237_v60 = vmul.f32 %v11843_v1, %v11585_v0  ;;  %v12239_v52 = vadd.f32 %v4700_v38, %v4376_v4  ;;  %v12241_v10 = vpop.permute.xlu0 %4041  ;;  %v15719_v0 = vld [vmem:[#allocation225_spill] sm:$0xff]  ;;  %v15721_v11 = vld [vmem:[#allocation226_spill] sm:$0xff] }
 0x55a   :  { %15710 = vst [vmem:[#allocation195_spill] sm:$0xff] %v12222_v19  ;;  %v12245_v63 = vmul.f32 %v11843_v1, %v15716_v43  ;;  %v12247_v46 = vadd.f32 %v4702_v8, %v4378_v14  ;;  %v5108_v22 = vadd.f32 %v5044_v58, %v12020_v29  ;;  %v5060_v37 = vmul.f32 %v11843_v1, %v11807_v40  ;;  %v6146_v29 = vld [vmem:[%s14838_s3 + $0xc8] sm:$0xff] }
 0x55b   :  { %15712 = vst [vmem:[#allocation203_spill] sm:$0xff] %v12231_v15  ;;  %15713 = vst [vmem:[#allocation196_spill] sm:$0xff] %v12233_v7  ;;  %6202 = vperm.xlu0 %8130, %v6124_v12   ;;  %v12252_v5 = vpop.permute.xlu1 %4995  ;;  %v12256_v38 = vmul.f32 %v11843_v1, %v15719_v0  ;;  %v12258_v4 = vadd.f32 %v4704_v17, %v4380_v39  ;;  %v12262_v43 = vmul.f32 %v11843_v1, %v15721_v11  ;;  %v15724_v39 = vld [vmem:[#allocation227_spill] sm:$0xff] }
 0x55c   :  { %15714 = vst [vmem:[#allocation197_spill] sm:$0xff] %v12237_v60  ;;  %15715 = vst [vmem:[#allocation205_spill] sm:$0xff] %v12239_v52  ;;  %v5100_v8 = vadd.f32 %v5036_v36, %v11993_v48  ;;  %v12270_v40 = vmul.f32 %v11848_v34, %v11607_v33  ;;  %v5432_v14 = vmul.f32 %v12089_v31, %v11707_v57  ;;  %5371 = vperm.xlu1 %8128, %v11421_v16   ;;  %v15727_v33 = vld [vmem:[#allocation228_spill] sm:$0xff]  ;;  %v15750_v60 = vld [vmem:[#allocation237_spill] sm:$0xff] }
 0x55d   :  { %15717 = vst [vmem:[#allocation198_spill] sm:$0xff] %v12245_v63  ;;  %15718 = vst [vmem:[#allocation199_spill] sm:$0xff] %v12247_v46  ;;  %v5116_v17 = vadd.f32 %v5052_v27, %v12070_v42  ;;  %v5068_v58 = vmul.f32 %v11843_v1, %v11851_v13  ;;  %v12280_v48 = vmul.f32 %v11843_v1, %v15724_v39  ;;  %v12292_v42 = vpop.permute.xlu0 %4051  ;;  %v15730_v39 = vld [vmem:[#allocation229_spill] sm:$0xff] }
 0x55e   :  { %15720 = vst [vmem:[#allocation207_spill] sm:$0xff] %v12256_v38  ;;  %15722 = vst [vmem:[#allocation200_spill] sm:$0xff] %v12262_v43  ;;  %v12284_v36 = vmul.f32 %v11848_v34, %v11613_v35  ;;  %v12288_v12 = vmul.f32 %v11843_v1, %v15727_v33  ;;  %v5424_v57 = vmul.f32 %v12089_v31, %v11683_v18  ;;  %v15732_v33 = vld [vmem:[#allocation230_spill] sm:$0xff]  ;;  %v15735_v38 = vld [vmem:[#allocation164_spill] sm:$0xff] }
 0x55f   :  { %15723 = vst [vmem:[#allocation210_spill] sm:$0xff] %v12270_v40  ;;  %15725 = vst [vmem:[#allocation201_spill] sm:$0xff] %v12280_v48  ;;  %v5440_v16 = vmul.f32 %v12089_v31, %v11731_v51  ;;  %v5496_v13 = vadd.f32 %v5432_v14, %v5108_v22  ;;  %v5124_v27 = vadd.f32 %v5060_v37, %v12127_v56  ;;  %6312 = vperm.xlu0 %8130, %v6146_v29   ;;  %v12299_v35 = vpop.permute.xlu1 %5003  ;;  %v15734_v56 = vld [vmem:[#allocation257_spill] sm:$0xff]  ;;  %v15766_v48 = vld [vmem:[#allocation106_spill] sm:$0xff] }
 0x560   :  { %15726 = vst [vmem:[#allocation202_spill] sm:$0xff] %v12284_v36  ;;  %15728 = vst [vmem:[#allocation212_spill] sm:$0xff] %v12288_v12  ;;  %v5076_v0 = vmul.f32 %v11843_v1, %v12035_v59  ;;  %v12303_v11 = vmul.f32 %v11848_v34, %v11619_v61  ;;  %v12307_v18 = vmul.f32 %v11843_v1, %v15730_v39  ;;  %v6153_v59 = vld [vmem:[%s14838_s3 + $0x100] sm:$0xff]  ;;  %5399 = vperm.xlu1 %8128, %v15735_v38   ;;  %v15736_v39 = vld [vmem:[#allocation231_spill] sm:$0xff] }
 0x561   :  { %v12311_v51 = vmul.f32 %v11848_v34, %v15732_v33  ;;  %v5488_v22 = vadd.f32 %v5424_v57, %v5100_v8  ;;  %v5448_v37 = vmul.f32 %v12089_v31, %v15734_v56  ;;  %v5504_v29 = vadd.f32 %v5440_v16, %v5116_v17  ;;  %v15738_v33 = vld [vmem:[#allocation232_spill] sm:$0xff]  ;;  %v15740_v57 = vld [vmem:[#allocation233_spill] sm:$0xff]  ;;  %v15742_v56 = vld [vmem:[#allocation234_spill] sm:$0xff] }
 0x562   :  { %15729 = vst [vmem:[#allocation204_spill] sm:$0xff] %v12303_v11  ;;  %15731 = vst [vmem:[#allocation215_spill] sm:$0xff] %v12307_v18  ;;  %v5132_v61 = vadd.f32 %v5068_v58, %v12155_v47  ;;  %v5084_v14 = vmul.f32 %v11843_v1, %v4988_v28  ;;  %v12323_v18 = vmul.f32 %v11843_v1, %v15736_v39  ;;  %v12340_v47 = vld [vmem:[%s14839_s16] ss:$0 sm:$0xff]  ;;  %v12342_v28 = vpop.permute.xlu0 %4061  ;;  %v15744_v58 = vld [vmem:[#allocation264_spill] sm:$0xff] }
 0x563   :  { %15733 = vst [vmem:[#allocation206_spill] sm:$0xff] %v12311_v51  ;;  %v12327_v8 = vmul.f32 %v11848_v34, %v15738_v33  ;;  %v12331_v12 = vmul.f32 %v11843_v1, %v15740_v57  ;;  %v12335_v17 = vmul.f32 %v11848_v34, %v15742_v56  ;;  %v12345_v38 = vadd.f32 %v12340_v47, %v5496_v13  ;;  %v12350_v57 = vpop.permute.xlu1 %5011  ;;  %v15746_v56 = vld [vmem:[#allocation235_spill] sm:$0xff]  ;;  %v15788_v11 = vld [vmem:[#allocation96_spill] sm:$0xff] }
 0x564   :  { %15737 = vst [vmem:[#allocation208_spill] sm:$0xff] %v12323_v18  ;;  %v5456_v16 = vmul.f32 %v12089_v31, %v15744_v58  ;;  %v5512_v39 = vadd.f32 %v5448_v37, %v5124_v27  ;;  %v5140_v33 = vadd.f32 %v5076_v0, %v12185_v54  ;;  %6347 = vperm.xlu0 %8130, %v6153_v59   ;;  %15745 = vst [vmem:[#allocation214_spill] sm:$0xff] %v12350_v57  ;;  %v15748_v18 = vld [vmem:[#allocation236_spill] sm:$0xff]  ;;  %v6154_v54 = vld [vmem:[%s14838_s3 + $0x108] sm:$0xff] }
 0x565   :  { %15739 = vst [vmem:[#allocation209_spill] sm:$0xff] %v12327_v8  ;;  %15741 = vst [vmem:[#allocation211_spill] sm:$0xff] %v12331_v12  ;;  %v12354_v12 = vmul.f32 %v11843_v1, %v15746_v56  ;;  %v12358_v63 = vmul.f32 %v11848_v34, %v15748_v18  ;;  %v12362_v13 = vmul.f32 %v11843_v1, %v15750_v60  ;;  %v15752_v59 = vld [vmem:[#allocation5_spill] sm:$0xff]  ;;  %5403 = vperm.xlu1 %8128, %v11459_v26   ;;  %v15753_v60 = vld [vmem:[#allocation238_spill] sm:$0xff] }
 0x566   :  { %15743 = vst [vmem:[#allocation213_spill] sm:$0xff] %v12335_v17  ;;  %v12365_v58 = vadd.f32 %v12340_v47, %v5488_v22  ;;  %v12371_v27 = vadd.f32 %v12340_v47, %v5504_v29  ;;  %v5520_v0 = vadd.f32 %v5456_v16, %v5132_v61  ;;  %v5464_v37 = vmul.f32 %v12089_v31, %v15752_v59  ;;  %v15755_v22 = vld [vmem:[#allocation239_spill] sm:$0xff]  ;;  %v15759_v61 = vld [vmem:[#allocation241_spill] sm:$0xff]  ;;  %v12393_v59 = vpop.permute.xlu0 %4071  ;;  %v15769_v8 = vld [vmem:[#allocation244_spill] sm:$0xff] }
 0x567   :  { %15747 = vst [vmem:[#allocation216_spill] sm:$0xff] %v12354_v12  ;;  %15749 = vst [vmem:[#allocation217_spill] sm:$0xff] %v12358_v63  ;;  %v5148_v18 = vadd.f32 %v5084_v14, %v12224_v6  ;;  %v12379_v56 = vmul.f32 %v11848_v34, %v15753_v60  ;;  %v12383_v12 = vmul.f32 %v11843_v1, %v15755_v22  ;;  %v5708_v26 = vsel %vm87_vm0, %v12345_v38, -inf  ;;  %v15761_v14 = vld [vmem:[#allocation167_spill] sm:$0xff] }
 0x568   :  { %15751 = vst [vmem:[#allocation218_spill] sm:$0xff] %v12362_v13  ;;  %v15757_v13 = vld [vmem:[#allocation240_spill] sm:$0xff]  ;;  %v12391_v16 = vmul.f32 %v11843_v1, %v15759_v61  ;;  %v12398_v6 = vadd.f32 %v12340_v47, %v5512_v39  ;;  %v5472_v60 = vmul.f32 %v12089_v31, %v15761_v14  ;;  %v5528_v22 = vadd.f32 %v5464_v37, %v5140_v33  ;;  %v15764_v61 = vld [vmem:[#allocation243_spill] sm:$0xff]  ;;  %v6133_v14 = vld [vmem:[%s14838_s3 + $0x60] sm:$0xff] }
 0x569   :  { %15754 = vst [vmem:[#allocation219_spill] sm:$0xff] %v12379_v56  ;;  %15756 = vst [vmem:[#allocation220_spill] sm:$0xff] %v12383_v12  ;;  %v12387_v29 = vmul.f32 %v11848_v34, %v15757_v13  ;;  %6352 = vperm.xlu0 %8130, %v6154_v54   ;;  %v5020_v12 = vpop.permute.xlu1 %5019  ;;  %v15762_v13 = vld [vmem:[#allocation242_spill] sm:$0xff]  ;;  %v5031_v43 = vmul.f32 %v11843_v1, %v15766_v48  ;;  %v5707_v33 = vsel %vm87_vm0, %v12365_v58, -inf  ;;  %v5710_v54 = vsel %vm87_vm0, %v12371_v27, -inf  ;;  %v15789_v36 = vld [vmem:[#allocation263_spill] sm:$0xff] }
 0x56a   :  { %15760 = vst [vmem:[#allocation222_spill] sm:$0xff] %v12391_v16  ;;  %v12404_v63 = vmul.f32 %v11848_v34, %v15762_v13  ;;  %v12408_v16 = vmul.f32 %v11843_v1, %v15764_v61  ;;  %v5092_v39 = vmul.f32 %v11843_v1, %v5020_v12  ;;  %v12421_v37 = vadd.f32 %v12340_v47, %v5520_v0  ;;  %v15767_v61 = vld [vmem:[#allocation190_spill] sm:$0xff]  ;;  %v12429_v15 = vpop.permute.xlu0 %4081  ;;  %v15771_v0 = vld [vmem:[#allocation245_spill] sm:$0xff]  ;;  %v15797_v57 = vld [vmem:[#allocation259_spill] sm:$0xff] }
 0x56b   :  { %15758 = vst [vmem:[#allocation221_spill] sm:$0xff] %v12387_v29  ;;  %v5536_v13 = vadd.f32 %v5472_v60, %v5148_v18  ;;  %5379 = vperm.xlu1 %8128, %v15767_v61   ;;  %v5709_v12 = vmax.f32 %v5707_v33, %v5708_v26  ;;  %v12433_v29 = vmul.f32 %v11848_v34, %v15769_v8  ;;  %v5712_v60 = vsel %vm87_vm0, %v12398_v6, -inf  ;;  %v15772_v26 = vld [vmem:[#allocation173_spill] sm:$0xff]  ;;  %v15773_v33 = vld [vmem:[#allocation256_spill] sm:$0xff]  ;;  %v6161_v8 = vld [vmem:[%s14838_s3 + $0x140] sm:$0xff] }
 0x56c   :  { %15763 = vst [vmem:[#allocation223_spill] sm:$0xff] %v12404_v63  ;;  %15765 = vst [vmem:[#allocation224_spill] sm:$0xff] %v12408_v16  ;;  %v15768_v16 = vld [vmem:[#allocation110_spill] sm:$0xff]  ;;  %v5480_v63 = vmul.f32 %v12089_v31, %v12011_v30  ;;  %v5156_v17 = vadd.f32 %v5092_v39, %v12258_v4  ;;  %v5419_v18 = vmul.f32 %v12089_v31, %v15771_v0 }
 0x56d   :  { %v5034_v48 = vmul.f32 %v11843_v1, %v15768_v16  ;;  %15770 = vst [vmem:[#allocation225_spill] sm:$0xff] %v12433_v29  ;;  %v12440_v16 = vadd.f32 %v12340_v47, %v5528_v22  ;;  %6247 = vperm.xlu0 %8130, %v6133_v14   ;;  %v5095_v30 = vadd.f32 %v5031_v43, %v15772_v26  ;;  %v12445_v19 = vpop.permute.xlu1 %5159  ;;  %v15774_v0 = vld [vmem:[#allocation246_spill] sm:$0xff]  ;;  %v15776_v22 = vld [vmem:[#allocation247_spill] sm:$0xff]  ;;  %v5714_v43 = vsel %vm87_vm0, %v12421_v37, -inf }
 0x56e   :  { %v5042_v4 = vmul.f32 %v11843_v1, %v15773_v33  ;;  %v5711_v39 = vmax.f32 %v5709_v12, %v5710_v54  ;;  %v5544_v61 = vadd.f32 %v5480_v63, %v5156_v17  ;;  %v12452_v29 = vmul.f32 %v11848_v34, %v15774_v0  ;;  %v15777_v63 = vld [vmem:[#allocation248_spill] sm:$0xff]  ;;  %v15779_v54 = vld [vmem:[#allocation169_spill] sm:$0xff]  ;;  %v15780_v33 = vld [vmem:[#allocation115_spill] sm:$0xff]  ;;  %v12469_v56 = vpop.permute.xlu0 %4091 }
 0x56f   :  { %v5422_v14 = vmul.f32 %v12089_v31, %v15776_v22  ;;  %v12459_v26 = vadd.f32 %v12340_v47, %v5536_v13  ;;  %5411 = vperm.xlu1 %8128, %v11469_v23   ;;  %v12464_v17 = vmul.f32 %v11848_v34, %v15777_v63  ;;  %v5098_v12 = vadd.f32 %v5034_v48, %v15779_v54  ;;  %v15781_v22 = vld [vmem:[#allocation92_spill] sm:$0xff]  ;;  %v15783_v13 = vld [vmem:[#allocation117_spill] sm:$0xff]  ;;  %v6129_v48 = vld [vmem:[%s14838_s3 + $0x40] sm:$0xff] }
 0x570   :  { %15775 = vst [vmem:[#allocation226_spill] sm:$0xff] %v12452_v29  ;;  %v5038_v0 = vmul.f32 %v11843_v1, %v15780_v33  ;;  %v5713_v29 = vmax.f32 %v5711_v39, %v5712_v60  ;;  %v12473_v51 = vmul.f32 %v11848_v34, %v15781_v22  ;;  %v5040_v20 = vmul.f32 %v11843_v1, %v15783_v13  ;;  %v15784_v60 = vld [vmem:[#allocation94_spill] sm:$0xff]  ;;  %v15785_v33 = vld [vmem:[#allocation181_spill] sm:$0xff]  ;;  %v6134_v13 = vld [vmem:[%s14838_s3 + $0x68] sm:$0xff] }
 0x571   :  { %15778 = vst [vmem:[#allocation227_spill] sm:$0xff] %v12464_v17  ;;  %v5716_v23 = vsel %vm87_vm0, %v12440_v16, -inf  ;;  %v12480_v63 = vadd.f32 %v12340_v47, %v5544_v61  ;;  %6387 = vperm.xlu0 %8130, %v6161_v8   ;;  %v5426_v39 = vmul.f32 %v12089_v31, %v15784_v60  ;;  %v5483_v54 = vadd.f32 %v5419_v18, %v5095_v30  ;;  %v12488_v17 = vpop.permute.xlu1 %5167  ;;  %v15786_v61 = vld [vmem:[#allocation249_spill] sm:$0xff]  ;;  %v15791_v30 = vld [vmem:[#allocation99_spill] sm:$0xff] }
 0x572   :  { %15782 = vst [vmem:[#allocation228_spill] sm:$0xff] %v12473_v51  ;;  %v5106_v22 = vadd.f32 %v5042_v4, %v15785_v33  ;;  %v5715_v51 = vmax.f32 %v5713_v29, %v5714_v43  ;;  %v12495_v8 = vmul.f32 %v11848_v34, %v15786_v61  ;;  %v5428_v44 = vmul.f32 %v12089_v31, %v15788_v11  ;;  %v15792_v33 = vld [vmem:[#allocation177_spill] sm:$0xff]  ;;  %v12507_v61 = vpop.permute.xlu0 %4101 }
 0x573   :  { %v5050_v60 = vmul.f32 %v11843_v1, %v15789_v36  ;;  %v5718_v18 = vsel %vm87_vm0, %v12459_v26, -inf  ;;  %v15790_v29 = vmov 0   ;;  %v5430_v4 = vmul.f32 %v12089_v31, %v15791_v30  ;;  %15793 = vst [vmem:[#allocation230_spill] sm:$0xff] %v12507_v61  ;;  %v15796_v36 = vld [vmem:[#allocation179_spill] sm:$0xff]  ;;  %v15803_v30 = vld [vmem:[#allocation101_spill] sm:$0xff]  ;;  %v15811_v61 = vld [vmem:[#allocation270_spill] sm:$0xff] }
 0x574   :  { %15787 = vst [vmem:[#allocation229_spill] sm:$0xff] %v12495_v8  ;;  %8131 = vset.pattern.permute.xlu1 %v15790_v29  ;;  %v5486_v43 = vadd.f32 %v5422_v14, %v5098_v12  ;;  %v5102_v40 = vadd.f32 %v5038_v0, %v15792_v33  ;;  %v5717_v46 = vmax.f32 %v5715_v51, %v5716_v23  ;;  %v15794_v8 = vld [vmem:[#allocation250_spill] sm:$0xff]  ;;  %v5720_v29 = vsel %vm87_vm0, %v12480_v63, -inf  ;;  %v6122_v51 = vld [vmem:[%s14838_s3 + $0x8] sm:$0xff]  ;;  %v15799_v12 = vld [vmem:[#allocation108_spill] sm:$0xff] }
 0x575   :  { %6227 = vperm.xlu1 %8131, %v6129_v48   ;;  %v12511_v11 = vmul.f32 %v11848_v34, %v15794_v8  ;;  %v5104_v52 = vadd.f32 %v5040_v20, %v15796_v36  ;;  %v5046_v7 = vmul.f32 %v11843_v1, %v15797_v57  ;;  %6252 = vperm.xlu0 %8130, %v6134_v13   ;;  %v12526_v20 = vpop.permute.xlu1 %5171  ;;  %v6162_v57 = vld [vmem:[%s14838_s3 + $0x148] sm:$0xff] }
 0x576   :  { %v12522_v14 = vadd.f32 %v12340_v47, %v5483_v54  ;;  %v5032_v0 = vmul.f32 %v11843_v1, %v15799_v12  ;;  %v5494_v23 = vadd.f32 %v5430_v4, %v5106_v22  ;;  %v5719_v48 = vmax.f32 %v5717_v46, %v5718_v18  ;;  %15800 = vst [vmem:[#allocation231_spill] sm:$0xff] %v12526_v20  ;;  %v15801_v8 = vld [vmem:[#allocation251_spill] sm:$0xff]  ;;  %v15805_v54 = vld [vmem:[#allocation261_spill] sm:$0xff]  ;;  %v15806_v12 = vld [vmem:[#allocation176_spill] sm:$0xff] }
 0x577   :  { %15795 = vst [vmem:[#allocation257_spill] sm:$0xff] %v12511_v11  ;;  %v12533_v13 = vmul.f32 %v11848_v34, %v15801_v8  ;;  %v12537_v33 = vmul.f32 %v11848_v34, %v15803_v30  ;;  %v5048_v36 = vmul.f32 %v11843_v1, %v15805_v54  ;;  %v5114_v22 = vadd.f32 %v5050_v60, %v15806_v12  ;;  %v15807_v46 = vld [vmem:[#allocation103_spill] sm:$0xff]  ;;  %v12549_v8 = vpop.permute.xlu0 %4111  ;;  %v15819_v12 = vld [vmem:[#allocation268_spill] sm:$0xff] }
 0x578   :  { %15798 = vst [vmem:[#allocation164_spill] sm:$0xff] %v12522_v14  ;;  %v5434_v18 = vmul.f32 %v12089_v31, %v15807_v46  ;;  %v12545_v4 = vadd.f32 %v12340_v47, %v5486_v43  ;;  %v5490_v11 = vadd.f32 %v5426_v39, %v5102_v40  ;;  %v12547_v20 = vmax.f32 %v5719_v48, %v5720_v29  ;;  %v6137_v43 = vld [vmem:[%s14838_s3 + $0x80] sm:$0xff]  ;;  %v15812_v40 = vld [vmem:[#allocation252_spill] sm:$0xff] }
 0x579   :  { %15802 = vst [vmem:[#allocation232_spill] sm:$0xff] %v12533_v13  ;;  %15804 = vst [vmem:[#allocation233_spill] sm:$0xff] %v12537_v33  ;;  %6192 = vperm.xlu1 %8131, %v6122_v51   ;;  %v15809_v13 = vld [vmem:[#allocation253_spill] sm:$0xff]  ;;  %v5492_v30 = vadd.f32 %v5428_v44, %v5104_v52  ;;  %v15810_v33 = vld [vmem:[#allocation182_spill] sm:$0xff]  ;;  %v5058_v60 = vmul.f32 %v11843_v1, %v15811_v61  ;;  %6392 = vperm.xlu0 %8130, %v6162_v57   ;;  %v12567_v44 = vpop.permute.xlu1 %5179  ;;  %v12574_v52 = vsel %vm87_vm0, %v12522_v14, -inf }
 0x57a   :  { %15808 = vst [vmem:[#allocation234_spill] sm:$0xff] %v12545_v4  ;;  %v5438_v34 = vmul.f32 %v12089_v31, %v15809_v13  ;;  %v5110_v54 = vadd.f32 %v5046_v7, %v15810_v33  ;;  %v5436_v39 = vmul.f32 %v12089_v31, %v15812_v40  ;;  %v15813_v29 = vld [vmem:[#allocation150_spill] sm:$0xff]  ;;  %v12565_v51 = vadd.f32 %v12340_v47, %v5494_v23  ;;  %v6155_v7 = vld [vmem:[%s14838_s3 + $0x110] sm:$0xff]  ;;  %v15820_v40 = vld [vmem:[#allocation113_spill] sm:$0xff] }
 0x57b   :  { %v12562_v48 = vadd.f32 %v5032_v0, %v15813_v29  ;;  %15815 = vst [vmem:[#allocation235_spill] sm:$0xff] %v12567_v44  ;;  %15816 = vst [vmem:[#allocation236_spill] sm:$0xff] %v12574_v52  ;;  %v15817_v61 = vld [vmem:[#allocation174_spill] sm:$0xff]  ;;  %v5056_v23 = vmul.f32 %v11843_v1, %v15819_v12  ;;  %v12583_v46 = vsel %vm87_vm0, %v12545_v4, -inf  ;;  %v5442_v29 = vmul.f32 %v12089_v31, %v15820_v40  ;;  %v12590_v14 = vpop.permute.xlu0 %4121  ;;  %v15825_v40 = vld [vmem:[#allocation255_spill] sm:$0xff] }
 0x57c   :  { %15814 = vst [vmem:[#allocation264_spill] sm:$0xff] %v12565_v51  ;;  %v5112_v57 = vadd.f32 %v5048_v36, %v15817_v61  ;;  %v5502_v13 = vadd.f32 %v5438_v34, %v5114_v22  ;;  %v15818_v33 = vld [vmem:[#allocation266_spill] sm:$0xff]  ;;  %v12588_v44 = vadd.f32 %v12340_v47, %v5490_v11  ;;  %15822 = vst [vmem:[#allocation5_spill] sm:$0xff] %v12590_v14  ;;  %v6123_v11 = vld [vmem:[%s14838_s3 + $0x10] sm:$0xff] }
 0x57d   :  { %v5054_v0 = vmul.f32 %v11843_v1, %v15818_v33  ;;  %6267 = vperm.xlu1 %8131, %v6137_v43   ;;  %v5743_v36 = vsub.f32 %v12365_v58, %v12547_v20  ;;  %v15823_v22 = vld [vmem:[#allocation254_spill] sm:$0xff]  ;;  %v12597_v61 = vadd.f32 %v12340_v47, %v5492_v30  ;;  %v5498_v33 = vadd.f32 %v5434_v18, %v5110_v54  ;;  %v12607_v4 = vpop.permute.xlu1 %5187  ;;  %v6142_v30 = vld [vmem:[%s14838_s3 + $0xa8] sm:$0xff] }
 0x57e   :  { %15821 = vst [vmem:[#allocation237_spill] sm:$0xff] %v12588_v44  ;;  %v5444_v34 = vmul.f32 %v12089_v31, %v15823_v22  ;;  %v5122_v12 = vadd.f32 %v5058_v60, %v12117_v55  ;;  %6357 = vperm.xlu0 %8130, %v6155_v7   ;;  %v5446_v43 = vmul.f32 %v12089_v31, %v15825_v40  ;;  %v5678_v58 = vsel %vm87_vm0, %v12565_v51, -inf  ;;  %v15828_v7 = vld [vmem:[#allocation186_spill] sm:$0xff]  ;;  %v15829_v40 = vld [vmem:[#allocation188_spill] sm:$0xff] }
 0x57f   :  { %15824 = vst [vmem:[#allocation238_spill] sm:$0xff] %v12597_v61  ;;  %15826 = vst [vmem:[#allocation239_spill] sm:$0xff] %v12607_v4  ;;  %v5751_v55 = vsub.f32 %v12345_v38, %v12547_v20  ;;  %v5759_v18 = vsub.f32 %v12371_v27, %v12547_v20  ;;  %v5500_v54 = vadd.f32 %v5436_v39, %v5112_v57  ;;  %v12625_v14 = vsel %vm87_vm0, %v12588_v44, -inf  ;;  %v12627_v4 = vpop.permute.xlu0 %4131  ;;  %v15831_v39 = vld [vmem:[#allocation258_spill] sm:$0xff]  ;;  %v15853_v44 = vld [vmem:[#allocation272_spill] sm:$0xff] }
 0x580   :  { %v12617_v60 = vadd.f32 %v12340_v47, %v5502_v13  ;;  %v5118_v22 = vadd.f32 %v5054_v0, %v15828_v7  ;;  %v5120_v51 = vadd.f32 %v5056_v23, %v15829_v40  ;;  %v5767_v52 = vsub.f32 %v12398_v6, %v12547_v20  ;;  %15830 = vst [vmem:[#allocation241_spill] sm:$0xff] %v12627_v4  ;;  %v6145_v23 = vld [vmem:[%s14838_s3 + $0xc0] sm:$0xff] }
 0x581   :  { %6197 = vperm.xlu1 %8131, %v6123_v11   ;;  %v5813_v38 = vmul.f32 1.442695, %v5743_v36  ;;  %v5829_v27 = vmul.f32 1.442695, %v5751_v55  ;;  %v12631_v57 = vmul.f32 %v12089_v31, %v15831_v39  ;;  %v12634_v13 = vadd.f32 %v12340_v47, %v5498_v33  ;;  %v12646_v55 = vpop.permute.xlu1 %5195  ;;  %v6170_v33 = vld [vmem:[%s14838_s3 + $0x188] sm:$0xff] }
 0x582   :  { %15827 = vst [vmem:[#allocation240_spill] sm:$0xff] %v12617_v60  ;;  %v5510_v0 = vadd.f32 %v5446_v43, %v5122_v12  ;;  %v12638_v6 = vsel %vm87_vm0, %v12597_v61, -inf  ;;  %6292 = vperm.xlu0 %8130, %v6142_v30   ;;  %v5679_v36 = vmax.f32 %v12583_v46, %v5678_v58  ;;  %v5775_v11 = vsub.f32 %v12421_v37, %v12547_v20  ;;  %v15834_v46 = vld [vmem:[#allocation273_spill] sm:$0xff] }
 0x583   :  { %15832 = vst [vmem:[#allocation167_spill] sm:$0xff] %v12634_v13  ;;  %8132 = vpow2.f32 %v5813_v38  ;;  %v5845_v12 = vmul.f32 1.442695, %v5759_v18  ;;  %v12652_v43 = vadd.f32 %v12340_v47, %v5500_v54  ;;  %v5680_v30 = vsel %vm87_vm0, %v12617_v60, -inf  ;;  %v12660_v39 = vpop.permute.xlu0 %4141  ;;  %v15836_v54 = vld [vmem:[#allocation260_spill] sm:$0xff] }
 0x584   :  { %v5506_v7 = vadd.f32 %v5442_v29, %v5118_v22  ;;  %v5508_v40 = vadd.f32 %v5444_v34, %v5120_v51  ;;  %v5062_v58 = vmul.f32 %v11843_v1, %v15834_v46  ;;  %v5783_v37 = vsub.f32 %v12440_v16, %v12547_v20  ;;  %15835 = vst [vmem:[#allocation243_spill] sm:$0xff] %v12660_v39  ;;  %v15837_v51 = vld [vmem:[#allocation262_spill] sm:$0xff]  ;;  %v6132_v16 = vld [vmem:[%s14838_s3 + $0x58] sm:$0xff] }
 0x585   :  { %15833 = vst [vmem:[#allocation242_spill] sm:$0xff] %v12652_v43  ;;  %6307 = vperm.xlu1 %8131, %v6145_v23   ;;  %8134 = vpow2.f32 %v5829_v27  ;;  %v5861_v38 = vmul.f32 1.442695, %v5767_v52  ;;  %v12664_v18 = vsel %vm87_vm0, %v12634_v13, -inf  ;;  %v12668_v60 = vmul.f32 %v12089_v31, %v15836_v54  ;;  %v15839_v52 = vld [vmem:[#allocation277_spill] sm:$0xff]  ;;  %v12682_v46 = vpop.permute.xlu1 %5203  ;;  %v6135_v54 = vld [vmem:[%s14838_s3 + $0x70] sm:$0xff] }
 0x586   :  { %v5454_v29 = vmul.f32 %v12089_v31, %v15837_v51  ;;  %v12673_v34 = vadd.f32 %v12340_v47, %v5510_v0  ;;  %6432 = vperm.xlu0 %8130, %v6170_v33   ;;  %v5066_v22 = vmul.f32 %v11843_v1, %v15839_v52  ;;  %v5791_v27 = vsub.f32 %v12459_v26, %v12547_v20  ;;  %v15840_v51 = vld [vmem:[#allocation265_spill] sm:$0xff] }
 0x587   :  { %v5877_v23 = vmul.f32 1.442695, %v5775_v11  ;;  %8136 = vpow2.f32 %v5845_v12  ;;  %v12689_v0 = vsel %vm87_vm0, %v12652_v43, -inf  ;;  %v12691_v33 = vmax.f32 %v5679_v36, %v5680_v30  ;;  %v12704_v12 = vpop.permute.xlu0 %4151  ;;  %v15844_v43 = vld [vmem:[#allocation267_spill] sm:$0xff] }
 0x588   :  { %15838 = vst [vmem:[#allocation106_spill] sm:$0xff] %v12673_v34  ;;  %v12695_v52 = vmul.f32 %v12089_v31, %v15840_v51  ;;  %v12698_v26 = vadd.f32 %v12340_v47, %v5506_v7  ;;  %v12701_v11 = vadd.f32 %v12340_v47, %v5508_v40  ;;  %v5126_v61 = vadd.f32 %v5062_v58, %v12136_v24  ;;  %v15845_v7 = vld [vmem:[#allocation275_spill] sm:$0xff]  ;;  %v6139_v24 = vld [vmem:[%s14838_s3 + $0x90] sm:$0xff] }
 0x589   :  { %v5893_v13 = vmul.f32 1.442695, %v5783_v37  ;;  %15843 = vst [vmem:[#allocation244_spill] sm:$0xff] %v12704_v12  ;;  %6242 = vperm.xlu1 %8131, %v6132_v16   ;;  %8138 = vpow2.f32 %v5861_v38  ;;  %v12708_v36 = vmul.f32 %v12089_v31, %v15844_v43  ;;  %v12712_v30 = vsel %vm87_vm0, %v12673_v34, -inf  ;;  %v15846_v37 = vld [vmem:[#allocation180_spill] sm:$0xff]  ;;  %v12724_v16 = vpop.permute.xlu1 %5211 }
 0x58a   :  { %15841 = vst [vmem:[#allocation190_spill] sm:$0xff] %v12698_v26  ;;  %15842 = vst [vmem:[#allocation110_spill] sm:$0xff] %v12701_v11  ;;  %v5064_v51 = vmul.f32 %v11843_v1, %v15845_v7  ;;  %v5799_v40 = vsub.f32 %v12480_v63, %v12547_v20  ;;  %6257 = vperm.xlu0 %8130, %v6135_v54   ;;  %v5130_v58 = vadd.f32 %v5066_v22, %v12147_v25  ;;  %v6163_v7 = vld [vmem:[%s14838_s3 + $0x150] sm:$0xff]  ;;  %v15848_v20 = vld [vmem:[#allocation269_spill] sm:$0xff] }
 0x58b   :  { %v4318_v43 = vmul.f32 %v11838_v62, %v15846_v37  ;;  %8140 = vpow2.f32 %v5877_v23  ;;  %v5909_v38 = vmul.f32 1.442695, %v5791_v27  ;;  %15847 = vst [vmem:[#allocation245_spill] sm:$0xff] %v12724_v16  ;;  %v12731_v63 = vsel %vm87_vm0, %v12698_v26, -inf  ;;  %v15849_v25 = vld [vmem:[#allocation271_spill] sm:$0xff]  ;;  %v12754_v12 = vpop.permute.xlu0 %4161 }
 0x58c   :  { %v12735_v54 = vmul.f32 %v12089_v31, %v15848_v20  ;;  %v12739_v22 = vmul.f32 %v12089_v31, %v15849_v25  ;;  %v15851_v23 = vld [vmem:[#allocation175_spill] sm:$0xff]  ;;  %v12747_v34 = vsel %vm87_vm0, %v12701_v11, -inf  ;;  %v12751_v26 = vmul.f32 %v12089_v31, %v15853_v44  ;;  %15854 = vst [vmem:[#allocation246_spill] sm:$0xff] %v12754_v12  ;;  %v6140_v44 = vld [vmem:[%s14838_s3 + $0x98] sm:$0xff] }
 0x58d   :  { %v5074_v27 = vmul.f32 %v11843_v1, %v15851_v23  ;;  %v12743_v37 = vpop.eup %8132  ;;  %v5514_v20 = vadd.f32 %v12631_v57, %v5126_v61  ;;  %8142 = vpow2.f32 %v5893_v13  ;;  %6277 = vperm.xlu1 %8131, %v6139_v24   ;;  %v15855_v23 = vld [vmem:[#allocation274_spill] sm:$0xff]  ;;  %v5128_v16 = vadd.f32 %v5064_v51, %v12140_v9  ;;  %v15857_v57 = vld [vmem:[#allocation143_spill] sm:$0xff]  ;;  %v12767_v24 = vpop.permute.xlu1 %5219 }
 0x58e   :  { %15850 = vst [vmem:[#allocation173_spill] sm:$0xff] %v12739_v22  ;;  %15852 = vst [vmem:[#allocation256_spill] sm:$0xff] %v12743_v37  ;;  %v5462_v22 = vmul.f32 %v12089_v31, %v15855_v23  ;;  %v5925_v11 = vmul.f32 1.442695, %v5799_v40  ;;  %6397 = vperm.xlu0 %8130, %v6163_v7   ;;  %v5518_v61 = vadd.f32 %v5454_v29, %v5130_v58  ;;  %8144 = vpow2.f32 %v5909_v38  ;;  %v6128_v23 = vld [vmem:[%s14838_s3 + $0x38] sm:$0xff]  ;;  %v15859_v51 = vld [vmem:[#allocation146_spill] sm:$0xff] }
 0x58f   :  { %v12764_v39 = vpop.eup %8134  ;;  %v4706_v13 = vadd.f32 %v15857_v57, %v4318_v43  ;;  %15858 = vst [vmem:[#allocation248_spill] sm:$0xff] %v12767_v24  ;;  %v6019_v9 = vsel %vm87_vm0, %v12743_v37, 0.0  ;;  %v5070_v40 = vmul.f32 %v11843_v1, %v15859_v51  ;;  %v15860_v7 = vld [vmem:[#allocation161_spill] sm:$0xff]  ;;  %v5138_v29 = vadd.f32 %v5074_v27, %v12176_v53  ;;  %v12790_v51 = vpop.permute.xlu0 %4171  ;;  %v15864_v27 = vld [vmem:[#allocation191_spill] sm:$0xff] }
 0x590   :  { %15856 = vst [vmem:[#allocation247_spill] sm:$0xff] %v12764_v39  ;;  %v5072_v25 = vmul.f32 %v11843_v1, %v15860_v7  ;;  %v6020_v58 = vsel %vm87_vm0, %v12764_v39, 0.0  ;;  %v12784_v38 = vadd.f32 %v12340_v47, %v5514_v20  ;;  %v15862_v57 = vld [vmem:[#allocation185_spill] sm:$0xff]  ;;  %v5418_v37 = vmul.f32 %v12089_v31, %v12445_v19  ;;  %15863 = vst [vmem:[#allocation115_spill] sm:$0xff] %v12790_v51 }
 0x591   :  { %v12781_v43 = vpop.eup %8136  ;;  %v5078_v12 = vmul.f32 %v11843_v1, %v15862_v57  ;;  %6282 = vperm.xlu1 %8131, %v6140_v44   ;;  %v6021_v7 = vadd.f32 %v6020_v58, %v6019_v9  ;;  %v5516_v53 = vadd.f32 %v12668_v60, %v5128_v16  ;;  %v5080_v39 = vmul.f32 %v11843_v1, %v15864_v27  ;;  %v6125_v57 = vld [vmem:[%s14838_s3 + $0x20] sm:$0xff]  ;;  %v15867_v16 = vld [vmem:[#allocation152_spill] sm:$0xff]  ;;  %v12808_v9 = vpop.permute.xlu1 %5227 }
 0x592   :  { %15861 = vst [vmem:[#allocation169_spill] sm:$0xff] %v12781_v43  ;;  %8146 = vpow2.f32 %v5925_v11  ;;  %v5420_v20 = vmul.f32 %v12089_v31, %v12488_v17  ;;  %6222 = vperm.xlu0 %8130, %v6128_v23   ;;  %v12803_v19 = vadd.f32 %v12340_v47, %v5518_v61  ;;  %v5082_v60 = vmul.f32 %v11843_v1, %v12163_v32  ;;  %v6150_v17 = vld [vmem:[%s14838_s3 + $0xe8] sm:$0xff] }
 0x593   :  { %v12800_v24 = vpop.eup %8138  ;;  %v5094_v44 = vadd.f32 %v15867_v16, %v4706_v13  ;;  %15868 = vst [vmem:[#allocation94_spill] sm:$0xff] %v12808_v9  ;;  %v6022_v11 = vsel %vm87_vm0, %v12781_v43, 0.0  ;;  %v5134_v23 = vadd.f32 %v5070_v40, %v12159_v2  ;;  %v5136_v58 = vadd.f32 %v5072_v25, %v12167_v45  ;;  %v15870_v13 = vld [vmem:[#allocation276_spill] sm:$0xff]  ;;  %v12828_v43 = vpop.permute.xlu0 %4181 }
 0x594   :  { %15865 = vst [vmem:[#allocation92_spill] sm:$0xff] %v12800_v24  ;;  %15866 = vst [vmem:[#allocation117_spill] sm:$0xff] %v12803_v19  ;;  %v5526_v61 = vadd.f32 %v5462_v22, %v5138_v29  ;;  %v6023_v27 = vadd.f32 %v6022_v11, %v6021_v7  ;;  %v12821_v32 = vsel %vm87_vm0, %v12784_v38, -inf  ;;  %v12825_v16 = vmul.f32 %v12089_v31, %v15870_v13  ;;  %v6147_v25 = vld [vmem:[%s14838_s3 + $0xd0] sm:$0xff] }
 0x595   :  { %v12817_v51 = vpop.eup %8140  ;;  %v5142_v9 = vadd.f32 %v5078_v12, %v12195_v49  ;;  %v5482_v4 = vadd.f32 %v5418_v37, %v5094_v44  ;;  %6207 = vperm.xlu1 %8131, %v6125_v57   ;;  %v12831_v2 = vadd.f32 %v12340_v47, %v5516_v53  ;;  %v5144_v45 = vadd.f32 %v5080_v39, %v12205_v3  ;;  %v15872_v37 = vld [vmem:[#allocation278_spill] sm:$0xff]  ;;  %v12847_v39 = vpop.permute.xlu1 %5235 }
 0x596   :  { %15869 = vst [vmem:[#allocation181_spill] sm:$0xff] %v12817_v51  ;;  %v5484_v22 = vadd.f32 %v5420_v20, %v12562_v48  ;;  %6332 = vperm.xlu0 %8130, %v6150_v17   ;;  %v6024_v40 = vsel %vm87_vm0, %v12800_v24, 0.0  ;;  %v5684_v12 = vsel %vm87_vm0, %v12803_v19, -inf  ;;  %v5470_v29 = vmul.f32 %v12089_v31, %v15872_v37  ;;  %v6178_v48 = vld [vmem:[%s14838_s3 + $0x1c8] sm:$0xff]  ;;  %v15887_v24 = vld [vmem:[#allocation144_spill] sm:$0xff] }
 0x597   :  { %15871 = vst [vmem:[#allocation249_spill] sm:$0xff] %v12831_v2  ;;  %v12840_v49 = vpop.eup %8142  ;;  %v5146_v3 = vadd.f32 %v5082_v60, %v12218_v50  ;;  %v6025_v7 = vadd.f32 %v6024_v40, %v6023_v27  ;;  %v5522_v53 = vadd.f32 %v12695_v52, %v5134_v23  ;;  %v5524_v20 = vadd.f32 %v12735_v54, %v5136_v58  ;;  %v15874_v60 = vld [vmem:[#allocation189_spill] sm:$0xff]  ;;  %v12867_v27 = vpop.permute.xlu0 %4191 }
 0x598   :  { %v12855_v57 = vadd.f32 %v12340_v47, %v5526_v61  ;;  %v6026_v44 = vsel %vm87_vm0, %v12817_v51, 0.0  ;;  %v12859_v17 = vpop.eup %8144  ;;  %v5530_v50 = vadd.f32 %v12708_v36, %v5142_v9  ;;  %v4321_v11 = vmul.f32 %v11838_v62, %v15874_v60  ;;  %v6126_v36 = vld [vmem:[%s14838_s3 + $0x28] sm:$0xff] }
 0x599   :  { %v12865_v13 = vadd.f32 %v12340_v47, %v5482_v4  ;;  %6317 = vperm.xlu1 %8131, %v6147_v25   ;;  %v6027_v52 = vadd.f32 %v6026_v44, %v6025_v7  ;;  %v5532_v54 = vadd.f32 %v12751_v26, %v5144_v45  ;;  %v4323_v23 = vmul.f32 %v11838_v62, %v12153_v41  ;;  %v12886_v41 = vpop.permute.xlu1 %5243  ;;  %v6157_v45 = vld [vmem:[%s14838_s3 + $0x120] sm:$0xff]  ;;  %v15880_v7 = vld [vmem:[#allocation149_spill] sm:$0xff] }
 0x59a   :  { %15873 = vst [vmem:[#allocation96_spill] sm:$0xff] %v12855_v57  ;;  %v12873_v58 = vadd.f32 %v12340_v47, %v5484_v22  ;;  %6472 = vperm.xlu0 %8130, %v6178_v48   ;;  %v6028_v4 = vsel %vm87_vm0, %v12840_v49, 0.0  ;;  %v12882_v9 = vsel %vm87_vm0, %v12831_v2, -inf  ;;  %v5534_v61 = vadd.f32 %v5470_v29, %v5146_v3 }
 0x59b   :  { %15875 = vst [vmem:[#allocation263_spill] sm:$0xff] %v12865_v13  ;;  %v4325_v26 = vmul.f32 %v11838_v62, %v12193_v21  ;;  %v6029_v22 = vadd.f32 %v6028_v4, %v6027_v52  ;;  %v15877_v40 = vmax.f32 %v12691_v33, %v12712_v30  ;;  %v12897_v48 = vadd.f32 %v12340_v47, %v5522_v53  ;;  %v12909_v52 = vpop.permute.xlu0 %4201  ;;  %v15883_v53 = vld [vmem:[#allocation153_spill] sm:$0xff] }
 0x59c   :  { %15876 = vst [vmem:[#allocation99_spill] sm:$0xff] %v12873_v58  ;;  %v12891_v25 = vpop.eup %8146  ;;  %v12900_v29 = vadd.f32 %v12340_v47, %v5524_v20  ;;  %v6030_v21 = vsel %vm87_vm0, %v12859_v17, 0.0  ;;  %v5686_v3 = vsel %vm87_vm0, %v12855_v57, -inf  ;;  %v4709_v44 = vadd.f32 %v15880_v7, %v4321_v11  ;;  %v6148_v11 = vld [vmem:[%s14838_s3 + $0xd8] sm:$0xff] }
 0x59d   :  { %v5685_v37 = vmax.f32 %v15877_v40, %v5684_v12  ;;  %15878 = vst [vmem:[#allocation177_spill] sm:$0xff] %v12897_v48  ;;  %v5617_v60 = vsel %vm87_vm0, %v12865_v13, -inf  ;;  %6212 = vperm.xlu1 %8131, %v6126_v36   ;;  %v6031_v33 = vadd.f32 %v6030_v21, %v6029_v22  ;;  %v12912_v30 = vadd.f32 %v12340_v47, %v5530_v50  ;;  %v15884_v40 = vld [vmem:[#allocation156_spill] sm:$0xff]  ;;  %v15886_v22 = vld [vmem:[#allocation157_spill] sm:$0xff]  ;;  %v12933_v21 = vpop.permute.xlu1 %5251 }
 0x59e   :  { %15879 = vst [vmem:[#allocation250_spill] sm:$0xff] %v12900_v29  ;;  %v12915_v12 = vadd.f32 %v12340_v47, %v5532_v54  ;;  %v4711_v20 = vadd.f32 %v15883_v53, %v4323_v23  ;;  %v5647_v4 = vsel %vm87_vm0, %v12873_v58, -inf  ;;  %6367 = vperm.xlu0 %8130, %v6157_v45   ;;  %v12925_v36 = vmul.f32 %v12089_v31, %v15884_v40  ;;  %v6144_v45 = vld [vmem:[%s14838_s3 + $0xb8] sm:$0xff] }
 0x59f   :  { %15881 = vst [vmem:[#allocation179_spill] sm:$0xff] %v12912_v30  ;;  %v12928_v50 = vadd.f32 %v12340_v47, %v5534_v61  ;;  %v4713_v54 = vadd.f32 %v15886_v22, %v4325_v26  ;;  %v6032_v23 = vsel %vm87_vm0, %v12891_v25, 0.0  ;;  %v12940_v7 = vsel %vm87_vm0, %v12897_v48, -inf  ;;  %v12951_v19 = vpop.permute.xlu0 %4211 }
 0x5a0   :  { %15882 = vst [vmem:[#allocation259_spill] sm:$0xff] %v12915_v12  ;;  %v4327_v53 = vmul.f32 %v11838_v62, %v12241_v10  ;;  %v5619_v61 = vmax.f32 %v5617_v60, %v12625_v14  ;;  %v6033_v40 = vadd.f32 %v6032_v23, %v6031_v33  ;;  %v12947_v26 = vsel %vm87_vm0, %v12900_v29, -inf  ;;  %v15888_v60 = vld [vmem:[#allocation145_spill] sm:$0xff]  ;;  %v15889_v33 = vld [vmem:[#allocation147_spill] sm:$0xff] }
 0x5a1   :  { %15885 = vst [vmem:[#allocation108_spill] sm:$0xff] %v12928_v50  ;;  %v5687_v22 = vmax.f32 %v5685_v37, %v5686_v3  ;;  %v5649_v51 = vmax.f32 %v5647_v4, %v12638_v6  ;;  %v5097_v57 = vadd.f32 %v15887_v24, %v4709_v44  ;;  %6322 = vperm.xlu1 %8131, %v6148_v11   ;;  %v12955_v2 = vsel %vm87_vm0, %v12912_v30, -inf  ;;  %v6141_v6 = vld [vmem:[%s14838_s3 + $0xa0] sm:$0xff]  ;;  %v12974_v11 = vpop.permute.xlu1 %5259  ;;  %v15904_v29 = vld [vmem:[#allocation183_spill] sm:$0xff] }
 0x5a2   :  { %v12959_v10 = vsel %vm87_vm0, %v12915_v12, -inf  ;;  %v4329_v14 = vmul.f32 %v11838_v62, %v12292_v42  ;;  %v5099_v37 = vadd.f32 %v15888_v60, %v4711_v20  ;;  %6302 = vperm.xlu0 %8130, %v6144_v45   ;;  %v5688_v24 = vsel %vm87_vm0, %v12928_v50, -inf  ;;  %v6172_v42 = vld [vmem:[%s14838_s3 + $0x198] sm:$0xff]  ;;  %v15890_v20 = vld [vmem:[#allocation171_spill] sm:$0xff]  ;;  %v15897_v12 = vld [vmem:[#allocation214_spill] sm:$0xff] }
 0x5a3   :  { %v5086_v3 = vmul.f32 %v11843_v1, %v12252_v5  ;;  %v4331_v44 = vmul.f32 %v11838_v62, %v12342_v28  ;;  %v5101_v4 = vadd.f32 %v15889_v33, %v4713_v54  ;;  %v4715_v23 = vadd.f32 %v15890_v20, %v4327_v53  ;;  %v12990_v50 = vpop.permute.xlu0 %4221  ;;  %v15891_v53 = vld [vmem:[#allocation165_spill] sm:$0xff] }
 0x5a4   :  { %v5088_v45 = vmul.f32 %v11843_v1, %v12299_v35  ;;  %v5621_v60 = vmax.f32 %v5619_v61, %v12664_v18  ;;  %8148 = vrcp.f32 %v6033_v40  ;;  %v4333_v5 = vmul.f32 %v11838_v62, %v12393_v59  ;;  %v15892_v35 = vld [vmem:[#allocation230_spill] sm:$0xff]  ;;  %v15893_v61 = vld [vmem:[#allocation231_spill] sm:$0xff] }
 0x5a5   :  { %v4335_v28 = vmul.f32 %v11838_v62, %v12429_v15  ;;  %v4337_v54 = vmul.f32 %v11838_v62, %v12469_v56  ;;  %v5651_v33 = vmax.f32 %v5649_v51, %v12689_v0  ;;  %6287 = vperm.xlu1 %8131, %v6141_v6   ;;  %v4717_v20 = vadd.f32 %v15891_v53, %v4329_v14  ;;  %v6169_v15 = vld [vmem:[%s14838_s3 + $0x180] sm:$0xff]  ;;  %v15895_v56 = vld [vmem:[#allocation196_spill] sm:$0xff] }
 0x5a6   :  { %v4339_v18 = vmul.f32 %v11838_v62, %v15892_v35  ;;  %v5421_v40 = vmul.f32 %v12089_v31, %v15893_v61  ;;  %6442 = vperm.xlu0 %8130, %v6172_v42   ;;  %v13000_v59 = vmax.f32 %v5687_v22, %v5688_v24  ;;  %v13003_v0 = vadd.f32 %v5086_v3, %v15895_v56  ;;  %v15896_v51 = vld [vmem:[#allocation168_spill] sm:$0xff]  ;;  %v13010_v35 = vpop.permute.xlu1 %5267  ;;  %v6165_v42 = vld [vmem:[%s14838_s3 + $0x160] sm:$0xff]  ;;  %v15898_v61 = vld [vmem:[#allocation205_spill] sm:$0xff] }
 0x5a7   :  { %v4719_v6 = vadd.f32 %v15896_v51, %v4331_v44  ;;  %v5090_v14 = vmul.f32 %v11843_v1, %v15897_v12  ;;  %v4341_v53 = vmul.f32 %v11838_v62, %v12549_v8  ;;  %v13016_v22 = vadd.f32 %v5088_v45, %v15898_v61  ;;  %v15900_v3 = vld [vmem:[#allocation235_spill] sm:$0xff]  ;;  %v15901_v56 = vld [vmem:[#allocation148_spill] sm:$0xff]  ;;  %v15902_v1 = vld [vmem:[#allocation170_spill] sm:$0xff]  ;;  %v13026_v48 = vpop.permute.xlu0 %4231 }
 0x5a8   :  { %15894 = vst [vmem:[#allocation251_spill] sm:$0xff] %v13000_v59  ;;  %v5623_v24 = vmax.f32 %v5621_v60, %v12731_v63  ;;  %v5423_v44 = vmul.f32 %v12089_v31, %v15900_v3  ;;  %v5103_v51 = vadd.f32 %v15901_v56, %v4715_v23  ;;  %v4721_v12 = vadd.f32 %v15902_v1, %v4333_v5  ;;  %v15903_v59 = vld [vmem:[#allocation172_spill] sm:$0xff]  ;;  %v15905_v45 = vld [vmem:[#allocation178_spill] sm:$0xff]  ;;  %v15906_v63 = vld [vmem:[#allocation239_spill] sm:$0xff] }
 0x5a9   :  { %15899 = vst [vmem:[#allocation101_spill] sm:$0xff] %v13016_v22  ;;  %v4723_v8 = vadd.f32 %v15903_v59, %v4335_v28  ;;  %v4725_v58 = vadd.f32 %v15904_v29, %v4337_v54  ;;  %v5653_v30 = vmax.f32 %v5651_v33, %v12747_v34  ;;  %6427 = vperm.xlu1 %8131, %v6169_v15   ;;  %v15907_v3 = vld [vmem:[#allocation151_spill] sm:$0xff]  ;;  %v6156_v23 = vld [vmem:[%s14838_s3 + $0x118] sm:$0xff]  ;;  %v15909_v34 = vld [vmem:[#allocation192_spill] sm:$0xff] }
 0x5aa   :  { %v4727_v61 = vadd.f32 %v15905_v45, %v4339_v18  ;;  %v5485_v22 = vadd.f32 %v5421_v40, %v5097_v57  ;;  %v5425_v60 = vmul.f32 %v12089_v31, %v15906_v63  ;;  %v5105_v13 = vadd.f32 %v15907_v3, %v4717_v20  ;;  %6407 = vperm.xlu0 %8130, %v6165_v42   ;;  %v15908_v5 = vld [vmem:[#allocation199_spill] sm:$0xff]  ;;  %v15910_v33 = vld [vmem:[#allocation154_spill] sm:$0xff]  ;;  %v13042_v18 = vpop.permute.xlu1 %5275  ;;  %v6152_v20 = vld [vmem:[%s14838_s3 + $0xf8] sm:$0xff] }
 0x5ab   :  { %v13036_v29 = vadd.f32 %v5090_v14, %v15908_v5  ;;  %v4729_v28 = vadd.f32 %v15909_v34, %v4341_v53  ;;  %v5427_v54 = vmul.f32 %v12089_v31, %v12646_v55  ;;  %v5107_v57 = vadd.f32 %v15910_v33, %v4719_v6  ;;  %v15911_v59 = vld [vmem:[#allocation5_spill] sm:$0xff]  ;;  %v15912_v55 = vld [vmem:[#allocation155_spill] sm:$0xff]  ;;  %v15913_v6 = vld [vmem:[#allocation158_spill] sm:$0xff]  ;;  %v13058_v3 = vpop.permute.xlu0 %4241 }
 0x5ac   :  { %v5625_v40 = vmax.f32 %v5623_v24, %v12821_v32  ;;  %v5487_v15 = vadd.f32 %v5423_v44, %v5099_v37  ;;  %v4343_v14 = vmul.f32 %v11838_v62, %v15911_v59  ;;  %v5429_v53 = vmul.f32 %v12089_v31, %v12682_v46  ;;  %v15914_v45 = vld [vmem:[#allocation159_spill] sm:$0xff]  ;;  %v15916_v44 = vld [vmem:[#allocation241_spill] sm:$0xff]  ;;  %v15920_v34 = vld [vmem:[#allocation162_spill] sm:$0xff] }
 0x5ad   :  { %v5655_v42 = vmax.f32 %v5653_v30, %v12882_v9  ;;  %v5109_v56 = vadd.f32 %v15912_v55, %v4721_v12  ;;  %v5111_v1 = vadd.f32 %v15913_v6, %v4723_v8  ;;  %v13056_v63 = vadd.f32 %v15914_v45, %v4725_v58  ;;  %6362 = vperm.xlu1 %8131, %v6156_v23   ;;  %v15917_v9 = vld [vmem:[#allocation160_spill] sm:$0xff]  ;;  %v15918_v8 = vld [vmem:[#allocation243_spill] sm:$0xff]  ;;  %v15919_v5 = vld [vmem:[#allocation245_spill] sm:$0xff] }
 0x5ae   :  { %v13060_v32 = vpop.eup %8148  ;;  %v13063_v37 = vadd.f32 %v12340_v47, %v5485_v22  ;;  %v5489_v24 = vadd.f32 %v5425_v60, %v5101_v4  ;;  %v4345_v46 = vmul.f32 %v11838_v62, %v15916_v44  ;;  %v13068_v30 = vadd.f32 %v15917_v9, %v4727_v61  ;;  %6342 = vperm.xlu0 %8130, %v6152_v20   ;;  %v6127_v58 = vld [vmem:[%s14838_s3 + $0x30] sm:$0xff]  ;;  %v13080_v60 = vpop.permute.xlu1 %5283  ;;  %v6180_v61 = vld [vmem:[%s14838_s3 + $0x1d8] sm:$0xff] }
 0x5af   :  { %15915 = vst [vmem:[#allocation261_spill] sm:$0xff] %v13060_v32  ;;  %v5491_v12 = vadd.f32 %v5427_v54, %v5103_v51  ;;  %v4347_v23 = vmul.f32 %v11838_v62, %v15918_v8  ;;  %v5431_v22 = vmul.f32 %v12089_v31, %v15919_v5  ;;  %v13078_v4 = vadd.f32 %v15920_v34, %v4729_v28  ;;  %v15922_v51 = vld [vmem:[#allocation184_spill] sm:$0xff]  ;;  %v13091_v6 = vpop.permute.xlu0 %4251 }
 0x5b0   :  { %v5627_v33 = vmax.f32 %v5625_v40, %v12940_v7  ;;  %v13087_v20 = vadd.f32 %v12340_v47, %v5487_v15  ;;  %v4731_v54 = vadd.f32 %v15922_v51, %v4343_v14  ;;  %v5493_v59 = vadd.f32 %v5429_v53, %v5105_v13  ;;  %v15927_v13 = vld [vmem:[#allocation187_spill] sm:$0xff]  ;;  %v15928_v15 = vld [vmem:[#allocation244_spill] sm:$0xff] }
 0x5b1   :  { %v5657_v55 = vmax.f32 %v5655_v42, %v12947_v26  ;;  %6217 = vperm.xlu1 %8131, %v6127_v58   ;;  %v13095_v28 = vmul.f32 %v13060_v32, %v12840_v49  ;;  %v13099_v45 = vmul.f32 %v13060_v32, %v12859_v17  ;;  %v13103_v7 = vmul.f32 %v13060_v32, %v12891_v25  ;;  %v15929_v53 = vld [vmem:[#allocation248_spill] sm:$0xff]  ;;  %v6149_v17 = vld [vmem:[%s14838_s3 + $0xe0] sm:$0xff] }
 0x5b2   :  { %15921 = vst [vmem:[#allocation176_spill] sm:$0xff] %v13087_v20  ;;  %v13106_v40 = vadd.f32 %v12340_v47, %v5489_v24  ;;  %v4733_v26 = vadd.f32 %v15927_v13, %v4345_v46  ;;  %v4349_v14 = vmul.f32 %v11838_v62, %v15928_v15  ;;  %v5433_v49 = vmul.f32 %v12089_v31, %v15929_v53  ;;  %v15930_v24 = vld [vmem:[#allocation210_spill] sm:$0xff]  ;;  %v13124_v9 = vpop.permute.xlu1 %5291 }
 0x5b3   :  { %15923 = vst [vmem:[#allocation103_spill] sm:$0xff] %v13095_v28  ;;  %15924 = vst [vmem:[#allocation253_spill] sm:$0xff] %v13099_v45  ;;  %6482 = vperm.xlu0 %8130, %v6180_v61   ;;  %v13118_v25 = vsel %vm87_vm0, %v13063_v37, -inf  ;;  %v13121_v42 = vadd.f32 %v12340_v47, %v5491_v12  ;;  %v4735_v44 = vadd.f32 %v15930_v24, %v4347_v23  ;;  %v6173_v58 = vld [vmem:[%s14838_s3 + $0x1a0] sm:$0xff]  ;;  %v13134_v5 = vsel %vm87_vm0, %v13087_v20, -inf  ;;  %v13149_v13 = vpop.permute.xlu0 %4261 }
 0x5b4   :  { %15925 = vst [vmem:[#allocation182_spill] sm:$0xff] %v13103_v7  ;;  %15926 = vst [vmem:[#allocation270_spill] sm:$0xff] %v13106_v40  ;;  %v5495_v46 = vadd.f32 %v5431_v22, %v5107_v57  ;;  %v13130_v8 = vmax.f32 %v5627_v33, %v12955_v2  ;;  %v13137_v34 = vadd.f32 %v12340_v47, %v5493_v59  ;;  %v15931_v12 = vld [vmem:[#allocation94_spill] sm:$0xff]  ;;  %v15933_v33 = vld [vmem:[#allocation163_spill] sm:$0xff]  ;;  %v13153_v59 = vsel %vm87_vm0, %v13106_v40, -inf }
 0x5b5   :  { %v5435_v23 = vmul.f32 %v12089_v31, %v15931_v12  ;;  %v13142_v57 = vmax.f32 %v5657_v55, %v12959_v10  ;;  %v15932_v22 = vld [vmem:[#allocation246_spill] sm:$0xff]  ;;  %v5437_v2 = vmul.f32 %v12089_v31, %v12847_v39  ;;  %v5119_v51 = vadd.f32 %v15933_v33, %v4731_v54  ;;  %6327 = vperm.xlu1 %8131, %v6149_v17   ;;  %v15937_v12 = vld [vmem:[#allocation115_spill] sm:$0xff]  ;;  %v15946_v40 = vld [vmem:[#allocation221_spill] sm:$0xff] }
 0x5b6   :  { %v4351_v61 = vmul.f32 %v11838_v62, %v15932_v22  ;;  %v15934_v15 = vld [vmem:[#allocation202_spill] sm:$0xff]  ;;  %v5497_v24 = vadd.f32 %v5433_v49, %v5109_v56  ;;  %v13164_v54 = vsel %vm87_vm0, %v13121_v42, -inf  ;;  %v13167_v17 = vadd.f32 %v12340_v47, %v5495_v46  ;;  %v6174_v49 = vld [vmem:[%s14838_s3 + $0x1a8] sm:$0xff] }
 0x5b7   :  { %v4737_v53 = vadd.f32 %v15934_v15, %v4349_v14  ;;  %v15935_v10 = vld [vmem:[#allocation166_spill] sm:$0xff]  ;;  %6447 = vperm.xlu0 %8130, %v6173_v58   ;;  %v4353_v22 = vmul.f32 %v11838_v62, %v15937_v12  ;;  %v15938_v14 = vld [vmem:[#allocation193_spill] sm:$0xff]  ;;  %v13181_v58 = vsel %vm87_vm0, %v13137_v34, -inf  ;;  %v5499_v33 = vadd.f32 %v5435_v23, %v5111_v1  ;;  %v13193_v45 = vpop.permute.xlu0 %4271  ;;  %v15940_v1 = vld [vmem:[#allocation236_spill] sm:$0xff] }
 0x5b8   :  { %v13157_v55 = vadd.f32 %v15935_v10, %v4733_v26  ;;  %v6177_v39 = vld [vmem:[%s14838_s3 + $0x1c0] sm:$0xff]  ;;  %15936 = vst [vmem:[#allocation252_spill] sm:$0xff] %v13167_v17  ;;  %v13172_v56 = vadd.f32 %v15938_v14, %v4735_v44  ;;  %v13174_v26 = vpop.permute.xlu1 %5299  ;;  %v5439_v46 = vmul.f32 %v12089_v31, %v12886_v41  ;;  %v4361_v15 = vmul.f32 %v11838_v62, %v12951_v19  ;;  %v15939_v10 = vld [vmem:[#allocation204_spill] sm:$0xff] }
 0x5b9   :  { %v4739_v44 = vadd.f32 %v15939_v10, %v4351_v61  ;;  %v5501_v12 = vadd.f32 %v5437_v2, %v13056_v63  ;;  %v5441_v14 = vmul.f32 %v12089_v31, %v12933_v21  ;;  %v5443_v7 = vmul.f32 %v12089_v31, %v12974_v11  ;;  %6467 = vperm.xlu1 %8131, %v6177_v39   ;;  %v15942_v61 = vld [vmem:[#allocation194_spill] sm:$0xff]  ;;  %v6136_v21 = vld [vmem:[%s14838_s3 + $0x78] sm:$0xff]  ;;  %v15944_v10 = vld [vmem:[#allocation219_spill] sm:$0xff] }
 0x5ba   :  { %v5634_v23 = vmax.f32 %v15940_v1, %v13164_v54  ;;  %v13198_v41 = vadd.f32 %v12340_v47, %v5497_v24  ;;  %v4363_v19 = vmul.f32 %v11838_v62, %v12990_v50  ;;  %v13203_v63 = vadd.f32 %v15942_v61, %v4737_v53  ;;  %v15943_v24 = vld [vmem:[#allocation206_spill] sm:$0xff] }
 0x5bb   :  { %6452 = vperm.xlu0 %8130, %v6174_v49   ;;  %v5664_v11 = vmax.f32 %v13118_v25, %v13181_v58  ;;  %v13212_v2 = vsel %vm87_vm0, %v13167_v17, -inf  ;;  %v4741_v39 = vadd.f32 %v15943_v24, %v4353_v22  ;;  %v4355_v50 = vmul.f32 %v11838_v62, %v12828_v43  ;;  %v6181_v53 = vld [vmem:[%s14838_s3 + $0x1e0] sm:$0xff]  ;;  %v15945_v24 = vld [vmem:[#allocation195_spill] sm:$0xff]  ;;  %v4282_v32 = vpop.permute.xlu0 %4281 }
 0x5bc   :  { %15941 = vst [vmem:[#allocation150_spill] sm:$0xff] %v13198_v41  ;;  %v13217_v54 = vpop.permute.xlu1 %5307  ;;  %v13223_v49 = vadd.f32 %v12340_v47, %v5499_v33  ;;  %v4357_v25 = vmul.f32 %v11838_v62, %v12867_v27  ;;  %v5503_v58 = vadd.f32 %v5439_v46, %v13068_v30  ;;  %v4749_v1 = vadd.f32 %v15944_v10, %v4361_v15  ;;  %v13275_v10 = vld [vmem:[%s14839_s16] ss:$0 sm:$0xff] }
 0x5bd   :  { %v13230_v22 = vadd.f32 %v12340_v47, %v5501_v12  ;;  %v5505_v43 = vadd.f32 %v5441_v14, %v13078_v4  ;;  %v5507_v61 = vadd.f32 %v5443_v7, %v5119_v51  ;;  %v13234_v28 = vadd.f32 %v15945_v24, %v4739_v44  ;;  %6262 = vperm.xlu1 %8131, %v6136_v21   ;;  %v6164_v4 = vld [vmem:[%s14838_s3 + $0x158] sm:$0xff] }
 0x5be   :  { %v5723_v33 = vsel %vm87_vm0, %v13198_v41, -inf  ;;  %v4751_v27 = vadd.f32 %v15946_v40, %v4363_v19  ;;  %v5445_v30 = vmul.f32 %v12089_v31, %v13010_v35  ;;  %v4365_v46 = vmul.f32 %v11838_v62, %v13026_v48  ;;  %v15947_v51 = vld [vmem:[#allocation209_spill] sm:$0xff]  ;;  %v15948_v40 = vld [vmem:[#allocation203_spill] sm:$0xff] }
 0x5bf   :  { %6487 = vperm.xlu0 %8130, %v6181_v53   ;;  %v5694_v7 = vmax.f32 %v13134_v5, %v13212_v2  ;;  %v4743_v15 = vadd.f32 %v15947_v51, %v4355_v50  ;;  %v4359_v44 = vmul.f32 %v11838_v62, %v12909_v52  ;;  %v13252_v12 = vadd.f32 %v15948_v40, %v4741_v39  ;;  %v6182_v48 = vld [vmem:[%s14838_s3 + $0x1e8] sm:$0xff]  ;;  %v15949_v19 = vld [vmem:[#allocation213_spill] sm:$0xff]  ;;  %v15950_v2 = vld [vmem:[#allocation200_spill] sm:$0xff] }
 0x5c0   :  { %v13254_v35 = vpop.permute.xlu1 %5315  ;;  %v5635_v14 = vsel %vm87_vm0, %v13223_v49, -inf  ;;  %v4745_v21 = vadd.f32 %v15949_v19, %v4357_v25  ;;  %v13263_v5 = vadd.f32 %v12340_v47, %v5503_v58  ;;  %v5137_v50 = vadd.f32 %v15950_v2, %v4749_v1  ;;  %v13280_v58 = vpop.permute.xlu0 %4291  ;;  %v15952_v1 = vld [vmem:[#allocation201_spill] sm:$0xff] }
 0x5c1   :  { %v5724_v52 = vmax.f32 %v13153_v59, %v5723_v33  ;;  %v5665_v39 = vsel %vm87_vm0, %v13230_v22, -inf  ;;  %v13270_v53 = vadd.f32 %v12340_v47, %v5505_v43  ;;  %v13278_v25 = vadd.f32 %v13275_v10, %v5507_v61  ;;  %6402 = vperm.xlu1 %8131, %v6164_v4   ;;  %v15953_v33 = vld [vmem:[#allocation223_spill] sm:$0xff]  ;;  %v6143_v43 = vld [vmem:[%s14838_s3 + $0xb0] sm:$0xff]  ;;  %v15954_v61 = vld [vmem:[#allocation217_spill] sm:$0xff] }
 0x5c2   :  { %v5139_v24 = vadd.f32 %v15952_v1, %v4751_v27  ;;  %v5509_v59 = vadd.f32 %v5445_v30, %v13157_v55  ;;  %v4753_v51 = vadd.f32 %v15953_v33, %v4365_v46  ;;  %v5447_v47 = vmul.f32 %v12089_v31, %v13042_v18  ;;  %v15955_v27 = vld [vmem:[#allocation197_spill] sm:$0xff]  ;;  %v15958_v33 = vld [vmem:[#allocation212_spill] sm:$0xff] }
 0x5c3   :  { %15951 = vst [vmem:[#allocation174_spill] sm:$0xff] %v13270_v53  ;;  %6492 = vperm.xlu0 %8130, %v6182_v48   ;;  %v13290_v40 = vmax.f32 %v5634_v23, %v5635_v14  ;;  %v4747_v19 = vadd.f32 %v15954_v61, %v4359_v44  ;;  %v4367_v4 = vmul.f32 %v11838_v62, %v13058_v3  ;;  %v6176_v18 = vld [vmem:[%s14838_s3 + $0x1b8] sm:$0xff]  ;;  %v5695_v46 = vsel %vm87_vm0, %v13263_v5, -inf  ;;  %v15957_v14 = vld [vmem:[#allocation198_spill] sm:$0xff] }
 0x5c4   :  { %v13296_v2 = vadd.f32 %v15955_v27, %v4743_v15  ;;  %v5324_v55 = vpop.permute.xlu1 %5323  ;;  %v13301_v30 = vmax.f32 %v5664_v11, %v5665_v39  ;;  %v15956_v23 = vld [vmem:[#allocation173_spill] sm:$0xff]  ;;  %v13307_v44 = vadd.f32 %v15957_v14, %v4745_v21  ;;  %v5725_v3 = vsel %vm87_vm0, %v13270_v53, -inf  ;;  %v13319_v39 = vpop.permute.xlu0 %4301 }
 0x5c5   :  { %v5525_v48 = vadd.f32 %v15956_v23, %v5137_v50  ;;  %v13313_v15 = vsel %vm87_vm0, %v13278_v25, -inf  ;;  %v5449_v1 = vmul.f32 %v12089_v31, %v13080_v60  ;;  %v5451_v11 = vmul.f32 %v12089_v31, %v13124_v9  ;;  %6297 = vperm.xlu1 %8131, %v6143_v43   ;;  %v6171_v60 = vld [vmem:[%s14838_s3 + $0x190] sm:$0xff]  ;;  %v15959_v23 = vld [vmem:[#allocation225_spill] sm:$0xff]  ;;  %v15960_v43 = vld [vmem:[#allocation207_spill] sm:$0xff] }
 0x5c6   :  { %v5527_v50 = vadd.f32 %v12825_v16, %v5139_v24  ;;  %v13323_v21 = vadd.f32 %v13275_v10, %v5509_v59  ;;  %v5141_v61 = vadd.f32 %v15958_v33, %v4753_v51  ;;  %v5511_v27 = vadd.f32 %v5447_v47, %v13172_v56  ;;  %v6184_v59 = vld [vmem:[%s14838_s3 + $0x1f8] sm:$0xff] }
 0x5c7   :  { %6462 = vperm.xlu0 %8130, %v6176_v18   ;;  %v4755_v14 = vadd.f32 %v15959_v23, %v4367_v4  ;;  %v5453_v9 = vmul.f32 %v12089_v31, %v13174_v26  ;;  %v5135_v41 = vadd.f32 %v15960_v43, %v4747_v19  ;;  %v5459_v16 = vmul.f32 %v12089_v31, %v5324_v55  ;;  %v6151_v43 = vld [vmem:[%s14838_s3 + $0xf0] sm:$0xff] }
 0x5c8   :  { %v5356_v24 = vpop.permute.xlu1 %5355  ;;  %v13338_v56 = vmax.f32 %v5694_v7, %v5695_v46  ;;  %v13340_v51 = vmax.f32 %v5724_v52, %v5725_v3  ;;  %v13343_v47 = vadd.f32 %v13275_v10, %v5525_v48  ;;  %v4375_v4 = vmul.f32 %v11838_v62, %v4282_v32  ;;  %v13351_v33 = vpop.permute.xlu0 %4311  ;;  %v15962_v3 = vld [vmem:[#allocation215_spill] sm:$0xff] }
 0x5c9   :  { %v5638_v26 = vmax.f32 %v13290_v40, %v13313_v15  ;;  %v5513_v19 = vadd.f32 %v5449_v1, %v13203_v63  ;;  %v5515_v55 = vadd.f32 %v5451_v11, %v13234_v28  ;;  %v5467_v18 = vmul.f32 %v12089_v31, %v5356_v24  ;;  %6437 = vperm.xlu1 %8131, %v6171_v60   ;;  %v6158_v28 = vld [vmem:[%s14838_s3 + $0x128] sm:$0xff]  ;;  %v15963_v11 = vld [vmem:[#allocation229_spill] sm:$0xff] }
 0x5ca   :  { %v13354_v7 = vadd.f32 %v13275_v10, %v5527_v50  ;;  %v5667_v52 = vsel %vm87_vm0, %v13323_v21, -inf  ;;  %v5529_v32 = vadd.f32 %v12925_v36, %v5141_v61  ;;  %v13360_v46 = vadd.f32 %v13275_v10, %v5511_v27 }
 0x5cb   :  { %6502 = vperm.xlu0 %8130, %v6184_v59   ;;  %v4369_v63 = vmul.f32 %v11838_v62, %v13091_v6  ;;  %v5517_v40 = vadd.f32 %v5453_v9, %v13252_v12  ;;  %v5523_v48 = vadd.f32 %v5459_v16, %v5135_v41  ;;  %v5143_v15 = vadd.f32 %v15962_v3, %v4755_v14  ;;  %v15966_v16 = vld [vmem:[#allocation226_spill] sm:$0xff] }
 0x5cc   :  { %15961 = vst [vmem:[#allocation266_spill] sm:$0xff] %v13354_v7  ;;  %v5384_v1 = vpop.permute.xlu1 %5383  ;;  %v5455_v36 = vmul.f32 %v12089_v31, %v13217_v54  ;;  %v4763_v50 = vadd.f32 %v15963_v11, %v4375_v4  ;;  %v13375_v27 = vsel %vm87_vm0, %v13343_v47, -inf  ;;  %v5668_v60 = vmax.f32 %v13301_v30, %v5667_v52  ;;  %v13384_v23 = vpop.permute.xlu0 %6187 }
 0x5cd   :  { %v5474_v61 = vmul.f32 %v12089_v31, %v5384_v1  ;;  %v13379_v6 = vadd.f32 %v13275_v10, %v5513_v19  ;;  %v13382_v41 = vadd.f32 %v13275_v10, %v5515_v55  ;;  %v5531_v12 = vadd.f32 %v5467_v18, %v5143_v15  ;;  %6372 = vperm.xlu1 %8131, %v6158_v28   ;;  %v15967_v18 = vld [vmem:[#allocation218_spill] sm:$0xff] }
 0x5ce   :  { %v13387_v54 = vadd.f32 %v13275_v10, %v5529_v32  ;;  %v13391_v14 = vsel %vm87_vm0, %v13360_v46, -inf  ;;  %v4371_v30 = vmul.f32 %v11838_v62, %v13149_v13  ;;  %v4757_v24 = vadd.f32 %v15966_v16, %v4369_v63 }
 0x5cf   :  { %15964 = vst [vmem:[#allocation268_spill] sm:$0xff] %v13379_v6  ;;  %v5538_v9 = vadd.f32 %v5474_v61, %v13003_v0  ;;  %v13401_v59 = vadd.f32 %v13275_v10, %v5517_v40  ;;  %v13404_v4 = vadd.f32 %v13275_v10, %v5523_v48  ;;  %v13408_v55 = vsel %vm87_vm0, %v13354_v7, -inf }
 0x5d0   :  { %15965 = vst [vmem:[#allocation113_spill] sm:$0xff] %v13387_v54  ;;  %v5388_v19 = vpop.permute.xlu1 %5387  ;;  %v5519_v13 = vadd.f32 %v5455_v36, %v13296_v2  ;;  %v5151_v52 = vadd.f32 %v15967_v18, %v4763_v50  ;;  %v5698_v28 = vmax.f32 %v13338_v56, %v13391_v14  ;;  %v13420_v63 = vsel %vm87_vm0, %v13379_v6, -inf  ;;  %v15968_v2 = vld [vmem:[#allocation227_spill] sm:$0xff]  ;;  %v6179_v56 = vld [vmem:[%s14838_s3 + $0x1d0] sm:$0xff]  ;;  %v13444_v14 = vpop.permute.xlu0 %6232 }
 0x5d1   :  { %v13412_v0 = vadd.f32 %v13275_v10, %v5538_v9  ;;  %v5475_v32 = vmul.f32 %v12089_v31, %v5388_v19  ;;  %v5639_v40 = vsel %vm87_vm0, %v13382_v41, -inf  ;;  %v13425_v48 = vadd.f32 %v13275_v10, %v5531_v12  ;;  %6337 = vperm.xlu1 %8131, %v6151_v43   ;;  %15969 = vst [vmem:[#allocation254_spill] sm:$0xff] %v13444_v14  ;;  %v15970_v19 = vld [vmem:[#allocation208_spill] sm:$0xff] }
 0x5d2   :  { %v4759_v3 = vadd.f32 %v15968_v2, %v4371_v30  ;;  %v13435_v36 = vsel %vm87_vm0, %v13387_v54, -inf  ;;  %v5669_v11 = vsel %vm87_vm0, %v13401_v59, -inf  ;;  %v4373_v50 = vmul.f32 %v11838_v62, %v13193_v45  ;;  %v15974_v54 = vld [vmem:[#allocation228_spill] sm:$0xff] }
 0x5d3   :  { %v5630_v15 = vsel %vm87_vm0, %v13412_v0, -inf  ;;  %v5539_v1 = vadd.f32 %v5475_v32, %v5151_v52  ;;  %v5641_v61 = vsel %vm87_vm0, %v13404_v4, -inf  ;;  %v5640_v43 = vmax.f32 %v5638_v26, %v5639_v40  ;;  %v15971_v52 = vld [vmem:[#allocation190_spill] sm:$0xff]  ;;  %v15972_v26 = vld [vmem:[#allocation263_spill] sm:$0xff] }
 0x5d4   :  { %v5631_v12 = vmax.f32 %v13130_v8, %v5630_v15  ;;  %v5364_v30 = vpop.permute.xlu1 %5363  ;;  %v13449_v16 = vadd.f32 %v13275_v10, %v5519_v13  ;;  %v5145_v18 = vadd.f32 %v15970_v19, %v4757_v24  ;;  %v5643_v45 = vsel %vm87_vm0, %v13425_v48, -inf  ;;  %v6166_v24 = vld [vmem:[%s14838_s3 + $0x168] sm:$0xff] }
 0x5d5   :  { %v13457_v8 = vadd.f32 %v13275_v10, %v5539_v1  ;;  %6477 = vperm.xlu1 %8131, %v6179_v56   ;;  %v13459_v15 = vmax.f32 %v5668_v60, %v5669_v11  ;;  %v5642_v9 = vmax.f32 %v5640_v43, %v5641_v61  ;;  %v15973_v13 = vld [vmem:[#allocation211_spill] sm:$0xff]  ;;  %v4377_v60 = vmul.f32 %v11838_v62, %v13280_v58  ;;  %v15975_v1 = vld [vmem:[#allocation237_spill] sm:$0xff] }
 0x5d6   :  { %v5761_v32 = vsub.f32 %v15971_v52, %v5631_v12  ;;  %v5769_v2 = vsub.f32 %v12784_v38, %v5631_v12  ;;  %v5737_v40 = vsub.f32 %v15972_v26, %v5631_v12  ;;  %v13466_v19 = vadd.f32 %v15973_v13, %v4759_v3  ;;  %v15976_v26 = vld [vmem:[#allocation167_spill] sm:$0xff] }
 0x5d7   :  { %v13469_v52 = vadd.f32 %v15974_v54, %v4373_v50  ;;  %v5457_v38 = vmul.f32 %v12089_v31, %v13254_v35  ;;  %v5745_v56 = vsub.f32 %v15975_v1, %v5631_v12  ;;  %v5699_v61 = vsel %vm87_vm0, %v13449_v16, -inf  ;;  %v13482_v35 = vpop.permute.xlu0 %6272  ;;  %v15978_v1 = vld [vmem:[#allocation177_spill] sm:$0xff] }
 0x5d8   :  { %v5392_v11 = vpop.permute.xlu1 %5391  ;;  %v5644_v43 = vmax.f32 %v5642_v9, %v5643_v45  ;;  %v5753_v6 = vsub.f32 %v15976_v26, %v5631_v12  ;;  %v5849_v3 = vmul.f32 1.442695, %v5761_v32  ;;  %v5865_v13 = vmul.f32 1.442695, %v5769_v2  ;;  %15977 = vst [vmem:[#allocation255_spill] sm:$0xff] %v13482_v35  ;;  %v6159_v45 = vld [vmem:[%s14838_s3 + $0x130] sm:$0xff] }
 0x5d9   :  { %v5645_v54 = vsel %vm87_vm0, %v13457_v8, -inf  ;;  %v5469_v50 = vmul.f32 %v12089_v31, %v5364_v30  ;;  %v5476_v58 = vmul.f32 %v12089_v31, %v5392_v11  ;;  %6412 = vperm.xlu1 %8131, %v6166_v24   ;;  %v5777_v53 = vsub.f32 %v15978_v1, %v5631_v12  ;;  %v15979_v30 = vld [vmem:[#allocation257_spill] sm:$0xff]  ;;  %v15980_v26 = vld [vmem:[#allocation179_spill] sm:$0xff] }
 0x5da   :  { %v5801_v14 = vmul.f32 1.442695, %v5737_v40  ;;  %v13486_v17 = vmax.f32 %v5644_v43, %v5645_v54  ;;  %v5521_v32 = vadd.f32 %v5457_v38, %v13307_v44  ;;  %v4765_v2 = vadd.f32 %v15979_v30, %v4377_v60  ;;  %v15981_v9 = vld [vmem:[#allocation101_spill] sm:$0xff] }
 0x5db   :  { %v5785_v35 = vsub.f32 %v15980_v26, %v5631_v12  ;;  %v5817_v11 = vmul.f32 1.442695, %v5745_v56  ;;  %v13496_v20 = vmax.f32 %v5698_v28, %v5699_v61  ;;  %v5793_v40 = vsub.f32 %v13412_v0, %v5631_v12  ;;  %v13512_v12 = vpop.permute.xlu0 %6237 }
 0x5dc   :  { %v5396_v24 = vpop.permute.xlu1 %5395  ;;  %8150 = vpow2.f32 %v5849_v3  ;;  %v5833_v43 = vmul.f32 1.442695, %v5753_v6  ;;  %v5754_v54 = vsub.f32 %v13223_v49, %v13486_v17  ;;  %v5533_v1 = vadd.f32 %v5469_v50, %v5145_v18  ;;  %v6160_v6 = vld [vmem:[%s14838_s3 + $0x138] sm:$0xff]  ;;  %15983 = vst [vmem:[#allocation188_spill] sm:$0xff] %v13512_v12  ;;  %v15984_v18 = vld [vmem:[#allocation220_spill] sm:$0xff] }
 0x5dd   :  { %8152 = vpow2.f32 %v5865_v13  ;;  %v5540_v7 = vadd.f32 %v5476_v58, %v15981_v9  ;;  %6377 = vperm.xlu1 %8131, %v6159_v45   ;;  %v4379_v44 = vmul.f32 %v11838_v62, %v13319_v39  ;;  %v5881_v38 = vmul.f32 1.442695, %v5777_v53  ;;  %v15985_v53 = vld [vmem:[#allocation164_spill] sm:$0xff] }
 0x5de   :  { %8154 = vpow2.f32 %v5801_v14  ;;  %v5762_v28 = vsub.f32 %v13278_v25, %v13486_v17  ;;  %v13510_v0 = vadd.f32 %v13275_v10, %v5521_v32  ;;  %v5897_v49 = vmul.f32 1.442695, %v5785_v35  ;;  %v15986_v35 = vld [vmem:[#allocation232_spill] sm:$0xff] }
 0x5df   :  { %8156 = vpow2.f32 %v5817_v11  ;;  %v5153_v60 = vadd.f32 %v15984_v18, %v4765_v2  ;;  %v5913_v39 = vmul.f32 1.442695, %v5793_v40  ;;  %v5738_v14 = vsub.f32 %v15985_v53, %v13486_v17 }
 0x5e0   :  { %15982 = vst [vmem:[#allocation186_spill] sm:$0xff] %v13510_v0  ;;  %v5372_v56 = vpop.permute.xlu1 %5371  ;;  %8158 = vpow2.f32 %v5833_v43  ;;  %v5746_v25 = vsub.f32 %v13121_v42, %v13486_v17  ;;  %v5770_v61 = vsub.f32 %v13382_v41, %v13486_v17  ;;  %v5835_v3 = vmul.f32 1.442695, %v5754_v54  ;;  %v6167_v42 = vld [vmem:[%s14838_s3 + $0x170] sm:$0xff]  ;;  %v13547_v43 = vpop.permute.xlu0 %6202 }
 0x5e1   :  { %v13522_v13 = vadd.f32 %v13275_v10, %v5533_v1  ;;  %v13525_v50 = vadd.f32 %v13275_v10, %v5540_v7  ;;  %6382 = vperm.xlu1 %8131, %v6160_v6   ;;  %v4767_v58 = vadd.f32 %v15986_v35, %v4379_v44  ;;  %8160 = vpow2.f32 %v5881_v38  ;;  %15987 = vst [vmem:[#allocation258_spill] sm:$0xff] %v13547_v43  ;;  %v6168_v1 = vld [vmem:[%s14838_s3 + $0x178] sm:$0xff] }
 0x5e2   :  { %v5851_v9 = vmul.f32 1.442695, %v5762_v28  ;;  %v5477_v45 = vmul.f32 %v12089_v31, %v5396_v24  ;;  %8162 = vpow2.f32 %v5897_v49  ;;  %v5778_v41 = vsub.f32 %v13404_v4, %v13486_v17  ;;  %v15989_v28 = vld [vmem:[#allocation222_spill] sm:$0xff] }
 0x5e3   :  { %v5803_v32 = vmul.f32 1.442695, %v5738_v14  ;;  %v5660_v7 = vsel %vm87_vm0, %v13525_v50, -inf  ;;  %8164 = vpow2.f32 %v5913_v39  ;;  %v5786_v2 = vsub.f32 %v13425_v48, %v13486_v17 }
 0x5e4   :  { %v13536_v30 = vpop.permute.xlu1 %5399  ;;  %v5794_v26 = vsub.f32 %v13457_v8, %v13486_v17  ;;  %v5819_v11 = vmul.f32 1.442695, %v5746_v25  ;;  %8166 = vpow2.f32 %v5835_v3  ;;  %v5867_v24 = vmul.f32 1.442695, %v5770_v61  ;;  %v15991_v3 = vld [vmem:[#allocation99_spill] sm:$0xff] }
 0x5e5   :  { %v5673_v40 = vsel %vm87_vm0, %v13522_v13, -inf  ;;  %v13545_v4 = vmax.f32 %v13142_v57, %v5660_v7  ;;  %6417 = vperm.xlu1 %8131, %v6167_v42   ;;  %v13553_v48 = vsel %vm87_vm0, %v13510_v0, -inf  ;;  %8168 = vpow2.f32 %v5851_v9 }
 0x5e6   :  { %v13549_v54 = vpop.eup %8150  ;;  %v5541_v17 = vadd.f32 %v5477_v45, %v5153_v60  ;;  %v5883_v44 = vmul.f32 1.442695, %v5778_v41  ;;  %8170 = vpow2.f32 %v5803_v32  ;;  %v5471_v38 = vmul.f32 %v12089_v31, %v5372_v56  ;;  %v15993_v45 = vld [vmem:[#allocation238_spill] sm:$0xff]  ;;  %v6175_v32 = vld [vmem:[%s14838_s3 + $0x1b0] sm:$0xff] }
 0x5e7   :  { %15988 = vst [vmem:[#allocation273_spill] sm:$0xff] %v13549_v54  ;;  %v13560_v57 = vpop.eup %8152  ;;  %v13564_v6 = vadd.f32 %v15989_v28, %v4767_v58  ;;  %v5899_v60 = vmul.f32 1.442695, %v5786_v2  ;;  %v5915_v39 = vmul.f32 1.442695, %v5794_v26  ;;  %8172 = vpow2.f32 %v5819_v11  ;;  %v15994_v2 = vld [vmem:[#allocation110_spill] sm:$0xff] }
 0x5e8   :  { %v13566_v49 = vpop.permute.xlu1 %5403  ;;  %v13568_v18 = vpop.eup %8154  ;;  %v15990_v53 = vmax.f32 %v13459_v15, %v13375_v27  ;;  %v5934_v56 = vsel %vm87_vm0, %v13549_v54, 0.0  ;;  %8174 = vpow2.f32 %v5867_v24  ;;  %v5739_v35 = vsub.f32 %v15991_v3, %v13545_v4  ;;  %v15992_v27 = vld [vmem:[#allocation242_spill] sm:$0xff] }
 0x5e9   :  { %v13573_v25 = vpop.eup %8156  ;;  %v5929_v61 = vsel %vm87_vm0, %v13568_v18, 0.0  ;;  %6422 = vperm.xlu1 %8131, %v6168_v1   ;;  %v5755_v15 = vsub.f32 %v15992_v27, %v13545_v4  ;;  %v5747_v42 = vsub.f32 %v15993_v45, %v13545_v4  ;;  %v13590_v41 = vadd.f32 %v13275_v10, %v5541_v17  ;;  %v13600_v24 = vpop.permute.xlu0 %6312 }
 0x5ea   :  { %v5674_v14 = vmax.f32 %v15990_v53, %v5673_v40  ;;  %v13581_v58 = vpop.eup %8158  ;;  %v5930_v9 = vsel %vm87_vm0, %v13573_v25, 0.0  ;;  %8176 = vpow2.f32 %v5883_v44  ;;  %v5763_v26 = vsub.f32 %v15994_v2, %v13545_v4  ;;  %15995 = vst [vmem:[#allocation260_spill] sm:$0xff] %v13600_v24  ;;  %v15996_v44 = vld [vmem:[#allocation249_spill] sm:$0xff]  ;;  %v16000_v2 = vld [vmem:[#allocation259_spill] sm:$0xff] }
 0x5eb   :  { %v5931_v7 = vadd.f32 %v5930_v9, %v5929_v61  ;;  %v13598_v11 = vadd.f32 %v5471_v38, %v13466_v19  ;;  %v13604_v1 = vpop.eup %8160  ;;  %v5932_v17 = vsel %vm87_vm0, %v13581_v58, 0.0  ;;  %v5936_v28 = vsel %vm87_vm0, %v13560_v57, 0.0  ;;  %v15998_v38 = vld [vmem:[#allocation250_spill] sm:$0xff]  ;;  %v16007_v24 = vld [vmem:[#allocation251_spill] sm:$0xff] }
 0x5ec   :  { %v13602_v40 = vpop.permute.xlu1 %5379  ;;  %v5771_v53 = vsub.f32 %v15996_v44, %v13545_v4  ;;  %v5805_v61 = vmul.f32 1.442695, %v5739_v35  ;;  %v13612_v3 = vpop.eup %8162  ;;  %8178 = vpow2.f32 %v5899_v60  ;;  %v5779_v9 = vsub.f32 %v15998_v38, %v13545_v4  ;;  %v6183_v35 = vld [vmem:[%s14838_s3 + $0x1f0] sm:$0xff] }
 0x5ed   :  { %15997 = vst [vmem:[#allocation262_spill] sm:$0xff] %v13612_v3  ;;  %v5933_v19 = vadd.f32 %v5932_v17, %v5931_v7  ;;  %v5821_v27 = vmul.f32 1.442695, %v5747_v42  ;;  %6457 = vperm.xlu1 %8131, %v6175_v32   ;;  %v13616_v45 = vpop.eup %8164  ;;  %8180 = vpow2.f32 %v5915_v39  ;;  %v5787_v8 = vsub.f32 %v16000_v2, %v13545_v4 }
 0x5ee   :  { %15999 = vst [vmem:[#allocation277_spill] sm:$0xff] %v13616_v45  ;;  %v5837_v0 = vmul.f32 1.442695, %v5755_v15  ;;  %v5675_v44 = vsel %vm87_vm0, %v13590_v41, -inf  ;;  %v13625_v60 = vpop.eup %8166  ;;  %v5795_v42 = vsub.f32 %v13525_v50, %v13545_v4  ;;  %v5853_v32 = vmul.f32 1.442695, %v5763_v26  ;;  %v13643_v4 = vpop.permute.xlu0 %6347 }
 0x5ef   :  { %v5935_v7 = vadd.f32 %v5934_v56, %v5933_v19  ;;  %v13629_v17 = vmax.f32 %v5674_v14, %v5675_v44  ;;  %v13633_v38 = vpop.eup %8168  ;;  %v5938_v15 = vsel %vm87_vm0, %v13604_v1, 0.0  ;;  %v5869_v2 = vmul.f32 1.442695, %v5771_v53 }
 0x5f0   :  { %v13631_v39 = vpop.permute.xlu1 %5411  ;;  %8182 = vpow2.f32 %v5805_v61  ;;  %v5478_v43 = vmul.f32 %v12089_v31, %v13536_v30  ;;  %v13639_v54 = vpop.eup %8170  ;;  %v5885_v19 = vmul.f32 1.442695, %v5779_v9  ;;  %v5940_v26 = vsel %vm87_vm0, %v13612_v3, 0.0 }
 0x5f1   :  { %v5937_v56 = vadd.f32 %v5936_v28, %v5935_v7  ;;  %8184 = vpow2.f32 %v5821_v27  ;;  %v5748_v50 = vsub.f32 %v13137_v34, %v13629_v17  ;;  %6497 = vperm.xlu1 %8131, %v6183_v35   ;;  %v13645_v14 = vpop.eup %8172  ;;  %v5944_v53 = vsel %vm87_vm0, %v13639_v54, 0.0 }
 0x5f2   :  { %v5901_v30 = vmul.f32 1.442695, %v5787_v8  ;;  %8186 = vpow2.f32 %v5837_v0  ;;  %v13651_v61 = vpop.eup %8174  ;;  %v5945_v9 = vsel %vm87_vm0, %v13645_v14, 0.0  ;;  %v5917_v34 = vmul.f32 1.442695, %v5795_v42 }
 0x5f3   :  { %16001 = vst [vmem:[#allocation265_spill] sm:$0xff] %v13651_v61  ;;  %v5939_v28 = vadd.f32 %v5938_v15, %v5937_v56  ;;  %8188 = vpow2.f32 %v5853_v32  ;;  %v5942_v27 = vsel %vm87_vm0, %v13616_v45, 0.0  ;;  %v5946_v44 = vadd.f32 %v5945_v9, %v5944_v53  ;;  %v13674_v53 = vpop.permute.xlu0 %6352 }
 0x5f4   :  { %8190 = vpow2.f32 %v5869_v2  ;;  %v5823_v35 = vmul.f32 1.442695, %v5748_v50  ;;  %v13657_v7 = vpop.permute.xlu1 %6227  ;;  %v13659_v3 = vpop.eup %8176  ;;  %v5947_v0 = vsel %vm87_vm0, %v13625_v60, 0.0  ;;  %v5756_v15 = vsub.f32 %v13230_v22, %v13629_v17  ;;  %16003 = vst [vmem:[#allocation275_spill] sm:$0xff] %v13674_v53 }
 0x5f5   :  { %v5941_v8 = vadd.f32 %v5940_v26, %v5939_v28  ;;  %8192 = vpow2.f32 %v5885_v19  ;;  %v5948_v32 = vadd.f32 %v5947_v0, %v5946_v44  ;;  %v5949_v42 = vsel %vm87_vm0, %v13633_v38, 0.0 }
 0x5f6   :  { %8194 = vpow2.f32 %v5901_v30  ;;  %v5542_v2 = vadd.f32 %v5478_v43, %v13036_v29  ;;  %v13668_v56 = vpop.eup %8178  ;;  %v5951_v26 = vsel %vm87_vm0, %v13651_v61, 0.0  ;;  %v5764_v19 = vsub.f32 %v13323_v21, %v13629_v17 }
 0x5f7   :  { %16002 = vst [vmem:[#allocation267_spill] sm:$0xff] %v13668_v56  ;;  %v5943_v50 = vadd.f32 %v5942_v27, %v5941_v8  ;;  %8196 = vpow2.f32 %v5917_v34  ;;  %v13676_v22 = vpop.eup %8180  ;;  %v5950_v28 = vadd.f32 %v5949_v42, %v5948_v32  ;;  %v5953_v30 = vsel %vm87_vm0, %v13659_v3, 0.0 }
 0x5f8   :  { %8198 = vpow2.f32 %v5823_v35  ;;  %v13682_v29 = vadd.f32 %v13275_v10, %v13598_v11  ;;  %v13684_v43 = vpop.permute.xlu1 %6192  ;;  %v5772_v9 = vsub.f32 %v13401_v59, %v13629_v17  ;;  %v5839_v21 = vmul.f32 1.442695, %v5756_v15 }
 0x5f9   :  { %8200 = vrcp.f32 %v5943_v50  ;;  %v5740_v34 = vsub.f32 %v13063_v37, %v13629_v17  ;;  %v5952_v44 = vadd.f32 %v5951_v26, %v5950_v28  ;;  %v5780_v35 = vsub.f32 %v13343_v47, %v13629_v17 }
 0x5fa   :  { %v13690_v27 = vpop.eup %8182  ;;  %v5788_v11 = vsub.f32 %v13522_v13, %v13629_v17  ;;  %v13697_v8 = vadd.f32 %v13275_v10, %v5542_v2  ;;  %v5796_v37 = vsub.f32 %v13590_v41, %v13629_v17  ;;  %v5855_v15 = vmul.f32 1.442695, %v5764_v19 }
 0x5fb   :  { %v13699_v0 = vpop.eup %8184  ;;  %v5959_v59 = vsel %vm87_vm0, %v13690_v27, 0.0  ;;  %v5807_v32 = vmul.f32 1.442695, %v5740_v34  ;;  %v5954_v50 = vadd.f32 %v5953_v30, %v5952_v44  ;;  %v5479_v2 = vmul.f32 %v12089_v31, %v13566_v49  ;;  %v13719_v30 = vpop.permute.xlu0 %6247 }
 0x5fc   :  { %v13705_v42 = vpop.eup %8186  ;;  %v5960_v47 = vsel %vm87_vm0, %v13699_v0, 0.0  ;;  %v5690_v13 = vsel %vm87_vm0, %v13697_v8, -inf  ;;  %v13713_v26 = vpop.permute.xlu1 %6267  ;;  %v5955_v41 = vsel %vm87_vm0, %v13668_v56, 0.0  ;;  %8202 = vpow2.f32 %v5839_v21  ;;  %16005 = vst [vmem:[#allocation269_spill] sm:$0xff] %v13719_v30 }
 0x5fd   :  { %v13715_v28 = vpop.eup %8188  ;;  %v5961_v17 = vadd.f32 %v5960_v47, %v5959_v59  ;;  %v5871_v19 = vmul.f32 1.442695, %v5772_v9  ;;  %v5962_v44 = vsel %vm87_vm0, %v13705_v42, 0.0  ;;  %v5887_v45 = vmul.f32 1.442695, %v5780_v35 }
 0x5fe   :  { %16004 = vst [vmem:[#allocation180_spill] sm:$0xff] %v13715_v28  ;;  %v13721_v34 = vpop.eup %8190  ;;  %v5903_v53 = vmul.f32 1.442695, %v5788_v11  ;;  %8204 = vpow2.f32 %v5807_v32  ;;  %v5956_v12 = vadd.f32 %v5955_v41, %v5954_v50  ;;  %v13728_v56 = vmax.f32 %v16007_v24, %v5690_v13 }
 0x5ff   :  { %16006 = vst [vmem:[#allocation271_spill] sm:$0xff] %v13721_v34  ;;  %v13725_v49 = vpop.eup %8192  ;;  %v5963_v61 = vadd.f32 %v5962_v44, %v5961_v17  ;;  %8206 = vpow2.f32 %v5855_v15  ;;  %v16009_v9 = vmax.f32 %v13340_v51, %v13420_v63  ;;  %v5964_v35 = vsel %vm87_vm0, %v13715_v28, 0.0  ;;  %v13761_v41 = vpop.permute.xlu0 %6387 }
 0x600   :  { %v13730_v21 = vpop.eup %8194  ;;  %v5919_v11 = vmul.f32 1.442695, %v5796_v37  ;;  %v5543_v32 = vadd.f32 %v5479_v2, %v13564_v6  ;;  %v13741_v50 = vpop.permute.xlu1 %6197  ;;  %v4381_v24 = vmul.f32 %v11838_v62, %v13351_v33  ;;  %8208 = vpow2.f32 %v5871_v19  ;;  %16013 = vst [vmem:[#allocation143_spill] sm:$0xff] %v13761_v41  ;;  %v16014_v19 = vld [vmem:[#allocation117_spill] sm:$0xff] }
 0x601   :  { %16008 = vst [vmem:[#allocation175_spill] sm:$0xff] %v13730_v21  ;;  %v13736_v59 = vmax.f32 %v16009_v9, %v13553_v48  ;;  %v13743_v15 = vpop.eup %8196  ;;  %v5965_v47 = vadd.f32 %v5964_v35, %v5963_v61  ;;  %v5703_v51 = vsel %vm87_vm0, %v13682_v29, -inf  ;;  %v5957_v48 = vsel %vm87_vm0, %v13676_v22, 0.0  ;;  %v16012_v61 = vld [vmem:[#allocation106_spill] sm:$0xff] }
 0x602   :  { %16010 = vst [vmem:[#allocation272_spill] sm:$0xff] %v13743_v15  ;;  %v13749_v63 = vpop.eup %8198  ;;  %v5966_v6 = vsel %vm87_vm0, %v13721_v34, 0.0  ;;  %v5968_v37 = vsel %vm87_vm0, %v13725_v49, 0.0  ;;  %8210 = vpow2.f32 %v5887_v45  ;;  %v5958_v62 = vadd.f32 %v5957_v48, %v5956_v12  ;;  %v16015_v12 = vld [vmem:[#allocation233_spill] sm:$0xff]  ;;  %v16016_v48 = vld [vmem:[#allocation96_spill] sm:$0xff] }
 0x603   :  { %v13757_v13 = vpop.eup %8200  ;;  %v5967_v33 = vadd.f32 %v5966_v6, %v5965_v47  ;;  %8212 = vpow2.f32 %v5903_v53  ;;  %v5765_v2 = vsub.f32 %v16012_v61, %v13728_v56  ;;  %v5773_v44 = vsub.f32 %v16014_v19, %v13728_v56  ;;  %v16018_v19 = vld [vmem:[#allocation108_spill] sm:$0xff] }
 0x604   :  { %16011 = vst [vmem:[#allocation274_spill] sm:$0xff] %v13757_v13  ;;  %v6050_v17 = vmul.f32 %v13757_v13, %v13568_v18  ;;  %8214 = vpow2.f32 %v5919_v11  ;;  %v13768_v9 = vadd.f32 %v13275_v10, %v5543_v32  ;;  %v13770_v45 = vpop.permute.xlu1 %6307  ;;  %v4769_v35 = vadd.f32 %v16015_v12, %v4381_v24 }
 0x605   :  { %v5969_v53 = vadd.f32 %v5968_v37, %v5967_v33  ;;  %v5970_v47 = vsel %vm87_vm0, %v13730_v21, 0.0  ;;  %v5781_v6 = vsub.f32 %v16016_v48, %v13728_v56  ;;  %v5975_v11 = vsel %vm87_vm0, %v13749_v63, 0.0 }
 0x606   :  { %v6505_v18 = vmul.f32 %v13384_v23, %v6050_v17  ;;  %v16017_v32 = vmax.f32 %v13496_v20, %v13408_v55  ;;  %v5789_v34 = vsub.f32 %v16018_v19, %v13728_v56  ;;  %v13785_v24 = vpop.eup %8202  ;;  %8216 = vrcp.f32 %v5958_v62  ;;  %v16019_v20 = vld [vmem:[#allocation216_spill] sm:$0xff] }
 0x607   :  { %v5971_v37 = vadd.f32 %v5970_v47, %v5969_v53  ;;  %v5857_v33 = vmul.f32 1.442695, %v5765_v2  ;;  %v5705_v12 = vsel %vm87_vm0, %v13768_v9, -inf  ;;  %v5797_v23 = vsub.f32 %v13697_v8, %v13728_v56 }
 0x608   :  { %v5704_v61 = vmax.f32 %v16017_v32, %v5703_v51  ;;  %v13789_v48 = vpop.eup %8204  ;;  %v5873_v17 = vmul.f32 1.442695, %v5773_v44  ;;  %v5149_v55 = vadd.f32 %v16019_v20, %v13469_v52  ;;  %6633 = vrot.lane.b32.xlu1 %v6505_v18, %s8282_s6  ;;  %v13798_v51 = vpop.permute.xlu1 %6242  ;;  %v5889_v53 = vmul.f32 1.442695, %v5781_v6 }
 0x609   :  { %v13800_v62 = vpop.eup %8206  ;;  %v5974_v2 = vsel %vm87_vm0, %v13789_v48, 0.0  ;;  %v5473_v8 = vmul.f32 %v12089_v31, %v13602_v40  ;;  %v13808_v44 = vpop.permute.xlu0 %6252  ;;  %v5972_v52 = vsel %vm87_vm0, %v13743_v15, 0.0  ;;  %v5905_v32 = vmul.f32 1.442695, %v5789_v34 }
 0x60a   :  { %v13793_v41 = vmax.f32 %v5704_v61, %v5705_v12  ;;  %16020 = vst [vmem:[#allocation146_spill] sm:$0xff] %v13808_v44  ;;  %v5976_v18 = vadd.f32 %v5975_v11, %v5974_v2  ;;  %v16021_v61 = vld [vmem:[#allocation224_spill] sm:$0xff]  ;;  %v13813_v12 = vpop.eup %8208  ;;  %v5973_v20 = vadd.f32 %v5972_v52, %v5971_v37  ;;  %v5977_v6 = vsel %vm87_vm0, %v13785_v24, 0.0  ;;  %v16022_v2 = vld [vmem:[#allocation234_spill] sm:$0xff] }
 0x60b   :  { %v5157_v19 = vadd.f32 %v16021_v61, %v4769_v35  ;;  %8218 = vpow2.f32 %v5857_v33  ;;  %v5979_v28 = vsel %vm87_vm0, %v13800_v62, 0.0  ;;  %v5921_v34 = vmul.f32 1.442695, %v5797_v23  ;;  %v16023_v52 = vld [vmem:[#allocation264_spill] sm:$0xff] }
 0x60c   :  { %v5758_v47 = vsub.f32 %v13263_v5, %v13793_v41  ;;  %v13819_v40 = vpop.eup %8210  ;;  %v5978_v44 = vadd.f32 %v5977_v6, %v5976_v18  ;;  %8220 = vpow2.f32 %v5873_v17  ;;  %v13823_v11 = vpop.permute.xlu1 %6277  ;;  %v5537_v37 = vadd.f32 %v5473_v8, %v5149_v55  ;;  %v16024_v6 = vld [vmem:[#allocation240_spill] sm:$0xff] }
 0x60d   :  { %v13825_v35 = vpop.eup %8212  ;;  %8222 = vpow2.f32 %v5889_v53  ;;  %v5741_v33 = vsub.f32 %v16022_v2, %v13728_v56  ;;  %v5749_v5 = vsub.f32 %v16023_v52, %v13728_v56  ;;  %v5757_v30 = vsub.f32 %v16024_v6, %v13728_v56  ;;  %v13843_v8 = vpop.permute.xlu0 %6392  ;;  %v16026_v6 = vld [vmem:[#allocation266_spill] sm:$0xff] }
 0x60e   :  { %v13831_v61 = vpop.eup %8214  ;;  %v5980_v18 = vadd.f32 %v5979_v28, %v5978_v44  ;;  %8224 = vpow2.f32 %v5905_v32  ;;  %v13837_v23 = vmul.f32 %v13757_v13, %v13560_v57  ;;  %v5981_v17 = vsel %vm87_vm0, %v13813_v12, 0.0  ;;  %16025 = vst [vmem:[#allocation161_spill] sm:$0xff] %v13843_v8 }
 0x60f   :  { %8226 = vrcp.f32 %v5973_v20  ;;  %v5766_v55 = vsub.f32 %v13360_v46, %v13793_v41  ;;  %v5843_v53 = vmul.f32 1.442695, %v5758_v47  ;;  %v5983_v28 = vsel %vm87_vm0, %v13819_v40, 0.0 }
 0x610   :  { %v5982_v2 = vadd.f32 %v5981_v17, %v5980_v18  ;;  %v5985_v56 = vsel %vm87_vm0, %v13825_v35, 0.0  ;;  %8228 = vpow2.f32 %v5921_v34  ;;  %v13849_v57 = vpop.permute.xlu1 %6282  ;;  %v13851_v44 = vpop.eup %8216  ;;  %v5987_v32 = vsel %vm87_vm0, %v13831_v61, 0.0 }
 0x611   :  { %v13856_v46 = vadd.f32 %v13275_v10, %v5537_v37  ;;  %v5809_v47 = vmul.f32 1.442695, %v5741_v33  ;;  %v5825_v20 = vmul.f32 1.442695, %v5749_v5  ;;  %v5774_v18 = vsub.f32 %v13449_v16, %v13793_v41 }
 0x612   :  { %v5984_v52 = vadd.f32 %v5983_v28, %v5982_v2  ;;  %v5782_v17 = vsub.f32 %v16026_v6, %v13793_v41  ;;  %v5841_v34 = vmul.f32 1.442695, %v5757_v30  ;;  %v5790_v8 = vsub.f32 %v13682_v29, %v13793_v41 }
 0x613   :  { %v5798_v15 = vsub.f32 %v13768_v9, %v13793_v41  ;;  %8230 = vpow2.f32 %v5843_v53  ;;  %v5859_v21 = vmul.f32 1.442695, %v5766_v55  ;;  %v6066_v37 = vmul.f32 %v13851_v44, %v13645_v14  ;;  %v16028_v9 = vld [vmem:[#allocation176_spill] sm:$0xff]  ;;  %v13882_v55 = vpop.permute.xlu0 %6357 }
 0x614   :  { %v5986_v33 = vadd.f32 %v5985_v56, %v5984_v52  ;;  %8232 = vpow2.f32 %v5809_v47  ;;  %v5481_v16 = vmul.f32 %v12089_v31, %v13631_v39  ;;  %v13870_v5 = vpop.permute.xlu1 %6207  ;;  %v13876_v29 = vmul.f32 %v13757_v13, %v13604_v1  ;;  %v16030_v47 = vld [vmem:[#allocation252_spill] sm:$0xff] }
 0x615   :  { %v13872_v2 = vpop.eup %8218  ;;  %8234 = vpow2.f32 %v5825_v20  ;;  %v6065_v30 = vmul.f32 %v13757_v13, %v13573_v25  ;;  %v5742_v14 = vsub.f32 %v16028_v9, %v13793_v41  ;;  %v5875_v39 = vmul.f32 1.442695, %v5774_v18 }
 0x616   :  { %16027 = vst [vmem:[#allocation185_spill] sm:$0xff] %v13872_v2  ;;  %v13884_v53 = vpop.eup %8220  ;;  %v5988_v31 = vadd.f32 %v5987_v32, %v5986_v33  ;;  %8236 = vpow2.f32 %v5841_v34  ;;  %v5545_v28 = vadd.f32 %v5481_v16, %v5157_v19  ;;  %v5750_v20 = vsub.f32 %v16030_v47, %v13793_v41 }
 0x617   :  { %16029 = vst [vmem:[#allocation191_spill] sm:$0xff] %v13884_v53  ;;  %v13886_v56 = vpop.eup %8222  ;;  %8238 = vpow2.f32 %v5859_v21  ;;  %v6513_v1 = vmul.f32 %v13657_v7, %v6065_v30  ;;  %v5811_v25 = vmul.f32 1.442695, %v5742_v14  ;;  %v5733_v6 = vsel %vm87_vm0, %v13856_v46, -inf  ;;  %v16031_v7 = vld [vmem:[#allocation254_spill] sm:$0xff] }
 0x618   :  { %v13891_v52 = vpop.eup %8224  ;;  %8240 = vrcp.f32 %v5988_v31  ;;  %v13896_v32 = vadd.f32 %v13275_v10, %v5545_v28  ;;  %v6052_v19 = vmul.f32 %v13851_v44, %v13639_v54  ;;  %v13900_v18 = vpop.permute.xlu1 %6317  ;;  %v6514_v34 = vmul.f32 %v16031_v7, %v6066_v37 }
 0x619   :  { %v13902_v21 = vpop.eup %8226  ;;  %8242 = vpow2.f32 %v5811_v25  ;;  %v5827_v41 = vmul.f32 1.442695, %v5750_v20  ;;  %v13907_v33 = vmul.f32 %v13851_v44, %v13659_v3  ;;  %6649 = vrot.lane.b32.xlu0 %v6513_v1, %s8282_s6  ;;  %v6074_v10 = vmul.f32 %v13851_v44, %v13625_v60  ;;  %v13924_v28 = vpop.permute.xlu0 %6292  ;;  %v16034_v25 = vld [vmem:[#allocation255_spill] sm:$0xff] }
 0x61a   :  { %v13910_v16 = vpop.eup %8228  ;;  %v5735_v54 = vsel %vm87_vm0, %v13896_v32, -inf  ;;  %v6506_v30 = vmul.f32 %v13684_v43, %v6052_v19  ;;  %v6073_v37 = vmul.f32 %v13757_v13, %v13581_v58  ;;  %v6082_v9 = vmul.f32 %v13851_v44, %v13633_v38  ;;  %16033 = vst [vmem:[#allocation152_spill] sm:$0xff] %v13924_v28 }
 0x61b   :  { %v5891_v3 = vmul.f32 1.442695, %v5782_v17  ;;  %v16032_v14 = vmax.f32 %v13736_v59, %v13435_v36  ;;  %8244 = vpow2.f32 %v5827_v41  ;;  %v6054_v60 = vmul.f32 %v13902_v21, %v13690_v27 }
 0x61c   :  { %6635 = vrot.lane.b32.xlu1 %v6506_v30, %s8282_s6  ;;  %v13929_v43 = vpop.permute.xlu1 %6212  ;;  %v6067_v58 = vmul.f32 %v13902_v21, %v13699_v0  ;;  %v5907_v38 = vmul.f32 1.442695, %v5790_v8  ;;  %v13942_v59 = vmul.f32 %v13643_v4, %v13837_v23  ;;  %8246 = vpow2.f32 %v5875_v39  ;;  %v16035_v0 = vld [vmem:[#allocation260_spill] sm:$0xff] }
 0x61d   :  { %v5734_v31 = vmax.f32 %v16032_v14, %v5733_v6  ;;  %v13931_v1 = vpop.eup %8230  ;;  %6651 = vrot.lane.b32.xlu0 %v6514_v34, %s8282_s6  ;;  %v5923_v27 = vmul.f32 1.442695, %v5798_v15  ;;  %v6521_v47 = vmul.f32 %v13713_v26, %v6073_v37  ;;  %v6522_v6 = vmul.f32 %v16034_v25, %v6074_v10  ;;  %v16036_v15 = vld [vmem:[#allocation265_spill] sm:$0xff]  ;;  %v16038_v10 = vld [vmem:[#allocation188_spill] sm:$0xff]  ;;  %v16039_v37 = vld [vmem:[#allocation174_spill] sm:$0xff] }
 0x61e   :  { %v13938_v36 = vpop.eup %8232  ;;  %v13949_v8 = vmul.f32 %v16035_v0, %v6082_v9  ;;  %8248 = vpow2.f32 %v5891_v3  ;;  %v13957_v4 = vsel %vm87_vm0, %v13910_v16, 0.0  ;;  %v13961_v26 = vmul.f32 %v13851_v44, %v16036_v15  ;;  %v13974_v3 = vpop.permute.xlu0 %6432 }
 0x61f   :  { %v13935_v17 = vmax.f32 %v5734_v31, %v5735_v54  ;;  %v13945_v20 = vpop.eup %8234  ;;  %v5989_v19 = vsel %vm87_vm0, %v13938_v36, 0.0  ;;  %v6507_v39 = vmul.f32 %v13741_v50, %v6054_v60  ;;  %v6515_v54 = vmul.f32 %v16038_v10, %v6067_v58  ;;  %16040 = vst [vmem:[#allocation278_spill] sm:$0xff] %v13974_v3  ;;  %v16041_v60 = vld [vmem:[#allocation267_spill] sm:$0xff]  ;;  %v16044_v10 = vld [vmem:[#allocation273_spill] sm:$0xff] }
 0x620   :  { %v13953_v7 = vpop.eup %8236  ;;  %v5990_v23 = vsel %vm87_vm0, %v13945_v20, 0.0  ;;  %6665 = vrot.lane.b32.xlu1 %v6521_v47, %s8282_s6  ;;  %v13967_v34 = vpop.permute.xlu1 %6322  ;;  %8250 = vpow2.f32 %v5907_v38  ;;  %v5994_v31 = vsel %vm87_vm0, %v13872_v2, 0.0  ;;  %v13985_v58 = vmul.f32 %v13851_v44, %v16041_v60 }
 0x621   :  { %v13969_v41 = vpop.eup %8238  ;;  %v5991_v30 = vadd.f32 %v5990_v23, %v5989_v19  ;;  %v5760_v9 = vsub.f32 %v16039_v37, %v13935_v17  ;;  %6667 = vrot.lane.b32.xlu0 %v6522_v6, %s8282_s6  ;;  %8252 = vpow2.f32 %v5923_v27  ;;  %v5992_v50 = vsel %vm87_vm0, %v13953_v7, 0.0  ;;  %v16043_v19 = vld [vmem:[#allocation268_spill] sm:$0xff] }
 0x622   :  { %16037 = vst [vmem:[#allocation276_spill] sm:$0xff] %v13969_v41  ;;  %v13977_v14 = vpop.eup %8240  ;;  %16042 = vst [vmem:[#allocation189_spill] sm:$0xff] %v13985_v58  ;;  %v5996_v6 = vsel %vm87_vm0, %v13884_v53, 0.0  ;;  %v5998_v27 = vsel %vm87_vm0, %v13886_v56, 0.0  ;;  %v6000_v0 = vsel %vm87_vm0, %v13891_v52, 0.0  ;;  %v5768_v15 = vsub.f32 %v16043_v19, %v13935_v17 }
 0x623   :  { %v13987_v38 = vpop.eup %8242  ;;  %v6056_v47 = vmul.f32 %v13977_v14, %v13789_v48  ;;  %v5993_v25 = vadd.f32 %v5992_v50, %v5991_v30  ;;  %v6081_v37 = vmul.f32 %v13757_v13, %v16044_v10  ;;  %v16046_v50 = vld [vmem:[#allocation258_spill] sm:$0xff]  ;;  %v5847_v2 = vmul.f32 1.442695, %v5760_v9 }
 0x624   :  { %v6004_v23 = vsel %vm87_vm0, %v13987_v38, 0.0  ;;  %6637 = vrot.lane.b32.xlu1 %v6507_v39, %s8282_s6  ;;  %v14004_v48 = vpop.permute.xlu1 %6287  ;;  %v6068_v3 = vmul.f32 %v13977_v14, %v13749_v63  ;;  %v6007_v10 = vsel %vm87_vm0, %v13931_v1, 0.0  ;;  %v6009_v39 = vsel %vm87_vm0, %v13969_v41, 0.0  ;;  %v16051_v41 = vld [vmem:[#allocation270_spill] sm:$0xff] }
 0x625   :  { %16045 = vst [vmem:[#allocation149_spill] sm:$0xff] %v14004_v48  ;;  %v14006_v30 = vpop.eup %8244  ;;  %v6508_v60 = vmul.f32 %v16046_v50, %v6056_v47  ;;  %v5995_v53 = vadd.f32 %v5994_v31, %v5993_v25  ;;  %6653 = vrot.lane.b32.xlu0 %v6515_v54, %s8282_s6  ;;  %v6529_v58 = vmul.f32 %v13770_v45, %v6081_v37  ;;  %v16047_v31 = vld [vmem:[#allocation186_spill] sm:$0xff]  ;;  %v14021_v25 = vpop.permute.xlu0 %6257  ;;  %v16050_v50 = vld [vmem:[#allocation113_spill] sm:$0xff]  ;;  %v5863_v48 = vmul.f32 1.442695, %v5768_v15 }
 0x626   :  { %v6005_v19 = vsel %vm87_vm0, %v14006_v30, 0.0  ;;  %v5776_v9 = vsub.f32 %v16047_v31, %v13935_v17  ;;  %16048 = vst [vmem:[#allocation153_spill] sm:$0xff] %v14021_v25  ;;  %v14025_v63 = vmul.f32 %v13902_v21, %v13725_v49  ;;  %v14027_v54 = vpop.eup %8246  ;;  %v5784_v13 = vsub.f32 %v16050_v50, %v13935_v17 }
 0x627   :  { %v5997_v28 = vadd.f32 %v5996_v6, %v5995_v53  ;;  %v6006_v47 = vadd.f32 %v6005_v19, %v6004_v23  ;;  %v5744_v45 = vsub.f32 %v16051_v41, %v13935_v17  ;;  %v16052_v53 = vld [vmem:[#allocation150_spill] sm:$0xff]  ;;  %8254 = vpow2.f32 %v5847_v2 }
 0x628   :  { %16049 = vst [vmem:[#allocation156_spill] sm:$0xff] %v14025_v63  ;;  %v5752_v6 = vsub.f32 %v16052_v53, %v13935_v17  ;;  %6681 = vrot.lane.b32.xlu1 %v6529_v58, %s8282_s6  ;;  %v14036_v23 = vpop.permute.xlu1 %6427  ;;  %v14038_v37 = vpop.eup %8248  ;;  %v6516_v31 = vmul.f32 %v13798_v51, %v6068_v3  ;;  %v6075_v15 = vmul.f32 %v13902_v21, %v13705_v42 }
 0x629   :  { %v5999_v49 = vadd.f32 %v5998_v27, %v5997_v28  ;;  %v6008_v19 = vadd.f32 %v6007_v10, %v6006_v47  ;;  %6639 = vrot.lane.b32.xlu0 %v6508_v60, %s8282_s6  ;;  %v5815_v41 = vmul.f32 1.442695, %v5744_v45  ;;  %v14046_v53 = vmul.f32 %v13851_v44, %v13676_v22 }
 0x62a   :  { %v5831_v50 = vmul.f32 1.442695, %v5752_v6  ;;  %v14048_v58 = vpop.eup %8250  ;;  %v14052_v2 = vmul.f32 %v13977_v14, %v13800_v62  ;;  %v14056_v51 = vmul.f32 %v13977_v14, %v13825_v35  ;;  %v5792_v42 = vsub.f32 %v13856_v46, %v13935_v17 }
 0x62b   :  { %v6001_v63 = vadd.f32 %v6000_v0, %v5999_v49  ;;  %v6010_v25 = vadd.f32 %v6009_v39, %v6008_v19  ;;  %v14058_v28 = vpop.eup %8252  ;;  %v6011_v22 = vsel %vm87_vm0, %v14027_v54, 0.0  ;;  %v6013_v44 = vsel %vm87_vm0, %v14038_v37, 0.0  ;;  %v14070_v0 = vpop.permute.xlu0 %6397 }
 0x62c   :  { %8256 = vpow2.f32 %v5815_v41  ;;  %6655 = vrot.lane.b32.xlu1 %v6516_v31, %s8282_s6  ;;  %v14067_v62 = vpop.permute.xlu1 %6362  ;;  %v5879_v35 = vmul.f32 1.442695, %v5776_v9  ;;  %v5800_v46 = vsub.f32 %v13896_v32, %v13935_v17  ;;  %v6523_v60 = vmul.f32 %v13823_v11, %v6075_v15 }
 0x62d   :  { %v6003_v3 = vadd.f32 %v13957_v4, %v6001_v63  ;;  %v6012_v27 = vadd.f32 %v6011_v22, %v6010_v25  ;;  %8258 = vpow2.f32 %v5831_v50  ;;  %6683 = vrot.lane.b32.xlu0 %v13949_v8, %s8282_s6  ;;  %v6076_v10 = vmul.f32 %v13977_v14, %v13785_v24 }
 0x62e   :  { %8260 = vpow2.f32 %v5863_v48  ;;  %v5895_v39 = vmul.f32 1.442695, %v5784_v13  ;;  %v14081_v9 = vmul.f32 %v13977_v14, %v13813_v12  ;;  %v5911_v47 = vmul.f32 1.442695, %v5792_v42  ;;  %v16053_v48 = vld [vmem:[#allocation175_spill] sm:$0xff] }
 0x62f   :  { %8262 = vrcp.f32 %v6003_v3  ;;  %v6014_v4 = vadd.f32 %v6013_v44, %v6012_v27  ;;  %v6015_v8 = vsel %vm87_vm0, %v14048_v58, 0.0  ;;  %v14090_v11 = vmul.f32 %v13977_v14, %v13831_v61  ;;  %v16054_v61 = vld [vmem:[#allocation272_spill] sm:$0xff]  ;;  %v14113_v49 = vpop.permute.xlu0 %6222 }
 0x630   :  { %6669 = vrot.lane.b32.xlu1 %v6523_v60, %s8282_s6  ;;  %v14086_v32 = vpop.permute.xlu1 %6217  ;;  %v14094_v13 = vmul.f32 %v13977_v14, %v13819_v40  ;;  %8264 = vpow2.f32 %v5879_v35  ;;  %v6017_v12 = vsel %vm87_vm0, %v14058_v28, 0.0  ;;  %v6524_v17 = vmul.f32 %v13849_v57, %v6076_v10  ;;  %v16055_v14 = vld [vmem:[#allocation275_spill] sm:$0xff] }
 0x631   :  { %v6016_v24 = vadd.f32 %v6015_v8, %v6014_v4  ;;  %6697 = vrot.lane.b32.xlu0 %v13942_v59, %s8282_s6  ;;  %v14103_v25 = vmul.f32 %v13902_v21, %v16053_v48  ;;  %v14107_v63 = vmul.f32 %v13902_v21, %v16054_v61  ;;  %v14109_v40 = vpop.eup %8254  ;;  %v6538_v45 = vmul.f32 %v16055_v14, %v13961_v26  ;;  %v16056_v4 = vld [vmem:[#allocation269_spill] sm:$0xff]  ;;  %v16057_v61 = vld [vmem:[#allocation180_spill] sm:$0xff] }
 0x632   :  { %8266 = vpow2.f32 %v5895_v39  ;;  %v5927_v59 = vmul.f32 1.442695, %v5800_v46  ;;  %v6037_v35 = vsel %vm87_vm0, %v14109_v40, 0.0  ;;  %v6083_v14 = vmul.f32 %v13902_v21, %v16057_v61  ;;  %v16061_v61 = vld [vmem:[#allocation271_spill] sm:$0xff] }
 0x633   :  { %v6018_v6 = vadd.f32 %v6017_v12, %v6016_v24  ;;  %8268 = vpow2.f32 %v5911_v47  ;;  %v14133_v44 = vpop.permute.xlu0 %6332 }
 0x634   :  { %6671 = vrot.lane.b32.xlu1 %v6524_v17, %s8282_s6  ;;  %v14116_v57 = vpop.permute.xlu1 %6327 }
 0x635   :  { %8270 = vrcp.f32 %v6018_v6  ;;  %6699 = vrot.lane.b32.xlu0 %v6538_v45, %s8282_s6 }
 0x636   :  { %v14119_v19 = vpop.eup %8256  ;;  %8272 = vpow2.f32 %v5927_v59  ;;  %v16058_v59 = vld [vmem:[#allocation143_spill] sm:$0xff] }
 0x637   :  { %v14121_v31 = vpop.eup %8258  ;;  %v6034_v26 = vsel %vm87_vm0, %v14119_v19, 0.0  ;;  %v14171_v45 = vpop.permute.xlu0 %6472  ;;  %v6545_v6 = vmul.f32 %v16058_v59, %v13876_v29 }
 0x638   :  { %v14125_v15 = vpop.eup %8260  ;;  %v6035_v41 = vsel %vm87_vm0, %v14121_v31, 0.0  ;;  %v14129_v50 = vpop.permute.xlu1 %6467 }
 0x639   :  { %v14131_v42 = vpop.eup %8262  ;;  %v6036_v22 = vadd.f32 %v6035_v41, %v6034_v26 }
 0x63a   :  { %v6069_v3 = vmul.f32 %v14131_v42, %v13945_v20  ;;  %v6058_v27 = vmul.f32 %v14131_v42, %v13938_v36  ;;  %v14141_v46 = vpop.eup %8264  ;;  %v14145_v10 = vmul.f32 %v14131_v42, %v13886_v56  ;;  %v14149_v39 = vmul.f32 %v14131_v42, %v13891_v52 }
 0x63b   :  { %v6038_v60 = vadd.f32 %v6037_v35, %v6036_v22  ;;  %v6039_v20 = vsel %vm87_vm0, %v14125_v15, 0.0  ;;  %v6041_v56 = vsel %vm87_vm0, %v14141_v46, 0.0  ;;  %v14165_v52 = vmul.f32 %v14131_v42, %v13910_v16 }
 0x63c   :  { %v6517_v47 = vmul.f32 %v16056_v4, %v6069_v3  ;;  %v6509_v8 = vmul.f32 %v13870_v5, %v6058_v27  ;;  %v14155_v24 = vpop.permute.xlu1 %6262  ;;  %v14157_v36 = vpop.eup %8266  ;;  %v6531_v35 = vmul.f32 %v13900_v18, %v6083_v14  ;;  %v6091_v14 = vmul.f32 %v13902_v21, %v16061_v61  ;;  %v16068_v61 = vld [vmem:[#allocation247_spill] sm:$0xff] }
 0x63d   :  { %v6040_v12 = vadd.f32 %v6039_v20, %v6038_v60  ;;  %v8269_v17 = vpop.eup %8268  ;;  %v6043_v41 = vsel %vm87_vm0, %v14157_v36, 0.0 }
 0x63e   :  { %6657 = vrot.lane.b32.xlu0 %v6517_v47, %s8282_s6  ;;  %6641 = vrot.lane.b32.xlu1 %v6509_v8, %s8282_s6  ;;  %v6045_v29 = vsel %vm87_vm0, %v8269_v17, 0.0  ;;  %v16059_v47 = vld [vmem:[#allocation146_spill] sm:$0xff] }
 0x63f   :  { %v14167_v48 = vpop.eup %8270  ;;  %v6042_v5 = vadd.f32 %v6041_v56, %v6040_v12  ;;  %v14204_v56 = vpop.permute.xlu0 %6367 }
 0x640   :  { %v6070_v26 = vmul.f32 %v14167_v48, %v14006_v30  ;;  %v14179_v22 = vpop.permute.xlu1 %6402  ;;  %v8273_v16 = vpop.eup %8272  ;;  %v6060_v27 = vmul.f32 %v14167_v48, %v13987_v38  ;;  %v14186_v60 = vmul.f32 %v14167_v48, %v14048_v58  ;;  %v14193_v4 = vmul.f32 %v14167_v48, %v14058_v28  ;;  %v16060_v28 = vld [vmem:[#allocation161_spill] sm:$0xff] }
 0x641   :  { %v6044_v3 = vadd.f32 %v6043_v41, %v6042_v5  ;;  %v6047_v18 = vsel %vm87_vm0, %v8273_v16, 0.0  ;;  %v14201_v58 = vmul.f32 %v14167_v48, %v14038_v37  ;;  %v6546_v5 = vmul.f32 %v16060_v28, %v13907_v33  ;;  %v16062_v41 = vld [vmem:[#allocation149_spill] sm:$0xff] }
 0x642   :  { %6713 = vrot.lane.b32.xlu0 %v6545_v6, %s8282_s6  ;;  %6685 = vrot.lane.b32.xlu1 %v6531_v35, %s8282_s6  ;;  %v6518_v20 = vmul.f32 %v16059_v47, %v6070_v26  ;;  %v6510_v12 = vmul.f32 %v13929_v43, %v6060_v27  ;;  %v6532_v37 = vmul.f32 %v13967_v34, %v14052_v2  ;;  %v16063_v34 = vld [vmem:[#allocation262_spill] sm:$0xff]  ;;  %v16065_v27 = vld [vmem:[#allocation152_spill] sm:$0xff] }
 0x643   :  { %v6046_v30 = vadd.f32 %v6045_v29, %v6044_v3  ;;  %v14217_v43 = vpop.permute.xlu0 %6302  ;;  %v6077_v6 = vmul.f32 %v14131_v42, %v13953_v7  ;;  %v6539_v26 = vmul.f32 %v13882_v55, %v6091_v14  ;;  %v6078_v33 = vmul.f32 %v14167_v48, %v13931_v1  ;;  %v16064_v2 = vld [vmem:[#allocation274_spill] sm:$0xff] }
 0x644   :  { %v14197_v38 = vpop.permute.xlu1 %6297  ;;  %v6105_v35 = vmul.f32 %v16064_v2, %v16063_v34  ;;  %v6540_v28 = vmul.f32 %v14067_v62, %v14081_v9  ;;  %v16072_v62 = vld [vmem:[#allocation185_spill] sm:$0xff] }
 0x645   :  { %v6048_v8 = vadd.f32 %v6047_v18, %v6046_v30  ;;  %v6525_v3 = vmul.f32 %v16062_v41, %v6077_v6  ;;  %v6526_v7 = vmul.f32 %v16065_v27, %v6078_v33  ;;  %v16070_v6 = vld [vmem:[#allocation256_spill] sm:$0xff]  ;;  %v6085_v9 = vmul.f32 %v14131_v42, %v16072_v62 }
 0x646   :  { %6659 = vrot.lane.b32.xlu0 %v6518_v20, %s8282_s6  ;;  %6643 = vrot.lane.b32.xlu1 %v6510_v12, %s8282_s6  ;;  %v6553_v1 = vmul.f32 %v14036_v23, %v6105_v35  ;;  %v16066_v20 = vld [vmem:[#allocation189_spill] sm:$0xff] }
 0x647   :  { %8274 = vrcp.f32 %v6048_v8  ;;  %v6443_v55 = vpop.permute.xlu0 %6442  ;;  %v16067_v8 = vld [vmem:[#allocation278_spill] sm:$0xff]  ;;  %v16069_v23 = vld [vmem:[#allocation261_spill] sm:$0xff] }
 0x648   :  { %v14212_v59 = vpop.permute.xlu1 %6437  ;;  %v6554_v12 = vmul.f32 %v16067_v8, %v16066_v20  ;;  %v6071_v14 = vmul.f32 %v16069_v23, %v16068_v61  ;;  %v16075_v8 = vld [vmem:[#allocation276_spill] sm:$0xff] }
 0x64a   :  { %6715 = vrot.lane.b32.xlu0 %v6546_v5, %s8282_s6  ;;  %6687 = vrot.lane.b32.xlu1 %v6532_v37, %s8282_s6 }
 0x64b   :  { %v6408_v37 = vpop.permute.xlu0 %6407 }
 0x64c   :  { %v14225_v21 = vpop.permute.xlu1 %6372 }
 0x64e   :  { %6701 = vrot.lane.b32.xlu0 %v6539_v26, %s8282_s6  ;;  %6673 = vrot.lane.b32.xlu1 %v6525_v3, %s8282_s6  ;;  %v16073_v3 = vld [vmem:[#allocation156_spill] sm:$0xff] }
 0x64f   :  { %v6547_v34 = vmul.f32 %v14070_v0, %v16073_v3  ;;  %v6343_v27 = vpop.permute.xlu0 %6342  ;;  %v16079_v3 = vld [vmem:[#allocation181_spill] sm:$0xff] }
 0x650   :  { %v14233_v29 = vpop.permute.xlu1 %6337 }
 0x651   :  { %v14235_v30 = vpop.eup %8274 }
 0x652   :  { %6675 = vrot.lane.b32.xlu0 %v6526_v7, %s8282_s6  ;;  %6729 = vrot.lane.b32.xlu1 %v6553_v1, %s8282_s6  ;;  %v14241_v18 = vmul.f32 %v14235_v30, %v8269_v17  ;;  %v14244_v47 = vmul.f32 %v14235_v30, %v8273_v16  ;;  %v6062_v17 = vmul.f32 %v16069_v23, %v16070_v6  ;;  %v16071_v16 = vld [vmem:[#allocation153_spill] sm:$0xff] }
 0x653   :  { %v6519_v26 = vmul.f32 %v16071_v16, %v6071_v14  ;;  %v6064_v35 = vmul.f32 %v14235_v30, %v14119_v19  ;;  %v6533_v7 = vmul.f32 %v14116_v57, %v6085_v9  ;;  %v6483_v19 = vpop.permute.xlu0 %6482  ;;  %v6072_v57 = vmul.f32 %v14235_v30, %v14121_v31 }
 0x654   :  { %v14250_v5 = vpop.permute.xlu1 %6477  ;;  %v6511_v33 = vmul.f32 %v14086_v32, %v6062_v17  ;;  %v16074_v32 = vld [vmem:[#allocation277_spill] sm:$0xff]  ;;  %v6548_v6 = vmul.f32 %v14179_v22, %v14094_v13  ;;  %v16076_v17 = vld [vmem:[#allocation191_spill] sm:$0xff]  ;;  %v6555_v22 = vmul.f32 %v14212_v59, %v14103_v25  ;;  %v6549_v25 = vmul.f32 %v6408_v37, %v14145_v10 }
 0x655   :  { %v6113_v1 = vmul.f32 %v16064_v2, %v16074_v32  ;;  %v6512_v20 = vmul.f32 %v14113_v49, %v6064_v35  ;;  %v6520_v61 = vmul.f32 %v14155_v24, %v6072_v57  ;;  %v6093_v31 = vmul.f32 %v14131_v42, %v16076_v17  ;;  %v16087_v17 = vld [vmem:[#allocation17_spill] sm:$0xff] }
 0x656   :  { %6731 = vrot.lane.b32.xlu0 %v6554_v12, %s8282_s6  ;;  %6703 = vrot.lane.b32.xlu1 %v6540_v28, %s8282_s6  ;;  %v6086_v12 = vmul.f32 %v14167_v48, %v16075_v8  ;;  %v6088_v59 = vmul.f32 %v14235_v30, %v14125_v15  ;;  %v6096_v32 = vmul.f32 %v14235_v30, %v14141_v46  ;;  %v16082_v46 = vld [vmem:[#allocation38_spill] sm:$0xff] }
 0x657   :  { %v6561_v0 = vmul.f32 %v14129_v50, %v6113_v1  ;;  %v6562_v50 = vmul.f32 %v14171_v45, %v14046_v53  ;;  %v6448_v14 = vpop.permute.xlu0 %6447  ;;  %v6541_v16 = vmul.f32 %v14204_v56, %v6093_v31  ;;  %v6094_v56 = vmul.f32 %v14167_v48, %v14027_v54 }
 0x658   :  { %v6413_v41 = vpop.permute.xlu1 %6412  ;;  %v6534_v2 = vmul.f32 %v14133_v44, %v6086_v12  ;;  %v16077_v44 = vld [vmem:[#allocation169_spill] sm:$0xff]  ;;  %v6557_v12 = vmul.f32 %v6448_v14, %v14149_v39  ;;  %v16085_v39 = vld [vmem:[#allocation72_spill] sm:$0xff] }
 0x659   :  { %v6079_v24 = vmul.f32 %v16069_v23, %v16077_v44  ;;  %v6542_v62 = vmul.f32 %v14225_v21, %v6094_v56  ;;  %v6536_v21 = vmul.f32 %v6343_v27, %v6088_v59  ;;  %v6550_v15 = vmul.f32 %v6413_v41, %v14201_v58  ;;  %v16080_v27 = vld [vmem:[#allocation33_spill] sm:$0xff]  ;;  %v7052_v58 = vld [vmem:[%s14841_s19] sm:$0xff] }
 0x65a   :  { %6661 = vrot.lane.b32.xlu0 %v6519_v26, %s8282_s6  ;;  %6645 = vrot.lane.b32.xlu1 %v6511_v33, %s8282_s6  ;;  %v6080_v26 = vmul.f32 %v14235_v30, %v14109_v40  ;;  %v16088_v56 = vld [vmem:[#allocation49_spill] sm:$0xff] }
 0x65b   :  { %v6527_v53 = vmul.f32 %v14197_v38, %v6079_v24  ;;  %v6453_v13 = vpop.permute.xlu0 %6452  ;;  %v6556_v38 = vmul.f32 %v6443_v55, %v14056_v51  ;;  %v6563_v55 = vmul.f32 %v14250_v5, %v14107_v63  ;;  %v7450_v5 = vld [vmem:[%s14840_s17] ss:$0 sm:$0xff] }
 0x65c   :  { %v6378_v28 = vpop.permute.xlu1 %6377  ;;  %v6528_v42 = vmul.f32 %v14217_v43, %v6080_v26  ;;  %v16078_v43 = vld [vmem:[#allocation92_spill] sm:$0xff]  ;;  %v6558_v14 = vmul.f32 %v6453_v13, %v14186_v60  ;;  %v16090_v60 = vld [vmem:[#allocation103_spill] sm:$0xff] }
 0x65d   :  { %v6087_v9 = vmul.f32 %v16069_v23, %v16078_v43 }
 0x65e   :  { %6717 = vrot.lane.b32.xlu0 %v6547_v34, %s8282_s6  ;;  %6689 = vrot.lane.b32.xlu1 %v6533_v7, %s8282_s6  ;;  %v6095_v34 = vmul.f32 %v16069_v23, %v16079_v3  ;;  %v16081_v7 = vld [vmem:[#allocation90_spill] sm:$0xff]  ;;  %v7053_v23 = vld [vmem:[%s14841_s19 + $0x8] sm:$0xff]  ;;  %v16093_v3 = vld [vmem:[#allocation32_spill] sm:$0xff] }
 0x65f   :  { %v6488_v33 = vpop.permute.xlu0 %6487  ;;  %v6535_v54 = vmul.f32 %v14233_v29, %v6087_v9  ;;  %v6564_v29 = vmul.f32 %v6483_v19, %v14090_v11  ;;  %v3277_v11 = vadd.f32 %v16081_v7, %v16080_v27  ;;  %v8073_v1 = vpack.c.bf16 %v7053_v23, %v7052_v58  ;;  %v7451_v19 = vld [vmem:[%s14842_s18] ss:$0 sm:$0xff]  ;;  %v16091_v9 = vld [vmem:[#allocation44_spill] sm:$0xff] }
 0x660   :  { %v6383_v49 = vpop.permute.xlu1 %6382  ;;  %v6543_v63 = vmul.f32 %v6378_v28, %v6095_v34  ;;  %v16094_v34 = vld [vmem:[#allocation9_spill] sm:$0xff]  ;;  %v16095_v27 = vld [vmem:[#allocation40_spill] sm:$0xff] }
 0x661   :  { %8074 = vmatprep.subr.bf16.mxu0 %v8073_v1  ;;  %v16096_v7 = vld [vmem:[#allocation16_spill] sm:$0xff] }
 0x662   :  { %6647 = vrot.lane.b32.xlu0 %v6512_v20, %s8282_s6  ;;  %6745 = vrot.lane.b32.xlu1 %v6561_v0, %s8282_s6  ;;  %v6544_v20 = vmul.f32 %v6383_v49, %v6096_v32  ;;  %v16083_v0 = vld [vmem:[#allocation14_spill] sm:$0xff]  ;;  %v16084_v49 = vld [vmem:[#allocation31_spill] sm:$0xff] }
 0x663   :  { %v14325_v51 = vpop.permute.xlu0 %6492  ;;  %v3285_v28 = vadd.f32 %v16083_v0, %v16082_v46  ;;  %8076 = vmatpush3.bf16.msra.mxu0 %v8073_v1  ;;  %v16097_v1 = vld [vmem:[#allocation52_spill] sm:$0xff] }
 0x664   :  { %v14299_v45 = vpop.permute.xlu1 %6417 }
 0x665   :  { %v6551_v13 = vmul.f32 %v14299_v45, %v16090_v60  ;;  %v6566_v45 = vmul.f32 %v14325_v51, %v14193_v4  ;;  %v16108_v60 = vld [vmem:[#allocation24_spill] sm:$0xff] }
 0x666   :  { %6691 = vrot.lane.b32.xlu0 %v6534_v2, %s8282_s6  ;;  %6663 = vrot.lane.b32.xlu1 %v6520_v61, %s8282_s6 }
 0x667   :  { %v14335_v37 = vpop.permute.xlu0 %6462 }
 0x668   :  { %v14310_v40 = vpop.permute.xlu1 %6422  ;;  %v6560_v23 = vmul.f32 %v14335_v37, %v14241_v18 }
 0x66a   :  { %6747 = vrot.lane.b32.xlu0 %v6562_v50, %s8282_s6  ;;  %6719 = vrot.lane.b32.xlu1 %v6548_v6, %s8282_s6  ;;  %v3278_v50 = vadd.f32 %v16085_v39, %v16084_v49  ;;  %v16086_v6 = vld [vmem:[#allocation41_spill] sm:$0xff] }
 0x66b   :  { %v14356_v41 = vpop.permute.xlu0 %6502  ;;  %v3286_v31 = vadd.f32 %v16087_v17, %v16086_v6  ;;  %v16104_v6 = vld [vmem:[#allocation182_spill] sm:$0xff] }
 0x66c   :  { %v14320_v48 = vpop.permute.xlu1 %6457  ;;  %v6568_v39 = vmul.f32 %v14356_v41, %v14244_v47 }
 0x66e   :  { %6705 = vrot.lane.b32.xlu0 %v6541_v16, %s8282_s6  ;;  %6677 = vrot.lane.b32.xlu1 %v6527_v53, %s8282_s6 }
 0x670   :  { %v14332_v10 = vpop.permute.xlu1 %6497 }
 0x671   :  { %v6567_v17 = vmul.f32 %v14332_v10, %v16104_v6  ;;  %v16122_v6 = vld [vmem:[#allocation97_spill] sm:$0xff] }
 0x672   :  { %6679 = vrot.lane.b32.xlu0 %v6528_v42, %s8282_s6  ;;  %6733 = vrot.lane.b32.xlu1 %v6555_v22, %s8282_s6  ;;  %v6565_v42 = vmul.f32 %v6488_v33, %v14165_v52  ;;  %v6104_v52 = vmul.f32 %v14235_v30, %v14157_v36 }
 0x676   :  { %6735 = vrot.lane.b32.xlu0 %v6556_v38, %s8282_s6  ;;  %6707 = vrot.lane.b32.xlu1 %v6542_v62, %s8282_s6  ;;  %v16089_v38 = vld [vmem:[#allocation22_spill] sm:$0xff] }
 0x677   :  { %v3293_v62 = vadd.f32 %v16089_v38, %v16088_v56 }
 0x67a   :  { %6721 = vrot.lane.b32.xlu0 %v6549_v25, %s8282_s6  ;;  %6693 = vrot.lane.b32.xlu1 %v6535_v54, %s8282_s6  ;;  %v6634_v35 = vpop.permute.xlu1 %6633  ;;  %v16092_v25 = vld [vmem:[#allocation25_spill] sm:$0xff] }
 0x67b   :  { %v6825_v8 = vmul.f32 %v6634_v35, %v3277_v11  ;;  %v3294_v54 = vadd.f32 %v16092_v25, %v16091_v9  ;;  %v3287_v11 = vadd.f32 %v16096_v7, %v16095_v27  ;;  %v16109_v25 = vld [vmem:[#allocation56_spill] sm:$0xff]  ;;  %v16114_v27 = vld [vmem:[#allocation105_spill] sm:$0xff] }
 0x67d   :  { %v6890_v61 = vsel %vm6889_vm1, %v6825_v8, 0.0 }
 0x67e   :  { %6695 = vrot.lane.b32.xlu0 %v6536_v21, %s8282_s6  ;;  %6749 = vrot.lane.b32.xlu1 %v6563_v55, %s8282_s6 }
 0x682   :  { %6751 = vrot.lane.b32.xlu0 %v6564_v29, %s8282_s6  ;;  %6723 = vrot.lane.b32.xlu1 %v6550_v15, %s8282_s6 }
 0x686   :  { %6709 = vrot.lane.b32.xlu0 %v6543_v63, %s8282_s6  ;;  %7016 = vrot.lane.b32.xlu1 %v7450_v5, %s8282_s6  ;;  %v3279_v63 = vadd.f32 %v16094_v34, %v16093_v3  ;;  %v6552_v5 = vmul.f32 %v14310_v40, %v6104_v52  ;;  %v16111_v3 = vld [vmem:[#allocation46_spill] sm:$0xff]  ;;  %v16112_v34 = vld [vmem:[#allocation27_spill] sm:$0xff] }
 0x68a   :  { %6711 = vrot.lane.b32.xlu0 %v6544_v20, %s8282_s6  ;;  %6737 = vrot.lane.b32.xlu1 %v6557_v12, %s8282_s6  ;;  %v16098_v20 = vld [vmem:[#allocation93_spill] sm:$0xff] }
 0x68b   :  { %v6650_v57 = vpop.permute.xlu0 %6649  ;;  %v3301_v8 = vadd.f32 %v16098_v20, %v16097_v1  ;;  %v16099_v12 = vld [vmem:[#allocation253_spill] sm:$0xff] }
 0x68c   :  { %v6833_v2 = vmul.f32 %v6650_v57, %v3285_v28  ;;  %v6559_v46 = vmul.f32 %v14320_v48, %v16099_v12  ;;  %v16100_v57 = vld [vmem:[#allocation35_spill] sm:$0xff] }
 0x68d   :  { %v16103_v48 = vld [vmem:[#allocation19_spill] sm:$0xff] }
 0x68e   :  { %7033 = vrot.lane.b32.xlu0 %v7451_v19, %s8282_s6  ;;  %v6891_v44 = vsel %vm6889_vm1, %v6833_v2, 0.0  ;;  %v6636_v24 = vpop.permute.xlu1 %6635  ;;  %6739 = vrot.lane.b32.xlu1 %v6558_v14, %s8282_s6  ;;  %v16101_v2 = vld [vmem:[#allocation10_spill] sm:$0xff]  ;;  %v16116_v12 = vld [vmem:[#allocation15_spill] sm:$0xff] }
 0x68f   :  { %v6892_v16 = vadd.f32 %v6891_v44, %v6890_v61  ;;  %v6652_v26 = vpop.permute.xlu0 %6651  ;;  %v6826_v53 = vmul.f32 %v6636_v24, %v3278_v50  ;;  %v3280_v61 = vadd.f32 %v16101_v2, %v16100_v57  ;;  %v16102_v50 = vld [vmem:[#allocation43_spill] sm:$0xff]  ;;  %v7054_v24 = vld [vmem:[%s14841_s19 + $0x10] sm:$0xff] }
 0x690   :  { %v6834_v22 = vmul.f32 %v6652_v26, %v3286_v31  ;;  %v3288_v14 = vadd.f32 %v16103_v48, %v16102_v50  ;;  %v16105_v26 = vld [vmem:[#allocation4_spill] sm:$0xff] }
 0x691   :  { %v6905_v43 = vsel %vm6889_vm1, %v6826_v53, 0.0  ;;  %v16106_v53 = vld [vmem:[#allocation91_spill] sm:$0xff] }
 0x692   :  { %6753 = vrot.lane.b32.xlu0 %v6565_v42, %s8282_s6  ;;  %v6906_v59 = vsel %vm6889_vm1, %v6834_v22, 0.0  ;;  %v6666_v21 = vpop.permute.xlu1 %6665  ;;  %6725 = vrot.lane.b32.xlu1 %v6551_v13, %s8282_s6  ;;  %v3302_v47 = vadd.f32 %v16106_v53, %v16105_v26  ;;  %v16123_v53 = vld [vmem:[#allocation45_spill] sm:$0xff] }
 0x693   :  { %v6907_v33 = vadd.f32 %v6906_v59, %v6905_v43  ;;  %v6668_v55 = vpop.permute.xlu0 %6667  ;;  %v6841_v29 = vmul.f32 %v6666_v21, %v3293_v62  ;;  %v16107_v62 = vld [vmem:[#allocation51_spill] sm:$0xff] }
 0x694   :  { %v6842_v15 = vmul.f32 %v6668_v55, %v3294_v54  ;;  %v3295_v13 = vadd.f32 %v16108_v60, %v16107_v62  ;;  %v16110_v54 = vld [vmem:[#allocation107_spill] sm:$0xff] }
 0x695   :  { %v6893_v35 = vsel %vm6889_vm1, %v6841_v29, 0.0  ;;  %v3309_v59 = vadd.f32 %v16110_v54, %v16109_v25 }
 0x696   :  { %6755 = vrot.lane.b32.xlu0 %v6566_v45, %s8282_s6  ;;  %v6908_v36 = vsel %vm6889_vm1, %v6842_v15, 0.0  ;;  %v6894_v30 = vadd.f32 %v6893_v35, %v6892_v16  ;;  %v6638_v32 = vpop.permute.xlu1 %6637  ;;  %6727 = vrot.lane.b32.xlu1 %v6552_v5, %s8282_s6  ;;  %v7055_v16 = vld [vmem:[%s14841_s19 + $0x18] sm:$0xff]  ;;  %v16113_v35 = vld [vmem:[#allocation78_spill] sm:$0xff]  ;;  %s8284_s19 = smov 96  }
 0x697   :  { %v6909_v4 = vadd.f32 %v6908_v36, %v6907_v33  ;;  %v6654_v51 = vpop.permute.xlu0 %6653  ;;  %v6827_v58 = vmul.f32 %v6638_v32, %v3279_v63  ;;  %v8077_v22 = vpack.c.bf16 %v7055_v16, %v7054_v24  ;;  %v3296_v63 = vadd.f32 %v16112_v34, %v16111_v3 }
 0x698   :  { %v6835_v40 = vmul.f32 %v6654_v51, %v3287_v11  ;;  %v3310_v7 = vadd.f32 %v16114_v27, %v16113_v35 }
 0x699   :  { %v6920_v0 = vsel %vm6889_vm1, %v6827_v58, 0.0  ;;  %8078 = vmatprep.subr.bf16.mxu0 %v8077_v22 }
 0x69a   :  { %6743 = vrot.lane.b32.xlu0 %v6560_v23, %s8282_s6  ;;  %v6921_v28 = vsel %vm6889_vm1, %v6835_v40, 0.0  ;;  %v6682_v19 = vpop.permute.xlu1 %6681  ;;  %6741 = vrot.lane.b32.xlu1 %v6559_v46, %s8282_s6 }
 0x69b   :  { %v6922_v18 = vadd.f32 %v6921_v28, %v6920_v0  ;;  %v6640_v37 = vpop.permute.xlu0 %6639  ;;  %v6849_v49 = vmul.f32 %v6682_v19, %v3301_v8  ;;  %8080 = vmatpush3.bf16.msra.mxu0 %v8077_v22  ;;  %v16115_v8 = vld [vmem:[#allocation34_spill] sm:$0xff]  ;;  %v16125_v22 = vld [vmem:[#allocation37_spill] sm:$0xff] }
 0x69c   :  { %v6828_v31 = vmul.f32 %v6640_v37, %v3280_v61  ;;  %v3281_v46 = vadd.f32 %v16116_v12, %v16115_v8  ;;  %v16117_v0 = vld [vmem:[#allocation2_spill] sm:$0xff]  ;;  %v16119_v37 = vld [vmem:[#allocation60_spill] sm:$0xff]  ;;  %v16130_v8 = vld [vmem:[#allocation11_spill] sm:$0xff] }
 0x69d   :  { %v6895_v44 = vsel %vm6889_vm1, %v6849_v49, 0.0  ;;  %v16118_v28 = vld [vmem:[#allocation18_spill] sm:$0xff]  ;;  %v16120_v49 = vld [vmem:[#allocation120_spill] sm:$0xff] }
 0x69e   :  { %6759 = vrot.lane.b32.xlu0 %v6568_v39, %s8282_s6  ;;  %v6896_v41 = vadd.f32 %v6895_v44, %v6894_v30  ;;  %v6656_v42 = vpop.permute.xlu1 %6655  ;;  %6757 = vrot.lane.b32.xlu1 %v6567_v17, %s8282_s6  ;;  %v6935_v43 = vsel %vm6889_vm1, %v6828_v31, 0.0  ;;  %v3289_v19 = vadd.f32 %v16118_v28, %v16117_v0  ;;  %v3317_v39 = vadd.f32 %v16120_v49, %v16119_v37  ;;  %v16132_v0 = vld [vmem:[#allocation12_spill] sm:$0xff] }
 0x69f   :  { %v6684_v10 = vpop.permute.xlu0 %6683  ;;  %v6836_v56 = vmul.f32 %v6656_v42, %v3288_v14  ;;  %v16121_v14 = vld [vmem:[#allocation3_spill] sm:$0xff]  ;;  %v16136_v37 = vld [vmem:[#allocation20_spill] sm:$0xff] }
 0x6a0   :  { %v6850_v38 = vmul.f32 %v6684_v10, %v3302_v47  ;;  %v3303_v17 = vadd.f32 %v16122_v6, %v16121_v14  ;;  %v16124_v47 = vld [vmem:[#allocation21_spill] sm:$0xff]  ;;  %v16140_v6 = vld [vmem:[#allocation26_spill] sm:$0xff] }
 0x6a1   :  { %v6936_v9 = vsel %vm6889_vm1, %v6836_v56, 0.0  ;;  %v16126_v10 = vld [vmem:[#allocation13_spill] sm:$0xff] }
 0x6a2   :  { %v6910_v21 = vsel %vm6889_vm1, %v6850_v38, 0.0  ;;  %v6937_v52 = vadd.f32 %v6936_v9, %v6935_v43  ;;  %v6670_v33 = vpop.permute.xlu1 %6669  ;;  %v3282_v56 = vadd.f32 %v16126_v10, %v16125_v22  ;;  %v16139_v14 = vld [vmem:[#allocation53_spill] sm:$0xff]  ;;  %v16149_v10 = vld [vmem:[#allocation54_spill] sm:$0xff] }
 0x6a3   :  { %v6911_v55 = vadd.f32 %v6910_v21, %v6909_v4  ;;  %v6698_v29 = vpop.permute.xlu0 %6697  ;;  %v6843_v45 = vmul.f32 %v6670_v33, %v3295_v13 }
 0x6a4   :  { %v6857_v15 = vmul.f32 %v6698_v29, %v3309_v59 }
 0x6a5   :  { %v6923_v5 = vsel %vm6889_vm1, %v6843_v45, 0.0 }
 0x6a6   :  { %v6897_v11 = vsel %vm6889_vm1, %v6857_v15, 0.0  ;;  %v6924_v36 = vadd.f32 %v6923_v5, %v6922_v18  ;;  %v6672_v30 = vpop.permute.xlu1 %6671 }
 0x6a7   :  { %v6898_v32 = vadd.f32 %v6897_v11, %v6896_v41  ;;  %v6700_v51 = vpop.permute.xlu0 %6699  ;;  %v6844_v58 = vmul.f32 %v6672_v30, %v3296_v63  ;;  %v3290_v41 = vadd.f32 %v16124_v47, %v16123_v53  ;;  %v16145_v53 = vld [vmem:[#allocation30_spill] sm:$0xff] }
 0x6a8   :  { %v6858_v23 = vmul.f32 %v6700_v51, %v3310_v7 }
 0x6a9   :  { %v6938_v4 = vsel %vm6889_vm1, %v6844_v58, 0.0 }
 0x6aa   :  { %v6912_v40 = vsel %vm6889_vm1, %v6858_v23, 0.0  ;;  %v14444_v1 = vadd.f32 %v6938_v4, %v6937_v52 }
 0x6ab   :  { %v14446_v20 = vadd.f32 %v6912_v40, %v6911_v55  ;;  %v16129_v40 = vld [vmem:[#allocation39_spill] sm:$0xff] }
 0x6ac   :  { %v14502_v12 = vadd.f32 %v16130_v8, %v16129_v40  ;;  %v16156_v40 = vld [vmem:[#allocation75_spill] sm:$0xff]  ;;  %v16157_v8 = vld [vmem:[#allocation104_spill] sm:$0xff] }
 0x6b0   :  { %v6658_v57 = vpop.permute.xlu0 %6657  ;;  %v6642_v2 = vpop.permute.xlu1 %6641 }
 0x6b1   :  { %v6837_v61 = vmul.f32 %v6658_v57, %v3289_v19  ;;  %v6829_v18 = vmul.f32 %v6642_v2, %v3281_v46  ;;  %v16131_v46 = vld [vmem:[#allocation36_spill] sm:$0xff]  ;;  %v16133_v19 = vld [vmem:[#allocation42_spill] sm:$0xff]  ;;  %v16134_v57 = vld [vmem:[#allocation23_spill] sm:$0xff] }
 0x6b2   :  { %v14506_v28 = vadd.f32 %v16132_v0, %v16131_v46  ;;  %v14510_v2 = vadd.f32 %v16134_v57, %v16133_v19  ;;  %v14542_v46 = vadd.f32 %v16157_v8, %v16156_v40  ;;  %v16159_v0 = vld [vmem:[#allocation61_spill] sm:$0xff]  ;;  %v16175_v40 = vld [vmem:[#allocation118_spill] sm:$0xff] }
 0x6b3   :  { %v6951_v50 = vsel %vm6889_vm1, %v6837_v61, 0.0  ;;  %v6950_v48 = vsel %vm6889_vm1, %v6829_v18, 0.0  ;;  %v16135_v18 = vld [vmem:[#allocation47_spill] sm:$0xff]  ;;  %v16160_v19 = vld [vmem:[#allocation109_spill] sm:$0xff] }
 0x6b4   :  { %v14458_v31 = vadd.f32 %v6951_v50, %v6950_v48  ;;  %v6714_v44 = vpop.permute.xlu0 %6713  ;;  %v6686_v16 = vpop.permute.xlu1 %6685  ;;  %v3291_v49 = vadd.f32 %v16136_v37, %v16135_v18  ;;  %v16138_v50 = vld [vmem:[#allocation29_spill] sm:$0xff]  ;;  %16158 = vst [vmem:[#allocation165_spill] sm:$0xff] %v14542_v46  ;;  %v3312_v57 = vadd.f32 %v16160_v19, %v16159_v0  ;;  %v16161_v18 = vld [vmem:[#allocation82_spill] sm:$0xff]  ;;  %v16162_v37 = vld [vmem:[#allocation119_spill] sm:$0xff] }
 0x6b5   :  { %v6865_v24 = vmul.f32 %v6714_v44, %v3317_v39  ;;  %v6851_v26 = vmul.f32 %v6686_v16, %v3303_v17  ;;  %v16137_v39 = vld [vmem:[#allocation48_spill] sm:$0xff]  ;;  %v3297_v17 = vadd.f32 %v16140_v6, %v16139_v14  ;;  %v16141_v44 = vld [vmem:[#allocation50_spill] sm:$0xff]  ;;  %v16163_v14 = vld [vmem:[#allocation77_spill] sm:$0xff] }
 0x6b6   :  { %v3298_v48 = vadd.f32 %v16138_v50, %v16137_v39  ;;  %v3318_v39 = vadd.f32 %v16162_v37, %v16161_v18  ;;  %v16164_v6 = vld [vmem:[#allocation111_spill] sm:$0xff]  ;;  %v16177_v0 = vld [vmem:[#allocation65_spill] sm:$0xff]  ;;  %v16184_v46 = vld [vmem:[#allocation84_spill] sm:$0xff] }
 0x6b7   :  { %v6899_v42 = vsel %vm6889_vm1, %v6865_v24, 0.0  ;;  %v6925_v62 = vsel %vm6889_vm1, %v6851_v26, 0.0  ;;  %v16142_v24 = vld [vmem:[#allocation28_spill] sm:$0xff]  ;;  %v16144_v26 = vld [vmem:[#allocation55_spill] sm:$0xff]  ;;  %v16178_v19 = vld [vmem:[#allocation121_spill] sm:$0xff] }
 0x6b8   :  { %v14465_v38 = vadd.f32 %v6899_v42, %v6898_v32  ;;  %v6660_v60 = vpop.permute.xlu0 %6659  ;;  %v14468_v13 = vadd.f32 %v6925_v62, %v6924_v36  ;;  %v6644_v9 = vpop.permute.xlu1 %6643  ;;  %v14522_v16 = vadd.f32 %v16142_v24, %v16141_v44  ;;  %v14526_v47 = vadd.f32 %v16145_v53, %v16144_v26  ;;  %v16148_v42 = vld [vmem:[#allocation95_spill] sm:$0xff]  ;;  %v16165_v24 = vld [vmem:[#allocation58_spill] sm:$0xff]  ;;  %v16166_v26 = vld [vmem:[#allocation112_spill] sm:$0xff] }
 0x6b9   :  { %v6838_v43 = vmul.f32 %v6660_v60, %v3290_v41  ;;  %v6830_v25 = vmul.f32 %v6644_v9, %v3282_v56  ;;  %v16147_v41 = vld [vmem:[#allocation57_spill] sm:$0xff]  ;;  %v16150_v56 = vld [vmem:[#allocation98_spill] sm:$0xff]  ;;  %v16151_v60 = vld [vmem:[#allocation76_spill] sm:$0xff]  ;;  %v3311_v44 = vadd.f32 %v16164_v6, %v16163_v14  ;;  %v14552_v53 = vadd.f32 %v16166_v26, %v16165_v24 }
 0x6ba   :  { %16143 = vst [vmem:[#allocation145_spill] sm:$0xff] %v14522_v16  ;;  %16146 = vst [vmem:[#allocation147_spill] sm:$0xff] %v14526_v47  ;;  %v3304_v22 = vadd.f32 %v16148_v42, %v16147_v41  ;;  %v14532_v62 = vadd.f32 %v16150_v56, %v16149_v10  ;;  %v16168_v41 = vld [vmem:[#allocation80_spill] sm:$0xff]  ;;  %v16169_v42 = vld [vmem:[#allocation114_spill] sm:$0xff]  ;;  %v3320_v18 = vadd.f32 %v16178_v19, %v16177_v0 }
 0x6bb   :  { %v6966_v54 = vsel %vm6889_vm1, %v6838_v43, 0.0  ;;  %v6965_v59 = vsel %vm6889_vm1, %v6830_v25, 0.0  ;;  %v16152_v43 = vld [vmem:[#allocation100_spill] sm:$0xff]  ;;  %v16153_v25 = vld [vmem:[#allocation59_spill] sm:$0xff]  ;;  %16167 = vst [vmem:[#allocation230_spill] sm:$0xff] %v14552_v53  ;;  %v14556_v10 = vadd.f32 %v16169_v42, %v16168_v41  ;;  %v16179_v37 = vld [vmem:[#allocation81_spill] sm:$0xff] }
 0x6bc   :  { %v6716_v21 = vpop.permute.xlu0 %6715  ;;  %v14472_v52 = vadd.f32 %v6966_v54, %v6965_v59  ;;  %v6688_v33 = vpop.permute.xlu1 %6687  ;;  %v3305_v9 = vadd.f32 %v16152_v43, %v16151_v60  ;;  %v16154_v54 = vld [vmem:[#allocation102_spill] sm:$0xff]  ;;  %v16170_v56 = vld [vmem:[#allocation63_spill] sm:$0xff]  ;;  %v16171_v60 = vld [vmem:[#allocation116_spill] sm:$0xff] }
 0x6bd   :  { %v14538_v59 = vadd.f32 %v16154_v54, %v16153_v25  ;;  %v14560_v43 = vadd.f32 %v16171_v60, %v16170_v56  ;;  %v16174_v54 = vld [vmem:[#allocation79_spill] sm:$0xff]  ;;  %v16180_v14 = vld [vmem:[#allocation122_spill] sm:$0xff]  ;;  %v6866_v24 = vmul.f32 %v6716_v21, %v3318_v39  ;;  %v16185_v56 = vld [vmem:[#allocation124_spill] sm:$0xff] }
 0x6be   :  { %v14566_v8 = vadd.f32 %v16175_v40, %v16174_v54  ;;  %v3319_v6 = vadd.f32 %v16180_v14, %v16179_v37  ;;  %v16181_v26 = vld [vmem:[#allocation62_spill] sm:$0xff]  ;;  %v16182_v41 = vld [vmem:[#allocation123_spill] sm:$0xff]  ;;  %v14578_v60 = vadd.f32 %v16185_v56, %v16184_v46  ;;  %v6852_v54 = vmul.f32 %v6688_v33, %v3304_v22  ;;  %v16194_v39 = vld [vmem:[#allocation64_spill] sm:$0xff] }
 0x6bf   :  { %16155 = vst [vmem:[#allocation171_spill] sm:$0xff] %v14538_v59  ;;  %16172 = vst [vmem:[#allocation231_spill] sm:$0xff] %v14560_v43  ;;  %v14574_v42 = vadd.f32 %v16182_v41, %v16181_v26  ;;  %v16186_v43 = vld [vmem:[#allocation67_spill] sm:$0xff]  ;;  %v16187_v59 = vld [vmem:[#allocation125_spill] sm:$0xff] }
 0x6c0   :  { %v6702_v55 = vpop.permute.xlu0 %6701  ;;  %v6674_v29 = vpop.permute.xlu1 %6673  ;;  %16176 = vst [vmem:[#allocation168_spill] sm:$0xff] %v14566_v8  ;;  %v16189_v40 = vld [vmem:[#allocation83_spill] sm:$0xff]  ;;  %v16190_v8 = vld [vmem:[#allocation126_spill] sm:$0xff]  ;;  %v16195_v14 = vld [vmem:[#allocation128_spill] sm:$0xff] }
 0x6c1   :  { %16183 = vst [vmem:[#allocation214_spill] sm:$0xff] %v14574_v42  ;;  %v14586_v0 = vadd.f32 %v16190_v8, %v16189_v40  ;;  %v16192_v19 = vld [vmem:[#allocation86_spill] sm:$0xff]  ;;  %v16193_v37 = vld [vmem:[#allocation127_spill] sm:$0xff]  ;;  %v3325_v26 = vadd.f32 %v16195_v14, %v16194_v39  ;;  %v16196_v41 = vld [vmem:[#allocation69_spill] sm:$0xff]  ;;  %v6859_v8 = vmul.f32 %v6702_v55, %v3311_v44  ;;  %v6845_v40 = vmul.f32 %v6674_v29, %v3297_v17 }
 0x6c2   :  { %v3326_v21 = vadd.f32 %v16193_v37, %v16192_v19  ;;  %v16197_v16 = vld [vmem:[#allocation129_spill] sm:$0xff]  ;;  %v16201_v33 = vld [vmem:[#allocation131_spill] sm:$0xff]  ;;  %v16204_v19 = vld [vmem:[#allocation8_spill] sm:$0xff]  ;;  %v6914_v39 = vsel %vm6889_vm1, %v6866_v24, 0.0 }
 0x6c3   :  { %16191 = vst [vmem:[#allocation235_spill] sm:$0xff] %v14586_v0  ;;  %v3328_v42 = vadd.f32 %v16197_v16, %v16196_v41  ;;  %v16198_v56 = vld [vmem:[#allocation85_spill] sm:$0xff]  ;;  %v16205_v37 = vld [vmem:[#allocation132_spill] sm:$0xff]  ;;  %v16206_v41 = vld [vmem:[#allocation6_spill] sm:$0xff] }
 0x6c4   :  { %v6676_v45 = vpop.permute.xlu0 %6675  ;;  %v6730_v15 = vpop.permute.xlu1 %6729  ;;  %v14606_v0 = vadd.f32 %v16205_v37, %v16204_v19  ;;  %v16207_v47 = vld [vmem:[#allocation135_spill] sm:$0xff]  ;;  %v16210_v29 = vld [vmem:[#allocation73_spill] sm:$0xff]  ;;  %v16214_v37 = vld [vmem:[#allocation70_spill] sm:$0xff] }
 0x6c5   :  { %v6846_v16 = vmul.f32 %v6676_v45, %v3298_v48  ;;  %v6873_v14 = vmul.f32 %v6730_v15, %v3325_v26  ;;  %v16211_v17 = vld [vmem:[#allocation137_spill] sm:$0xff]  ;;  %v16216_v45 = vld [vmem:[#allocation7_spill] sm:$0xff]  ;;  %v16217_v15 = vld [vmem:[#allocation140_spill] sm:$0xff]  ;;  %v6915_v26 = vadd.f32 %v6914_v39, %v14446_v20 }
 0x6c6   :  { %v3336_v44 = vadd.f32 %v16211_v17, %v16210_v29  ;;  %v14624_v48 = vadd.f32 %v16217_v15, %v16216_v45 }
 0x6c8   :  { %v14474_v3 = vpop.permute.xlu0 %6731  ;;  %v6704_v34 = vpop.permute.xlu1 %6703 }
 0x6c9   :  { %v6860_v55 = vmul.f32 %v6704_v34, %v3312_v57  ;;  %v6927_v34 = vsel %vm6889_vm1, %v6859_v8, 0.0  ;;  %v6953_v57 = vsel %vm6889_vm1, %v6845_v40, 0.0 }
 0x6ca   :  { %v6928_v40 = vadd.f32 %v6927_v34, %v14468_v13 }
 0x6cb   :  { %v6942_v29 = vsel %vm6889_vm1, %v6860_v55, 0.0 }
 0x6cc   :  { %v14476_v63 = vpop.permute.xlu0 %6661  ;;  %v14478_v5 = vpop.permute.xlu1 %6645 }
 0x6cd   :  { %v6839_v17 = vmul.f32 %v14476_v63, %v3291_v49  ;;  %v6831_v20 = vmul.f32 %v14478_v5, %v14506_v28 }
 0x6d0   :  { %v14480_v35 = vpop.permute.xlu0 %6717  ;;  %v14482_v27 = vpop.permute.xlu1 %6689 }
 0x6d4   :  { %v14484_v7 = vpop.permute.xlu0 %6647  ;;  %v14486_v11 = vpop.permute.xlu1 %6745 }
 0x6d8   :  { %v14488_v36 = vpop.permute.xlu0 %6691  ;;  %v14490_v30 = vpop.permute.xlu1 %6663 }
 0x6dc   :  { %v14492_v32 = vpop.permute.xlu0 %6747  ;;  %v6720_v51 = vpop.permute.xlu1 %6719 }
 0x6e0   :  { %v14494_v58 = vpop.permute.xlu0 %6705  ;;  %v14496_v23 = vpop.permute.xlu1 %6677 }
 0x6e1   :  { %16127 = vst [vmem:[#allocation157_spill] sm:$0xff] %v14496_v23  ;;  %v16199_v23 = vld [vmem:[#allocation130_spill] sm:$0xff] }
 0x6e4   :  { %v14498_v4 = vpop.permute.xlu0 %6679  ;;  %v14512_v61 = vpop.permute.xlu1 %6733 }
 0x6e5   :  { %16128 = vst [vmem:[#allocation144_spill] sm:$0xff] %v14498_v4  ;;  %v14582_v4 = vadd.f32 %v16187_v59, %v16186_v43  ;;  %v3327_v59 = vadd.f32 %v16199_v23, %v16198_v56  ;;  %v16200_v43 = vld [vmem:[#allocation66_spill] sm:$0xff]  ;;  %v16208_v23 = vld [vmem:[#allocation68_spill] sm:$0xff] }
 0x6e6   :  { %v14600_v22 = vadd.f32 %v16201_v33, %v16200_v43  ;;  %v16209_v56 = vld [vmem:[#allocation136_spill] sm:$0xff]  ;;  %v6940_v43 = vsel %vm6889_vm1, %v6852_v54, 0.0  ;;  %v6868_v54 = vmul.f32 %v6720_v51, %v3320_v18  ;;  %v6954_v51 = vadd.f32 %v6953_v57, %v14458_v31 }
 0x6e7   :  { %16188 = vst [vmem:[#allocation205_spill] sm:$0xff] %v14582_v4  ;;  %v3333_v53 = vadd.f32 %v16209_v56, %v16208_v23  ;;  %v16212_v33 = vld [vmem:[#allocation88_spill] sm:$0xff]  ;;  %v6968_v23 = vsel %vm6889_vm1, %v6846_v16, 0.0  ;;  %v6874_v56 = vmul.f32 %v14474_v3, %v3326_v21  ;;  %v6853_v18 = vmul.f32 %v14482_v27, %v3305_v9 }
 0x6e8   :  { %v6736_v50 = vpop.permute.xlu0 %6735  ;;  %v14562_v25 = vpop.permute.xlu1 %6707  ;;  %16202 = vst [vmem:[#allocation148_spill] sm:$0xff] %v14600_v22  ;;  %v16215_v22 = vld [vmem:[#allocation139_spill] sm:$0xff]  ;;  %v14644_v16 = vadd.f32 %v6968_v23, %v14472_v52  ;;  %v6944_v63 = vsel %vm6889_vm1, %v6868_v54, 0.0  ;;  %v6875_v31 = vmul.f32 %v14512_v61, %v3327_v59  ;;  %v6981_v27 = vsel %vm6889_vm1, %v6839_v17, 0.0 }
 0x6e9   :  { %16173 = vst [vmem:[#allocation196_spill] sm:$0xff] %v14562_v25  ;;  %v3334_v25 = vadd.f32 %v16207_v47, %v16206_v41  ;;  %v14620_v24 = vadd.f32 %v16215_v22, %v16214_v37  ;;  %v6901_v22 = vsel %vm6889_vm1, %v6873_v14, 0.0  ;;  %v6876_v8 = vmul.f32 %v6736_v50, %v3328_v42  ;;  %v16220_v17 = vld [vmem:[#allocation147_spill] sm:$0xff] }
 0x6ea   :  { %v6881_v3 = vmul.f32 %v14486_v11, %v3333_v53  ;;  %v6902_v5 = vadd.f32 %v6901_v22, %v14465_v38  ;;  %v6980_v52 = vsel %vm6889_vm1, %v6831_v20, 0.0  ;;  %v6955_v50 = vsel %vm6889_vm1, %v6853_v18, 0.0  ;;  %v16221_v20 = vld [vmem:[#allocation157_spill] sm:$0xff]  ;;  %v16222_v18 = vld [vmem:[#allocation214_spill] sm:$0xff] }
 0x6eb   :  { %v6882_v13 = vmul.f32 %v14492_v32, %v3334_v25  ;;  %v6946_v9 = vsel %vm6889_vm1, %v6876_v8, 0.0  ;;  %v6832_v32 = vmul.f32 %v14484_v7, %v14502_v12  ;;  %v6861_v25 = vmul.f32 %v14494_v58, %v14556_v10 }
 0x6ec   :  { %v14594_v46 = vpop.permute.xlu0 %6721  ;;  %v14602_v4 = vpop.permute.xlu1 %6693  ;;  %v6903_v61 = vsel %vm6889_vm1, %v6881_v3, 0.0  ;;  %v6854_v14 = vmul.f32 %v14488_v36, %v14532_v62  ;;  %v6931_v55 = vsel %vm6889_vm1, %v6875_v31, 0.0  ;;  %v6840_v12 = vmul.f32 %v14490_v30, %v14510_v2 }
 0x6ed   :  { %16203 = vst [vmem:[#allocation170_spill] sm:$0xff] %v14602_v4  ;;  %v16213_v4 = vld [vmem:[#allocation138_spill] sm:$0xff]  ;;  %v6956_v58 = vadd.f32 %v6955_v50, %v6954_v51  ;;  %v6869_v10 = vmul.f32 %v14594_v46, %v14578_v60  ;;  %v6904_v62 = vadd.f32 %v6903_v61, %v6902_v5  ;;  %v6957_v34 = vsel %vm6889_vm1, %v6861_v25, 0.0  ;;  %v16223_v5 = vld [vmem:[#allocation145_spill] sm:$0xff]  ;;  %v16226_v61 = vld [vmem:[#allocation171_spill] sm:$0xff] }
 0x6ee   :  { %v3335_v19 = vadd.f32 %v16213_v4, %v16212_v33  ;;  %v6941_v4 = vadd.f32 %v6940_v43, %v14444_v1  ;;  %v6867_v1 = vmul.f32 %v14480_v35, %v3319_v6  ;;  %v6916_v35 = vsel %vm6889_vm1, %v6874_v56, 0.0 }
 0x6ef   :  { %v6918_v43 = vsel %vm6889_vm1, %v6882_v13, 0.0  ;;  %v6917_v33 = vadd.f32 %v6916_v35, %v6915_v26  ;;  %v6995_v54 = vsel %vm6889_vm1, %v6832_v32, 0.0  ;;  %v6996_v60 = vsel %vm6889_vm1, %v6840_v12, 0.0 }
 0x6f0   :  { %v14626_v47 = vpop.permute.xlu0 %6695  ;;  %v6750_v41 = vpop.permute.xlu1 %6749  ;;  %v6943_v28 = vadd.f32 %v6942_v29, %v6941_v4  ;;  %v6929_v11 = vsel %vm6889_vm1, %v6867_v1, 0.0  ;;  %v16218_v4 = vld [vmem:[#allocation230_spill] sm:$0xff]  ;;  %v16219_v30 = vld [vmem:[#allocation196_spill] sm:$0xff]  ;;  %v6958_v29 = vadd.f32 %v6957_v34, %v6956_v58  ;;  %v6847_v8 = vmul.f32 %v16221_v20, %v16220_v17  ;;  %v16233_v20 = vld [vmem:[#allocation71_spill] sm:$0xff] }
 0x6f1   :  { %v6883_v6 = vmul.f32 %v6750_v41, %v3335_v19  ;;  %v14671_v19 = vadd.f32 %v6981_v27, %v6980_v52  ;;  %v6930_v7 = vadd.f32 %v6929_v11, %v6928_v40  ;;  %v6919_v15 = vadd.f32 %v6918_v43, %v6917_v33  ;;  %v16225_v52 = vld [vmem:[#allocation148_spill] sm:$0xff]  ;;  %v16229_v33 = vld [vmem:[#allocation231_spill] sm:$0xff] }
 0x6f2   :  { %v6945_v53 = vadd.f32 %v6944_v63, %v6943_v28  ;;  %v6970_v41 = vsel %vm6889_vm1, %v6854_v14, 0.0  ;;  %v6862_v2 = vmul.f32 %v16219_v30, %v16218_v4  ;;  %v6959_v40 = vsel %vm6889_vm1, %v6869_v10, 0.0  ;;  %v16224_v28 = vld [vmem:[#allocation144_spill] sm:$0xff]  ;;  %v16227_v14 = vld [vmem:[#allocation165_spill] sm:$0xff] }
 0x6f3   :  { %v6933_v37 = vsel %vm6889_vm1, %v6883_v6, 0.0  ;;  %v6932_v57 = vadd.f32 %v6931_v55, %v6930_v7  ;;  %v6848_v13 = vmul.f32 %v16224_v28, %v16223_v5  ;;  %v6997_v6 = vadd.f32 %v6996_v60, %v6995_v54 }
 0x6f4   :  { %v6752_v39 = vpop.permute.xlu0 %6751  ;;  %v6724_v21 = vpop.permute.xlu1 %6723  ;;  %v6972_v31 = vsel %vm6889_vm1, %v6862_v2, 0.0  ;;  %v6960_v32 = vadd.f32 %v6959_v40, %v6958_v29  ;;  %v6856_v25 = vmul.f32 %v14626_v47, %v16226_v61  ;;  %v16228_v43 = vld [vmem:[#allocation170_spill] sm:$0xff] }
 0x6f5   :  { %v6884_v49 = vmul.f32 %v6752_v39, %v3336_v44  ;;  %v6947_v44 = vadd.f32 %v6946_v9, %v6945_v53  ;;  %v6934_v46 = vadd.f32 %v6933_v37, %v6932_v57  ;;  %v6870_v39 = vmul.f32 %v6724_v21, %v16222_v18  ;;  %v16230_v57 = vld [vmem:[#allocation168_spill] sm:$0xff] }
 0x6f6   :  { %v6971_v53 = vadd.f32 %v6970_v41, %v14644_v16  ;;  %v6855_v55 = vmul.f32 %v16228_v43, %v16227_v14  ;;  %v6983_v16 = vsel %vm6889_vm1, %v6847_v8, 0.0  ;;  %v6998_v47 = vsel %vm6889_vm1, %v6848_v13, 0.0  ;;  %v16234_v8 = vld [vmem:[#allocation133_spill] sm:$0xff] }
 0x6f7   :  { %v6948_v42 = vsel %vm6889_vm1, %v6884_v49, 0.0  ;;  %v6999_v4 = vadd.f32 %v6998_v47, %v6997_v6  ;;  %v3332_v40 = vadd.f32 %v16234_v8, %v16233_v20  ;;  %v7208_v20 = vld [vmem:[%s14844_s4] sm:$0xff] }
 0x6f8   :  { %v14657_v38 = vpop.permute.xlu0 %6709  ;;  %v14665_v59 = vpop.permute.xlu1 %7016  ;;  %v6949_v45 = vadd.f32 %v6948_v42, %v6947_v44  ;;  %v6974_v44 = vsel %vm6889_vm1, %v6870_v39, 0.0  ;;  %v6973_v10 = vadd.f32 %v6972_v31, %v6971_v53  ;;  %v6985_v30 = vsel %vm6889_vm1, %v6855_v55, 0.0  ;;  %v16235_v39 = vld [vmem:[#allocation87_spill] sm:$0xff]  ;;  %v16238_v53 = vld [vmem:[#allocation141_spill] sm:$0xff] }
 0x6f9   :  { %v7020_v22 = vmul.f32 %v14665_v59, %v6919_v15  ;;  %v7019_v56 = vmul.f32 %v14665_v59, %v6904_v62  ;;  %v7021_v49 = vmul.f32 %v14665_v59, %v6934_v46 }
 0x6fa   :  { %v7022_v1 = vmul.f32 %v14665_v59, %v6949_v45  ;;  %v6975_v34 = vadd.f32 %v6974_v44, %v6973_v10 }
 0x6fc   :  { %v6712_v36 = vpop.permute.xlu0 %6711  ;;  %v6738_v26 = vpop.permute.xlu1 %6737 }
 0x6fd   :  { %v6877_v23 = vmul.f32 %v6738_v26, %v14606_v0  ;;  %v6864_v7 = vmul.f32 %v6712_v36, %v16229_v33  ;;  %v6863_v26 = vmul.f32 %v14657_v38, %v16230_v57  ;;  %v16232_v38 = vld [vmem:[#allocation205_spill] sm:$0xff] }
 0x6ff   :  { %v6961_v35 = vsel %vm6889_vm1, %v6877_v23, 0.0  ;;  %v7002_v2 = vsel %vm6889_vm1, %v6864_v7, 0.0 }
 0x700   :  { %v14690_v51 = vpop.permute.xlu0 %7033  ;;  %v6740_v0 = vpop.permute.xlu1 %6739  ;;  %v6962_v37 = vadd.f32 %v6961_v35, %v6960_v32 }
 0x701   :  { %v7037_v3 = vadd.f32 %v14690_v51, %v7020_v22  ;;  %v7036_v63 = vadd.f32 %v14690_v51, %v7019_v56  ;;  %v7039_v27 = vadd.f32 %v14690_v51, %v7022_v1  ;;  %v6878_v9 = vmul.f32 %v6740_v0, %v16225_v52  ;;  %v16231_v56 = vld [vmem:[#allocation235_spill] sm:$0xff]  ;;  %v16236_v0 = vld [vmem:[#allocation134_spill] sm:$0xff] }
 0x702   :  { %v7038_v50 = vadd.f32 %v14690_v51, %v7021_v49  ;;  %v6984_v1 = vadd.f32 %v6983_v16, %v14671_v19 }
 0x703   :  { %v7045_v11 = vmax.f32 %v7037_v3, 0.0  ;;  %v7044_v21 = vmax.f32 %v7036_v63, 0.0  ;;  %v6976_v45 = vsel %vm6889_vm1, %v6878_v9, 0.0  ;;  %v7047_v15 = vmax.f32 %v7039_v27, 0.0 }
 0x704   :  { %v6754_v42 = vpop.permute.xlu0 %6753  ;;  %v6726_v58 = vpop.permute.xlu1 %6725  ;;  %v7046_v36 = vmax.f32 %v7038_v50, 0.0  ;;  %v6977_v46 = vadd.f32 %v6976_v45, %v6975_v34  ;;  %v3331_v3 = vadd.f32 %v16236_v0, %v16235_v39  ;;  %v6987_v63 = vsel %vm6889_vm1, %v6863_v26, 0.0  ;;  %v16237_v50 = vld [vmem:[#allocation74_spill] sm:$0xff] }
 0x705   :  { %v6885_v12 = vmul.f32 %v6754_v42, %v14624_v48  ;;  %7073 = vrot.lane.b32.xlu0 %v7045_v11, %s8284_s19  ;;  %7071 = vrot.lane.b32.xlu1 %v7044_v21, %s8284_s19  ;;  %v7000_v48 = vsel %vm6889_vm1, %v6856_v25, 0.0  ;;  %v6871_v29 = vmul.f32 %v6726_v58, %v16231_v56  ;;  %v6986_v13 = vadd.f32 %v6985_v30, %v6984_v1  ;;  %v16239_v25 = vld [vmem:[#allocation89_spill] sm:$0xff]  ;;  %v16240_v42 = vld [vmem:[#allocation142_spill] sm:$0xff] }
 0x706   :  { %v7001_v18 = vadd.f32 %v7000_v48, %v6999_v4  ;;  %v3340_v6 = vadd.f32 %v16238_v53, %v16237_v50  ;;  %v3339_v14 = vadd.f32 %v16240_v42, %v16239_v25  ;;  %v7215_v25 = vld [vmem:[%s14844_s4 + $0x38] sm:$0xff] }
 0x707   :  { %v6963_v62 = vsel %vm6889_vm1, %v6885_v12, 0.0  ;;  %v6989_v19 = vsel %vm6889_vm1, %v6871_v29, 0.0  ;;  %v6988_v32 = vadd.f32 %v6987_v63, %v6986_v13  ;;  %v7209_v29 = vld [vmem:[%s14844_s4 + $0x8] sm:$0xff]  ;;  %v7210_v63 = vld [vmem:[%s14844_s4 + $0x10] sm:$0xff] }
 0x708   :  { %v6964_v54 = vadd.f32 %v6963_v62, %v6962_v37  ;;  %v6756_v41 = vpop.permute.xlu0 %6755  ;;  %v6728_v60 = vpop.permute.xlu1 %6727  ;;  %v7003_v31 = vadd.f32 %v7002_v2, %v7001_v18 }
 0x709   :  { %v6886_v23 = vmul.f32 %v6756_v41, %v14620_v24  ;;  %7077 = vrot.lane.b32.xlu0 %v7047_v15, %s8284_s19  ;;  %7075 = vrot.lane.b32.xlu1 %v7046_v36, %s8284_s19  ;;  %v6872_v17 = vmul.f32 %v6728_v60, %v16232_v38  ;;  %v6990_v7 = vadd.f32 %v6989_v19, %v6988_v32 }
 0x70a   :  { %v7023_v22 = vmul.f32 %v14665_v59, %v6964_v54 }
 0x70b   :  { %v6978_v24 = vsel %vm6889_vm1, %v6886_v23, 0.0  ;;  %v7004_v35 = vsel %vm6889_vm1, %v6872_v17, 0.0 }
 0x70c   :  { %v7040_v49 = vadd.f32 %v14690_v51, %v7023_v22  ;;  %v6979_v5 = vadd.f32 %v6978_v24, %v6977_v46  ;;  %v6744_v28 = vpop.permute.xlu0 %6743  ;;  %v6742_v52 = vpop.permute.xlu1 %6741  ;;  %v7005_v55 = vadd.f32 %v7004_v35, %v7003_v31  ;;  %v7452_v22 = vld [vmem:[%s14843_s20] ss:$0 sm:$0xff]  ;;  %v7211_v24 = vld [vmem:[%s14844_s4 + $0x18] sm:$0xff] }
 0x70d   :  { %v6880_v27 = vmul.f32 %v6744_v28, %v3332_v40  ;;  %v6879_v11 = vmul.f32 %v6742_v52, %v3331_v3  ;;  %v7213_v52 = vld [vmem:[%s14844_s4 + $0x28] sm:$0xff] }
 0x70e   :  { %v7024_v9 = vmul.f32 %v14665_v59, %v6979_v5  ;;  %v7048_v21 = vmax.f32 %v7040_v49, 0.0 }
 0x70f   :  { %v7006_v61 = vsel %vm6889_vm1, %v6880_v27, 0.0  ;;  %v6991_v44 = vsel %vm6889_vm1, %v6879_v11, 0.0  ;;  %v7212_v11 = vld [vmem:[%s14844_s4 + $0x20] sm:$0xff] }
 0x710   :  { %v7041_v43 = vadd.f32 %v14690_v51, %v7024_v9  ;;  %v6760_v33 = vpop.permute.xlu0 %6759  ;;  %7079 = vrot.lane.b32.xlu1 %v7048_v21, %s8284_s19  ;;  %v6758_v58 = vpop.permute.xlu1 %6757  ;;  %v7007_v16 = vadd.f32 %v7006_v61, %v7005_v55  ;;  %v6992_v37 = vadd.f32 %v6991_v44, %v6990_v7 }
 0x711   :  { %v6888_v12 = vmul.f32 %v6760_v33, %v3340_v6  ;;  %v6887_v47 = vmul.f32 %v6758_v58, %v3339_v14 }
 0x712   :  { %v7049_v10 = vmax.f32 %v7041_v43, 0.0  ;;  %v7214_v43 = vld [vmem:[%s14844_s4 + $0x30] sm:$0xff] }
 0x713   :  { %v7008_v45 = vsel %vm6889_vm1, %v6888_v12, 0.0  ;;  %v6993_v15 = vsel %vm6889_vm1, %v6887_v47, 0.0 }
 0x714   :  { %v7009_v62 = vadd.f32 %v7008_v45, %v7007_v16  ;;  %7081 = vrot.lane.b32.xlu0 %v7049_v10, %s8284_s19  ;;  %v6994_v36 = vadd.f32 %v6993_v15, %v6992_v37 }
 0x716   :  { %v7026_v48 = vmul.f32 %v14665_v59, %v7009_v62  ;;  %v7025_v34 = vmul.f32 %v14665_v59, %v6994_v36 }
 0x718   :  { %v7043_v57 = vadd.f32 %v14690_v51, %v7026_v48  ;;  %v7042_v26 = vadd.f32 %v14690_v51, %v7025_v34 }
 0x71a   :  { %v7051_v54 = vmax.f32 %v7043_v57, 0.0  ;;  %v7050_v41 = vmax.f32 %v7042_v26, 0.0 }
 0x71c   :  { %7085 = vrot.lane.b32.xlu0 %v7051_v54, %s8284_s19  ;;  %7083 = vrot.lane.b32.xlu1 %v7050_v41, %s8284_s19 }
 0x777   :  { %v7074_v4 = vpop.permute.xlu0 %7073  ;;  %v7072_v30 = vpop.permute.xlu1 %7071 }
 0x778   :  { %8029 = vmatprep.mubr.msk.f32.mxu0 %vm87_vm0, %v7072_v30 }
 0x779   :  { %8030 = vmatmul.mubr.msk.f32.vlgmr.msra.gmra.mrb[96].mxu0 %vm87_vm0, %v7074_v4 }
 0x77b   :  { %v7078_v2 = vpop.permute.xlu0 %7077  ;;  %v7076_v23 = vpop.permute.xlu1 %7075 }
 0x77c   :  { %8032 = vmatprep.mubr.msk.f32.mxu0 %vm87_vm0, %v7076_v23 }
 0x77d   :  { %8033 = vmatmul.mubr.msk.f32.gmra.mrb[98].mxu0 %vm87_vm0, %v7078_v2 }
 0x782   :  { %v7080_v59 = vpop.permute.xlu1 %7079 }
 0x783   :  { %8035 = vmatprep.mubr.msk.f32.mxu0 %vm87_vm0, %v7080_v59 }
 0x786   :  { %v7082_v51 = vpop.permute.xlu0 %7081 }
 0x787   :  { %8036 = vmatmul.mubr.msk.f32.gmra.mrb[100].mxu0 %vm87_vm0, %v7082_v51 }
 0x78e   :  { %v7086_v60 = vpop.permute.xlu0 %7085  ;;  %v7084_v46 = vpop.permute.xlu1 %7083 }
 0x78f   :  { %8038 = vmatprep.mubr.msk.f32.mxu0 %vm87_vm0, %v7084_v46 }
 0x790   :  { %8039 = vmatmul.mubr.msk.f32.gmra.mrb[102].mxu0 %vm87_vm0, %v7086_v60 }
 0x84c   :  { %v8031_v56 = vpop.f32.mrb[96].mxu0 }
 0x84d   :  { %v7175_v38 = vadd.f32 %v8031_v56, %v7452_v22  ;;  %v7169_v17 = vpop.f32.mrb[97].mxu0 }
 0x84e   :  { %v7170_v8 = vadd.f32 %v7452_v22, %v7169_v17 }
 0x84f   :  { %v7217_v40 = vadd.f32 %v7209_v29, %v7175_v38 }
 0x850   :  { %v7216_v1 = vadd.f32 %v7208_v20, %v7170_v8  ;;  %v8034_v18 = vpop.f32.mrb[98].mxu0 }
 0x851   :  { %v7225_v39 = vmax.f32 %v7217_v40, 0.0  ;;  %v7185_v0 = vadd.f32 %v8034_v18, %v7452_v22  ;;  %v7179_v3 = vpop.f32.mrb[99].mxu0 }
 0x852   :  { %v7224_v49 = vmax.f32 %v7216_v1, 0.0  ;;  %v7180_v5 = vadd.f32 %v7452_v22, %v7179_v3 }
 0x853   :  { %7233 = vst.msk [vmem:[%s14845_s21 + $0x8] sm:$0xff] %vm87_vm0, %v7225_v39  ;;  %v7219_v28 = vadd.f32 %v7211_v24, %v7185_v0 }
 0x854   :  { %7232 = vst.msk [vmem:[%s14845_s21] sm:$0xff] %vm87_vm0, %v7224_v49  ;;  %v7218_v13 = vadd.f32 %v7210_v63, %v7180_v5 }
 0x855   :  { %v7227_v31 = vmax.f32 %v7219_v28, 0.0 }
 0x856   :  { %v7226_v35 = vmax.f32 %v7218_v13, 0.0 }
 0x857   :  { %7235 = vst.msk [vmem:[%s14845_s21 + $0x18] sm:$0xff] %vm87_vm0, %v7227_v31 }
 0x858   :  { %7234 = vst.msk [vmem:[%s14845_s21 + $0x10] sm:$0xff] %vm87_vm0, %v7226_v35 }
 0x85a   :  { %v8037_v27 = vpop.f32.mrb[100].mxu0 }
 0x85b   :  { %v7195_v19 = vadd.f32 %v8037_v27, %v7452_v22  ;;  %v7189_v9 = vpop.f32.mrb[101].mxu0 }
 0x85c   :  { %v7190_v21 = vadd.f32 %v7452_v22, %v7189_v9 }
 0x85d   :  { %v7221_v50 = vadd.f32 %v7213_v52, %v7195_v19 }
 0x85e   :  { %v7220_v53 = vadd.f32 %v7212_v11, %v7190_v21 }
 0x85f   :  { %v7229_v6 = vmax.f32 %v7221_v50, 0.0 }
 0x860   :  { %v7228_v32 = vmax.f32 %v7220_v53, 0.0 }
 0x861   :  { %7237 = vst.msk [vmem:[%s14845_s21 + $0x28] sm:$0xff] %vm87_vm0, %v7229_v6 }
 0x862   :  { %7236 = vst.msk [vmem:[%s14845_s21 + $0x20] sm:$0xff] %vm87_vm0, %v7228_v32 }
 0x863   :  { %v8040_v61 = vpop.f32.mrb[102].mxu0 }
 0x864   :  { %v7205_v42 = vadd.f32 %v8040_v61, %v7452_v22  ;;  %v7199_v14 = vpop.f32.mrb[103].mxu0 }
 0x865   :  { %v7200_v55 = vadd.f32 %v7452_v22, %v7199_v14 }
 0x866   :  { %v7223_v44 = vadd.f32 %v7215_v25, %v7205_v42 }
 0x867   :  { %v7222_v33 = vadd.f32 %v7214_v43, %v7200_v55 }
 0x868   :  { %v7231_v7 = vmax.f32 %v7223_v44, 0.0 }
 0x869   :  { %v7230_v12 = vmax.f32 %v7222_v33, 0.0 }
 0x86a   :  { %7239 = vst.msk [vmem:[%s14845_s21 + $0x38] sm:$0xff] %vm87_vm0, %v7231_v7 }
 0x86b   :  { %7238 = vst.msk [vmem:[%s14845_s21 + $0x30] sm:$0xff] %vm87_vm0, %v7230_v12 }

</bundles_post_ra>
